<compile_context>
chip_gen: v6e
topology: v6e:2x2x1
jax: 0.10.0
libtpu: 0.0.40
codegen_flags: <defaults>
</compile_context>

<pallas_src>
import functools

import jax
import jax.numpy as jnp
from jax.experimental import pallas as pl
from jax.experimental.pallas import tpu as pltpu


def _round_up(x, m):
    return ((x + m - 1) // m) * m


# ---------------------------------------------------------------------------
# Pallas kernel: encoder -> (mu | logvar) -> decoder, fully fused.
# All matmuls hit the MXU (activations cast to the weight dtype right before
# each dot, accumulation in f32); bias-add + ReLU are f32 VPU elementwise ops
# on resident VMEM tiles.  BatchNorm is already folded into the weights.
# ---------------------------------------------------------------------------
def multvae_kernel(
    x_ref,
    w1_ref, b1_ref,          # encoder layer 1 (Linear with BN folded in)
    w2_ref, b2_ref,          # encoder layer 2 (Linear with BN folded in)
    wmv_ref, bmv_ref,        # fc_mu ++ fc_var merged, lane-padded -> [h1, 2*lat_pad]
    wd1_ref, bd1_ref,        # decoder layer 1 (Linear with BN folded in)
    wd2_ref, bd2_ref,        # decoder layer 2 (Linear with BN folded in)
    wo_ref, bo_ref,          # final decoder Linear
    recon_ref, mulv_ref,
    *, z_width,
):
    def mm(a, w_ref, b_ref):
        return jnp.dot(a.astype(w_ref.dtype), w_ref[...],
                       preferred_element_type=jnp.float32) + b_ref[...]

    x = x_ref[...]

    # ---- encoder (Dropout = identity in eval) ----
    h = jnp.maximum(mm(x, w1_ref, b1_ref), 0.0)
    h = jnp.maximum(mm(h, w2_ref, b2_ref), 0.0)

    # ---- fc_mu & fc_var as one lane-dense matmul: [mu | pad | logvar | pad] ----
    mulv = mm(h, wmv_ref, bmv_ref)

    # ---- reparameterize (eval mode: z = mu); slice is lane-aligned (z_width % 128 == 0) ----
    z = mulv[:, :z_width]

    # ---- decoder ----
    d = jnp.maximum(mm(z, wd1_ref, bd1_ref), 0.0)
    d = jnp.maximum(mm(d, wd2_ref, bd2_ref), 0.0)
    recon = mm(d, wo_ref, bo_ref)

    recon_ref[...] = recon.astype(recon_ref.dtype)
    mulv_ref[...] = mulv.astype(mulv_ref.dtype)


# ---------------------------------------------------------------------------
# Parameter init (matches the PyTorch module's parameter shapes/init values).
# ---------------------------------------------------------------------------
def init_params(key, input_dim, hidden_dims=(600, 200), latent_dim=100):
    params = {}

    def linear(key, d_in, d_out):
        kw, kb = jax.random.split(key)
        bound = 1.0 / jnp.sqrt(d_in)
        w = jax.random.uniform(kw, (d_out, d_in), jnp.float32, -bound, bound)  # (out, in)
        b = jax.random.uniform(kb, (d_out,), jnp.float32, -bound, bound)
        return w, b

    def bn(d):
        # gamma, beta, running_mean, running_var at their PyTorch init values.
        return (jnp.ones((d,), jnp.float32), jnp.zeros((d,), jnp.float32),
                jnp.zeros((d,), jnp.float32), jnp.ones((d,), jnp.float32))

    keys = jax.random.split(key, 7)
    h0, h1 = hidden_dims
    params["enc1"] = linear(keys[0], input_dim, h0) + bn(h0)
    params["enc2"] = linear(keys[1], h0, h1) + bn(h1)
    params["fc_mu"] = linear(keys[2], h1, latent_dim)
    params["fc_var"] = linear(keys[3], h1, latent_dim)
    params["dec1"] = linear(keys[4], latent_dim, h1) + bn(h1)
    params["dec2"] = linear(keys[5], h1, h0) + bn(h0)
    params["dec_out"] = linear(keys[6], h0, input_dim)
    return params


# ---------------------------------------------------------------------------
# Parameter prep: fold eval-mode BatchNorm into the Linear, pre-transpose.
# ---------------------------------------------------------------------------
def _fold_bn_into_linear(w, b, gamma, beta, rmean, rvar, eps=1e-5):
    """BN(x @ W.T + b) == x @ (W.T * s) + (b*s + t).  Returns ([in,out], [1,out])."""
    s = gamma / jnp.sqrt(rvar + eps)
    t = beta - rmean * s
    return w.T * s[None, :], (b * s + t)[None, :]


def _prep_linear(w, b):
    return w.T, b[None, :]


# ---------------------------------------------------------------------------
# Generation-aware helpers.
# ---------------------------------------------------------------------------
def _num_tensorcores_per_chip():
    try:
        kind = jax.devices()[0].device_kind.lower()
        if "v7" in kind:
            return 2
    except Exception:
        pass
    return 1


def _vmem_capacity_bytes():
    try:
        return int(pltpu.get_tpu_info().vmem_capacity_bytes)
    except Exception:
        return 64 << 20   # conservative (v7x per-TC size)


def _pick_block_b(batch, num_tc):
    b8 = _round_up(max(int(batch), 1), 8)
    if num_tc <= 1:
        # v5e / v6e (single TensorCore): fewest grid steps wins.
        return min(b8, 256)
    # v7x (2 TensorCores): split the batch into (an even number of) steps.
    half = _round_up(pl.cdiv(b8, 2), 8)
    return min(half, 256)


# ---------------------------------------------------------------------------
# Wrapper: BN folding, mu/var merge, lane/batch padding, pallas_call.
# ---------------------------------------------------------------------------
def multvae_forward(x, params, *, block_b=None,
                    compute_dtype=jnp.bfloat16, out_dtype=jnp.float32):
    batch, input_dim = x.shape
    h0 = params["enc1"][0].shape[0]
    h1 = params["enc2"][0].shape[0]
    latent_dim = params["fc_mu"][0].shape[0]

    num_tc = _num_tensorcores_per_chip()
    if block_b is None:
        block_b = _pick_block_b(batch, num_tc)

    # --- padding so every DMA and store is unmasked / lane-dense ---
    d_pad = _round_up(input_dim, 128)          # item-count axis
    lat_pad = _round_up(latent_dim, 128)       # per-half width of merged mu|logvar
    b_pad = _round_up(batch, block_b)

    f32 = jnp.float32

    # --- fold eval-mode BN into the Linears, pre-transpose to [in, out] ---
    w1, b1 = _fold_bn_into_linear(*params["enc1"])     # [input_dim, h0]
    w2, b2 = _fold_bn_into_linear(*params["enc2"])     # [h0, h1]
    wm, bm = _prep_linear(*params["fc_mu"])            # [h1, latent]
    wv, bv = _prep_linear(*params["fc_var"])           # [h1, latent]
    wd1, bd1 = _fold_bn_into_linear(*params["dec1"])   # [latent, h1]
    wd2, bd2 = _fold_bn_into_linear(*params["dec2"])   # [h1, h0]
    wo, bo = _prep_linear(*params["dec_out"])          # [h0, input_dim]

    # Merge fc_mu / fc_var into one lane-dense [h1, 2*lat_pad] matmul:
    # columns [0:latent) -> mu, [lat_pad:lat_pad+latent) -> logvar, rest zero.
    wmv = jnp.zeros((h1, 2 * lat_pad), f32)
    wmv = wmv.at[:, :latent_dim].set(wm).at[:, lat_pad:lat_pad + latent_dim].set(wv)
    bmv = jnp.zeros((1, 2 * lat_pad), f32)
    bmv = bmv.at[:, :latent_dim].set(bm).at[:, lat_pad:lat_pad + latent_dim].set(bv)

    # Zero-pad the latent axis of the first decoder layer (padded z cols are 0).
    wd1 = jnp.zeros((lat_pad, h1), f32).at[:latent_dim, :].set(wd1)

    # Zero-pad the item axis of the first / last layers and bias.
    w1 = jnp.zeros((d_pad, h0), f32).at[:input_dim, :].set(w1)
    wo = jnp.zeros((h0, d_pad), f32).at[:, :input_dim].set(wo)
    bo = jnp.zeros((1, d_pad), f32).at[:, :input_dim].set(bo)

    # Zero-pad the batch axis.
    x_p = jnp.zeros((b_pad, d_pad), f32).at[:batch, :input_dim].set(x)

    # Low-precision compute for x and the weight matrices; biases stay f32,
    # accumulation is f32 via preferred_element_type inside the kernel.
    cast = lambda a: a.astype(compute_dtype)
    x_c = cast(x_p)
    w1, w2, wmv, wd1, wd2, wo = map(cast, (w1, w2, wmv, wd1, wd2, wo))

    args = (x_c, w1, b1, w2, b2, wmv, bmv, wd1, bd1, wd2, bd2, wo, bo)
    nbytes = lambda a: int(a.size) * a.dtype.itemsize
    weight_bytes = sum(nbytes(a) for a in args[1:])
    out_itemsize = jnp.dtype(out_dtype).itemsize

    grid = (b_pad // block_b,)
    out_shape = (jax.ShapeDtypeStruct((b_pad, d_pad), out_dtype),
                 jax.ShapeDtypeStruct((b_pad, 2 * lat_pad), out_dtype))

    flops = 2 * b_pad * (d_pad * h0 + h0 * h1 + h1 * 2 * lat_pad
                         + lat_pad * h1 + h1 * h0 + h0 * d_pad)
    io_bytes = (nbytes(x_c) + weight_bytes
                + b_pad * (d_pad + 2 * lat_pad) * out_itemsize)

    kernel = functools.partial(multvae_kernel, z_width=lat_pad)

    def run(single_buffer_weights):
        def batch_spec(cols):
            return pl.BlockSpec((block_b, cols), lambda i: (i, 0))

        def const_spec(shape):
            kwargs = {}
            if single_buffer_weights:
                # index_map is constant across the grid -> one buffer is enough.
                kwargs["pipeline_mode"] = pl.Buffered(1)
            return pl.BlockSpec(shape, lambda i: (0,) * len(shape), **kwargs)

        in_specs = [batch_spec(d_pad)] + [const_spec(a.shape) for a in args[1:]]
        out_specs = (batch_spec(d_pad), batch_spec(2 * lat_pad))

        weight_mult = 1 if single_buffer_weights else 2
        tile_bytes = block_b * (d_pad * x_c.dtype.itemsize
                                + (d_pad + 2 * lat_pad) * out_itemsize)
        need = weight_mult * weight_bytes + 2 * tile_bytes + (8 << 20)
        budget = max(_vmem_capacity_bytes() - (16 << 20), 24 << 20)
        vmem_limit = int(min(max(need, 32 << 20), budget))

        return pl.pallas_call(
            kernel,
            out_shape=out_shape,
            grid_spec=pltpu.PrefetchScalarGridSpec(
                num_scalar_prefetch=0,
                grid=grid,
                in_specs=in_specs,
                out_specs=out_specs,
            ),
            compiler_params=pltpu.CompilerParams(
                dimension_semantics=("parallel",),
                vmem_limit_bytes=vmem_limit,
            ),
            cost_estimate=pl.CostEstimate(
                flops=flops, transcendentals=0, bytes_accessed=io_bytes),
        )(*args)

    try:
        recon_p, mulv_p = run(single_buffer_weights=True)
    except Exception:
        # pipeline_mode=pl.Buffered(1) unavailable on this jax version: fall back
        # to the default (double-buffered) weight specs.
        recon_p, mulv_p = run(single_buffer_weights=False)

    recon = recon_p[:batch, :input_dim]
    mu = mulv_p[:batch, :latent_dim]
    logvar = mulv_p[:batch, lat_pad:lat_pad + latent_dim]
    return recon, mu, logvar


# ---------------------------------------------------------------------------
# Pure-JAX reference (eval-mode forward, BN NOT folded), for correctness.
# ---------------------------------------------------------------------------
def reference_forward(x, params):
    def lin(h, w, b):
        return h @ w.T + b

    def bn(h, gamma, beta, rmean, rvar, eps=1e-5):
        return (h - rmean) / jnp.sqrt(rvar + eps) * gamma + beta

    w, b, g, be, rm, rv = params["enc1"]
    h = jnp.maximum(bn(lin(x, w, b), g, be, rm, rv), 0.0)
    w, b, g, be, rm, rv = params["enc2"]
    h = jnp.maximum(bn(lin(h, w, b), g, be, rm, rv), 0.0)

    mu = lin(h, *params["fc_mu"])
    logvar = lin(h, *params["fc_var"])
    z = mu

    w, b, g, be, rm, rv = params["dec1"]
    d = jnp.maximum(bn(lin(z, w, b), g, be, rm, rv), 0.0)
    w, b, g, be, rm, rv = params["dec2"]
    d = jnp.maximum(bn(lin(d, w, b), g, be, rm, rv), 0.0)
    recon = lin(d, *params["dec_out"])
    return recon, mu, logvar


def _max_rel_err(a, b):
    scale = jnp.maximum(jnp.max(jnp.abs(b)), 1.0)
    return float(jnp.max(jnp.abs(a - b)) / scale)


if __name__ == "__main__":
    key = jax.random.PRNGKey(0)
    k_param, k_x = jax.random.split(key)

    # Small shapes consistent with the module defaults; deliberately not
    # multiples of 128/8 so the padding paths are exercised.
    batch = 50
    input_dim = 300
    hidden_dims = (600, 200)
    latent_dim = 100

    params = init_params(k_param, input_dim, hidden_dims, latent_dim)
    # MultVAE input is typically a non-negative interaction/count vector.
    x = jax.random.uniform(k_x, (batch, input_dim), jnp.float32)

    ref_recon, ref_mu, ref_lv = reference_forward(x, params)

    # --- f32 compute path: tight check of the math (BN fold, merge, padding) ---
    recon, mu, logvar = multvae_forward(x, params, compute_dtype=jnp.float32)
    jax.block_until_ready((recon, mu, logvar))
    assert _max_rel_err(recon, ref_recon) < 1e-3
    assert _max_rel_err(mu, ref_mu) < 1e-3
    assert _max_rel_err(logvar, ref_lv) < 1e-3

    # --- default bf16 compute path: relaxed tolerances vs. f32 reference ---
    recon_bf, mu_bf, logvar_bf = multvae_forward(x, params)
    jax.block_until_ready((recon_bf, mu_bf, logvar_bf))
    assert _max_rel_err(recon_bf, ref_recon) < 5e-2
    assert _max_rel_err(mu_bf, ref_mu) < 5e-2
    assert _max_rel_err(logvar_bf, ref_lv) < 5e-2

    print("KERNEL_OK")
</pallas_src>

<mosaic_0001>
module attributes {stable_mosaic.version = 11 : i64} {
  func.func @multvae_kernel(%arg0: i32, %arg1: memref<56x384xf32, #tpu.memory_space<vmem>>, %arg2: memref<384x600xf32, #tpu.memory_space<vmem>>, %arg3: memref<1x600xf32, #tpu.memory_space<vmem>>, %arg4: memref<600x200xf32, #tpu.memory_space<vmem>>, %arg5: memref<1x200xf32, #tpu.memory_space<vmem>>, %arg6: memref<200x256xf32, #tpu.memory_space<vmem>>, %arg7: memref<1x256xf32, #tpu.memory_space<vmem>>, %arg8: memref<128x200xf32, #tpu.memory_space<vmem>>, %arg9: memref<1x200xf32, #tpu.memory_space<vmem>>, %arg10: memref<200x600xf32, #tpu.memory_space<vmem>>, %arg11: memref<1x600xf32, #tpu.memory_space<vmem>>, %arg12: memref<600x384xf32, #tpu.memory_space<vmem>>, %arg13: memref<1x384xf32, #tpu.memory_space<vmem>>, %arg14: memref<56x384xf32, #tpu.memory_space<vmem>>, %arg15: memref<56x256xf32, #tpu.memory_space<vmem>>) attributes {dimension_semantics = [#tpu.dimension_semantics<parallel>], iteration_bounds = array<i64: 1>, scalar_prefetch = 0 : i64, scratch_operands = 0 : i64, tpu.core_type = #tpu.core_type<tc>, window_params = [{transform_indices = @transform_0, window_bounds = array<i64: 56, 384>}, {pipeline_mode = #tpu.pipeline_mode<synchronous>, transform_indices = @transform_1, window_bounds = array<i64: 384, 600>}, {pipeline_mode = #tpu.pipeline_mode<synchronous>, transform_indices = @transform_2, window_bounds = array<i64: 1, 600>}, {pipeline_mode = #tpu.pipeline_mode<synchronous>, transform_indices = @transform_3, window_bounds = array<i64: 600, 200>}, {pipeline_mode = #tpu.pipeline_mode<synchronous>, transform_indices = @transform_4, window_bounds = array<i64: 1, 200>}, {pipeline_mode = #tpu.pipeline_mode<synchronous>, transform_indices = @transform_5, window_bounds = array<i64: 200, 256>}, {pipeline_mode = #tpu.pipeline_mode<synchronous>, transform_indices = @transform_6, window_bounds = array<i64: 1, 256>}, {pipeline_mode = #tpu.pipeline_mode<synchronous>, transform_indices = @transform_7, window_bounds = array<i64: 128, 200>}, {pipeline_mode = #tpu.pipeline_mode<synchronous>, transform_indices = @transform_8, window_bounds = array<i64: 1, 200>}, {pipeline_mode = #tpu.pipeline_mode<synchronous>, transform_indices = @transform_9, window_bounds = array<i64: 200, 600>}, {pipeline_mode = #tpu.pipeline_mode<synchronous>, transform_indices = @transform_10, window_bounds = array<i64: 1, 600>}, {pipeline_mode = #tpu.pipeline_mode<synchronous>, transform_indices = @transform_11, window_bounds = array<i64: 600, 384>}, {pipeline_mode = #tpu.pipeline_mode<synchronous>, transform_indices = @transform_12, window_bounds = array<i64: 1, 384>}, {transform_indices = @transform_13, window_bounds = array<i64: 56, 384>}, {transform_indices = @transform_14, window_bounds = array<i64: 56, 256>}]} {
    %c0 = arith.constant 0 : index
    %c0_0 = arith.constant 0 : index
    %0 = vector.load %arg1[%c0, %c0_0] : memref<56x384xf32, #tpu.memory_space<vmem>>, vector<56x384xf32>
    %c0_1 = arith.constant 0 : index
    %c0_2 = arith.constant 0 : index
    %1 = vector.load %arg2[%c0_1, %c0_2] : memref<384x600xf32, #tpu.memory_space<vmem>>, vector<384x600xf32>
    %cst = arith.constant dense<0.000000e+00> : vector<56x600xf32>
    %2 = tpu.matmul %0, %1, %cst {dimension_numbers = #tpu.dot_dimension_numbers<[1], [0], [0], [1], [0, 0, 1, 1], [], []>} : vector<56x384xf32>, vector<384x600xf32>, vector<56x600xf32> -> vector<56x600xf32>
    %c0_3 = arith.constant 0 : index
    %c0_4 = arith.constant 0 : index
    %3 = vector.load %arg3[%c0_3, %c0_4] : memref<1x600xf32, #tpu.memory_space<vmem>>, vector<1x600xf32>
    %4 = vector.broadcast %3 : vector<1x600xf32> to vector<56x600xf32>
    %5 = arith.addf %2, %4 : vector<56x600xf32>
    %cst_5 = arith.constant 0.000000e+00 : f32
    %6 = vector.broadcast %cst_5 : f32 to vector<56x600xf32>
    %7 = arith.maximumf %5, %6 : vector<56x600xf32>
    %c0_6 = arith.constant 0 : index
    %c0_7 = arith.constant 0 : index
    %8 = vector.load %arg4[%c0_6, %c0_7] : memref<600x200xf32, #tpu.memory_space<vmem>>, vector<600x200xf32>
    %cst_8 = arith.constant dense<0.000000e+00> : vector<56x200xf32>
    %9 = tpu.matmul %7, %8, %cst_8 {dimension_numbers = #tpu.dot_dimension_numbers<[1], [0], [0], [1], [0, 0, 1, 1], [], []>} : vector<56x600xf32>, vector<600x200xf32>, vector<56x200xf32> -> vector<56x200xf32>
    %c0_9 = arith.constant 0 : index
    %c0_10 = arith.constant 0 : index
    %10 = vector.load %arg5[%c0_9, %c0_10] : memref<1x200xf32, #tpu.memory_space<vmem>>, vector<1x200xf32>
    %11 = vector.broadcast %10 : vector<1x200xf32> to vector<56x200xf32>
    %12 = arith.addf %9, %11 : vector<56x200xf32>
    %cst_11 = arith.constant 0.000000e+00 : f32
    %13 = vector.broadcast %cst_11 : f32 to vector<56x200xf32>
    %14 = arith.maximumf %12, %13 : vector<56x200xf32>
    %c0_12 = arith.constant 0 : index
    %c0_13 = arith.constant 0 : index
    %15 = vector.load %arg6[%c0_12, %c0_13] : memref<200x256xf32, #tpu.memory_space<vmem>>, vector<200x256xf32>
    %cst_14 = arith.constant dense<0.000000e+00> : vector<56x256xf32>
    %16 = tpu.matmul %14, %15, %cst_14 {dimension_numbers = #tpu.dot_dimension_numbers<[1], [0], [0], [1], [0, 0, 1, 1], [], []>} : vector<56x200xf32>, vector<200x256xf32>, vector<56x256xf32> -> vector<56x256xf32>
    %c0_15 = arith.constant 0 : index
    %c0_16 = arith.constant 0 : index
    %17 = vector.load %arg7[%c0_15, %c0_16] : memref<1x256xf32, #tpu.memory_space<vmem>>, vector<1x256xf32>
    %18 = vector.broadcast %17 : vector<1x256xf32> to vector<56x256xf32>
    %19 = arith.addf %16, %18 : vector<56x256xf32>
    %20 = vector.extract_strided_slice %19 {offsets = [0, 0], sizes = [56, 128], strides = [1, 1]} : vector<56x256xf32> to vector<56x128xf32>
    %c0_17 = arith.constant 0 : index
    %c0_18 = arith.constant 0 : index
    %21 = vector.load %arg8[%c0_17, %c0_18] : memref<128x200xf32, #tpu.memory_space<vmem>>, vector<128x200xf32>
    %cst_19 = arith.constant dense<0.000000e+00> : vector<56x200xf32>
    %22 = tpu.matmul %20, %21, %cst_19 {dimension_numbers = #tpu.dot_dimension_numbers<[1], [0], [0], [1], [0, 0, 1, 1], [], []>} : vector<56x128xf32>, vector<128x200xf32>, vector<56x200xf32> -> vector<56x200xf32>
    %c0_20 = arith.constant 0 : index
    %c0_21 = arith.constant 0 : index
    %23 = vector.load %arg9[%c0_20, %c0_21] : memref<1x200xf32, #tpu.memory_space<vmem>>, vector<1x200xf32>
    %24 = vector.broadcast %23 : vector<1x200xf32> to vector<56x200xf32>
    %25 = arith.addf %22, %24 : vector<56x200xf32>
    %cst_22 = arith.constant 0.000000e+00 : f32
    %26 = vector.broadcast %cst_22 : f32 to vector<56x200xf32>
    %27 = arith.maximumf %25, %26 : vector<56x200xf32>
    %c0_23 = arith.constant 0 : index
    %c0_24 = arith.constant 0 : index
    %28 = vector.load %arg10[%c0_23, %c0_24] : memref<200x600xf32, #tpu.memory_space<vmem>>, vector<200x600xf32>
    %cst_25 = arith.constant dense<0.000000e+00> : vector<56x600xf32>
    %29 = tpu.matmul %27, %28, %cst_25 {dimension_numbers = #tpu.dot_dimension_numbers<[1], [0], [0], [1], [0, 0, 1, 1], [], []>} : vector<56x200xf32>, vector<200x600xf32>, vector<56x600xf32> -> vector<56x600xf32>
    %c0_26 = arith.constant 0 : index
    %c0_27 = arith.constant 0 : index
    %30 = vector.load %arg11[%c0_26, %c0_27] : memref<1x600xf32, #tpu.memory_space<vmem>>, vector<1x600xf32>
    %31 = vector.broadcast %30 : vector<1x600xf32> to vector<56x600xf32>
    %32 = arith.addf %29, %31 : vector<56x600xf32>
    %cst_28 = arith.constant 0.000000e+00 : f32
    %33 = vector.broadcast %cst_28 : f32 to vector<56x600xf32>
    %34 = arith.maximumf %32, %33 : vector<56x600xf32>
    %c0_29 = arith.constant 0 : index
    %c0_30 = arith.constant 0 : index
    %35 = vector.load %arg12[%c0_29, %c0_30] : memref<600x384xf32, #tpu.memory_space<vmem>>, vector<600x384xf32>
    %cst_31 = arith.constant dense<0.000000e+00> : vector<56x384xf32>
    %36 = tpu.matmul %34, %35, %cst_31 {dimension_numbers = #tpu.dot_dimension_numbers<[1], [0], [0], [1], [0, 0, 1, 1], [], []>} : vector<56x600xf32>, vector<600x384xf32>, vector<56x384xf32> -> vector<56x384xf32>
    %c0_32 = arith.constant 0 : index
    %c0_33 = arith.constant 0 : index
    %37 = vector.load %arg13[%c0_32, %c0_33] : memref<1x384xf32, #tpu.memory_space<vmem>>, vector<1x384xf32>
    %38 = vector.broadcast %37 : vector<1x384xf32> to vector<56x384xf32>
    %39 = arith.addf %36, %38 : vector<56x384xf32>
    %c0_34 = arith.constant 0 : index
    %c0_35 = arith.constant 0 : index
    %40 = vector.load %arg14[%c0_34, %c0_35] : memref<56x384xf32, #tpu.memory_space<vmem>>, vector<56x384xf32>
    tpu.vector_store %arg14[%c0_34, %c0_35], %39 {strides = array<i32>} : memref<56x384xf32, #tpu.memory_space<vmem>>, vector<56x384xf32>,
    %c0_36 = arith.constant 0 : index
    %c0_37 = arith.constant 0 : index
    %41 = vector.load %arg15[%c0_36, %c0_37] : memref<56x256xf32, #tpu.memory_space<vmem>>, vector<56x256xf32>
    tpu.vector_store %arg15[%c0_36, %c0_37], %19 {strides = array<i32>} : memref<56x256xf32, #tpu.memory_space<vmem>>, vector<56x256xf32>,
    return
  }
  func.func @transform_0(%arg0: i32) -> (i32, i32) {
    %c0_i32 = arith.constant 0 : i32
    %c0_i32_0 = arith.constant 0 : i32
    return %arg0, %c0_i32 : i32, i32
  }
  func.func @transform_1(%arg0: i32) -> (i32, i32) {
    %c0_i32 = arith.constant 0 : i32
    %c0_i32_0 = arith.constant 0 : i32
    %c0_i32_1 = arith.constant 0 : i32
    return %c0_i32, %c0_i32_0 : i32, i32
  }
  func.func @transform_2(%arg0: i32) -> (i32, i32) {
    %c0_i32 = arith.constant 0 : i32
    %c0_i32_0 = arith.constant 0 : i32
    %c0_i32_1 = arith.constant 0 : i32
    return %c0_i32, %c0_i32_0 : i32, i32
  }
  func.func @transform_3(%arg0: i32) -> (i32, i32) {
    %c0_i32 = arith.constant 0 : i32
    %c0_i32_0 = arith.constant 0 : i32
    %c0_i32_1 = arith.constant 0 : i32
    return %c0_i32, %c0_i32_0 : i32, i32
  }
  func.func @transform_4(%arg0: i32) -> (i32, i32) {
    %c0_i32 = arith.constant 0 : i32
    %c0_i32_0 = arith.constant 0 : i32
    %c0_i32_1 = arith.constant 0 : i32
    return %c0_i32, %c0_i32_0 : i32, i32
  }
  func.func @transform_5(%arg0: i32) -> (i32, i32) {
    %c0_i32 = arith.constant 0 : i32
    %c0_i32_0 = arith.constant 0 : i32
    %c0_i32_1 = arith.constant 0 : i32
    return %c0_i32, %c0_i32_0 : i32, i32
  }
  func.func @transform_6(%arg0: i32) -> (i32, i32) {
    %c0_i32 = arith.constant 0 : i32
    %c0_i32_0 = arith.constant 0 : i32
    %c0_i32_1 = arith.constant 0 : i32
    return %c0_i32, %c0_i32_0 : i32, i32
  }
  func.func @transform_7(%arg0: i32) -> (i32, i32) {
    %c0_i32 = arith.constant 0 : i32
    %c0_i32_0 = arith.constant 0 : i32
    %c0_i32_1 = arith.constant 0 : i32
    return %c0_i32, %c0_i32_0 : i32, i32
  }
  func.func @transform_8(%arg0: i32) -> (i32, i32) {
    %c0_i32 = arith.constant 0 : i32
    %c0_i32_0 = arith.constant 0 : i32
    %c0_i32_1 = arith.constant 0 : i32
    return %c0_i32, %c0_i32_0 : i32, i32
  }
  func.func @transform_9(%arg0: i32) -> (i32, i32) {
    %c0_i32 = arith.constant 0 : i32
    %c0_i32_0 = arith.constant 0 : i32
    %c0_i32_1 = arith.constant 0 : i32
    return %c0_i32, %c0_i32_0 : i32, i32
  }
  func.func @transform_10(%arg0: i32) -> (i32, i32) {
    %c0_i32 = arith.constant 0 : i32
    %c0_i32_0 = arith.constant 0 : i32
    %c0_i32_1 = arith.constant 0 : i32
    return %c0_i32, %c0_i32_0 : i32, i32
  }
  func.func @transform_11(%arg0: i32) -> (i32, i32) {
    %c0_i32 = arith.constant 0 : i32
    %c0_i32_0 = arith.constant 0 : i32
    %c0_i32_1 = arith.constant 0 : i32
    return %c0_i32, %c0_i32_0 : i32, i32
  }
  func.func @transform_12(%arg0: i32) -> (i32, i32) {
    %c0_i32 = arith.constant 0 : i32
    %c0_i32_0 = arith.constant 0 : i32
    %c0_i32_1 = arith.constant 0 : i32
    return %c0_i32, %c0_i32_0 : i32, i32
  }
  func.func @transform_13(%arg0: i32) -> (i32, i32) {
    %c0_i32 = arith.constant 0 : i32
    %c0_i32_0 = arith.constant 0 : i32
    return %arg0, %c0_i32 : i32, i32
  }
  func.func @transform_14(%arg0: i32) -> (i32, i32) {
    %c0_i32 = arith.constant 0 : i32
    %c0_i32_0 = arith.constant 0 : i32
    return %arg0, %c0_i32 : i32, i32
  }
}

module attributes {stable_mosaic.version = 11 : i64} {
  func.func @multvae_kernel(%arg0: i32, %arg1: memref<56x384xf32, #tpu.memory_space<vmem>>, %arg2: memref<384x600xf32, #tpu.memory_space<vmem>>, %arg3: memref<1x600xf32, #tpu.memory_space<vmem>>, %arg4: memref<600x200xf32, #tpu.memory_space<vmem>>, %arg5: memref<1x200xf32, #tpu.memory_space<vmem>>, %arg6: memref<200x256xf32, #tpu.memory_space<vmem>>, %arg7: memref<1x256xf32, #tpu.memory_space<vmem>>, %arg8: memref<128x200xf32, #tpu.memory_space<vmem>>, %arg9: memref<1x200xf32, #tpu.memory_space<vmem>>, %arg10: memref<200x600xf32, #tpu.memory_space<vmem>>, %arg11: memref<1x600xf32, #tpu.memory_space<vmem>>, %arg12: memref<600x384xf32, #tpu.memory_space<vmem>>, %arg13: memref<1x384xf32, #tpu.memory_space<vmem>>, %arg14: memref<56x384xf32, #tpu.memory_space<vmem>>, %arg15: memref<56x256xf32, #tpu.memory_space<vmem>>) attributes {dimension_semantics = [#tpu.dimension_semantics<parallel>], iteration_bounds = array<i64: 1>, scalar_prefetch = 0 : i64, scratch_operands = 0 : i64, tpu.core_type = #tpu.core_type<tc>, window_params = [{transform_indices = @transform_0, window_bounds = array<i64: 56, 384>}, {pipeline_mode = #tpu.pipeline_mode<synchronous>, transform_indices = @transform_1, window_bounds = array<i64: 384, 600>}, {pipeline_mode = #tpu.pipeline_mode<synchronous>, transform_indices = @transform_2, window_bounds = array<i64: 1, 600>}, {pipeline_mode = #tpu.pipeline_mode<synchronous>, transform_indices = @transform_3, window_bounds = array<i64: 600, 200>}, {pipeline_mode = #tpu.pipeline_mode<synchronous>, transform_indices = @transform_4, window_bounds = array<i64: 1, 200>}, {pipeline_mode = #tpu.pipeline_mode<synchronous>, transform_indices = @transform_5, window_bounds = array<i64: 200, 256>}, {pipeline_mode = #tpu.pipeline_mode<synchronous>, transform_indices = @transform_6, window_bounds = array<i64: 1, 256>}, {pipeline_mode = #tpu.pipeline_mode<synchronous>, transform_indices = @transform_7, window_bounds = array<i64: 128, 200>}, {pipeline_mode = #tpu.pipeline_mode<synchronous>, transform_indices = @transform_8, window_bounds = array<i64: 1, 200>}, {pipeline_mode = #tpu.pipeline_mode<synchronous>, transform_indices = @transform_9, window_bounds = array<i64: 200, 600>}, {pipeline_mode = #tpu.pipeline_mode<synchronous>, transform_indices = @transform_10, window_bounds = array<i64: 1, 600>}, {pipeline_mode = #tpu.pipeline_mode<synchronous>, transform_indices = @transform_11, window_bounds = array<i64: 600, 384>}, {pipeline_mode = #tpu.pipeline_mode<synchronous>, transform_indices = @transform_12, window_bounds = array<i64: 1, 384>}, {transform_indices = @transform_13, window_bounds = array<i64: 56, 384>}, {transform_indices = @transform_14, window_bounds = array<i64: 56, 256>}]} {
    %c0 = arith.constant 0 : index
    %c0_0 = arith.constant 0 : index
    %0 = vector.load %arg1[%c0, %c0_0] : memref<56x384xf32, #tpu.memory_space<vmem>>, vector<56x384xf32>
    %c0_1 = arith.constant 0 : index
    %c0_2 = arith.constant 0 : index
    %1 = vector.load %arg2[%c0_1, %c0_2] : memref<384x600xf32, #tpu.memory_space<vmem>>, vector<384x600xf32>
    %cst = arith.constant dense<0.000000e+00> : vector<56x600xf32>
    %2 = tpu.matmul %0, %1, %cst {dimension_numbers = #tpu.dot_dimension_numbers<[1], [0], [0], [1], [0, 0, 1, 1], [], []>} : vector<56x384xf32>, vector<384x600xf32>, vector<56x600xf32> -> vector<56x600xf32>
    %c0_3 = arith.constant 0 : index
    %c0_4 = arith.constant 0 : index
    %3 = vector.load %arg3[%c0_3, %c0_4] : memref<1x600xf32, #tpu.memory_space<vmem>>, vector<1x600xf32>
    %4 = vector.broadcast %3 : vector<1x600xf32> to vector<56x600xf32>
    %5 = arith.addf %2, %4 : vector<56x600xf32>
    %cst_5 = arith.constant 0.000000e+00 : f32
    %6 = vector.broadcast %cst_5 : f32 to vector<56x600xf32>
    %7 = arith.maximumf %5, %6 : vector<56x600xf32>
    %c0_6 = arith.constant 0 : index
    %c0_7 = arith.constant 0 : index
    %8 = vector.load %arg4[%c0_6, %c0_7] : memref<600x200xf32, #tpu.memory_space<vmem>>, vector<600x200xf32>
    %cst_8 = arith.constant dense<0.000000e+00> : vector<56x200xf32>
    %9 = tpu.matmul %7, %8, %cst_8 {dimension_numbers = #tpu.dot_dimension_numbers<[1], [0], [0], [1], [0, 0, 1, 1], [], []>} : vector<56x600xf32>, vector<600x200xf32>, vector<56x200xf32> -> vector<56x200xf32>
    %c0_9 = arith.constant 0 : index
    %c0_10 = arith.constant 0 : index
    %10 = vector.load %arg5[%c0_9, %c0_10] : memref<1x200xf32, #tpu.memory_space<vmem>>, vector<1x200xf32>
    %11 = vector.broadcast %10 : vector<1x200xf32> to vector<56x200xf32>
    %12 = arith.addf %9, %11 : vector<56x200xf32>
    %cst_11 = arith.constant 0.000000e+00 : f32
    %13 = vector.broadcast %cst_11 : f32 to vector<56x200xf32>
    %14 = arith.maximumf %12, %13 : vector<56x200xf32>
    %c0_12 = arith.constant 0 : index
    %c0_13 = arith.constant 0 : index
    %15 = vector.load %arg6[%c0_12, %c0_13] : memref<200x256xf32, #tpu.memory_space<vmem>>, vector<200x256xf32>
    %cst_14 = arith.constant dense<0.000000e+00> : vector<56x256xf32>
    %16 = tpu.matmul %14, %15, %cst_14 {dimension_numbers = #tpu.dot_dimension_numbers<[1], [0], [0], [1], [0, 0, 1, 1], [], []>} : vector<56x200xf32>, vector<200x256xf32>, vector<56x256xf32> -> vector<56x256xf32>
    %c0_15 = arith.constant 0 : index
    %c0_16 = arith.constant 0 : index
    %17 = vector.load %arg7[%c0_15, %c0_16] : memref<1x256xf32, #tpu.memory_space<vmem>>, vector<1x256xf32>
    %18 = vector.broadcast %17 : vector<1x256xf32> to vector<56x256xf32>
    %19 = arith.addf %16, %18 : vector<56x256xf32>
    %20 = vector.extract_strided_slice %19 {offsets = [0, 0], sizes = [56, 128], strides = [1, 1]} : vector<56x256xf32> to vector<56x128xf32>
    %c0_17 = arith.constant 0 : index
    %c0_18 = arith.constant 0 : index
    %21 = vector.load %arg8[%c0_17, %c0_18] : memref<128x200xf32, #tpu.memory_space<vmem>>, vector<128x200xf32>
    %cst_19 = arith.constant dense<0.000000e+00> : vector<56x200xf32>
    %22 = tpu.matmul %20, %21, %cst_19 {dimension_numbers = #tpu.dot_dimension_numbers<[1], [0], [0], [1], [0, 0, 1, 1], [], []>} : vector<56x128xf32>, vector<128x200xf32>, vector<56x200xf32> -> vector<56x200xf32>
    %c0_20 = arith.constant 0 : index
    %c0_21 = arith.constant 0 : index
    %23 = vector.load %arg9[%c0_20, %c0_21] : memref<1x200xf32, #tpu.memory_space<vmem>>, vector<1x200xf32>
    %24 = vector.broadcast %23 : vector<1x200xf32> to vector<56x200xf32>
    %25 = arith.addf %22, %24 : vector<56x200xf32>
    %cst_22 = arith.constant 0.000000e+00 : f32
    %26 = vector.broadcast %cst_22 : f32 to vector<56x200xf32>
    %27 = arith.maximumf %25, %26 : vector<56x200xf32>
    %c0_23 = arith.constant 0 : index
    %c0_24 = arith.constant 0 : index
    %28 = vector.load %arg10[%c0_23, %c0_24] : memref<200x600xf32, #tpu.memory_space<vmem>>, vector<200x600xf32>
    %cst_25 = arith.constant dense<0.000000e+00> : vector<56x600xf32>
    %29 = tpu.matmul %27, %28, %cst_25 {dimension_numbers = #tpu.dot_dimension_numbers<[1], [0], [0], [1], [0, 0, 1, 1], [], []>} : vector<56x200xf32>, vector<200x600xf32>, vector<56x600xf32> -> vector<56x600xf32>
    %c0_26 = arith.constant 0 : index
    %c0_27 = arith.constant 0 : index
    %30 = vector.load %arg11[%c0_26, %c0_27] : memref<1x600xf32, #tpu.memory_space<vmem>>, vector<1x600xf32>
    %31 = vector.broadcast %30 : vector<1x600xf32> to vector<56x600xf32>
    %32 = arith.addf %29, %31 : vector<56x600xf32>
    %cst_28 = arith.constant 0.000000e+00 : f32
    %33 = vector.broadcast %cst_28 : f32 to vector<56x600xf32>
    %34 = arith.maximumf %32, %33 : vector<56x600xf32>
    %c0_29 = arith.constant 0 : index
    %c0_30 = arith.constant 0 : index
    %35 = vector.load %arg12[%c0_29, %c0_30] : memref<600x384xf32, #tpu.memory_space<vmem>>, vector<600x384xf32>
    %cst_31 = arith.constant dense<0.000000e+00> : vector<56x384xf32>
    %36 = tpu.matmul %34, %35, %cst_31 {dimension_numbers = #tpu.dot_dimension_numbers<[1], [0], [0], [1], [0, 0, 1, 1], [], []>} : vector<56x600xf32>, vector<600x384xf32>, vector<56x384xf32> -> vector<56x384xf32>
    %c0_32 = arith.constant 0 : index
    %c0_33 = arith.constant 0 : index
    %37 = vector.load %arg13[%c0_32, %c0_33] : memref<1x384xf32, #tpu.memory_space<vmem>>, vector<1x384xf32>
    %38 = vector.broadcast %37 : vector<1x384xf32> to vector<56x384xf32>
    %39 = arith.addf %36, %38 : vector<56x384xf32>
    %c0_34 = arith.constant 0 : index
    %c0_35 = arith.constant 0 : index
    %40 = vector.load %arg14[%c0_34, %c0_35] : memref<56x384xf32, #tpu.memory_space<vmem>>, vector<56x384xf32>
    tpu.vector_store %arg14[%c0_34, %c0_35], %39 {strides = array<i32>} : memref<56x384xf32, #tpu.memory_space<vmem>>, vector<56x384xf32>,
    %c0_36 = arith.constant 0 : index
    %c0_37 = arith.constant 0 : index
    %41 = vector.load %arg15[%c0_36, %c0_37] : memref<56x256xf32, #tpu.memory_space<vmem>>, vector<56x256xf32>
    tpu.vector_store %arg15[%c0_36, %c0_37], %19 {strides = array<i32>} : memref<56x256xf32, #tpu.memory_space<vmem>>, vector<56x256xf32>,
    return
  }
  func.func @transform_0(%arg0: i32) -> (i32, i32) {
    %c0_i32 = arith.constant 0 : i32
    %c0_i32_0 = arith.constant 0 : i32
    return %arg0, %c0_i32 : i32, i32
  }
  func.func @transform_1(%arg0: i32) -> (i32, i32) {
    %c0_i32 = arith.constant 0 : i32
    %c0_i32_0 = arith.constant 0 : i32
    %c0_i32_1 = arith.constant 0 : i32
    return %c0_i32, %c0_i32_0 : i32, i32
  }
  func.func @transform_2(%arg0: i32) -> (i32, i32) {
    %c0_i32 = arith.constant 0 : i32
    %c0_i32_0 = arith.constant 0 : i32
    %c0_i32_1 = arith.constant 0 : i32
    return %c0_i32, %c0_i32_0 : i32, i32
  }
  func.func @transform_3(%arg0: i32) -> (i32, i32) {
    %c0_i32 = arith.constant 0 : i32
    %c0_i32_0 = arith.constant 0 : i32
    %c0_i32_1 = arith.constant 0 : i32
    return %c0_i32, %c0_i32_0 : i32, i32
  }
  func.func @transform_4(%arg0: i32) -> (i32, i32) {
    %c0_i32 = arith.constant 0 : i32
    %c0_i32_0 = arith.constant 0 : i32
    %c0_i32_1 = arith.constant 0 : i32
    return %c0_i32, %c0_i32_0 : i32, i32
  }
  func.func @transform_5(%arg0: i32) -> (i32, i32) {
    %c0_i32 = arith.constant 0 : i32
    %c0_i32_0 = arith.constant 0 : i32
    %c0_i32_1 = arith.constant 0 : i32
    return %c0_i32, %c0_i32_0 : i32, i32
  }
  func.func @transform_6(%arg0: i32) -> (i32, i32) {
    %c0_i32 = arith.constant 0 : i32
    %c0_i32_0 = arith.constant 0 : i32
    %c0_i32_1 = arith.constant 0 : i32
    return %c0_i32, %c0_i32_0 : i32, i32
  }
  func.func @transform_7(%arg0: i32) -> (i32, i32) {
    %c0_i32 = arith.constant 0 : i32
    %c0_i32_0 = arith.constant 0 : i32
    %c0_i32_1 = arith.constant 0 : i32
    return %c0_i32, %c0_i32_0 : i32, i32
  }
  func.func @transform_8(%arg0: i32) -> (i32, i32) {
    %c0_i32 = arith.constant 0 : i32
    %c0_i32_0 = arith.constant 0 : i32
    %c0_i32_1 = arith.constant 0 : i32
    return %c0_i32, %c0_i32_0 : i32, i32
  }
  func.func @transform_9(%arg0: i32) -> (i32, i32) {
    %c0_i32 = arith.constant 0 : i32
    %c0_i32_0 = arith.constant 0 : i32
    %c0_i32_1 = arith.constant 0 : i32
    return %c0_i32, %c0_i32_0 : i32, i32
  }
  func.func @transform_10(%arg0: i32) -> (i32, i32) {
    %c0_i32 = arith.constant 0 : i32
    %c0_i32_0 = arith.constant 0 : i32
    %c0_i32_1 = arith.constant 0 : i32
    return %c0_i32, %c0_i32_0 : i32, i32
  }
  func.func @transform_11(%arg0: i32) -> (i32, i32) {
    %c0_i32 = arith.constant 0 : i32
    %c0_i32_0 = arith.constant 0 : i32
    %c0_i32_1 = arith.constant 0 : i32
    return %c0_i32, %c0_i32_0 : i32, i32
  }
  func.func @transform_12(%arg0: i32) -> (i32, i32) {
    %c0_i32 = arith.constant 0 : i32
    %c0_i32_0 = arith.constant 0 : i32
    %c0_i32_1 = arith.constant 0 : i32
    return %c0_i32, %c0_i32_0 : i32, i32
  }
  func.func @transform_13(%arg0: i32) -> (i32, i32) {
    %c0_i32 = arith.constant 0 : i32
    %c0_i32_0 = arith.constant 0 : i32
    return %arg0, %c0_i32 : i32, i32
  }
  func.func @transform_14(%arg0: i32) -> (i32, i32) {
    %c0_i32 = arith.constant 0 : i32
    %c0_i32_0 = arith.constant 0 : i32
    return %arg0, %c0_i32 : i32, i32
  }
}

</mosaic_0001>

<bundles_post_ra>
// kernel: tpu_custom_call.1
= control target key start
LH: loop header
LB: loop body
LE: loop exit
PB: predicated region body
PF: predicated region fallthrough
CT: control target
= control target key end

     0   :  { %20 = vsyncpa [#allocation3], 0  ;;  %s7325_s0 = inlined_call_operand.vmem [shape: f32[56,384], index: 0, kind: input, shape index: {}]   ;;  %s7326_s1 = inlined_call_operand.vmem [shape: f32[384,600], index: 1, kind: input, shape index: {}]   ;;  %s7327_s2 = inlined_call_operand.vmem [shape: f32[1,600], index: 2, kind: input, shape index: {}]   ;;  %s7328_s3 = inlined_call_operand.vmem [shape: f32[600,200], index: 3, kind: input, shape index: {}]   ;;  %s7329_s4 = inlined_call_operand.vmem [shape: f32[1,200], index: 4, kind: input, shape index: {}]   ;;  %s7330_s5 = inlined_call_operand.vmem [shape: f32[200,256], index: 5, kind: input, shape index: {}]   ;;  %s7331_s6 = inlined_call_operand.vmem [shape: f32[1,256], index: 6, kind: input, shape index: {}]   ;;  %s7332_s7 = inlined_call_operand.vmem [shape: f32[128,200], index: 7, kind: input, shape index: {}]   ;;  %s7333_s8 = inlined_call_operand.vmem [shape: f32[1,200], index: 8, kind: input, shape index: {}]   ;;  %s7334_s9 = inlined_call_operand.vmem [shape: f32[200,600], index: 9, kind: input, shape index: {}]   ;;  %s7335_s10 = inlined_call_operand.vmem [shape: f32[1,600], index: 10, kind: input, shape index: {}]   ;;  %s7336_s11 = inlined_call_operand.vmem [shape: f32[600,384], index: 11, kind: input, shape index: {}]   ;;  %s7337_s12 = inlined_call_operand.vmem [shape: f32[1,384], index: 12, kind: input, shape index: {}]   ;;  %s7338_s13 = inlined_call_operand.hbm [shape: f32[56,384], index: 13, kind: output, shape index: {0}]   ;;  %s7339_s14 = inlined_call_operand.hbm [shape: f32[56,256], index: 14, kind: output, shape index: {1}]  }
   0x1   :  { %v145_v0 = vld [vmem:[%s7326_s1 + $0x260] sm:$0xff]  ;;  %v144_v2 = vld [vmem:[%s7326_s1 + $0x258] sm:$0xff]  ;;  %v139_v6 = vld [vmem:[%s7326_s1 + $0x230] sm:$0xff] }
   0x2   :  { %v305_v1 = vld [vmem:[%s7326_s1 + $0x760] sm:$0xff]  ;;  %336 = vmatprep.subr.mxu0 %v145_v0  ;;  %v304_v3 = vld [vmem:[%s7326_s1 + $0x758] sm:$0xff]  ;;  %v299_v7 = vld [vmem:[%s7326_s1 + $0x730] sm:$0xff] }
   0x3   :  { %443 = vmatprep.subr.mxu1 %v305_v1  ;;  %v140_v4 = vld [vmem:[%s7326_s1 + $0x238] sm:$0xff]  ;;  %337 = vmatpush1.msra.mxu0 %v144_v2  ;;  %v135_v8 = vld [vmem:[%s7326_s1 + $0x210] sm:$0xff]  ;;  %v134_v10 = vld [vmem:[%s7326_s1 + $0x208] sm:$0xff] }
   0x4   :  { %v300_v5 = vld [vmem:[%s7326_s1 + $0x738] sm:$0xff]  ;;  %444 = vmatpush1.msra.mxu1 %v304_v3  ;;  %338 = vmatprep.subr.mxu0 %v140_v4  ;;  %v295_v9 = vld [vmem:[%s7326_s1 + $0x710] sm:$0xff]  ;;  %v294_v11 = vld [vmem:[%s7326_s1 + $0x708] sm:$0xff] }
   0x5   :  { %445 = vmatprep.subr.mxu1 %v300_v5  ;;  %339 = vmatpush1.msra.mxu0 %v139_v6  ;;  %v130_v12 = vld [vmem:[%s7326_s1 + $0x1e8] sm:$0xff]  ;;  %v129_v14 = vld [vmem:[%s7326_s1 + $0x1e0] sm:$0xff]  ;;  %v124_v18 = vld [vmem:[%s7326_s1 + $0x1b8] sm:$0xff]  ;;  %v3766_v5 = vmov 0.0  }
   0x6   :  { %446 = vmatpush1.msra.mxu1 %v299_v7  ;;  %v290_v13 = vld [vmem:[%s7326_s1 + $0x6e8] sm:$0xff]  ;;  %340 = vmatprep.subr.mxu0 %v135_v8  ;;  %v289_v15 = vld [vmem:[%s7326_s1 + $0x6e0] sm:$0xff]  ;;  %v284_v19 = vld [vmem:[%s7326_s1 + $0x6b8] sm:$0xff] }
   0x7   :  { %447 = vmatprep.subr.mxu1 %v295_v9  ;;  %341 = vmatpush1.msra.mxu0 %v134_v10  ;;  %v125_v16 = vld [vmem:[%s7326_s1 + $0x1c0] sm:$0xff]  ;;  %v120_v20 = vld [vmem:[%s7326_s1 + $0x198] sm:$0xff]  ;;  %v119_v22 = vld [vmem:[%s7326_s1 + $0x190] sm:$0xff] }
   0x8   :  { %448 = vmatpush1.msra.mxu1 %v294_v11  ;;  %v285_v17 = vld [vmem:[%s7326_s1 + $0x6c0] sm:$0xff]  ;;  %342 = vmatprep.subr.mxu0 %v130_v12  ;;  %v280_v21 = vld [vmem:[%s7326_s1 + $0x698] sm:$0xff]  ;;  %v279_v23 = vld [vmem:[%s7326_s1 + $0x690] sm:$0xff] }
   0x9   :  { %449 = vmatprep.subr.mxu1 %v290_v13  ;;  %343 = vmatpush1.msra.mxu0 %v129_v14  ;;  %v115_v24 = vld [vmem:[%s7326_s1 + $0x170] sm:$0xff]  ;;  %v114_v26 = vld [vmem:[%s7326_s1 + $0x168] sm:$0xff]  ;;  %v109_v30 = vld [vmem:[%s7326_s1 + $0x140] sm:$0xff] }
   0xa   :  { %450 = vmatpush1.msra.mxu1 %v289_v15  ;;  %344 = vmatprep.subr.mxu0 %v125_v16  ;;  %v275_v25 = vld [vmem:[%s7326_s1 + $0x670] sm:$0xff]  ;;  %v274_v27 = vld [vmem:[%s7326_s1 + $0x668] sm:$0xff]  ;;  %v269_v31 = vld [vmem:[%s7326_s1 + $0x640] sm:$0xff] }
   0xb   :  { %451 = vmatprep.subr.mxu1 %v285_v17  ;;  %345 = vmatpush1.msra.mxu0 %v124_v18  ;;  %v110_v28 = vld [vmem:[%s7326_s1 + $0x148] sm:$0xff]  ;;  %v105_v32 = vld [vmem:[%s7326_s1 + $0x120] sm:$0xff]  ;;  %v104_v34 = vld [vmem:[%s7326_s1 + $0x118] sm:$0xff] }
   0xc   :  { %452 = vmatpush1.msra.mxu1 %v284_v19  ;;  %346 = vmatprep.subr.mxu0 %v120_v20  ;;  %v270_v29 = vld [vmem:[%s7326_s1 + $0x648] sm:$0xff]  ;;  %v265_v33 = vld [vmem:[%s7326_s1 + $0x620] sm:$0xff]  ;;  %v264_v35 = vld [vmem:[%s7326_s1 + $0x618] sm:$0xff] }
   0xd   :  { %453 = vmatprep.subr.mxu1 %v280_v21  ;;  %347 = vmatpush1.msra.mxu0 %v119_v22  ;;  %v100_v36 = vld [vmem:[%s7326_s1 + $0xf8] sm:$0xff]  ;;  %v99_v38 = vld [vmem:[%s7326_s1 + $0xf0] sm:$0xff]  ;;  %v94_v42 = vld [vmem:[%s7326_s1 + $0xc8] sm:$0xff] }
   0xe   :  { %454 = vmatpush1.msra.mxu1 %v279_v23  ;;  %348 = vmatprep.subr.mxu0 %v115_v24  ;;  %v260_v37 = vld [vmem:[%s7326_s1 + $0x5f8] sm:$0xff]  ;;  %v259_v39 = vld [vmem:[%s7326_s1 + $0x5f0] sm:$0xff]  ;;  %v254_v43 = vld [vmem:[%s7326_s1 + $0x5c8] sm:$0xff] }
   0xf   :  { %455 = vmatprep.subr.mxu1 %v275_v25  ;;  %349 = vmatpush1.msra.mxu0 %v114_v26  ;;  %v95_v40 = vld [vmem:[%s7326_s1 + $0xd0] sm:$0xff]  ;;  %v90_v44 = vld [vmem:[%s7326_s1 + $0xa8] sm:$0xff]  ;;  %v89_v46 = vld [vmem:[%s7326_s1 + $0xa0] sm:$0xff] }
  0x10   :  { %456 = vmatpush1.msra.mxu1 %v274_v27  ;;  %350 = vmatprep.subr.mxu0 %v110_v28  ;;  %v255_v41 = vld [vmem:[%s7326_s1 + $0x5d0] sm:$0xff]  ;;  %v250_v45 = vld [vmem:[%s7326_s1 + $0x5a8] sm:$0xff]  ;;  %v249_v47 = vld [vmem:[%s7326_s1 + $0x5a0] sm:$0xff] }
  0x11   :  { %457 = vmatprep.subr.mxu1 %v270_v29  ;;  %351 = vmatpush1.msra.mxu0 %v109_v30  ;;  %v85_v48 = vld [vmem:[%s7326_s1 + $0x80] sm:$0xff]  ;;  %v84_v50 = vld [vmem:[%s7326_s1 + $0x78] sm:$0xff]  ;;  %v79_v54 = vld [vmem:[%s7326_s1 + $0x50] sm:$0xff] }
  0x12   :  { %458 = vmatpush1.msra.mxu1 %v269_v31  ;;  %352 = vmatprep.subr.mxu0 %v105_v32  ;;  %v245_v49 = vld [vmem:[%s7326_s1 + $0x580] sm:$0xff]  ;;  %v244_v51 = vld [vmem:[%s7326_s1 + $0x578] sm:$0xff]  ;;  %v239_v55 = vld [vmem:[%s7326_s1 + $0x550] sm:$0xff] }
  0x13   :  { %459 = vmatprep.subr.mxu1 %v265_v33  ;;  %353 = vmatpush1.msra.mxu0 %v104_v34  ;;  %v80_v52 = vld [vmem:[%s7326_s1 + $0x58] sm:$0xff]  ;;  %v75_v56 = vld [vmem:[%s7326_s1 + $0x30] sm:$0xff]  ;;  %v74_v58 = vld [vmem:[%s7326_s1 + $0x28] sm:$0xff] }
  0x14   :  { %460 = vmatpush1.msra.mxu1 %v264_v35  ;;  %354 = vmatprep.subr.mxu0 %v100_v36  ;;  %v240_v53 = vld [vmem:[%s7326_s1 + $0x558] sm:$0xff]  ;;  %v235_v57 = vld [vmem:[%s7326_s1 + $0x530] sm:$0xff]  ;;  %v234_v59 = vld [vmem:[%s7326_s1 + $0x528] sm:$0xff] }
  0x15   :  { %461 = vmatprep.subr.mxu1 %v260_v37  ;;  %355 = vmatpush1.msra.mxu0 %v99_v38  ;;  %v70_v60 = vld [vmem:[%s7326_s1 + $0x8] sm:$0xff]  ;;  %v69_v62 = vld [vmem:[%s7326_s1] sm:$0xff]  ;;  %v147_v1 = vld [vmem:[%s7326_s1 + $0x270] sm:$0xff] }
  0x16   :  { %462 = vmatpush1.msra.mxu1 %v259_v39  ;;  %356 = vmatprep.subr.mxu0 %v95_v40  ;;  %v230_v61 = vld [vmem:[%s7326_s1 + $0x508] sm:$0xff]  ;;  %v229_v63 = vld [vmem:[%s7326_s1 + $0x500] sm:$0xff]  ;;  %v224_v2 = vld [vmem:[%s7326_s1 + $0x4d8] sm:$0xff] }
  0x17   :  { %463 = vmatprep.subr.mxu1 %v255_v41  ;;  %357 = vmatpush1.msra.mxu0 %v94_v42  ;;  %v225_v0 = vld [vmem:[%s7326_s1 + $0x4e0] sm:$0xff]  ;;  %v4053_v3 = vld [vmem:[%s7325_s0 + $0x10] sm:$0xff]  ;;  %v220_v4 = vld [vmem:[%s7326_s1 + $0x4b8] sm:$0xff] }
  0x18   :  { %464 = vmatpush1.msra.mxu1 %v254_v43  ;;  %358 = vmatprep.subr.mxu0 %v90_v44  ;;  %v146_v6 = vld [vmem:[%s7326_s1 + $0x268] sm:$0xff]  ;;  %v219_v7 = vld [vmem:[%s7326_s1 + $0x4b0] sm:$0xff]  ;;  %v141_v10 = vld [vmem:[%s7326_s1 + $0x240] sm:$0xff] }
  0x19   :  { %465 = vmatprep.subr.mxu1 %v250_v45  ;;  %359 = vmatpush1.msra.mxu0 %v89_v46  ;;  %v142_v8 = vld [vmem:[%s7326_s1 + $0x248] sm:$0xff]  ;;  %v215_v9 = vld [vmem:[%s7326_s1 + $0x490] sm:$0xff]  ;;  %v137_v12 = vld [vmem:[%s7326_s1 + $0x220] sm:$0xff] }
  0x1a   :  { %466 = vmatpush1.msra.mxu1 %v249_v47  ;;  %360 = vmatprep.subr.mxu0 %v85_v48  ;;  %v214_v11 = vld [vmem:[%s7326_s1 + $0x488] sm:$0xff]  ;;  %v136_v14 = vld [vmem:[%s7326_s1 + $0x218] sm:$0xff]  ;;  %v209_v15 = vld [vmem:[%s7326_s1 + $0x460] sm:$0xff] }
  0x1b   :  { %467 = vmatprep.subr.mxu1 %v245_v49  ;;  %361 = vmatpush1.msra.mxu0 %v84_v50  ;;  %v210_v13 = vld [vmem:[%s7326_s1 + $0x468] sm:$0xff]  ;;  %v132_v16 = vld [vmem:[%s7326_s1 + $0x1f8] sm:$0xff]  ;;  %v205_v17 = vld [vmem:[%s7326_s1 + $0x440] sm:$0xff] }
  0x1c   :  { %468 = vmatpush1.msra.mxu1 %v244_v51  ;;  %362 = vmatprep.subr.mxu0 %v80_v52  ;;  %v131_v18 = vld [vmem:[%s7326_s1 + $0x1f0] sm:$0xff]  ;;  %v204_v19 = vld [vmem:[%s7326_s1 + $0x438] sm:$0xff]  ;;  %v126_v22 = vld [vmem:[%s7326_s1 + $0x1c8] sm:$0xff] }
  0x1d   :  { %469 = vmatprep.subr.mxu1 %v240_v53  ;;  %363 = vmatpush1.msra.mxu0 %v79_v54  ;;  %v127_v20 = vld [vmem:[%s7326_s1 + $0x1d0] sm:$0xff]  ;;  %v200_v21 = vld [vmem:[%s7326_s1 + $0x418] sm:$0xff]  ;;  %v122_v24 = vld [vmem:[%s7326_s1 + $0x1a8] sm:$0xff] }
  0x1e   :  { %470 = vmatpush1.msra.mxu1 %v239_v55  ;;  %364 = vmatprep.subr.mxu0 %v75_v56  ;;  %v199_v23 = vld [vmem:[%s7326_s1 + $0x410] sm:$0xff]  ;;  %v121_v26 = vld [vmem:[%s7326_s1 + $0x1a0] sm:$0xff]  ;;  %v194_v27 = vld [vmem:[%s7326_s1 + $0x3e8] sm:$0xff] }
  0x1f   :  { %471 = vmatprep.subr.mxu1 %v235_v57  ;;  %365 = vmatpush1.msra.mxu0 %v74_v58  ;;  %v195_v25 = vld [vmem:[%s7326_s1 + $0x3f0] sm:$0xff]  ;;  %v117_v28 = vld [vmem:[%s7326_s1 + $0x180] sm:$0xff]  ;;  %v190_v29 = vld [vmem:[%s7326_s1 + $0x3c8] sm:$0xff] }
  0x20   :  { %472 = vmatpush1.msra.mxu1 %v234_v59  ;;  %366 = vmatprep.subr.mxu0 %v70_v60  ;;  %v116_v30 = vld [vmem:[%s7326_s1 + $0x178] sm:$0xff]  ;;  %v189_v31 = vld [vmem:[%s7326_s1 + $0x3c0] sm:$0xff]  ;;  %v111_v34 = vld [vmem:[%s7326_s1 + $0x150] sm:$0xff] }
  0x21   :  { %473 = vmatprep.subr.mxu1 %v230_v61  ;;  %367 = vmatpush1.msra.mxu0 %v69_v62  ;;  %v112_v32 = vld [vmem:[%s7326_s1 + $0x158] sm:$0xff]  ;;  %v185_v33 = vld [vmem:[%s7326_s1 + $0x3a0] sm:$0xff]  ;;  %v107_v36 = vld [vmem:[%s7326_s1 + $0x130] sm:$0xff] }
  0x22   :  { %474 = vmatpush1.msra.mxu1 %v229_v63  ;;  %368 = vmatprep.subr.mxu0 %v225_v0  ;;  %v184_v35 = vld [vmem:[%s7326_s1 + $0x398] sm:$0xff]  ;;  %v106_v38 = vld [vmem:[%s7326_s1 + $0x128] sm:$0xff]  ;;  %v179_v39 = vld [vmem:[%s7326_s1 + $0x370] sm:$0xff] }
  0x23   :  { %507 = vmatprep.mubr.f32.mxu1 %v3766_v5  ;;  %550 = vmatprep.subr.mxu1 %v147_v1  ;;  %v180_v37 = vld [vmem:[%s7326_s1 + $0x378] sm:$0xff]  ;;  %v102_v40 = vld [vmem:[%s7326_s1 + $0x108] sm:$0xff]  ;;  %v175_v41 = vld [vmem:[%s7326_s1 + $0x350] sm:$0xff] }
  0x24   :  { %369 = vmatpush2.msra.mxu0 %v224_v2  ;;  %508 = vmatmul.mubr.f32.vlgmr.msra.gmra.mxu1 %v4053_v3  ;;  %v101_v42 = vld [vmem:[%s7326_s1 + $0x100] sm:$0xff]  ;;  %v174_v43 = vld [vmem:[%s7326_s1 + $0x348] sm:$0xff]  ;;  %v96_v46 = vld [vmem:[%s7326_s1 + $0xd8] sm:$0xff] }
  0x25   :  { %370 = vmatprep.subr.mxu0 %v220_v4  ;;  %551 = vmatpush1.msra.mxu1 %v146_v6  ;;  %v97_v44 = vld [vmem:[%s7326_s1 + $0xe0] sm:$0xff]  ;;  %v170_v45 = vld [vmem:[%s7326_s1 + $0x328] sm:$0xff]  ;;  %v92_v48 = vld [vmem:[%s7326_s1 + $0xb8] sm:$0xff] }
  0x26   :  { %371 = vmatpush2.msra.mxu0 %v219_v7  ;;  %552 = vmatprep.subr.mxu1 %v142_v8  ;;  %v169_v47 = vld [vmem:[%s7326_s1 + $0x320] sm:$0xff]  ;;  %v91_v50 = vld [vmem:[%s7326_s1 + $0xb0] sm:$0xff]  ;;  %v164_v51 = vld [vmem:[%s7326_s1 + $0x2f8] sm:$0xff] }
  0x27   :  { %372 = vmatprep.subr.mxu0 %v215_v9  ;;  %553 = vmatpush1.msra.mxu1 %v141_v10  ;;  %v165_v49 = vld [vmem:[%s7326_s1 + $0x300] sm:$0xff]  ;;  %v87_v52 = vld [vmem:[%s7326_s1 + $0x90] sm:$0xff]  ;;  %v160_v53 = vld [vmem:[%s7326_s1 + $0x2d8] sm:$0xff] }
  0x28   :  { %373 = vmatpush2.msra.mxu0 %v214_v11  ;;  %554 = vmatprep.subr.mxu1 %v137_v12  ;;  %v86_v54 = vld [vmem:[%s7326_s1 + $0x88] sm:$0xff]  ;;  %v159_v55 = vld [vmem:[%s7326_s1 + $0x2d0] sm:$0xff]  ;;  %v81_v58 = vld [vmem:[%s7326_s1 + $0x60] sm:$0xff] }
  0x29   :  { %374 = vmatprep.subr.mxu0 %v210_v13  ;;  %555 = vmatpush1.msra.mxu1 %v136_v14  ;;  %v82_v56 = vld [vmem:[%s7326_s1 + $0x68] sm:$0xff]  ;;  %v155_v57 = vld [vmem:[%s7326_s1 + $0x2b0] sm:$0xff]  ;;  %v77_v60 = vld [vmem:[%s7326_s1 + $0x40] sm:$0xff] }
  0x2a   :  { %375 = vmatpush2.msra.mxu0 %v209_v15  ;;  %556 = vmatprep.subr.mxu1 %v132_v16  ;;  %v154_v59 = vld [vmem:[%s7326_s1 + $0x2a8] sm:$0xff]  ;;  %v76_v62 = vld [vmem:[%s7326_s1 + $0x38] sm:$0xff]  ;;  %v149_v63 = vld [vmem:[%s7326_s1 + $0x280] sm:$0xff] }
  0x2b   :  { %376 = vmatprep.subr.mxu0 %v205_v17  ;;  %557 = vmatpush1.msra.mxu1 %v131_v18  ;;  %v150_v61 = vld [vmem:[%s7326_s1 + $0x288] sm:$0xff]  ;;  %v72_v0 = vld [vmem:[%s7326_s1 + $0x18] sm:$0xff]  ;;  %v71_v2 = vld [vmem:[%s7326_s1 + $0x10] sm:$0xff] }
  0x2c   :  { %377 = vmatpush2.msra.mxu0 %v204_v19  ;;  %558 = vmatprep.subr.mxu1 %v127_v20  ;;  %v4240_v1 = vld [vmem:[%s7325_s0 + $0x8] sm:$0xff]  ;;  %v4248_v4 = vld [vmem:[%s7325_s0] sm:$0xff]  ;;  %v227_v6 = vld [vmem:[%s7326_s1 + $0x4f0] sm:$0xff] }
  0x2d   :  { %378 = vmatprep.subr.mxu0 %v200_v21  ;;  %559 = vmatpush1.msra.mxu1 %v126_v22  ;;  %v307_v7 = vld [vmem:[%s7326_s1 + $0x770] sm:$0xff]  ;;  %v226_v8 = vld [vmem:[%s7326_s1 + $0x4e8] sm:$0xff]  ;;  %v4273_v12 = vld [vmem:[%s7325_s0 + $0x20] sm:$0xff] }
  0x2e   :  { %379 = vmatpush2.msra.mxu0 %v199_v23  ;;  %560 = vmatprep.subr.mxu1 %v122_v24  ;;  %v306_v9 = vld [vmem:[%s7326_s1 + $0x768] sm:$0xff]  ;;  %v221_v13 = vld [vmem:[%s7326_s1 + $0x4c0] sm:$0xff]  ;;  %v4287_v16 = vld [vmem:[%s7325_s0 + $0x18] sm:$0xff] }
  0x2f   :  { %380 = vmatprep.subr.mxu0 %v195_v25  ;;  %561 = vmatpush1.msra.mxu1 %v121_v26  ;;  %v222_v10 = vld [vmem:[%s7326_s1 + $0x4c8] sm:$0xff]  ;;  %v301_v14 = vld [vmem:[%s7326_s1 + $0x740] sm:$0xff]  ;;  %v216_v18 = vld [vmem:[%s7326_s1 + $0x498] sm:$0xff] }
  0x30   :  { %381 = vmatpush2.msra.mxu0 %v194_v27  ;;  %562 = vmatprep.subr.mxu1 %v117_v28  ;;  %v302_v11 = vld [vmem:[%s7326_s1 + $0x748] sm:$0xff]  ;;  %v217_v15 = vld [vmem:[%s7326_s1 + $0x4a0] sm:$0xff]  ;;  %v296_v19 = vld [vmem:[%s7326_s1 + $0x718] sm:$0xff] }
  0x31   :  { %382 = vmatprep.subr.mxu0 %v190_v29  ;;  %563 = vmatpush1.msra.mxu1 %v116_v30  ;;  %v297_v17 = vld [vmem:[%s7326_s1 + $0x720] sm:$0xff]  ;;  %v4302_v20 = vld [vmem:[%s7325_s0 + $0x28] sm:$0xff]  ;;  %v212_v21 = vld [vmem:[%s7326_s1 + $0x478] sm:$0xff] }
  0x32   :  { %383 = vmatpush2.msra.mxu0 %v189_v31  ;;  %564 = vmatprep.subr.mxu1 %v112_v32  ;;  %v292_v22 = vld [vmem:[%s7326_s1 + $0x6f8] sm:$0xff]  ;;  %v211_v24 = vld [vmem:[%s7326_s1 + $0x470] sm:$0xff]  ;;  %v206_v29 = vld [vmem:[%s7326_s1 + $0x448] sm:$0xff] }
  0x33   :  { %384 = vmatprep.subr.mxu0 %v185_v33  ;;  %565 = vmatpush1.msra.mxu1 %v111_v34  ;;  %v4315_v23 = vld [vmem:[%s7325_s0 + $0x38] sm:$0xff]  ;;  %v291_v25 = vld [vmem:[%s7326_s1 + $0x6f0] sm:$0xff]  ;;  %v286_v30 = vld [vmem:[%s7326_s1 + $0x6c8] sm:$0xff] }
  0x34   :  { %385 = vmatpush2.msra.mxu0 %v184_v35  ;;  %566 = vmatprep.subr.mxu1 %v107_v36  ;;  %v207_v26 = vld [vmem:[%s7326_s1 + $0x450] sm:$0xff]  ;;  %v4345_v31 = vld [vmem:[%s7325_s0 + $0x40] sm:$0xff]  ;;  %v202_v32 = vld [vmem:[%s7326_s1 + $0x428] sm:$0xff] }
  0x35   :  { %386 = vmatprep.subr.mxu0 %v180_v37  ;;  %567 = vmatpush1.msra.mxu1 %v106_v38  ;;  %v4330_v27 = vld [vmem:[%s7325_s0 + $0x30] sm:$0xff]  ;;  %v282_v33 = vld [vmem:[%s7326_s1 + $0x6a8] sm:$0xff]  ;;  %v201_v35 = vld [vmem:[%s7326_s1 + $0x420] sm:$0xff] }
  0x36   :  { %387 = vmatpush2.msra.mxu0 %v179_v39  ;;  %568 = vmatprep.subr.mxu1 %v102_v40  ;;  %v287_v28 = vld [vmem:[%s7326_s1 + $0x6d0] sm:$0xff]  ;;  %v281_v36 = vld [vmem:[%s7326_s1 + $0x6a0] sm:$0xff]  ;;  %v4373_v38 = vld [vmem:[%s7325_s0 + $0x48] sm:$0xff] }
  0x37   :  { %388 = vmatprep.subr.mxu0 %v175_v41  ;;  %569 = vmatpush1.msra.mxu1 %v101_v42  ;;  %v4358_v34 = vld [vmem:[%s7325_s0 + $0x50] sm:$0xff]  ;;  %v197_v37 = vld [vmem:[%s7326_s1 + $0x400] sm:$0xff]  ;;  %v196_v40 = vld [vmem:[%s7326_s1 + $0x3f8] sm:$0xff] }
  0x38   :  { %389 = vmatpush2.msra.mxu0 %v174_v43  ;;  %570 = vmatprep.subr.mxu1 %v97_v44  ;;  %v277_v39 = vld [vmem:[%s7326_s1 + $0x680] sm:$0xff]  ;;  %v276_v41 = vld [vmem:[%s7326_s1 + $0x678] sm:$0xff] }
  0x39   :  { %390 = vmatprep.subr.mxu0 %v170_v45  ;;  %571 = vmatpush1.msra.mxu1 %v96_v46  ;;  %v4388_v42 = vld [vmem:[%s7325_s0 + $0x58] sm:$0xff]  ;;  %v4401_v45 = vld [vmem:[%s7325_s0 + $0x68] sm:$0xff]  ;;  %v191_v46 = vld [vmem:[%s7326_s1 + $0x3d0] sm:$0xff] }
  0x3a   :  { %391 = vmatpush2.msra.mxu0 %v169_v47  ;;  %572 = vmatprep.subr.mxu1 %v92_v48  ;;  %v192_v43 = vld [vmem:[%s7326_s1 + $0x3d8] sm:$0xff]  ;;  %v271_v47 = vld [vmem:[%s7326_s1 + $0x650] sm:$0xff] }
  0x3b   :  { %392 = vmatprep.subr.mxu0 %v165_v49  ;;  %573 = vmatpush1.msra.mxu1 %v91_v50  ;;  %v272_v44 = vld [vmem:[%s7326_s1 + $0x658] sm:$0xff]  ;;  %v187_v48 = vld [vmem:[%s7326_s1 + $0x3b0] sm:$0xff]  ;;  %v4416_v49 = vld [vmem:[%s7325_s0 + $0x60] sm:$0xff] }
  0x3c   :  { %393 = vmatpush2.msra.mxu0 %v164_v51  ;;  %574 = vmatprep.subr.mxu1 %v87_v52  ;;  %v267_v50 = vld [vmem:[%s7326_s1 + $0x630] sm:$0xff]  ;;  %v186_v51 = vld [vmem:[%s7326_s1 + $0x3a8] sm:$0xff] }
  0x3d   :  { %394 = vmatprep.subr.mxu0 %v160_v53  ;;  %575 = vmatpush1.msra.mxu1 %v86_v54  ;;  %v266_v52 = vld [vmem:[%s7326_s1 + $0x628] sm:$0xff]  ;;  %v4431_v53 = vld [vmem:[%s7325_s0 + $0x70] sm:$0xff] }
  0x3e   :  { %395 = vmatpush2.msra.mxu0 %v159_v55  ;;  %576 = vmatprep.subr.mxu1 %v82_v56  ;;  %v182_v54 = vld [vmem:[%s7326_s1 + $0x388] sm:$0xff]  ;;  %v4444_v56 = vld [vmem:[%s7325_s0 + $0x80] sm:$0xff] }
  0x3f   :  { %396 = vmatprep.subr.mxu0 %v155_v57  ;;  %577 = vmatpush1.msra.mxu1 %v81_v58  ;;  %v262_v55 = vld [vmem:[%s7326_s1 + $0x608] sm:$0xff]  ;;  %v181_v57 = vld [vmem:[%s7326_s1 + $0x380] sm:$0xff] }
  0x40   :  { %397 = vmatpush2.msra.mxu0 %v154_v59  ;;  %578 = vmatprep.subr.mxu1 %v77_v60  ;;  %v261_v58 = vld [vmem:[%s7326_s1 + $0x600] sm:$0xff]  ;;  %v4459_v60 = vld [vmem:[%s7325_s0 + $0x78] sm:$0xff] }
  0x41   :  { %398 = vmatprep.subr.mxu0 %v150_v61  ;;  %579 = vmatpush1.msra.mxu1 %v76_v62  ;;  %v177_v59 = vld [vmem:[%s7326_s1 + $0x360] sm:$0xff]  ;;  %v176_v62 = vld [vmem:[%s7326_s1 + $0x358] sm:$0xff] }
  0x42   :  { %399 = vmatpush2.msra.mxu0 %v149_v63  ;;  %580 = vmatprep.subr.mxu1 %v72_v0  ;;  %v257_v61 = vld [vmem:[%s7326_s1 + $0x5e0] sm:$0xff]  ;;  %v256_v63 = vld [vmem:[%s7326_s1 + $0x5d8] sm:$0xff]  ;;  %v4474_v0 = vld [vmem:[%s7325_s0 + $0x88] sm:$0xff] }
  0x43   :  { %400 = vmatprep.mubr.f32.mxu0 %v4240_v1  ;;  %581 = vmatpush1.msra.mxu1 %v71_v2  ;;  %v172_v2 = vld [vmem:[%s7326_s1 + $0x338] sm:$0xff] }
  0x44   :  { %401 = vmatmul.mubr.f32.vlgmr.msra.gmra.mxu0 %v4248_v4  ;;  %582 = vmatprep.subr.mxu1 %v227_v6  ;;  %v252_v6 = vld [vmem:[%s7326_s1 + $0x5b8] sm:$0xff] }
  0x45   :  { %657 = vmatprep.subr.mxu0 %v307_v7  ;;  %583 = vmatpush2.msra.mxu1 %v226_v8 }
  0x46   :  { %658 = vmatpush1.msra.mxu0 %v306_v9  ;;  %584 = vmatprep.subr.mxu1 %v222_v10 }
  0x47   :  { %659 = vmatprep.subr.mxu0 %v302_v11  ;;  %406 = vmatprep.mubr.f32.mxu0 %v4273_v12 }
  0x48   :  { %585 = vmatpush2.msra.mxu1 %v221_v13  ;;  %660 = vmatpush1.msra.mxu0 %v301_v14 }
  0x49   :  { %586 = vmatprep.subr.mxu1 %v217_v15  ;;  %407 = vmatmul.mubr.f32.gmra.mxu0 %v4287_v16 }
  0x4a   :  { %661 = vmatprep.subr.mxu0 %v297_v17  ;;  %513 = vmatprep.mubr.f32.mxu1 %v3766_v5 }
  0x4b   :  { %587 = vmatpush2.msra.mxu1 %v216_v18  ;;  %662 = vmatpush1.msra.mxu0 %v296_v19 }
  0x4c   :  { %514 = vmatmul.mubr.f32.gmra.mxu1 %v4302_v20  ;;  %588 = vmatprep.subr.mxu1 %v212_v21 }
  0x4d   :  { %663 = vmatprep.subr.mxu0 %v292_v22  ;;  %412 = vmatprep.mubr.f32.mxu0 %v4315_v23 }
  0x4e   :  { %589 = vmatpush2.msra.mxu1 %v211_v24  ;;  %664 = vmatpush1.msra.mxu0 %v291_v25 }
  0x4f   :  { %590 = vmatprep.subr.mxu1 %v207_v26  ;;  %413 = vmatmul.mubr.f32.gmra.mxu0 %v4330_v27 }
  0x50   :  { %665 = vmatprep.subr.mxu0 %v287_v28  ;;  %519 = vmatprep.mubr.f32.mxu1 %v3766_v5 }
  0x51   :  { %591 = vmatpush2.msra.mxu1 %v206_v29  ;;  %666 = vmatpush1.msra.mxu0 %v286_v30 }
  0x52   :  { %520 = vmatmul.mubr.f32.gmra.mxu1 %v4345_v31  ;;  %592 = vmatprep.subr.mxu1 %v202_v32 }
  0x53   :  { %667 = vmatprep.subr.mxu0 %v282_v33  ;;  %418 = vmatprep.mubr.f32.mxu0 %v4358_v34 }
  0x54   :  { %593 = vmatpush2.msra.mxu1 %v201_v35  ;;  %668 = vmatpush1.msra.mxu0 %v281_v36 }
  0x55   :  { %594 = vmatprep.subr.mxu1 %v197_v37  ;;  %419 = vmatmul.mubr.f32.gmra.mxu0 %v4373_v38 }
  0x56   :  { %669 = vmatprep.subr.mxu0 %v277_v39  ;;  %525 = vmatprep.mubr.f32.mxu1 %v3766_v5 }
  0x57   :  { %595 = vmatpush2.msra.mxu1 %v196_v40  ;;  %670 = vmatpush1.msra.mxu0 %v276_v41 }
  0x58   :  { %526 = vmatmul.mubr.f32.gmra.mxu1 %v4388_v42  ;;  %596 = vmatprep.subr.mxu1 %v192_v43 }
  0x59   :  { %671 = vmatprep.subr.mxu0 %v272_v44  ;;  %424 = vmatprep.mubr.f32.mxu0 %v4401_v45 }
  0x5a   :  { %597 = vmatpush2.msra.mxu1 %v191_v46  ;;  %672 = vmatpush1.msra.mxu0 %v271_v47 }
  0x5b   :  { %598 = vmatprep.subr.mxu1 %v187_v48  ;;  %425 = vmatmul.mubr.f32.gmra.mxu0 %v4416_v49 }
  0x5c   :  { %673 = vmatprep.subr.mxu0 %v267_v50  ;;  %531 = vmatprep.mubr.f32.mxu1 %v3766_v5 }
  0x5d   :  { %599 = vmatpush2.msra.mxu1 %v186_v51  ;;  %674 = vmatpush1.msra.mxu0 %v266_v52 }
  0x5e   :  { %532 = vmatmul.mubr.f32.gmra.mxu1 %v4431_v53  ;;  %600 = vmatprep.subr.mxu1 %v182_v54 }
  0x5f   :  { %675 = vmatprep.subr.mxu0 %v262_v55  ;;  %430 = vmatprep.mubr.f32.mxu0 %v4444_v56 }
  0x60   :  { %601 = vmatpush2.msra.mxu1 %v181_v57  ;;  %676 = vmatpush1.msra.mxu0 %v261_v58 }
  0x61   :  { %602 = vmatprep.subr.mxu1 %v177_v59  ;;  %431 = vmatmul.mubr.f32.gmra.mxu0 %v4459_v60 }
  0x62   :  { %677 = vmatprep.subr.mxu0 %v257_v61 }
  0x63   :  { %21 = vsyncpa [#allocation5], 0  ;;  %537 = vmatprep.mubr.f32.mxu1 %v3766_v5  ;;  %603 = vmatpush2.msra.mxu1 %v176_v62  ;;  %v4487_v7 = vld [vmem:[%s7325_s0 + $0x98] sm:$0xff]  ;;  %v171_v8 = vld [vmem:[%s7326_s1 + $0x330] sm:$0xff]  ;;  %vm3767_vm0 = vmmov 0   ;;  %vm1161_vm1 = vcmask 719872  }
  0x64   :  { %678 = vmatpush1.msra.mxu0 %v256_v63  ;;  %538 = vmatmul.mubr.f32.gmra.mxu1 %v4474_v0  ;;  %v251_v9 = vld [vmem:[%s7326_s1 + $0x5b0] sm:$0xff]  ;;  %v166_v14 = vld [vmem:[%s7326_s1 + $0x308] sm:$0xff]  ;;  %v4517_v17 = vld [vmem:[%s7325_s0 + $0xa0] sm:$0xff]  ;;  %vm1580_vm2 = vcmask 588800  }
  0x65   :  { %v167_v10 = vld [vmem:[%s7326_s1 + $0x310] sm:$0xff]  ;;  %604 = vmatprep.subr.mxu1 %v172_v2  ;;  %679 = vmatprep.subr.mxu0 %v252_v6  ;;  %v246_v15 = vld [vmem:[%s7326_s1 + $0x588] sm:$0xff]  ;;  %v161_v21 = vld [vmem:[%s7326_s1 + $0x2e0] sm:$0xff] }
  0x66   :  { %v4502_v11 = vld [vmem:[%s7325_s0 + $0x90] sm:$0xff]  ;;  %436 = vmatprep.mubr.f32.mxu0 %v4487_v7  ;;  %605 = vmatpush2.msra.mxu1 %v171_v8  ;;  %v162_v18 = vld [vmem:[%s7326_s1 + $0x2e8] sm:$0xff]  ;;  %v241_v22 = vld [vmem:[%s7326_s1 + $0x560] sm:$0xff] }
  0x67   :  { %v247_v13 = vld [vmem:[%s7326_s1 + $0x590] sm:$0xff]  ;;  %680 = vmatpush1.msra.mxu0 %v251_v9  ;;  %606 = vmatprep.subr.mxu1 %v167_v10  ;;  %v242_v19 = vld [vmem:[%s7326_s1 + $0x568] sm:$0xff]  ;;  %v157_v24 = vld [vmem:[%s7326_s1 + $0x2c0] sm:$0xff] }
  0x68   :  { %437 = vmatmul.mubr.f32.gmra.mxu0 %v4502_v11  ;;  %681 = vmatprep.subr.mxu0 %v247_v13  ;;  %v237_v25 = vld [vmem:[%s7326_s1 + $0x540] sm:$0xff]  ;;  %v156_v26 = vld [vmem:[%s7326_s1 + $0x2b8] sm:$0xff]  ;;  %v151_v32 = vld [vmem:[%s7326_s1 + $0x290] sm:$0xff] }
  0x69   :  { %543 = vmatprep.mubr.f32.mxu1 %v3766_v5  ;;  %607 = vmatpush2.msra.mxu1 %v166_v14  ;;  %v236_v28 = vld [vmem:[%s7326_s1 + $0x538] sm:$0xff]  ;;  %v231_v33 = vld [vmem:[%s7326_s1 + $0x510] sm:$0xff]  ;;  %v218_v40 = vld [vmem:[%s7326_s1 + $0x4a8] sm:$0xff] }
  0x6a   :  { %682 = vmatpush1.msra.mxu0 %v246_v15  ;;  %544 = vmatmul.mubr.f32.gmra.mxu1 %v4517_v17  ;;  %v152_v29 = vld [vmem:[%s7326_s1 + $0x298] sm:$0xff]  ;;  %v223_v37 = vld [vmem:[%s7326_s1 + $0x4d0] sm:$0xff]  ;;  %v138_v43 = vld [vmem:[%s7326_s1 + $0x228] sm:$0xff] }
  0x6b   :  { %608 = vmatprep.subr.mxu1 %v162_v18  ;;  %683 = vmatprep.subr.mxu0 %v242_v19  ;;  %v232_v30 = vld [vmem:[%s7326_s1 + $0x518] sm:$0xff]  ;;  %v143_v39 = vld [vmem:[%s7326_s1 + $0x250] sm:$0xff]  ;;  %v213_v44 = vld [vmem:[%s7326_s1 + $0x480] sm:$0xff] }
  0x6c   :  { %609 = vmatpush2.msra.mxu1 %v161_v21  ;;  %684 = vmatpush1.msra.mxu0 %v241_v22  ;;  %v228_v35 = vld [vmem:[%s7326_s1 + $0x4f8] sm:$0xff]  ;;  %v133_v46 = vld [vmem:[%s7326_s1 + $0x200] sm:$0xff]  ;;  %v303_v47 = vld [vmem:[%s7326_s1 + $0x750] sm:$0xff] }
  0x6d   :  { %610 = vmatprep.subr.mxu1 %v157_v24  ;;  %685 = vmatprep.subr.mxu0 %v237_v25  ;;  %v148_v36 = vld [vmem:[%s7326_s1 + $0x278] sm:$0xff]  ;;  %v298_v51 = vld [vmem:[%s7326_s1 + $0x728] sm:$0xff]  ;;  %v203_v52 = vld [vmem:[%s7326_s1 + $0x430] sm:$0xff] }
  0x6e   :  { %611 = vmatpush2.msra.mxu1 %v156_v26  ;;  %686 = vmatpush1.msra.mxu0 %v236_v28  ;;  %v308_v41 = vld [vmem:[%s7326_s1 + $0x778] sm:$0xff]  ;;  %v123_v54 = vld [vmem:[%s7326_s1 + $0x1b0] sm:$0xff]  ;;  %v293_v55 = vld [vmem:[%s7326_s1 + $0x700] sm:$0xff] }
  0x6f   :  { %612 = vmatprep.subr.mxu1 %v152_v29  ;;  %687 = vmatprep.subr.mxu0 %v232_v30  ;;  %v208_v48 = vld [vmem:[%s7326_s1 + $0x458] sm:$0xff]  ;;  %v198_v57 = vld [vmem:[%s7326_s1 + $0x408] sm:$0xff]  ;;  %v193_v61 = vld [vmem:[%s7326_s1 + $0x3e0] sm:$0xff] }
  0x70   :  { %613 = vmatpush2.msra.mxu1 %v151_v32  ;;  %614 = vmatprep.mubr.f32.mxu1 %v4240_v1  ;;  %v128_v50 = vld [vmem:[%s7326_s1 + $0x1d8] sm:$0xff]  ;;  %v118_v58 = vld [vmem:[%s7326_s1 + $0x188] sm:$0xff]  ;;  %v113_v62 = vld [vmem:[%s7326_s1 + $0x160] sm:$0xff] }
  0x71   :  { %688 = vmatpush1.msra.mxu0 %v231_v33  ;;  %721 = vmatprep.mubr.f32.mxu0 %v3766_v5  ;;  %v288_v59 = vld [vmem:[%s7326_s1 + $0x6d8] sm:$0xff]  ;;  %v283_v63 = vld [vmem:[%s7326_s1 + $0x6b0] sm:$0xff]  ;;  %v278_v8 = vld [vmem:[%s7326_s1 + $0x688] sm:$0xff] }
  0x72   :  { %615 = vmatmul.mubr.f32.vlgmr.msra.gmra.mxu1 %v4248_v4  ;;  %722 = vmatmul.mubr.f32.vlgmr.msra.gmra.mxu0 %v4053_v3  ;;  %v188_v2 = vld [vmem:[%s7326_s1 + $0x3b8] sm:$0xff]  ;;  %v183_v9 = vld [vmem:[%s7326_s1 + $0x390] sm:$0xff]  ;;  %v273_v13 = vld [vmem:[%s7326_s1 + $0x660] sm:$0xff] }
  0x73   :  { %3396 = vmatprep.subr.mxu0 %v228_v35  ;;  %620 = vmatprep.mubr.f32.mxu1 %v4273_v12  ;;  %v108_v6 = vld [vmem:[%s7326_s1 + $0x138] sm:$0xff]  ;;  %v103_v10 = vld [vmem:[%s7326_s1 + $0x110] sm:$0xff]  ;;  %v178_v14 = vld [vmem:[%s7326_s1 + $0x368] sm:$0xff] }
  0x74   :  { %3397 = vmatpush3.msra.mxu0 %v148_v36  ;;  %3596 = vmatprep.subr.mxu1 %v3766_v5  ;;  %v98_v15 = vld [vmem:[%s7326_s1 + $0xe8] sm:$0xff]  ;;  %v268_v18 = vld [vmem:[%s7326_s1 + $0x638] sm:$0xff]  ;;  %v173_v19 = vld [vmem:[%s7326_s1 + $0x340] sm:$0xff] }
  0x75   :  { %3398 = vmatprep.subr.mxu0 %v223_v37  ;;  %727 = vmatprep.mubr.f32.mxu0 %v3766_v5  ;;  %v93_v21 = vld [vmem:[%s7326_s1 + $0xc0] sm:$0xff]  ;;  %v263_v22 = vld [vmem:[%s7326_s1 + $0x610] sm:$0xff]  ;;  %v168_v24 = vld [vmem:[%s7326_s1 + $0x318] sm:$0xff] }
  0x76   :  { %3399 = vmatpush3.msra.mxu0 %v143_v39  ;;  %621 = vmatmul.mubr.f32.gmra.mxu1 %v4287_v16  ;;  %v88_v25 = vld [vmem:[%s7326_s1 + $0x98] sm:$0xff]  ;;  %v258_v26 = vld [vmem:[%s7326_s1 + $0x5e8] sm:$0xff]  ;;  %v163_v28 = vld [vmem:[%s7326_s1 + $0x2f0] sm:$0xff] }
  0x77   :  { %3400 = vmatprep.subr.mxu0 %v218_v40  ;;  %3597 = vmatpush3.msra.mxu1 %v308_v41  ;;  %v83_v29 = vld [vmem:[%s7326_s1 + $0x70] sm:$0xff]  ;;  %v253_v30 = vld [vmem:[%s7326_s1 + $0x5c0] sm:$0xff]  ;;  %v158_v32 = vld [vmem:[%s7326_s1 + $0x2c8] sm:$0xff] }
  0x78   :  { %3401 = vmatpush3.msra.mxu0 %v138_v43  ;;  %3598 = vmatprep.subr.mxu1 %v3766_v5  ;;  %v78_v33 = vld [vmem:[%s7326_s1 + $0x48] sm:$0xff]  ;;  %v248_v35 = vld [vmem:[%s7326_s1 + $0x598] sm:$0xff]  ;;  %v153_v36 = vld [vmem:[%s7326_s1 + $0x2a0] sm:$0xff] }
  0x79   :  { %728 = vmatmul.mubr.f32.gmra.mxu0 %v4302_v20  ;;  %3402 = vmatprep.subr.mxu0 %v213_v44  ;;  %v73_v37 = vld [vmem:[%s7326_s1 + $0x20] sm:$0xff]  ;;  %v243_v39 = vld [vmem:[%s7326_s1 + $0x570] sm:$0xff]  ;;  %v238_v40 = vld [vmem:[%s7326_s1 + $0x548] sm:$0xff] }
  0x7a   :  { %626 = vmatprep.mubr.f32.mxu1 %v4315_v23  ;;  %3403 = vmatpush3.msra.mxu0 %v133_v46  ;;  %v1030_v41 = vld [vmem:[%s7328_s3 + $0xf8] sm:$0xff]  ;;  %v233_v43 = vld [vmem:[%s7326_s1 + $0x520] sm:$0xff]  ;;  %v1093_v44 = vld [vmem:[%s7328_s3 + $0x2f0] sm:$0xff] }
  0x7b   :  { %3599 = vmatpush3.msra.mxu1 %v303_v47  ;;  %3404 = vmatprep.subr.mxu0 %v208_v48  ;;  %v1091_v46 = vld [vmem:[%s7328_s3 + $0x2e0] sm:$0xff]  ;;  %v1089_v47 = vld [vmem:[%s7328_s3 + $0x2d0] sm:$0xff] }
  0x7c   :  { %627 = vmatmul.mubr.f32.gmra.mxu1 %v4330_v27  ;;  %3600 = vmatprep.subr.mxu1 %v3766_v5  ;;  %v1087_v48 = vld [vmem:[%s7328_s3 + $0x2c0] sm:$0xff] }
  0x7d   :  { %733 = vmatprep.mubr.f32.mxu0 %v3766_v5  ;;  %3405 = vmatpush3.msra.mxu0 %v128_v50  ;;  %v1085_v50 = vld [vmem:[%s7328_s3 + $0x2b0] sm:$0xff] }
  0x7e   :  { %3601 = vmatpush3.msra.mxu1 %v298_v51  ;;  %734 = vmatmul.mubr.f32.gmra.mxu0 %v4345_v31  ;;  %v1018_v51 = vld [vmem:[%s7328_s3 + $0x98] sm:$0xff] }
  0x7f   :  { %3406 = vmatprep.subr.mxu0 %v203_v52  ;;  %3602 = vmatprep.subr.mxu1 %v3766_v5  ;;  %v1016_v52 = vld [vmem:[%s7328_s3 + $0x88] sm:$0xff] }
  0x80   :  { %632 = vmatprep.mubr.f32.mxu1 %v4358_v34  ;;  %3407 = vmatpush3.msra.mxu0 %v123_v54  ;;  %v1015_v54 = vld [vmem:[%s7328_s3 + $0x80] sm:$0xff] }
  0x81   :  { %3603 = vmatpush3.msra.mxu1 %v293_v55  ;;  %3408 = vmatprep.subr.mxu0 %v198_v57  ;;  %v1082_v55 = vld [vmem:[%s7328_s3 + $0x298] sm:$0xff]  ;;  %v1013_v57 = vld [vmem:[%s7328_s3 + $0x70] sm:$0xff] }
  0x82   :  { %633 = vmatmul.mubr.f32.gmra.mxu1 %v4373_v38  ;;  %3604 = vmatprep.subr.mxu1 %v3766_v5 }
  0x83   :  { %739 = vmatprep.mubr.f32.mxu0 %v3766_v5  ;;  %3409 = vmatpush3.msra.mxu0 %v118_v58  ;;  %v1081_v58 = vld [vmem:[%s7328_s3 + $0x290] sm:$0xff] }
  0x84   :  { %3605 = vmatpush3.msra.mxu1 %v288_v59  ;;  %740 = vmatmul.mubr.f32.gmra.mxu0 %v4388_v42  ;;  %v1012_v59 = vld [vmem:[%s7328_s3 + $0x68] sm:$0xff] }
  0x85   :  { %3410 = vmatprep.subr.mxu0 %v193_v61  ;;  %3606 = vmatprep.subr.mxu1 %v3766_v5  ;;  %v1080_v61 = vld [vmem:[%s7328_s3 + $0x288] sm:$0xff] }
  0x86   :  { %638 = vmatprep.mubr.f32.mxu1 %v4401_v45  ;;  %3411 = vmatpush3.msra.mxu0 %v113_v62  ;;  %v1011_v62 = vld [vmem:[%s7328_s3 + $0x60] sm:$0xff] }
  0x87   :  { %3607 = vmatpush3.msra.mxu1 %v283_v63  ;;  %3412 = vmatprep.subr.mxu0 %v188_v2  ;;  %v1079_v63 = vld [vmem:[%s7328_s3 + $0x280] sm:$0xff]  ;;  %v1078_v2 = vld [vmem:[%s7328_s3 + $0x278] sm:$0xff] }
  0x88   :  { %639 = vmatmul.mubr.f32.gmra.mxu1 %v4416_v49  ;;  %3608 = vmatprep.subr.mxu1 %v3766_v5 }
  0x89   :  { %745 = vmatprep.mubr.f32.mxu0 %v3766_v5  ;;  %3413 = vmatpush3.msra.mxu0 %v108_v6  ;;  %v1009_v6 = vld [vmem:[%s7328_s3 + $0x50] sm:$0xff] }
  0x8a   :  { %3609 = vmatpush3.msra.mxu1 %v278_v8  ;;  %746 = vmatmul.mubr.f32.gmra.mxu0 %v4431_v53  ;;  %v1077_v8 = vld [vmem:[%s7328_s3 + $0x270] sm:$0xff] }
  0x8b   :  { %3414 = vmatprep.subr.mxu0 %v183_v9  ;;  %3610 = vmatprep.subr.mxu1 %v3766_v5  ;;  %v1008_v9 = vld [vmem:[%s7328_s3 + $0x48] sm:$0xff] }
  0x8c   :  { %644 = vmatprep.mubr.f32.mxu1 %v4444_v56  ;;  %3415 = vmatpush3.msra.mxu0 %v103_v10  ;;  %v1076_v10 = vld [vmem:[%s7328_s3 + $0x268] sm:$0xff] }
  0x8d   :  { %3611 = vmatpush3.msra.mxu1 %v273_v13  ;;  %3416 = vmatprep.subr.mxu0 %v178_v14  ;;  %v1007_v13 = vld [vmem:[%s7328_s3 + $0x40] sm:$0xff] }
  0x8e   :  { %645 = vmatmul.mubr.f32.gmra.mxu1 %v4459_v60  ;;  %3612 = vmatprep.subr.mxu1 %v3766_v5  ;;  %v1075_v14 = vld [vmem:[%s7328_s3 + $0x260] sm:$0xff] }
  0x8f   :  { %751 = vmatprep.mubr.f32.mxu0 %v3766_v5  ;;  %3417 = vmatpush3.msra.mxu0 %v98_v15  ;;  %v1006_v15 = vld [vmem:[%s7328_s3 + $0x38] sm:$0xff] }
  0x90   :  { %3613 = vmatpush3.msra.mxu1 %v268_v18  ;;  %752 = vmatmul.mubr.f32.gmra.mxu0 %v4474_v0  ;;  %v1074_v18 = vld [vmem:[%s7328_s3 + $0x258] sm:$0xff] }
  0x91   :  { %3418 = vmatprep.subr.mxu0 %v173_v19  ;;  %3614 = vmatprep.subr.mxu1 %v3766_v5  ;;  %v1005_v19 = vld [vmem:[%s7328_s3 + $0x30] sm:$0xff] }
  0x92   :  { %650 = vmatprep.mubr.f32.mxu1 %v4487_v7  ;;  %3419 = vmatpush3.msra.mxu0 %v93_v21  ;;  %v1073_v21 = vld [vmem:[%s7328_s3 + $0x250] sm:$0xff] }
  0x93   :  { %3615 = vmatpush3.msra.mxu1 %v263_v22  ;;  %3420 = vmatprep.subr.mxu0 %v168_v24  ;;  %v1004_v22 = vld [vmem:[%s7328_s3 + $0x28] sm:$0xff] }
  0x94   :  { %651 = vmatmul.mubr.f32.gmra.mxu1 %v4502_v11  ;;  %3616 = vmatprep.subr.mxu1 %v3766_v5  ;;  %v1072_v24 = vld [vmem:[%s7328_s3 + $0x248] sm:$0xff] }
  0x95   :  { %757 = vmatprep.mubr.f32.mxu0 %v3766_v5  ;;  %3421 = vmatpush3.msra.mxu0 %v88_v25  ;;  %v1003_v25 = vld [vmem:[%s7328_s3 + $0x20] sm:$0xff] }
  0x96   :  { %3617 = vmatpush3.msra.mxu1 %v258_v26  ;;  %758 = vmatmul.mubr.f32.gmra.mxu0 %v4517_v17  ;;  %v1071_v26 = vld [vmem:[%s7328_s3 + $0x240] sm:$0xff] }
  0x97   :  { %3422 = vmatprep.subr.mxu0 %v163_v28  ;;  %3618 = vmatprep.subr.mxu1 %v3766_v5  ;;  %v1002_v28 = vld [vmem:[%s7328_s3 + $0x18] sm:$0xff] }
  0x98   :  { %3423 = vmatpush3.msra.mxu0 %v83_v29  ;;  %3619 = vmatpush3.msra.mxu1 %v253_v30  ;;  %v1070_v29 = vld [vmem:[%s7328_s3 + $0x238] sm:$0xff]  ;;  %v1001_v30 = vld [vmem:[%s7328_s3 + $0x10] sm:$0xff] }
  0x99   :  { %3424 = vmatprep.subr.mxu0 %v158_v32  ;;  %3620 = vmatprep.subr.mxu1 %v3766_v5  ;;  %v1069_v32 = vld [vmem:[%s7328_s3 + $0x230] sm:$0xff] }
  0x9a   :  { %3425 = vmatpush3.msra.mxu0 %v78_v33  ;;  %3621 = vmatpush3.msra.mxu1 %v248_v35  ;;  %v1000_v33 = vld [vmem:[%s7328_s3 + $0x8] sm:$0xff] }
  0x9b   :  { %3426 = vmatprep.subr.mxu0 %v153_v36  ;;  %3622 = vmatprep.subr.mxu1 %v3766_v5  ;;  %v1068_v35 = vld [vmem:[%s7328_s3 + $0x228] sm:$0xff]  ;;  %v999_v36 = vld [vmem:[%s7328_s3] sm:$0xff] }
  0x9c   :  { %3427 = vmatpush3.msra.mxu0 %v73_v37  ;;  %828 = vmatprep.mubr.f32.mxu0 %v4240_v1  ;;  %v1029_v1 = vld [vmem:[%s7328_s3 + $0xf0] sm:$0xff]  ;;  %v1067_v37 = vld [vmem:[%s7328_s3 + $0x220] sm:$0xff] }
  0x9d   :  { %3623 = vmatpush3.msra.mxu1 %v243_v39  ;;  %829 = vmatmul.mubr.f32.vlgmr.msra.gmra.mxu0 %v4248_v4  ;;  %v1028_v4 = vld [vmem:[%s7328_s3 + $0xe8] sm:$0xff]  ;;  %v1062_v39 = vld [vmem:[%s7328_s3 + $0x1f8] sm:$0xff] }
  0x9e   :  { %3624 = vmatprep.subr.mxu1 %v3766_v5  ;;  %833 = vmatprep.mubr.f32.mxu0 %v4273_v12  ;;  %v1094_v12 = vld [vmem:[%s7328_s3 + $0x2f8] sm:$0xff] }
  0x9f   :  { %3625 = vmatpush3.msra.mxu1 %v238_v40  ;;  %3628 = vmatprep.mubr.msk.f32.mxu1 %vm3767_vm0, %v3766_v5  ;;  %v1066_v40 = vld [vmem:[%s7328_s3 + $0x218] sm:$0xff] }
  0xa0   :  { %3626 = vmatprep.subr.mxu1 %v3766_v5  ;;  %1183 = vmatprep.subr.mxu0 %v1030_v41  ;;  %v1061_v41 = vld [vmem:[%s7328_s3 + $0x1f0] sm:$0xff] }
  0xa1   :  { %3627 = vmatpush3.msra.mxu1 %v233_v43  ;;  %834 = vmatmul.mubr.f32.gmra.mxu0 %v4287_v16  ;;  %v1027_v16 = vld [vmem:[%s7328_s3 + $0xe0] sm:$0xff]  ;;  %v1065_v43 = vld [vmem:[%s7328_s3 + $0x210] sm:$0xff] }
  0xa2   :  { %3629 = vmatmul.mubr.f32.vlgmr.msra.gmra.mxu1 %v4053_v3  ;;  %838 = vmatprep.mubr.f32.mxu0 %v4315_v23  ;;  %v1026_v3 = vld [vmem:[%s7328_s3 + $0xd8] sm:$0xff]  ;;  %v1092_v23 = vld [vmem:[%s7328_s3 + $0x2e8] sm:$0xff] }
  0xa3   :  { %3631 = vmatprep.mubr.msk.f32.mxu1 %vm3767_vm0, %v3766_v5  ;;  %1184 = vmatpush1.msra.mxu0 %v1029_v1  ;;  %v1060_v1 = vld [vmem:[%s7328_s3 + $0x1e8] sm:$0xff] }
  0xa4   :  { %1185 = vmatprep.subr.mxu0 %v1028_v4  ;;  %1290 = vmatprep.subr.mxu1 %v1094_v12  ;;  %v1064_v4 = vld [vmem:[%s7328_s3 + $0x208] sm:$0xff]  ;;  %v1059_v12 = vld [vmem:[%s7328_s3 + $0x1e0] sm:$0xff] }
  0xa5   :  { %839 = vmatmul.mubr.f32.gmra.mxu0 %v4330_v27  ;;  %1291 = vmatpush1.msra.mxu1 %v1093_v44  ;;  %v1025_v27 = vld [vmem:[%s7328_s3 + $0xd0] sm:$0xff]  ;;  %v1063_v44 = vld [vmem:[%s7328_s3 + $0x200] sm:$0xff] }
  0xa6   :  { %3632 = vmatmul.mubr.f32.gmra.mxu1 %v4302_v20  ;;  %843 = vmatprep.mubr.f32.mxu0 %v4358_v34  ;;  %v1024_v20 = vld [vmem:[%s7328_s3 + $0xc8] sm:$0xff]  ;;  %v1090_v34 = vld [vmem:[%s7328_s3 + $0x2d8] sm:$0xff] }
  0xa7   :  { %3634 = vmatprep.mubr.msk.f32.mxu1 %vm3767_vm0, %v3766_v5  ;;  %1186 = vmatpush1.msra.mxu0 %v1027_v16  ;;  %v1058_v16 = vld [vmem:[%s7328_s3 + $0x1d8] sm:$0xff] }
  0xa8   :  { %1187 = vmatprep.subr.mxu0 %v1026_v3  ;;  %1292 = vmatprep.subr.mxu1 %v1092_v23  ;;  %v1126_v3 = vld [vmem:[%s7328_s3 + $0x3f8] sm:$0xff]  ;;  %v1057_v23 = vld [vmem:[%s7328_s3 + $0x1d0] sm:$0xff] }
  0xa9   :  { %844 = vmatmul.mubr.f32.gmra.mxu0 %v4373_v38  ;;  %1293 = vmatpush1.msra.mxu1 %v1091_v46  ;;  %v1023_v38 = vld [vmem:[%s7328_s3 + $0xc0] sm:$0xff]  ;;  %v1125_v46 = vld [vmem:[%s7328_s3 + $0x3f0] sm:$0xff] }
  0xaa   :  { %3635 = vmatmul.mubr.f32.gmra.mxu1 %v4345_v31  ;;  %848 = vmatprep.mubr.f32.mxu0 %v4401_v45  ;;  %v1022_v31 = vld [vmem:[%s7328_s3 + $0xb8] sm:$0xff]  ;;  %v1088_v45 = vld [vmem:[%s7328_s3 + $0x2c8] sm:$0xff] }
  0xab   :  { %3637 = vmatprep.mubr.msk.f32.mxu1 %vm3767_vm0, %v3766_v5  ;;  %1188 = vmatpush1.msra.mxu0 %v1025_v27  ;;  %v1056_v27 = vld [vmem:[%s7328_s3 + $0x1c8] sm:$0xff] }
  0xac   :  { %1189 = vmatprep.subr.mxu0 %v1024_v20  ;;  %1294 = vmatprep.subr.mxu1 %v1090_v34  ;;  %v1124_v20 = vld [vmem:[%s7328_s3 + $0x3e8] sm:$0xff]  ;;  %v1055_v34 = vld [vmem:[%s7328_s3 + $0x1c0] sm:$0xff] }
  0xad   :  { %849 = vmatmul.mubr.f32.gmra.mxu0 %v4416_v49  ;;  %1295 = vmatpush1.msra.mxu1 %v1089_v47  ;;  %v1021_v49 = vld [vmem:[%s7328_s3 + $0xb0] sm:$0xff]  ;;  %v1123_v47 = vld [vmem:[%s7328_s3 + $0x3e0] sm:$0xff] }
  0xae   :  { %3638 = vmatmul.mubr.f32.gmra.mxu1 %v4388_v42  ;;  %853 = vmatprep.mubr.f32.mxu0 %v4444_v56  ;;  %v1020_v42 = vld [vmem:[%s7328_s3 + $0xa8] sm:$0xff]  ;;  %v1086_v56 = vld [vmem:[%s7328_s3 + $0x2b8] sm:$0xff] }
  0xaf   :  { %3640 = vmatprep.mubr.msk.f32.mxu1 %vm3767_vm0, %v3766_v5  ;;  %1190 = vmatpush1.msra.mxu0 %v1023_v38  ;;  %v1054_v38 = vld [vmem:[%s7328_s3 + $0x1b8] sm:$0xff] }
  0xb0   :  { %1191 = vmatprep.subr.mxu0 %v1022_v31  ;;  %1296 = vmatprep.subr.mxu1 %v1088_v45  ;;  %v1122_v31 = vld [vmem:[%s7328_s3 + $0x3d8] sm:$0xff]  ;;  %v1053_v45 = vld [vmem:[%s7328_s3 + $0x1b0] sm:$0xff] }
  0xb1   :  { %854 = vmatmul.mubr.f32.gmra.mxu0 %v4459_v60  ;;  %1297 = vmatpush1.msra.mxu1 %v1087_v48  ;;  %v1019_v60 = vld [vmem:[%s7328_s3 + $0xa0] sm:$0xff]  ;;  %v1121_v48 = vld [vmem:[%s7328_s3 + $0x3d0] sm:$0xff] }
  0xb2   :  { %3641 = vmatmul.mubr.f32.gmra.mxu1 %v4431_v53  ;;  %858 = vmatprep.mubr.f32.mxu0 %v4487_v7  ;;  %v1017_v53 = vld [vmem:[%s7328_s3 + $0x90] sm:$0xff]  ;;  %v1084_v7 = vld [vmem:[%s7328_s3 + $0x2a8] sm:$0xff] }
  0xb3   :  { %3643 = vmatprep.mubr.msk.f32.mxu1 %vm3767_vm0, %v3766_v5  ;;  %1192 = vmatpush1.msra.mxu0 %v1021_v49  ;;  %v1052_v49 = vld [vmem:[%s7328_s3 + $0x1a8] sm:$0xff] }
  0xb4   :  { %1193 = vmatprep.subr.mxu0 %v1020_v42  ;;  %1298 = vmatprep.subr.mxu1 %v1086_v56  ;;  %v1120_v42 = vld [vmem:[%s7328_s3 + $0x3c8] sm:$0xff]  ;;  %v1051_v56 = vld [vmem:[%s7328_s3 + $0x1a0] sm:$0xff] }
  0xb5   :  { %859 = vmatmul.mubr.f32.gmra.mxu0 %v4502_v11  ;;  %1299 = vmatpush1.msra.mxu1 %v1085_v50  ;;  %v1083_v11 = vld [vmem:[%s7328_s3 + $0x2a0] sm:$0xff] }
  0xb6   :  { %3644 = vmatmul.mubr.f32.gmra.mxu1 %v4474_v0  ;;  %1194 = vmatpush1.msra.mxu0 %v1019_v60  ;;  %v1014_v0 = vld [vmem:[%s7328_s3 + $0x78] sm:$0xff]  ;;  %v1119_v50 = vld [vmem:[%s7328_s3 + $0x3c0] sm:$0xff] }
  0xb7   :  { %3646 = vmatprep.mubr.msk.f32.mxu1 %vm3767_vm0, %v3766_v5  ;;  %1195 = vmatprep.subr.mxu0 %v1018_v51  ;;  %v1050_v60 = vld [vmem:[%s7328_s3 + $0x198] sm:$0xff] }
  0xb8   :  { %1196 = vmatpush1.msra.mxu0 %v1017_v53  ;;  %1300 = vmatprep.subr.mxu1 %v1084_v7  ;;  %v1118_v51 = vld [vmem:[%s7328_s3 + $0x3b8] sm:$0xff]  ;;  %v1049_v53 = vld [vmem:[%s7328_s3 + $0x190] sm:$0xff] }
  0xb9   :  { %1197 = vmatprep.subr.mxu0 %v1016_v52  ;;  %1301 = vmatpush1.msra.mxu1 %v1083_v11  ;;  %v1117_v7 = vld [vmem:[%s7328_s3 + $0x3b0] sm:$0xff]  ;;  %v1048_v52 = vld [vmem:[%s7328_s3 + $0x188] sm:$0xff] }
  0xba   :  { %3647 = vmatmul.mubr.f32.gmra.mxu1 %v4517_v17  ;;  %1198 = vmatpush1.msra.mxu0 %v1015_v54  ;;  %v1010_v17 = vld [vmem:[%s7328_s3 + $0x58] sm:$0xff]  ;;  %v1116_v11 = vld [vmem:[%s7328_s3 + $0x3a8] sm:$0xff]  ;;  %v1047_v54 = vld [vmem:[%s7328_s3 + $0x180] sm:$0xff] }
  0xbb   :  { %1199 = vmatprep.subr.mxu0 %v1014_v0  ;;  %1302 = vmatprep.subr.mxu1 %v1082_v55  ;;  %v1115_v0 = vld [vmem:[%s7328_s3 + $0x3a0] sm:$0xff]  ;;  %v1046_v55 = vld [vmem:[%s7328_s3 + $0x178] sm:$0xff] }
  0xbc   :  { %1200 = vmatpush1.msra.mxu0 %v1013_v57  ;;  %1303 = vmatpush1.msra.mxu1 %v1081_v58  ;;  %v1114_v57 = vld [vmem:[%s7328_s3 + $0x398] sm:$0xff]  ;;  %v1045_v58 = vld [vmem:[%s7328_s3 + $0x170] sm:$0xff] }
  0xbd   :  { %1201 = vmatprep.subr.mxu0 %v1012_v59  ;;  %1304 = vmatprep.subr.mxu1 %v1080_v61  ;;  %v1113_v59 = vld [vmem:[%s7328_s3 + $0x390] sm:$0xff]  ;;  %v1044_v61 = vld [vmem:[%s7328_s3 + $0x168] sm:$0xff] }
  0xbe   :  { %1202 = vmatpush1.msra.mxu0 %v1011_v62  ;;  %1305 = vmatpush1.msra.mxu1 %v1079_v63  ;;  %v1112_v62 = vld [vmem:[%s7328_s3 + $0x388] sm:$0xff]  ;;  %v1043_v63 = vld [vmem:[%s7328_s3 + $0x160] sm:$0xff] }
  0xbf   :  { %1203 = vmatprep.subr.mxu0 %v1010_v17  ;;  %1306 = vmatprep.subr.mxu1 %v1078_v2  ;;  %v1111_v17 = vld [vmem:[%s7328_s3 + $0x380] sm:$0xff]  ;;  %v1042_v2 = vld [vmem:[%s7328_s3 + $0x158] sm:$0xff] }
  0xc0   :  { %1204 = vmatpush1.msra.mxu0 %v1009_v6  ;;  %1307 = vmatpush1.msra.mxu1 %v1077_v8  ;;  %v1110_v6 = vld [vmem:[%s7328_s3 + $0x378] sm:$0xff]  ;;  %v1041_v8 = vld [vmem:[%s7328_s3 + $0x150] sm:$0xff] }
  0xc1   :  { %1205 = vmatprep.subr.mxu0 %v1008_v9  ;;  %1308 = vmatprep.subr.mxu1 %v1076_v10  ;;  %v1109_v9 = vld [vmem:[%s7328_s3 + $0x370] sm:$0xff]  ;;  %v1040_v10 = vld [vmem:[%s7328_s3 + $0x148] sm:$0xff] }
  0xc2   :  { %1206 = vmatpush1.msra.mxu0 %v1007_v13  ;;  %1309 = vmatpush1.msra.mxu1 %v1075_v14  ;;  %v1108_v13 = vld [vmem:[%s7328_s3 + $0x368] sm:$0xff]  ;;  %v1039_v14 = vld [vmem:[%s7328_s3 + $0x140] sm:$0xff] }
  0xc3   :  { %1207 = vmatprep.subr.mxu0 %v1006_v15  ;;  %1310 = vmatprep.subr.mxu1 %v1074_v18  ;;  %v1107_v15 = vld [vmem:[%s7328_s3 + $0x360] sm:$0xff]  ;;  %v1038_v18 = vld [vmem:[%s7328_s3 + $0x138] sm:$0xff] }
  0xc4   :  { %1208 = vmatpush1.msra.mxu0 %v1005_v19  ;;  %1311 = vmatpush1.msra.mxu1 %v1073_v21  ;;  %v1106_v19 = vld [vmem:[%s7328_s3 + $0x358] sm:$0xff]  ;;  %v1037_v21 = vld [vmem:[%s7328_s3 + $0x130] sm:$0xff] }
  0xc5   :  { %1209 = vmatprep.subr.mxu0 %v1004_v22  ;;  %1312 = vmatprep.subr.mxu1 %v1072_v24  ;;  %v1105_v22 = vld [vmem:[%s7328_s3 + $0x350] sm:$0xff]  ;;  %v1036_v24 = vld [vmem:[%s7328_s3 + $0x128] sm:$0xff] }
  0xc6   :  { %1210 = vmatpush1.msra.mxu0 %v1003_v25  ;;  %1313 = vmatpush1.msra.mxu1 %v1071_v26  ;;  %v1104_v25 = vld [vmem:[%s7328_s3 + $0x348] sm:$0xff]  ;;  %v1035_v26 = vld [vmem:[%s7328_s3 + $0x120] sm:$0xff] }
  0xc7   :  { %1211 = vmatprep.subr.mxu0 %v1002_v28  ;;  %1314 = vmatprep.subr.mxu1 %v1070_v29  ;;  %v1103_v28 = vld [vmem:[%s7328_s3 + $0x340] sm:$0xff]  ;;  %v1034_v29 = vld [vmem:[%s7328_s3 + $0x118] sm:$0xff] }
  0xc8   :  { %1212 = vmatpush1.msra.mxu0 %v1001_v30  ;;  %1315 = vmatpush1.msra.mxu1 %v1069_v32  ;;  %v1102_v30 = vld [vmem:[%s7328_s3 + $0x338] sm:$0xff]  ;;  %v1033_v32 = vld [vmem:[%s7328_s3 + $0x110] sm:$0xff] }
  0xc9   :  { %1213 = vmatprep.subr.mxu0 %v1000_v33  ;;  %1316 = vmatprep.subr.mxu1 %v1068_v35  ;;  %v1101_v33 = vld [vmem:[%s7328_s3 + $0x330] sm:$0xff]  ;;  %v1032_v35 = vld [vmem:[%s7328_s3 + $0x108] sm:$0xff] }
  0xca   :  { %1214 = vmatpush1.msra.mxu0 %v999_v36  ;;  %1317 = vmatpush1.msra.mxu1 %v1067_v37  ;;  %v1100_v36 = vld [vmem:[%s7328_s3 + $0x328] sm:$0xff]  ;;  %v1031_v37 = vld [vmem:[%s7328_s3 + $0x100] sm:$0xff] }
  0xcb   :  { %1215 = vmatprep.subr.mxu0 %v1062_v39  ;;  %1318 = vmatprep.subr.mxu1 %v1066_v40  ;;  %v1099_v39 = vld [vmem:[%s7328_s3 + $0x320] sm:$0xff]  ;;  %v1098_v40 = vld [vmem:[%s7328_s3 + $0x318] sm:$0xff] }
  0xcc   :  { %1216 = vmatpush2.msra.mxu0 %v1061_v41  ;;  %1319 = vmatpush1.msra.mxu1 %v1065_v43  ;;  %v1148_v41 = vld [vmem:[%s7328_s3 + $0x4a8] sm:$0xff]  ;;  %v1097_v43 = vld [vmem:[%s7328_s3 + $0x310] sm:$0xff] }
  0xcd   :  { %1217 = vmatprep.subr.mxu0 %v1060_v1  ;;  %1320 = vmatprep.subr.mxu1 %v1064_v4  ;;  %v1096_v1 = vld [vmem:[%s7328_s3 + $0x308] sm:$0xff]  ;;  %v1095_v4 = vld [vmem:[%s7328_s3 + $0x300] sm:$0xff] }
  0xce   :  { %1218 = vmatpush2.msra.mxu0 %v1059_v12  ;;  %1321 = vmatpush1.msra.mxu1 %v1063_v44  ;;  %v311_v12 = vlaneseq }
  0xcf   :  { %1219 = vmatprep.subr.mxu0 %v1058_v16  ;;  %1322 = vmatprep.subr.mxu1 %v1126_v3  ;;  %v5176_v3 = vld [vmem:[%s7327_s2] sm:$0x1f] }
  0xd0   :  { %1220 = vmatpush2.msra.mxu0 %v1057_v23  ;;  %1323 = vmatpush2.msra.mxu1 %v1125_v46  ;;  %v5168_v44 = vshrl.u32 %v311_v12, 7  ;;  %v1131_v12 = vld [vmem:[%s7328_s3 + $0x420] sm:$0xff] }
  0xd1   :  { %1221 = vmatprep.subr.mxu0 %v1056_v27  ;;  %1324 = vmatprep.subr.mxu1 %v1124_v20 }
  0xd2   :  { %1222 = vmatpush2.msra.mxu0 %v1055_v34  ;;  %1325 = vmatpush2.msra.mxu1 %v1123_v47  ;;  %v5171_v16 = vsub.s32 0, %v5168_v44  ;;  %v5179_v23 = vsub.s32 1, %v5168_v44 }
  0xd3   :  { %1223 = vmatprep.subr.mxu0 %v1054_v38  ;;  %1326 = vmatprep.subr.mxu1 %v1122_v31 }
  0xd4   :  { %1224 = vmatpush2.msra.mxu0 %v1053_v45  ;;  %1327 = vmatpush2.msra.mxu1 %v1121_v48  ;;  %v5183_v46 = vrot.slane %v5176_v3, %v5171_v16  ;;  %v5187_v27 = vrot.slane %v5176_v3, %v5179_v23 }
  0xd5   :  { %1225 = vmatprep.subr.mxu0 %v1052_v49  ;;  %1328 = vmatprep.subr.mxu1 %v1120_v42 }
  0xd6   :  { %1226 = vmatpush2.msra.mxu0 %v1051_v56  ;;  %1329 = vmatpush2.msra.mxu1 %v1119_v50 }
  0xd7   :  { %1227 = vmatprep.subr.mxu0 %v1050_v60  ;;  %1330 = vmatprep.subr.mxu1 %v1118_v51 }
  0xd8   :  { %1228 = vmatpush2.msra.mxu0 %v1049_v53  ;;  %1331 = vmatpush2.msra.mxu1 %v1117_v7  ;;  %v1147_v7 = vld [vmem:[%s7328_s3 + $0x4a0] sm:$0xff] }
  0xd9   :  { %1229 = vmatprep.subr.mxu0 %v1048_v52  ;;  %1332 = vmatprep.subr.mxu1 %v1116_v11 }
  0xda   :  { %1230 = vmatpush2.msra.mxu0 %v1047_v54  ;;  %1333 = vmatpush2.msra.mxu1 %v1115_v0  ;;  %v1146_v54 = vld [vmem:[%s7328_s3 + $0x498] sm:$0xff] }
  0xdb   :  { %1231 = vmatprep.subr.mxu0 %v1046_v55  ;;  %1334 = vmatprep.subr.mxu1 %v1114_v57  ;;  %v1145_v55 = vld [vmem:[%s7328_s3 + $0x490] sm:$0xff] }
  0xdc   :  { %1232 = vmatpush2.msra.mxu0 %v1045_v58  ;;  %1335 = vmatpush2.msra.mxu1 %v1113_v59  ;;  %v1144_v58 = vld [vmem:[%s7328_s3 + $0x488] sm:$0xff] }
  0xdd   :  { %1233 = vmatprep.subr.mxu0 %v1044_v61  ;;  %1336 = vmatprep.subr.mxu1 %v1112_v62  ;;  %v1143_v62 = vld [vmem:[%s7328_s3 + $0x480] sm:$0xff] }
  0xde   :  { %1234 = vmatpush2.msra.mxu0 %v1043_v63  ;;  %1337 = vmatpush2.msra.mxu1 %v1111_v17 }
  0xdf   :  { %1235 = vmatprep.subr.mxu0 %v1042_v2  ;;  %1338 = vmatprep.subr.mxu1 %v1110_v6  ;;  %v1142_v2 = vld [vmem:[%s7328_s3 + $0x478] sm:$0xff] }
  0xe0   :  { %1236 = vmatpush2.msra.mxu0 %v1041_v8  ;;  %1339 = vmatpush2.msra.mxu1 %v1109_v9  ;;  %v1141_v9 = vld [vmem:[%s7328_s3 + $0x470] sm:$0xff] }
  0xe1   :  { %1237 = vmatprep.subr.mxu0 %v1040_v10  ;;  %1340 = vmatprep.subr.mxu1 %v1108_v13 }
  0xe2   :  { %1238 = vmatpush2.msra.mxu0 %v1039_v14  ;;  %1341 = vmatpush2.msra.mxu1 %v1107_v15  ;;  %v1140_v14 = vld [vmem:[%s7328_s3 + $0x468] sm:$0xff] }
  0xe3   :  { %1239 = vmatprep.subr.mxu0 %v1038_v18  ;;  %1342 = vmatprep.subr.mxu1 %v1106_v19  ;;  %v1139_v18 = vld [vmem:[%s7328_s3 + $0x460] sm:$0xff] }
  0xe4   :  { %1240 = vmatpush2.msra.mxu0 %v1037_v21  ;;  %1343 = vmatpush2.msra.mxu1 %v1105_v22  ;;  %v509_v20 = vpop.f32.mrf.mxu1  ;;  %v1138_v21 = vld [vmem:[%s7328_s3 + $0x458] sm:$0xff] }
  0xe5   :  { %1241 = vmatprep.subr.mxu0 %v1036_v24  ;;  %1344 = vmatprep.subr.mxu1 %v1104_v25  ;;  %v1137_v25 = vld [vmem:[%s7328_s3 + $0x450] sm:$0xff] }
  0xe6   :  { %1242 = vmatpush2.msra.mxu0 %v1035_v26  ;;  %1345 = vmatpush2.msra.mxu1 %v1103_v28  ;;  %v511_v45 = vpop.f32.mrf.mxu1 }
  0xe7   :  { %1243 = vmatprep.subr.mxu0 %v1034_v29  ;;  %1346 = vmatprep.subr.mxu1 %v1102_v30  ;;  %v1136_v29 = vld [vmem:[%s7328_s3 + $0x448] sm:$0xff] }
  0xe8   :  { %1244 = vmatpush2.msra.mxu0 %v1033_v32  ;;  %1347 = vmatpush2.msra.mxu1 %v1101_v33  ;;  %v1135_v33 = vld [vmem:[%s7328_s3 + $0x440] sm:$0xff] }
  0xe9   :  { %1245 = vmatprep.subr.mxu0 %v1032_v35  ;;  %1348 = vmatprep.subr.mxu1 %v1100_v36 }
  0xea   :  { %1246 = vmatpush2.msra.mxu0 %v1031_v37  ;;  %1349 = vmatpush2.msra.mxu1 %v1099_v39  ;;  %v1134_v37 = vld [vmem:[%s7328_s3 + $0x438] sm:$0xff] }
  0xeb   :  { %1350 = vmatprep.subr.mxu1 %v1098_v40  ;;  %1407 = vmatprep.subr.mxu0 %v1148_v41  ;;  %v1133_v40 = vld [vmem:[%s7328_s3 + $0x430] sm:$0xff] }
  0xec   :  { %1351 = vmatpush2.msra.mxu1 %v1097_v43  ;;  %v1132_v43 = vld [vmem:[%s7328_s3 + $0x428] sm:$0xff] }
  0xed   :  { %1352 = vmatprep.subr.mxu1 %v1096_v1 }
  0xee   :  { %1353 = vmatpush2.msra.mxu1 %v1095_v4 }
 0x104   :  { %v402_v34 = vpop.f32.mrf.mxu0 }
 0x105   :  { %v403_v47 = vadd.f32 %v402_v34, %v5183_v46 }
 0x106   :  { %v404_v38 = vpop.f32.mrf.mxu0 }
 0x107   :  { %v405_v31 = vadd.f32 %v404_v38, %v5187_v27  ;;  %v510_v48 = vadd.f32 %v509_v20, %v403_v47  ;;  %v1130_v47 = vld [vmem:[%s7328_s3 + $0x418] sm:$0xff] }
 0x109   :  { %v512_v49 = vadd.f32 %v511_v45, %v405_v31  ;;  %v408_v42 = vpop.f32.mrf.mxu0  ;;  %v964_v60 = vmax.f32 %v510_v48, 0.0  ;;  %v1129_v45 = vld [vmem:[%s7328_s3 + $0x410] sm:$0xff] }
 0x10a   :  { %v409_v56 = vadd.f32 %v408_v42, %v5183_v46  ;;  %v1128_v42 = vld [vmem:[%s7328_s3 + $0x408] sm:$0xff] }
 0x10b   :  { %v965_v50 = vmax.f32 %v512_v49, 0.0  ;;  %v410_v51 = vpop.f32.mrf.mxu0 }
 0x10c   :  { %v515_v53 = vpop.f32.mrf.mxu1  ;;  %v411_v52 = vadd.f32 %v410_v51, %v5187_v27 }
 0x10d   :  { %v516_v11 = vadd.f32 %v515_v53, %v409_v56  ;;  %1247 = vmatprep.mubr.f32.mxu0 %v965_v50  ;;  %v1127_v50 = vld [vmem:[%s7328_s3 + $0x400] sm:$0xff] }
 0x10e   :  { %v517_v0 = vpop.f32.mrf.mxu1  ;;  %1248 = vmatmul.mubr.f32.vlgmr.msra.gmra.mxu0 %v964_v60 }
 0x10f   :  { %v518_v57 = vadd.f32 %v517_v0, %v411_v52  ;;  %1408 = vmatpush1.msra.mxu0 %v1147_v7  ;;  %v969_v59 = vmax.f32 %v516_v11, 0.0  ;;  %v414_v61 = vpop.f32.mrf.mxu0 }
 0x110   :  { %1409 = vmatprep.subr.mxu0 %v1146_v54  ;;  %v415_v63 = vadd.f32 %v414_v61, %v5183_v46 }
 0x111   :  { %v970_v17 = vmax.f32 %v518_v57, 0.0  ;;  %1410 = vmatpush1.msra.mxu0 %v1145_v55  ;;  %v416_v6 = vpop.f32.mrf.mxu0 }
 0x112   :  { %v521_v8 = vpop.f32.mrf.mxu1  ;;  %1411 = vmatprep.subr.mxu0 %v1144_v58  ;;  %v417_v10 = vadd.f32 %v416_v6, %v5187_v27 }
 0x113   :  { %v522_v13 = vadd.f32 %v521_v8, %v415_v63  ;;  %1253 = vmatprep.mubr.f32.mxu0 %v970_v17  ;;  %1412 = vmatpush1.msra.mxu0 %v1143_v62 }
 0x114   :  { %v523_v15 = vpop.f32.mrf.mxu1  ;;  %1254 = vmatmul.mubr.f32.gmra.mxu0 %v969_v59  ;;  %1413 = vmatprep.subr.mxu0 %v1142_v2 }
 0x115   :  { %v524_v19 = vadd.f32 %v523_v15, %v417_v10  ;;  %1414 = vmatpush1.msra.mxu0 %v1141_v9  ;;  %v974_v22 = vmax.f32 %v522_v13, 0.0  ;;  %v420_v24 = vpop.f32.mrf.mxu0  ;;  %v5267_v9 = vsub.s32 2, %v5168_v44 }
 0x116   :  { %1415 = vmatprep.subr.mxu0 %v1140_v14  ;;  %v421_v26 = vadd.f32 %v420_v24, %v5183_v46  ;;  %v325_v14 = vsub.s32 3, %v5168_v44 }
 0x117   :  { %v975_v28 = vmax.f32 %v524_v19, 0.0  ;;  %1416 = vmatpush1.msra.mxu0 %v1139_v18  ;;  %v422_v30 = vpop.f32.mrf.mxu0 }
 0x118   :  { %v527_v32 = vpop.f32.mrf.mxu1  ;;  %1417 = vmatprep.subr.mxu0 %v1138_v21  ;;  %v423_v35 = vadd.f32 %v422_v30, %v5187_v27 }
 0x119   :  { %v528_v36 = vadd.f32 %v527_v32, %v421_v26  ;;  %1259 = vmatprep.mubr.f32.mxu0 %v975_v28  ;;  %1418 = vmatpush1.msra.mxu0 %v1137_v25 }
 0x11a   :  { %v529_v39 = vpop.f32.mrf.mxu1  ;;  %1260 = vmatmul.mubr.f32.gmra.mxu0 %v974_v22  ;;  %1419 = vmatprep.subr.mxu0 %v1136_v29 }
 0x11b   :  { %v530_v41 = vadd.f32 %v529_v39, %v423_v35  ;;  %1420 = vmatpush1.msra.mxu0 %v1135_v33  ;;  %v979_v1 = vmax.f32 %v528_v36, 0.0  ;;  %v426_v4 = vpop.f32.mrf.mxu0 }
 0x11c   :  { %1421 = vmatprep.subr.mxu0 %v1134_v37  ;;  %v427_v20 = vadd.f32 %v426_v4, %v5183_v46 }
 0x11d   :  { %v980_v34 = vmax.f32 %v530_v41, 0.0  ;;  %1422 = vmatpush1.msra.mxu0 %v1133_v40  ;;  %v428_v38 = vpop.f32.mrf.mxu0 }
 0x11e   :  { %v533_v31 = vpop.f32.mrf.mxu1  ;;  %1423 = vmatprep.subr.mxu0 %v1132_v43  ;;  %v429_v48 = vadd.f32 %v428_v38, %v5187_v27 }
 0x11f   :  { %v534_v49 = vadd.f32 %v533_v31, %v427_v20  ;;  %1265 = vmatprep.mubr.f32.mxu0 %v980_v34  ;;  %1424 = vmatpush1.msra.mxu0 %v1131_v12 }
 0x120   :  { %v535_v56 = vpop.f32.mrf.mxu1  ;;  %1266 = vmatmul.mubr.f32.gmra.mxu0 %v979_v1  ;;  %1425 = vmatprep.subr.mxu0 %v1130_v47 }
 0x121   :  { %v536_v60 = vadd.f32 %v535_v56, %v429_v48  ;;  %1426 = vmatpush1.msra.mxu0 %v1129_v45  ;;  %v984_v51 = vmax.f32 %v534_v49, 0.0  ;;  %v432_v53 = vpop.f32.mrf.mxu0 }
 0x122   :  { %1427 = vmatprep.subr.mxu0 %v1128_v42  ;;  %v433_v7 = vadd.f32 %v432_v53, %v5183_v46 }
 0x123   :  { %v985_v52 = vmax.f32 %v536_v60, 0.0  ;;  %1428 = vmatpush1.msra.mxu0 %v1127_v50  ;;  %v434_v11 = vpop.f32.mrf.mxu0 }
 0x124   :  { %v539_v54 = vpop.f32.mrf.mxu1  ;;  %v435_v0 = vadd.f32 %v434_v11, %v5187_v27 }
 0x125   :  { %v540_v55 = vadd.f32 %v539_v54, %v433_v7  ;;  %1271 = vmatprep.mubr.f32.mxu0 %v985_v52 }
 0x126   :  { %v541_v57 = vpop.f32.mrf.mxu1  ;;  %1272 = vmatmul.mubr.f32.gmra.mxu0 %v984_v51 }
 0x127   :  { %v542_v58 = vadd.f32 %v541_v57, %v435_v0  ;;  %v989_v59 = vmax.f32 %v540_v55, 0.0 }
 0x128   :  { %v438_v61 = vpop.f32.mrf.mxu0 }
 0x129   :  { %v439_v62 = vadd.f32 %v438_v61, %v5183_v46  ;;  %v990_v63 = vmax.f32 %v542_v58, 0.0  ;;  %v5272_v46 = vrot.slane %v5176_v3, %v5267_v9 }
 0x12a   :  { %v440_v17 = vpop.f32.mrf.mxu0  ;;  %v545_v2 = vpop.f32.mrf.mxu1 }
 0x12b   :  { %v441_v6 = vadd.f32 %v440_v17, %v5187_v27  ;;  %v546_v8 = vadd.f32 %v545_v2, %v439_v62  ;;  %1277 = vmatprep.mubr.f32.mxu0 %v990_v63  ;;  %v5277_v27 = vrot.slane %v5176_v3, %v325_v14 }
 0x12c   :  { %v547_v10 = vpop.f32.mrf.mxu1  ;;  %1278 = vmatmul.mubr.f32.gmra.mxu0 %v989_v59 }
 0x12d   :  { %v548_v13 = vadd.f32 %v547_v10, %v441_v6  ;;  %v994_v15 = vmax.f32 %v546_v8, 0.0 }
 0x12f   :  { %v995_v18 = vmax.f32 %v548_v13, 0.0 }
 0x131   :  { %1283 = vmatprep.mubr.f32.mxu0 %v995_v18 }
 0x132   :  { %v616_v19 = vpop.f32.mrf.mxu1  ;;  %v723_v21 = vpop.f32.mrf.mxu0  ;;  %1284 = vmatmul.mubr.f32.gmra.mxu0 %v994_v15 }
 0x133   :  { %v617_v22 = vadd.f32 %v616_v19, %v5272_v46  ;;  %1461 = vmatprep.mubr.f32.mxu0 %v3766_v5 }
 0x134   :  { %v618_v24 = vpop.f32.mrf.mxu1  ;;  %v725_v28 = vpop.f32.mrf.mxu0 }
 0x135   :  { %v619_v25 = vadd.f32 %v618_v24, %v5277_v27  ;;  %v724_v26 = vadd.f32 %v723_v21, %v617_v22 }
 0x136   :  { %v622_v29 = vpop.f32.mrf.mxu1 }
 0x137   :  { %v726_v30 = vadd.f32 %v725_v28, %v619_v25  ;;  %v623_v32 = vadd.f32 %v622_v29, %v5272_v46  ;;  %v966_v39 = vmax.f32 %v724_v26, 0.0 }
 0x138   :  { %v624_v33 = vpop.f32.mrf.mxu1 }
 0x139   :  { %v967_v35 = vmax.f32 %v726_v30, 0.0  ;;  %v625_v36 = vadd.f32 %v624_v33, %v5277_v27  ;;  %v729_v37 = vpop.f32.mrf.mxu0 }
 0x13a   :  { %v730_v40 = vadd.f32 %v729_v37, %v623_v32 }
 0x13b   :  { %v731_v41 = vpop.f32.mrf.mxu0  ;;  %1354 = vmatprep.mubr.f32.mxu1 %v967_v35 }
 0x13c   :  { %v628_v43 = vpop.f32.mrf.mxu1  ;;  %v732_v1 = vadd.f32 %v731_v41, %v625_v36  ;;  %1355 = vmatmul.mubr.f32.vlgmr.msra.gmra.mxu1 %v966_v39  ;;  %v971_v4 = vmax.f32 %v730_v40, 0.0  ;;  %v329_v39 = vsub.s32 4, %v5168_v44  ;;  %v6918_v44 = vld [vmem:[%s7336_s11 + $0x6e8] sm:$0xff] }
 0x13d   :  { %v629_v12 = vadd.f32 %v628_v43, %v5272_v46 }
 0x13e   :  { %v972_v20 = vmax.f32 %v732_v1, 0.0  ;;  %v630_v34 = vpop.f32.mrf.mxu1  ;;  %v735_v47 = vpop.f32.mrf.mxu0 }
 0x13f   :  { %v631_v38 = vadd.f32 %v630_v34, %v5277_v27  ;;  %v736_v31 = vadd.f32 %v735_v47, %v629_v12 }
 0x140   :  { %v737_v45 = vpop.f32.mrf.mxu0  ;;  %1360 = vmatprep.mubr.f32.mxu1 %v972_v20 }
 0x141   :  { %v738_v48 = vadd.f32 %v737_v45, %v631_v38  ;;  %1361 = vmatmul.mubr.f32.gmra.mxu1 %v971_v4  ;;  %v976_v49 = vmax.f32 %v736_v31, 0.0 }
 0x142   :  { %v634_v42 = vpop.f32.mrf.mxu1 }
 0x143   :  { %v635_v56 = vadd.f32 %v634_v42, %v5272_v46  ;;  %v977_v50 = vmax.f32 %v738_v48, 0.0 }
 0x144   :  { %v636_v60 = vpop.f32.mrf.mxu1  ;;  %v741_v51 = vpop.f32.mrf.mxu0 }
 0x145   :  { %v637_v53 = vadd.f32 %v636_v60, %v5277_v27  ;;  %v742_v7 = vadd.f32 %v741_v51, %v635_v56  ;;  %1366 = vmatprep.mubr.f32.mxu1 %v977_v50 }
 0x146   :  { %v743_v52 = vpop.f32.mrf.mxu0  ;;  %1367 = vmatmul.mubr.f32.gmra.mxu1 %v976_v49 }
 0x147   :  { %v744_v11 = vadd.f32 %v743_v52, %v637_v53  ;;  %v981_v54 = vmax.f32 %v742_v7, 0.0 }
 0x148   :  { %v640_v0 = vpop.f32.mrf.mxu1 }
 0x149   :  { %v641_v55 = vadd.f32 %v640_v0, %v5272_v46  ;;  %v982_v57 = vmax.f32 %v744_v11, 0.0 }
 0x14a   :  { %v642_v58 = vpop.f32.mrf.mxu1  ;;  %v747_v59 = vpop.f32.mrf.mxu0 }
 0x14b   :  { %v643_v61 = vadd.f32 %v642_v58, %v5277_v27  ;;  %v748_v62 = vadd.f32 %v747_v59, %v641_v55  ;;  %1372 = vmatprep.mubr.f32.mxu1 %v982_v57 }
 0x14c   :  { %v749_v63 = vpop.f32.mrf.mxu0  ;;  %1373 = vmatmul.mubr.f32.gmra.mxu1 %v981_v54 }
 0x14d   :  { %v750_v17 = vadd.f32 %v749_v63, %v643_v61  ;;  %v986_v2 = vmax.f32 %v748_v62, 0.0  ;;  %v1549_v62 = vld [vmem:[%s7330_s5 + $0xf8] sm:$0xff] }
 0x14e   :  { %v646_v6 = vpop.f32.mrf.mxu1  ;;  %1602 = vmatprep.subr.mxu1 %v1549_v62  ;;  %v1567_v62 = vld [vmem:[%s7330_s5 + $0x188] sm:$0xff] }
 0x14f   :  { %v647_v8 = vadd.f32 %v646_v6, %v5272_v46  ;;  %v987_v10 = vmax.f32 %v750_v17, 0.0 }
 0x150   :  { %v648_v13 = vpop.f32.mrf.mxu1  ;;  %v753_v15 = vpop.f32.mrf.mxu0 }
 0x151   :  { %v649_v18 = vadd.f32 %v648_v13, %v5277_v27  ;;  %v754_v19 = vadd.f32 %v753_v15, %v647_v8  ;;  %1378 = vmatprep.mubr.f32.mxu1 %v987_v10 }
 0x152   :  { %v755_v21 = vpop.f32.mrf.mxu0  ;;  %1379 = vmatmul.mubr.f32.gmra.mxu1 %v986_v2 }
 0x153   :  { %v756_v22 = vadd.f32 %v755_v21, %v649_v18  ;;  %v991_v24 = vmax.f32 %v754_v19, 0.0  ;;  %v1548_v18 = vld [vmem:[%s7330_s5 + $0xf0] sm:$0xff]  ;;  %v1547_v19 = vld [vmem:[%s7330_s5 + $0xe8] sm:$0xff] }
 0x154   :  { %v652_v25 = vpop.f32.mrf.mxu1  ;;  %1603 = vmatpush1.msra.mxu1 %v1548_v18  ;;  %v1558_v18 = vld [vmem:[%s7330_s5 + $0x140] sm:$0xff] }
 0x155   :  { %v653_v26 = vadd.f32 %v652_v25, %v5272_v46  ;;  %v992_v28 = vmax.f32 %v756_v22, 0.0  ;;  %v5298_v46 = vrot.slane %v5176_v3, %v329_v39  ;;  %1604 = vmatprep.subr.mxu1 %v1547_v19  ;;  %v1557_v19 = vld [vmem:[%s7330_s5 + $0x138] sm:$0xff] }
 0x156   :  { %v654_v29 = vpop.f32.mrf.mxu1  ;;  %v759_v30 = vpop.f32.mrf.mxu0 }
 0x157   :  { %v655_v32 = vadd.f32 %v654_v29, %v5277_v27  ;;  %v760_v33 = vadd.f32 %v759_v30, %v653_v26  ;;  %1384 = vmatprep.mubr.f32.mxu1 %v992_v28  ;;  %v1546_v26 = vld [vmem:[%s7330_s5 + $0xe0] sm:$0xff]  ;;  %v1545_v28 = vld [vmem:[%s7330_s5 + $0xd8] sm:$0xff]  ;;  %v1544_v29 = vld [vmem:[%s7330_s5 + $0xd0] sm:$0xff] }
 0x158   :  { %v761_v35 = vpop.f32.mrf.mxu0  ;;  %1385 = vmatmul.mubr.f32.gmra.mxu1 %v991_v24 }
 0x159   :  { %v762_v36 = vadd.f32 %v761_v35, %v655_v32  ;;  %v996_v37 = vmax.f32 %v760_v33, 0.0  ;;  %1605 = vmatpush1.msra.mxu1 %v1546_v26  ;;  %v1543_v35 = vld [vmem:[%s7330_s5 + $0xc8] sm:$0xff]  ;;  %v1552_v26 = vld [vmem:[%s7330_s5 + $0x110] sm:$0xff] }
 0x15a   :  { %1606 = vmatprep.subr.mxu1 %v1545_v28  ;;  %v1551_v28 = vld [vmem:[%s7330_s5 + $0x108] sm:$0xff] }
 0x15b   :  { %v997_v40 = vmax.f32 %v762_v36, 0.0  ;;  %1607 = vmatpush1.msra.mxu1 %v1544_v29  ;;  %v1550_v29 = vld [vmem:[%s7330_s5 + $0x100] sm:$0xff] }
 0x15c   :  { %1608 = vmatprep.subr.mxu1 %v1543_v35  ;;  %v1737_v35 = vld [vmem:[%s7332_s7 + $0xe0] sm:$0xff] }
 0x15d   :  { %v3428_v41 = vpop.f32.mrf.mxu0  ;;  %1390 = vmatprep.mubr.f32.mxu1 %v997_v40 }
 0x15e   :  { %1391 = vmatmul.mubr.f32.gmra.mxu1 %v996_v37  ;;  %v1542_v37 = vld [vmem:[%s7330_s5 + $0xc0] sm:$0xff] }
 0x15f   :  { %v3429_v43 = vpop.f32.mrf.mxu0  ;;  %1609 = vmatpush1.msra.mxu1 %v1542_v37  ;;  %v1735_v37 = vld [vmem:[%s7332_s7 + $0xd0] sm:$0xff] }
 0x160   :  { %v3430_v1 = vadd.f32 %v3429_v43, %v3428_v41 }
 0x161   :  { %v3431_v27 = vpop.f32.mrf.mxu0 }
 0x162   :  { %v831_v4 = vadd.f32 %v3430_v1, %v5298_v46  ;;  %v930_v12 = vpop.f32.mrf.mxu1  ;;  %v1541_v1 = vld [vmem:[%s7330_s5 + $0xb8] sm:$0xff] }
 0x163   :  { %v3432_v20 = vpop.f32.mrf.mxu0  ;;  %1610 = vmatprep.subr.mxu1 %v1541_v1  ;;  %v1731_v1 = vld [vmem:[%s7332_s7 + $0xb0] sm:$0xff] }
 0x164   :  { %v931_v34 = vadd.f32 %v930_v12, %v831_v4  ;;  %v3433_v47 = vadd.f32 %v3432_v20, %v3431_v27  ;;  %v3630_v38 = vpop.f32.mrf.mxu1 }
 0x165   :  { %v3434_v31 = vpop.f32.mrf.mxu0  ;;  %v1539_v38 = vld [vmem:[%s7330_s5 + $0xa8] sm:$0xff] }
 0x166   :  { %v968_v45 = vmax.f32 %v931_v34, 0.0  ;;  %v836_v48 = vadd.f32 %v3433_v47, %v5298_v46  ;;  %v935_v49 = vpop.f32.mrf.mxu1  ;;  %v1540_v47 = vld [vmem:[%s7330_s5 + $0xb0] sm:$0xff] }
 0x167   :  { %v3435_v42 = vpop.f32.mrf.mxu0  ;;  %1611 = vmatpush1.msra.mxu1 %v1540_v47  ;;  %v1725_v47 = vld [vmem:[%s7332_s7 + $0x80] sm:$0xff] }
 0x168   :  { %v3436_v56 = vadd.f32 %v3435_v42, %v3434_v31  ;;  %v936_v3 = vadd.f32 %v935_v49, %v836_v48  ;;  %3347 = vmatmul.mubr.msk.f32.vlgmr.msra.gmra.mxu0 %vm1161_vm1, %v968_v45  ;;  %v3633_v50 = vpop.f32.mrf.mxu1  ;;  %1612 = vmatprep.subr.mxu1 %v1539_v38  ;;  %v1537_v45 = vld [vmem:[%s7330_s5 + $0x98] sm:$0xff]  ;;  %v1536_v48 = vld [vmem:[%s7330_s5 + $0x90] sm:$0xff]  ;;  %v1535_v49 = vld [vmem:[%s7330_s5 + $0x88] sm:$0xff] }
 0x169   :  { %v3437_v60 = vpop.f32.mrf.mxu0  ;;  %1467 = vmatprep.mubr.f32.mxu0 %v3766_v5  ;;  %v1534_v42 = vld [vmem:[%s7330_s5 + $0x80] sm:$0xff]  ;;  %v1531_v50 = vld [vmem:[%s7330_s5 + $0x68] sm:$0xff]  ;;  %v1724_v38 = vld [vmem:[%s7332_s7 + $0x78] sm:$0xff] }
 0x16a   :  { %v973_v51 = vmax.f32 %v936_v3, 0.0  ;;  %v841_v53 = vadd.f32 %v3436_v56, %v5298_v46  ;;  %v940_v7 = vpop.f32.mrf.mxu1  ;;  %v1533_v56 = vld [vmem:[%s7330_s5 + $0x78] sm:$0xff]  ;;  %v1532_v3 = vld [vmem:[%s7330_s5 + $0x70] sm:$0xff] }
 0x16b   :  { %v3438_v52 = vpop.f32.mrf.mxu0 }
 0x16c   :  { %v3439_v11 = vadd.f32 %v3438_v52, %v3437_v60  ;;  %v941_v54 = vadd.f32 %v940_v7, %v841_v53  ;;  %3348 = vmatmul.mubr.msk.f32.gmra.mxu0 %vm1161_vm1, %v973_v51  ;;  %v3636_v0 = vpop.f32.mrf.mxu1  ;;  %v1530_v60 = vld [vmem:[%s7330_s5 + $0x60] sm:$0xff]  ;;  %v1529_v51 = vld [vmem:[%s7330_s5 + $0x58] sm:$0xff]  ;;  %v1528_v53 = vld [vmem:[%s7330_s5 + $0x50] sm:$0xff] }
 0x16d   :  { %v3440_v55 = vpop.f32.mrf.mxu0  ;;  %1473 = vmatprep.mubr.f32.mxu0 %v3766_v5  ;;  %v1527_v7 = vld [vmem:[%s7330_s5 + $0x48] sm:$0xff]  ;;  %v1526_v52 = vld [vmem:[%s7330_s5 + $0x40] sm:$0xff] }
 0x16e   :  { %v978_v57 = vmax.f32 %v941_v54, 0.0  ;;  %v846_v58 = vadd.f32 %v3439_v11, %v5298_v46  ;;  %v945_v59 = vpop.f32.mrf.mxu1  ;;  %v1525_v11 = vld [vmem:[%s7330_s5 + $0x38] sm:$0xff]  ;;  %v1524_v54 = vld [vmem:[%s7330_s5 + $0x30] sm:$0xff]  ;;  %v1523_v0 = vld [vmem:[%s7330_s5 + $0x28] sm:$0xff] }
 0x16f   :  { %v3441_v61 = vpop.f32.mrf.mxu0 }
 0x170   :  { %v3442_v63 = vadd.f32 %v3441_v61, %v3440_v55  ;;  %v946_v17 = vadd.f32 %v945_v59, %v846_v58  ;;  %3349 = vmatmul.mubr.msk.f32.gmra.mxu0 %vm1161_vm1, %v978_v57  ;;  %v3639_v2 = vpop.f32.mrf.mxu1  ;;  %v1522_v55 = vld [vmem:[%s7330_s5 + $0x20] sm:$0xff]  ;;  %v1521_v57 = vld [vmem:[%s7330_s5 + $0x18] sm:$0xff]  ;;  %v1520_v58 = vld [vmem:[%s7330_s5 + $0x10] sm:$0xff] }
 0x171   :  { %v3443_v6 = vpop.f32.mrf.mxu0  ;;  %1479 = vmatprep.mubr.f32.mxu0 %v3766_v5  ;;  %v1519_v59 = vld [vmem:[%s7330_s5 + $0x8] sm:$0xff]  ;;  %v1518_v61 = vld [vmem:[%s7330_s5] sm:$0xff]  ;;  %v1564_v2 = vld [vmem:[%s7330_s5 + $0x170] sm:$0xff] }
 0x172   :  { %v983_v8 = vmax.f32 %v946_v17, 0.0  ;;  %v851_v10 = vadd.f32 %v3442_v63, %v5298_v46  ;;  %v950_v13 = vpop.f32.mrf.mxu1  ;;  %v1566_v63 = vld [vmem:[%s7330_s5 + $0x180] sm:$0xff]  ;;  %v1565_v17 = vld [vmem:[%s7330_s5 + $0x178] sm:$0xff] }
 0x173   :  { %v3444_v15 = vpop.f32.mrf.mxu0 }
 0x174   :  { %v3445_v21 = vadd.f32 %v3444_v15, %v3443_v6  ;;  %v951_v22 = vadd.f32 %v950_v13, %v851_v10  ;;  %3350 = vmatmul.mubr.msk.f32.gmra.mxu0 %vm1161_vm1, %v983_v8  ;;  %v3642_v24 = vpop.f32.mrf.mxu1  ;;  %v1563_v6 = vld [vmem:[%s7330_s5 + $0x168] sm:$0xff]  ;;  %v1562_v8 = vld [vmem:[%s7330_s5 + $0x160] sm:$0xff]  ;;  %v1561_v10 = vld [vmem:[%s7330_s5 + $0x158] sm:$0xff] }
 0x175   :  { %v3446_v25 = vpop.f32.mrf.mxu0  ;;  %1485 = vmatprep.mubr.f32.mxu0 %v3766_v5  ;;  %v1560_v13 = vld [vmem:[%s7330_s5 + $0x150] sm:$0xff]  ;;  %v1559_v15 = vld [vmem:[%s7330_s5 + $0x148] sm:$0xff]  ;;  %v1554_v24 = vld [vmem:[%s7330_s5 + $0x120] sm:$0xff] }
 0x176   :  { %v988_v30 = vmax.f32 %v951_v22, 0.0  ;;  %v856_v32 = vadd.f32 %v3445_v21, %v5298_v46  ;;  %v955_v33 = vpop.f32.mrf.mxu1  ;;  %v1556_v21 = vld [vmem:[%s7330_s5 + $0x130] sm:$0xff]  ;;  %v1555_v22 = vld [vmem:[%s7330_s5 + $0x128] sm:$0xff] }
 0x177   :  { %v3447_v36 = vpop.f32.mrf.mxu0 }
 0x178   :  { %v3448_v40 = vadd.f32 %v3447_v36, %v3446_v25  ;;  %v956_v41 = vadd.f32 %v955_v33, %v856_v32  ;;  %3351 = vmatmul.mubr.msk.f32.gmra.mxu0 %vm1161_vm1, %v988_v30  ;;  %v3645_v43 = vpop.f32.mrf.mxu1  ;;  %v1553_v25 = vld [vmem:[%s7330_s5 + $0x118] sm:$0xff]  ;;  %v1739_v32 = vld [vmem:[%s7332_s7 + $0xf0] sm:$0xff]  ;;  %v1738_v33 = vld [vmem:[%s7332_s7 + $0xe8] sm:$0xff] }
 0x179   :  { %1491 = vmatprep.mubr.f32.mxu0 %v3766_v5  ;;  %v1740_v30 = vld [vmem:[%s7332_s7 + $0xf8] sm:$0xff] }
 0x17a   :  { %v993_v27 = vmax.f32 %v956_v41, 0.0  ;;  %v861_v4 = vadd.f32 %v3448_v40, %v5298_v46  ;;  %v960_v12 = vpop.f32.mrf.mxu1  ;;  %v1538_v46 = vld [vmem:[%s7330_s5 + $0xa0] sm:$0xff]  ;;  %1753 = vmatprep.subr.mxu0 %v1740_v30  ;;  %v1736_v36 = vld [vmem:[%s7332_s7 + $0xd8] sm:$0xff]  ;;  %v1734_v40 = vld [vmem:[%s7332_s7 + $0xc8] sm:$0xff] }
 0x17b   :  { %1613 = vmatpush1.msra.mxu1 %v1538_v46  ;;  %1754 = vmatpush1.msra.mxu0 %v1739_v32  ;;  %v1733_v41 = vld [vmem:[%s7332_s7 + $0xc0] sm:$0xff]  ;;  %v1732_v43 = vld [vmem:[%s7332_s7 + $0xb8] sm:$0xff]  ;;  %v1722_v46 = vld [vmem:[%s7332_s7 + $0x68] sm:$0xff] }
 0x17c   :  { %v961_v20 = vadd.f32 %v960_v12, %v861_v4  ;;  %3352 = vmatmul.mubr.msk.f32.gmra.mxu0 %vm1161_vm1, %v993_v27  ;;  %v3648_v34 = vpop.f32.mrf.mxu1  ;;  %1614 = vmatprep.subr.mxu1 %v1537_v45  ;;  %v1730_v27 = vld [vmem:[%s7332_s7 + $0xa8] sm:$0xff]  ;;  %v1729_v4 = vld [vmem:[%s7332_s7 + $0xa0] sm:$0xff]  ;;  %v1728_v12 = vld [vmem:[%s7332_s7 + $0x98] sm:$0xff] }
 0x17d   :  { %1497 = vmatprep.mubr.f32.mxu0 %v3766_v5  ;;  %1615 = vmatpush1.msra.mxu1 %v1536_v48  ;;  %v1726_v34 = vld [vmem:[%s7332_s7 + $0x88] sm:$0xff]  ;;  %v1721_v45 = vld [vmem:[%s7332_s7 + $0x60] sm:$0xff]  ;;  %v1720_v48 = vld [vmem:[%s7332_s7 + $0x58] sm:$0xff] }
 0x17e   :  { %v998_v31 = vmax.f32 %v961_v20, 0.0  ;;  %1616 = vmatprep.subr.mxu1 %v1535_v49  ;;  %1755 = vmatprep.subr.mxu0 %v1738_v33  ;;  %v1727_v20 = vld [vmem:[%s7332_s7 + $0x90] sm:$0xff] }
 0x17f   :  { %1617 = vmatpush1.msra.mxu1 %v1534_v42  ;;  %1756 = vmatpush1.msra.mxu0 %v1737_v35  ;;  %v1719_v49 = vld [vmem:[%s7332_s7 + $0x50] sm:$0xff]  ;;  %v1718_v42 = vld [vmem:[%s7332_s7 + $0x48] sm:$0xff] }
 0x180   :  { %3353 = vmatmul.mubr.msk.f32.gmra.mxu0 %vm1161_vm1, %v998_v31  ;;  %1618 = vmatprep.subr.mxu1 %v1533_v56  ;;  %v1723_v31 = vld [vmem:[%s7332_s7 + $0x70] sm:$0xff]  ;;  %v1717_v56 = vld [vmem:[%s7332_s7 + $0x40] sm:$0xff] }
 0x181   :  { %1817 = vmatprep.mubr.f32.mxu0 %v3766_v5  ;;  %1619 = vmatpush1.msra.mxu1 %v1532_v3  ;;  %v1716_v3 = vld [vmem:[%s7332_s7 + $0x38] sm:$0xff] }
 0x182   :  { %1620 = vmatprep.subr.mxu1 %v1531_v50  ;;  %1757 = vmatprep.subr.mxu0 %v1736_v36  ;;  %v1715_v50 = vld [vmem:[%s7332_s7 + $0x30] sm:$0xff] }
 0x183   :  { %1621 = vmatpush1.msra.mxu1 %v1530_v60  ;;  %1758 = vmatpush1.msra.mxu0 %v1735_v37  ;;  %v1714_v60 = vld [vmem:[%s7332_s7 + $0x28] sm:$0xff] }
 0x184   :  { %1622 = vmatprep.subr.mxu1 %v1529_v51  ;;  %1759 = vmatprep.subr.mxu0 %v1734_v40  ;;  %v1713_v51 = vld [vmem:[%s7332_s7 + $0x20] sm:$0xff] }
 0x185   :  { %1623 = vmatpush1.msra.mxu1 %v1528_v53  ;;  %1760 = vmatpush1.msra.mxu0 %v1733_v41  ;;  %v1712_v53 = vld [vmem:[%s7332_s7 + $0x18] sm:$0xff] }
 0x186   :  { %1624 = vmatprep.subr.mxu1 %v1527_v7  ;;  %1761 = vmatprep.subr.mxu0 %v1732_v43 }
 0x187   :  { %1625 = vmatpush1.msra.mxu1 %v1526_v52  ;;  %1762 = vmatpush1.msra.mxu0 %v1731_v1 }
 0x188   :  { %1626 = vmatprep.subr.mxu1 %v1525_v11  ;;  %1763 = vmatprep.subr.mxu0 %v1730_v27 }
 0x189   :  { %1627 = vmatpush1.msra.mxu1 %v1524_v54  ;;  %1764 = vmatpush1.msra.mxu0 %v1729_v4 }
 0x18a   :  { %1628 = vmatprep.subr.mxu1 %v1523_v0  ;;  %1765 = vmatprep.subr.mxu0 %v1728_v12 }
 0x18b   :  { %1629 = vmatpush1.msra.mxu1 %v1522_v55  ;;  %1766 = vmatpush1.msra.mxu0 %v1727_v20 }
 0x18c   :  { %1630 = vmatprep.subr.mxu1 %v1521_v57  ;;  %1767 = vmatprep.subr.mxu0 %v1726_v34 }
 0x18d   :  { %1631 = vmatpush1.msra.mxu1 %v1520_v58  ;;  %1768 = vmatpush1.msra.mxu0 %v1725_v47 }
 0x18e   :  { %1632 = vmatprep.subr.mxu1 %v1519_v59  ;;  %1769 = vmatprep.subr.mxu0 %v1724_v38 }
 0x18f   :  { %1633 = vmatpush1.msra.mxu1 %v1518_v61  ;;  %1770 = vmatpush1.msra.mxu0 %v1723_v31 }
 0x190   :  { %1648 = vmatprep.subr.mxu1 %v1567_v62  ;;  %1771 = vmatprep.subr.mxu0 %v1722_v46 }
 0x191   :  { %1649 = vmatpush2.msra.mxu1 %v1566_v63  ;;  %1772 = vmatpush1.msra.mxu0 %v1721_v45 }
 0x192   :  { %1650 = vmatprep.subr.mxu1 %v1565_v17  ;;  %1773 = vmatprep.subr.mxu0 %v1720_v48 }
 0x193   :  { %1651 = vmatpush2.msra.mxu1 %v1564_v2  ;;  %1774 = vmatpush1.msra.mxu0 %v1719_v49 }
 0x194   :  { %1652 = vmatprep.subr.mxu1 %v1563_v6  ;;  %1775 = vmatprep.subr.mxu0 %v1718_v42 }
 0x195   :  { %1653 = vmatpush2.msra.mxu1 %v1562_v8  ;;  %1776 = vmatpush1.msra.mxu0 %v1717_v56 }
 0x196   :  { %1654 = vmatprep.subr.mxu1 %v1561_v10  ;;  %1777 = vmatprep.subr.mxu0 %v1716_v3 }
 0x197   :  { %1655 = vmatpush2.msra.mxu1 %v1560_v13  ;;  %1778 = vmatpush1.msra.mxu0 %v1715_v50 }
 0x198   :  { %1656 = vmatprep.subr.mxu1 %v1559_v15  ;;  %1779 = vmatprep.subr.mxu0 %v1714_v60  ;;  %v1149_v15 = vld [vmem:[%s7329_s4] sm:$0x3] }
 0x199   :  { %1657 = vmatpush2.msra.mxu1 %v1558_v18  ;;  %1780 = vmatpush1.msra.mxu0 %v1713_v51  ;;  %v5566_v18 = vrot.slane %v1149_v15, %v5171_v16 }
 0x19a   :  { %1658 = vmatprep.subr.mxu1 %v1557_v19  ;;  %1781 = vmatprep.subr.mxu0 %v1712_v53 }
 0x19b   :  { %1659 = vmatpush2.msra.mxu1 %v1556_v21 }
 0x19c   :  { %1660 = vmatprep.subr.mxu1 %v1555_v22  ;;  %v5571_v22 = vrot.slane %v1149_v15, %v5179_v23 }
 0x19d   :  { %1661 = vmatpush2.msra.mxu1 %v1554_v24 }
 0x19e   :  { %1662 = vmatprep.subr.mxu1 %v1553_v25 }
 0x19f   :  { %1663 = vmatpush2.msra.mxu1 %v1552_v26 }
 0x1a0   :  { %1664 = vmatprep.subr.mxu1 %v1551_v28 }
 0x1a1   :  { %1665 = vmatpush2.msra.mxu1 %v1550_v29 }
 0x1ce   :  { %v1249_v7 = vpop.f32.mrf.mxu0 }
 0x1cf   :  { %v1250_v24 = vadd.f32 %v1249_v7, %v5566_v18 }
 0x1d0   :  { %v1251_v52 = vpop.f32.mrf.mxu0 }
 0x1d1   :  { %v1252_v28 = vadd.f32 %v1251_v52, %v5571_v22 }
 0x1d4   :  { %v1255_v11 = vpop.f32.mrf.mxu0 }
 0x1d5   :  { %v1256_v33 = vadd.f32 %v1255_v11, %v5566_v18 }
 0x1d6   :  { %v1257_v54 = vpop.f32.mrf.mxu0 }
 0x1d7   :  { %v1258_v40 = vadd.f32 %v1257_v54, %v5571_v22 }
 0x1da   :  { %v1261_v0 = vpop.f32.mrf.mxu0 }
 0x1db   :  { %v1262_v12 = vadd.f32 %v1261_v0, %v5566_v18 }
 0x1dc   :  { %v1263_v55 = vpop.f32.mrf.mxu0 }
 0x1dd   :  { %v1264_v31 = vadd.f32 %v1263_v55, %v5571_v22 }
 0x1e0   :  { %v1267_v57 = vpop.f32.mrf.mxu0 }
 0x1e1   :  { %v1268_v56 = vadd.f32 %v1267_v57, %v5566_v18 }
 0x1e2   :  { %v1269_v59 = vpop.f32.mrf.mxu0 }
 0x1e3   :  { %v1270_v53 = vadd.f32 %v1269_v59, %v5571_v22 }
 0x1e6   :  { %v1273_v62 = vpop.f32.mrf.mxu0 }
 0x1e7   :  { %v1274_v55 = vadd.f32 %v1273_v62, %v5566_v18 }
 0x1e8   :  { %v1275_v17 = vpop.f32.mrf.mxu0 }
 0x1ec   :  { %v5558_v6 = vpop.f32.mrf.mxu0 }
 0x1ee   :  { %v5560_v10 = vpop.f32.mrf.mxu0 }
 0x1f2   :  { %v5568_v19 = vpop.f32.mrf.mxu0 }
 0x1f4   :  { %v5574_v25 = vpop.f32.mrf.mxu0 }
 0x1fc   :  { %v1356_v58 = vpop.f32.mrf.mxu1 }
 0x1fd   :  { %v1357_v29 = vadd.f32 %v1356_v58, %v1250_v24  ;;  %v1280_v24 = vadd.f32 %v5558_v6, %v5566_v18 }
 0x1fe   :  { %v1358_v61 = vpop.f32.mrf.mxu1 }
 0x1ff   :  { %v1359_v32 = vadd.f32 %v1358_v61, %v1252_v28 }
 0x201   :  { %v1362_v63 = vpop.f32.mrf.mxu1 }
 0x202   :  { %v1363_v43 = vadd.f32 %v1362_v63, %v1256_v33 }
 0x203   :  { %v1364_v2 = vpop.f32.mrf.mxu1 }
 0x204   :  { %v1365_v27 = vadd.f32 %v1364_v2, %v1258_v40  ;;  %v1276_v2 = vadd.f32 %v1275_v17, %v5571_v22 }
 0x206   :  { %v1368_v8 = vpop.f32.mrf.mxu1 }
 0x207   :  { %v1369_v45 = vadd.f32 %v1368_v8, %v1262_v12 }
 0x208   :  { %v1370_v13 = vpop.f32.mrf.mxu1 }
 0x209   :  { %v1371_v49 = vadd.f32 %v1370_v13, %v1264_v31 }
 0x20c   :  { %v1374_v21 = vpop.f32.mrf.mxu1 }
 0x20d   :  { %v1375_v52 = vadd.f32 %v1374_v21, %v1268_v56  ;;  %v1944_v56 = vld [vmem:[%s7334_s9 + $0x230] sm:$0xff] }
 0x20e   :  { %v1376_v26 = vpop.f32.mrf.mxu1 }
 0x20f   :  { %v1377_v54 = vadd.f32 %v1376_v26, %v1270_v53  ;;  %v1930_v53 = vld [vmem:[%s7334_s9 + $0x1c0] sm:$0xff] }
 0x212   :  { %v1380_v35 = vpop.f32.mrf.mxu1 }
 0x213   :  { %v1381_v59 = vadd.f32 %v1380_v35, %v1274_v55  ;;  %v1915_v55 = vld [vmem:[%s7334_s9 + $0x148] sm:$0xff] }
 0x214   :  { %v1382_v20 = vpop.f32.mrf.mxu1 }
 0x215   :  { %v1383_v15 = vadd.f32 %v1382_v20, %v1276_v2  ;;  %v1904_v2 = vld [vmem:[%s7334_s9 + $0xf0] sm:$0xff] }
 0x218   :  { %v1386_v3 = vpop.f32.mrf.mxu1 }
 0x219   :  { %v1387_v17 = vadd.f32 %v1386_v3, %v1280_v24  ;;  %v1940_v3 = vld [vmem:[%s7334_s9 + $0x210] sm:$0xff]  ;;  %v1889_v24 = vld [vmem:[%s7334_s9 + $0x78] sm:$0xff] }
 0x21a   :  { %v1388_v58 = vpop.f32.mrf.mxu1 }
 0x21e   :  { %v1392_v26 = vpop.f32.mrf.mxu1 }
 0x220   :  { %v1394_v40 = vpop.f32.mrf.mxu1 }
 0x228   :  { %v1463_v30 = vpop.f32.mrf.mxu0 }
 0x229   :  { %v1464_v36 = vadd.f32 %v1463_v30, %v1357_v29  ;;  %v1282_v30 = vadd.f32 %v5560_v10, %v5571_v22 }
 0x22a   :  { %v1465_v37 = vpop.f32.mrf.mxu0 }
 0x22b   :  { %v1466_v41 = vadd.f32 %v1465_v37, %v1359_v32  ;;  %v1504_v34 = vmax.f32 %v1464_v36, 0.0  ;;  %v1389_v35 = vadd.f32 %v1388_v58, %v1282_v30  ;;  %v1286_v37 = vadd.f32 %v5568_v19, %v5566_v18  ;;  %v1914_v58 = vld [vmem:[%s7334_s9 + $0x140] sm:$0xff]  ;;  %v1875_v30 = vld [vmem:[%s7334_s9 + $0x8] sm:$0xff] }
 0x22c   :  { %v1469_v1 = vpop.f32.mrf.mxu0 }
 0x22d   :  { %v1505_v4 = vmax.f32 %v1466_v41, 0.0  ;;  %v1470_v47 = vadd.f32 %v1469_v1, %v1363_v43  ;;  %v1288_v1 = vadd.f32 %v5574_v25, %v5571_v22  ;;  %v1393_v10 = vadd.f32 %v1392_v26, %v1286_v37  ;;  %v1711_v22 = vld [vmem:[%s7332_s7 + $0x10] sm:$0xff]  ;;  %v1710_v25 = vld [vmem:[%s7332_s7 + $0x8] sm:$0xff]  ;;  %v1885_v26 = vld [vmem:[%s7334_s9 + $0x58] sm:$0xff] }
 0x22e   :  { %v1471_v38 = vpop.f32.mrf.mxu0  ;;  %1782 = vmatpush1.msra.mxu0 %v1711_v22  ;;  %v1985_v37 = vld [vmem:[%s7334_s9 + $0x378] sm:$0xff] }
 0x22f   :  { %v1472_v46 = vadd.f32 %v1471_v38, %v1365_v27  ;;  %3354 = vmatprep.mubr.msk.f32.mxu1 %vm1580_vm2, %v1505_v4  ;;  %v1506_v50 = vmax.f32 %v1470_v47, 0.0  ;;  %v1395_v12 = vadd.f32 %v1394_v40, %v1288_v1  ;;  %1783 = vmatprep.subr.mxu0 %v1710_v25  ;;  %v1984_v40 = vld [vmem:[%s7334_s9 + $0x370] sm:$0xff]  ;;  %v1974_v1 = vld [vmem:[%s7334_s9 + $0x320] sm:$0xff] }
 0x230   :  { %v1475_v48 = vpop.f32.mrf.mxu0  ;;  %1667 = vmatmul.mubr.f32.vlgmr.msra.gmra.mxu1 %v1504_v34  ;;  %v1942_v25 = vld [vmem:[%s7334_s9 + $0x220] sm:$0xff] }
 0x231   :  { %v1507_v42 = vmax.f32 %v1472_v46, 0.0  ;;  %v1476_v60 = vadd.f32 %v1475_v48, %v1369_v45  ;;  %v1709_v46 = vld [vmem:[%s7332_s7] sm:$0xff]  ;;  %v1949_v48 = vld [vmem:[%s7334_s9 + $0x258] sm:$0xff] }
 0x232   :  { %v1477_v51 = vpop.f32.mrf.mxu0  ;;  %1784 = vmatpush1.msra.mxu0 %v1709_v46  ;;  %v1950_v45 = vld [vmem:[%s7334_s9 + $0x260] sm:$0xff] }
 0x233   :  { %v1478_v7 = vadd.f32 %v1477_v51, %v1371_v49  ;;  %3355 = vmatprep.mubr.msk.f32.mxu1 %vm1580_vm2, %v1507_v42  ;;  %v1508_v61 = vmax.f32 %v1476_v60, 0.0  ;;  %v1952_v49 = vld [vmem:[%s7334_s9 + $0x270] sm:$0xff]  ;;  %2047 = vmatprep.subr.mxu1 %v1950_v45  ;;  %v1945_v42 = vld [vmem:[%s7334_s9 + $0x238] sm:$0xff]  ;;  %v1935_v60 = vld [vmem:[%s7334_s9 + $0x1e8] sm:$0xff] }
 0x234   :  { %v1481_v11 = vpop.f32.mrf.mxu0  ;;  %1673 = vmatmul.mubr.f32.gmra.mxu1 %v1506_v50  ;;  %2154 = vmatprep.subr.mxu0 %v1952_v49  ;;  %v1939_v50 = vld [vmem:[%s7334_s9 + $0x208] sm:$0xff]  ;;  %v1934_v51 = vld [vmem:[%s7334_s9 + $0x1e0] sm:$0xff]  ;;  %v1941_v45 = vld [vmem:[%s7334_s9 + $0x218] sm:$0xff] }
 0x235   :  { %v1509_v0 = vmax.f32 %v1478_v7, 0.0  ;;  %v1482_v63 = vadd.f32 %v1481_v11, %v1375_v52  ;;  %2048 = vmatpush1.msra.mxu1 %v1949_v48  ;;  %v1929_v7 = vld [vmem:[%s7334_s9 + $0x1b8] sm:$0xff]  ;;  %v1924_v11 = vld [vmem:[%s7334_s9 + $0x190] sm:$0xff] }
 0x236   :  { %v1483_v57 = vpop.f32.mrf.mxu0  ;;  %2049 = vmatprep.subr.mxu1 %v1945_v42  ;;  %v1925_v52 = vld [vmem:[%s7334_s9 + $0x198] sm:$0xff] }
 0x237   :  { %v1484_v8 = vadd.f32 %v1483_v57, %v1377_v54  ;;  %3356 = vmatprep.mubr.msk.f32.mxu1 %vm1580_vm2, %v1509_v0  ;;  %v1510_v28 = vmax.f32 %v1482_v63, 0.0  ;;  %2050 = vmatpush1.msra.mxu1 %v1944_v56  ;;  %v1920_v54 = vld [vmem:[%s7334_s9 + $0x170] sm:$0xff]  ;;  %v1919_v0 = vld [vmem:[%s7334_s9 + $0x168] sm:$0xff]  ;;  %v1909_v63 = vld [vmem:[%s7334_s9 + $0x118] sm:$0xff] }
 0x238   :  { %v1487_v13 = vpop.f32.mrf.mxu0  ;;  %1679 = vmatmul.mubr.f32.gmra.mxu1 %v1508_v61  ;;  %2051 = vmatprep.subr.mxu1 %v1940_v3  ;;  %v1910_v61 = vld [vmem:[%s7334_s9 + $0x120] sm:$0xff]  ;;  %v1905_v57 = vld [vmem:[%s7334_s9 + $0xf8] sm:$0xff]  ;;  %v1936_v56 = vld [vmem:[%s7334_s9 + $0x1f0] sm:$0xff] }
 0x239   :  { %v1511_v21 = vmax.f32 %v1484_v8, 0.0  ;;  %v1488_v62 = vadd.f32 %v1487_v13, %v1381_v59  ;;  %2052 = vmatpush1.msra.mxu1 %v1939_v50  ;;  %v1900_v8 = vld [vmem:[%s7334_s9 + $0xd0] sm:$0xff]  ;;  %v1899_v59 = vld [vmem:[%s7334_s9 + $0xc8] sm:$0xff]  ;;  %v1937_v49 = vld [vmem:[%s7334_s9 + $0x1f8] sm:$0xff] }
 0x23a   :  { %v1489_v29 = vpop.f32.mrf.mxu0  ;;  %2053 = vmatprep.subr.mxu1 %v1935_v60  ;;  %v1895_v13 = vld [vmem:[%s7334_s9 + $0xa8] sm:$0xff]  ;;  %v1932_v50 = vld [vmem:[%s7334_s9 + $0x1d0] sm:$0xff] }
 0x23b   :  { %v1490_v32 = vadd.f32 %v1489_v29, %v1383_v15  ;;  %3357 = vmatprep.mubr.msk.f32.mxu1 %vm1580_vm2, %v1511_v21  ;;  %v1512_v6 = vmax.f32 %v1488_v62, 0.0  ;;  %2054 = vmatpush1.msra.mxu1 %v1934_v51  ;;  %v1894_v15 = vld [vmem:[%s7334_s9 + $0xa0] sm:$0xff]  ;;  %v1880_v62 = vld [vmem:[%s7334_s9 + $0x30] sm:$0xff]  ;;  %v1879_v29 = vld [vmem:[%s7334_s9 + $0x28] sm:$0xff] }
 0x23c   :  { %v1493_v33 = vpop.f32.mrf.mxu0  ;;  %1685 = vmatmul.mubr.f32.gmra.mxu1 %v1510_v28  ;;  %2055 = vmatprep.subr.mxu1 %v1930_v53  ;;  %v1890_v21 = vld [vmem:[%s7334_s9 + $0x80] sm:$0xff]  ;;  %v1884_v28 = vld [vmem:[%s7334_s9 + $0x50] sm:$0xff]  ;;  %v1931_v51 = vld [vmem:[%s7334_s9 + $0x1c8] sm:$0xff] }
 0x23d   :  { %v1513_v36 = vmax.f32 %v1490_v32, 0.0  ;;  %v1494_v41 = vadd.f32 %v1493_v33, %v1387_v17  ;;  %2056 = vmatpush1.msra.mxu1 %v1929_v7  ;;  %v1874_v32 = vld [vmem:[%s7334_s9] sm:$0xff]  ;;  %v1995_v17 = vld [vmem:[%s7334_s9 + $0x3c8] sm:$0xff] }
 0x23e   :  { %v1495_v43 = vpop.f32.mrf.mxu0  ;;  %2057 = vmatprep.subr.mxu1 %v1925_v52  ;;  %v1994_v33 = vld [vmem:[%s7334_s9 + $0x3c0] sm:$0xff]  ;;  %v1927_v7 = vld [vmem:[%s7334_s9 + $0x1a8] sm:$0xff] }
 0x23f   :  { %v1496_v27 = vadd.f32 %v1495_v43, %v1389_v35  ;;  %3358 = vmatprep.mubr.msk.f32.mxu1 %vm1580_vm2, %v1513_v36  ;;  %v1514_v34 = vmax.f32 %v1494_v41, 0.0  ;;  %2058 = vmatpush1.msra.mxu1 %v1924_v11  ;;  %v1990_v35 = vld [vmem:[%s7334_s9 + $0x3a0] sm:$0xff]  ;;  %v1989_v36 = vld [vmem:[%s7334_s9 + $0x398] sm:$0xff]  ;;  %v1979_v41 = vld [vmem:[%s7334_s9 + $0x348] sm:$0xff] }
 0x240   :  { %v1499_v4 = vpop.f32.mrf.mxu0  ;;  %1691 = vmatmul.mubr.f32.gmra.mxu1 %v1512_v6  ;;  %2059 = vmatprep.subr.mxu1 %v1920_v54  ;;  %v1980_v6 = vld [vmem:[%s7334_s9 + $0x350] sm:$0xff]  ;;  %v1975_v43 = vld [vmem:[%s7334_s9 + $0x328] sm:$0xff]  ;;  %v1926_v11 = vld [vmem:[%s7334_s9 + $0x1a0] sm:$0xff] }
 0x241   :  { %v1515_v20 = vmax.f32 %v1496_v27, 0.0  ;;  %v1500_v47 = vadd.f32 %v1499_v4, %v1393_v10  ;;  %2060 = vmatpush1.msra.mxu1 %v1919_v0  ;;  %v1970_v27 = vld [vmem:[%s7334_s9 + $0x300] sm:$0xff] }
 0x242   :  { %v1501_v38 = vpop.f32.mrf.mxu0  ;;  %2061 = vmatprep.subr.mxu1 %v1915_v55  ;;  %v1568_v10 = vld [vmem:[%s7331_s6] sm:$0x3] }
 0x243   :  { %v1502_v31 = vadd.f32 %v1501_v38, %v1395_v12  ;;  %3359 = vmatprep.mubr.msk.f32.mxu1 %vm1580_vm2, %v1515_v20  ;;  %v1516_v19 = vmax.f32 %v1500_v47, 0.0  ;;  %2062 = vmatpush1.msra.mxu1 %v1914_v58  ;;  %v5745_v4 = vrot.slane %v1568_v10, %v5171_v16  ;;  %v5748_v12 = vrot.slane %v1568_v10, %v5179_v23  ;;  %v1951_v47 = vld [vmem:[%s7334_s9 + $0x268] sm:$0xff]  ;;  %v1922_v0 = vld [vmem:[%s7334_s9 + $0x180] sm:$0xff]  ;;  %v1921_v58 = vld [vmem:[%s7334_s9 + $0x178] sm:$0xff] }
 0x244   :  { %1697 = vmatmul.mubr.f32.gmra.mxu1 %v1514_v34  ;;  %2063 = vmatprep.subr.mxu1 %v1910_v61  ;;  %v1886_v10 = vld [vmem:[%s7334_s9 + $0x60] sm:$0xff] }
 0x245   :  { %v1517_v18 = vmax.f32 %v1502_v31, 0.0  ;;  %2064 = vmatpush1.msra.mxu1 %v1909_v63  ;;  %v1947_v31 = vld [vmem:[%s7334_s9 + $0x248] sm:$0xff]  ;;  %v1917_v63 = vld [vmem:[%s7334_s9 + $0x158] sm:$0xff] }
 0x246   :  { %2065 = vmatprep.subr.mxu1 %v1905_v57 }
 0x247   :  { %3360 = vmatprep.mubr.msk.f32.mxu1 %vm1580_vm2, %v1517_v18  ;;  %2066 = vmatpush1.msra.mxu1 %v1904_v2  ;;  %v1916_v2 = vld [vmem:[%s7334_s9 + $0x150] sm:$0xff] }
 0x248   :  { %1703 = vmatmul.mubr.f32.gmra.mxu1 %v1516_v19  ;;  %2067 = vmatprep.subr.mxu1 %v1900_v8  ;;  %v1946_v19 = vld [vmem:[%s7334_s9 + $0x240] sm:$0xff] }
 0x249   :  { %2068 = vmatpush1.msra.mxu1 %v1899_v59  ;;  %v1912_v59 = vld [vmem:[%s7334_s9 + $0x130] sm:$0xff] }
 0x24a   :  { %2069 = vmatprep.subr.mxu1 %v1895_v13 }
 0x24b   :  { %2070 = vmatpush1.msra.mxu1 %v1894_v15  ;;  %v1911_v15 = vld [vmem:[%s7334_s9 + $0x128] sm:$0xff] }
 0x24c   :  { %2071 = vmatprep.subr.mxu1 %v1890_v21 }
 0x24d   :  { %2072 = vmatpush1.msra.mxu1 %v1889_v24  ;;  %v1907_v24 = vld [vmem:[%s7334_s9 + $0x108] sm:$0xff] }
 0x24e   :  { %2073 = vmatprep.subr.mxu1 %v1885_v26 }
 0x24f   :  { %2074 = vmatpush1.msra.mxu1 %v1884_v28  ;;  %v1906_v28 = vld [vmem:[%s7334_s9 + $0x100] sm:$0xff] }
 0x250   :  { %2075 = vmatprep.subr.mxu1 %v1880_v62 }
 0x251   :  { %2076 = vmatpush1.msra.mxu1 %v1879_v29  ;;  %v1902_v29 = vld [vmem:[%s7334_s9 + $0xe0] sm:$0xff] }
 0x252   :  { %2077 = vmatprep.subr.mxu1 %v1875_v30 }
 0x253   :  { %2078 = vmatpush1.msra.mxu1 %v1874_v32  ;;  %v1901_v32 = vld [vmem:[%s7334_s9 + $0xd8] sm:$0xff] }
 0x254   :  { %2093 = vmatprep.subr.mxu1 %v1995_v17 }
 0x255   :  { %2094 = vmatpush2.msra.mxu1 %v1994_v33  ;;  %v1897_v33 = vld [vmem:[%s7334_s9 + $0xb8] sm:$0xff] }
 0x256   :  { %2095 = vmatprep.subr.mxu1 %v1990_v35 }
 0x257   :  { %2096 = vmatpush2.msra.mxu1 %v1989_v36  ;;  %v1896_v36 = vld [vmem:[%s7334_s9 + $0xb0] sm:$0xff] }
 0x258   :  { %2097 = vmatprep.subr.mxu1 %v1985_v37 }
 0x259   :  { %2098 = vmatpush2.msra.mxu1 %v1984_v40  ;;  %v1892_v40 = vld [vmem:[%s7334_s9 + $0x90] sm:$0xff] }
 0x25a   :  { %2099 = vmatprep.subr.mxu1 %v1980_v6 }
 0x25b   :  { %2100 = vmatpush2.msra.mxu1 %v1979_v41  ;;  %v1891_v41 = vld [vmem:[%s7334_s9 + $0x88] sm:$0xff] }
 0x25c   :  { %2101 = vmatprep.subr.mxu1 %v1975_v43 }
 0x25d   :  { %2102 = vmatpush2.msra.mxu1 %v1974_v1  ;;  %v1887_v1 = vld [vmem:[%s7334_s9 + $0x68] sm:$0xff] }
 0x25e   :  { %2103 = vmatprep.subr.mxu1 %v1970_v27 }
 0x2f0   :  { %v1668_v20 = vpop.f32.mrf.mxu1 }
 0x2f1   :  { %v1669_v34 = vadd.f32 %v1668_v20, %v5745_v4  ;;  %v1881_v20 = vld [vmem:[%s7334_s9 + $0x38] sm:$0xff] }
 0x2f2   :  { %v1670_v38 = vpop.f32.mrf.mxu1 }
 0x2f3   :  { %3301 = vst [vmem:[#allocation4] sm:$0xff] %v1669_v34  ;;  %v1671_v18 = vadd.f32 %v1670_v38, %v5748_v12  ;;  %1818 = vmatmul.mubr.f32.vlgmr.msra.gmra.mxu0 %v1669_v34  ;;  %v1876_v34 = vld [vmem:[%s7334_s9 + $0x10] sm:$0xff] }
 0x2f4   :  { %v1674_v22 = vpop.f32.mrf.mxu1  ;;  %1823 = vmatprep.mubr.f32.mxu0 %v3766_v5  ;;  %2155 = vmatpush1.msra.mxu0 %v1951_v47  ;;  %v1997_v47 = vld [vmem:[%s7334_s9 + $0x3d8] sm:$0xff]  ;;  %v1996_v38 = vld [vmem:[%s7334_s9 + $0x3d0] sm:$0xff] }
 0x2f5   :  { %3302 = vst [vmem:[#allocation4 + $0x8] sm:$0xff] %v1671_v18  ;;  %v1675_v46 = vadd.f32 %v1674_v22, %v5745_v4  ;;  %2156 = vmatprep.subr.mxu0 %v1947_v31  ;;  %v1992_v31 = vld [vmem:[%s7334_s9 + $0x3b0] sm:$0xff]  ;;  %v1991_v18 = vld [vmem:[%s7334_s9 + $0x3a8] sm:$0xff]  ;;  %v1986_v22 = vld [vmem:[%s7334_s9 + $0x380] sm:$0xff] }
 0x2f6   :  { %v1676_v48 = vpop.f32.mrf.mxu1  ;;  %2157 = vmatpush1.msra.mxu0 %v1946_v19  ;;  %v1987_v19 = vld [vmem:[%s7334_s9 + $0x388] sm:$0xff] }
 0x2f7   :  { %3303 = vst [vmem:[#allocation4 + $0x10] sm:$0xff] %v1675_v46  ;;  %v1677_v42 = vadd.f32 %v1676_v48, %v5748_v12  ;;  %1824 = vmatmul.mubr.f32.gmra.mxu0 %v1675_v46  ;;  %2158 = vmatprep.subr.mxu0 %v1942_v25  ;;  %v1982_v25 = vld [vmem:[%s7334_s9 + $0x360] sm:$0xff]  ;;  %v1981_v46 = vld [vmem:[%s7334_s9 + $0x358] sm:$0xff]  ;;  %v1976_v48 = vld [vmem:[%s7334_s9 + $0x330] sm:$0xff] }
 0x2f8   :  { %v1680_v3 = vpop.f32.mrf.mxu1  ;;  %1829 = vmatprep.mubr.f32.mxu0 %v3766_v5  ;;  %2159 = vmatpush1.msra.mxu0 %v1941_v45  ;;  %v1977_v45 = vld [vmem:[%s7334_s9 + $0x338] sm:$0xff] }
 0x2f9   :  { %3304 = vst [vmem:[#allocation4 + $0x18] sm:$0xff] %v1677_v42  ;;  %v1681_v60 = vadd.f32 %v1680_v3, %v5745_v4  ;;  %2160 = vmatprep.subr.mxu0 %v1937_v49  ;;  %v1969_v49 = vld [vmem:[%s7334_s9 + $0x2f8] sm:$0xff]  ;;  %v1972_v42 = vld [vmem:[%s7334_s9 + $0x310] sm:$0xff]  ;;  %v1971_v3 = vld [vmem:[%s7334_s9 + $0x308] sm:$0xff] }
 0x2fa   :  { %v1682_v53 = vpop.f32.mrf.mxu1  ;;  %2161 = vmatpush1.msra.mxu0 %v1936_v56  ;;  %2104 = vmatpush2.msra.mxu1 %v1969_v49  ;;  %v1965_v56 = vld [vmem:[%s7334_s9 + $0x2d8] sm:$0xff] }
 0x2fb   :  { %3305 = vst [vmem:[#allocation4 + $0x20] sm:$0xff] %v1681_v60  ;;  %v1683_v52 = vadd.f32 %v1682_v53, %v5748_v12  ;;  %1830 = vmatmul.mubr.f32.gmra.mxu0 %v1681_v60  ;;  %2162 = vmatprep.subr.mxu0 %v1932_v50  ;;  %v1964_v50 = vld [vmem:[%s7334_s9 + $0x2d0] sm:$0xff]  ;;  %v1967_v60 = vld [vmem:[%s7334_s9 + $0x2e8] sm:$0xff]  ;;  %v1966_v53 = vld [vmem:[%s7334_s9 + $0x2e0] sm:$0xff] }
 0x2fc   :  { %v1686_v54 = vpop.f32.mrf.mxu1  ;;  %1835 = vmatprep.mubr.f32.mxu0 %v3766_v5  ;;  %2163 = vmatpush1.msra.mxu0 %v1931_v51  ;;  %v1960_v51 = vld [vmem:[%s7334_s9 + $0x2b0] sm:$0xff] }
 0x2fd   :  { %3306 = vst [vmem:[#allocation4 + $0x28] sm:$0xff] %v1683_v52  ;;  %v1687_v55 = vadd.f32 %v1686_v54, %v5745_v4  ;;  %2164 = vmatprep.subr.mxu0 %v1927_v7  ;;  %2105 = vmatprep.subr.mxu1 %v1965_v56  ;;  %v1959_v7 = vld [vmem:[%s7334_s9 + $0x2a8] sm:$0xff]  ;;  %v1962_v52 = vld [vmem:[%s7334_s9 + $0x2c0] sm:$0xff]  ;;  %v1961_v54 = vld [vmem:[%s7334_s9 + $0x2b8] sm:$0xff] }
 0x2fe   :  { %v1688_v61 = vpop.f32.mrf.mxu1  ;;  %2165 = vmatpush1.msra.mxu0 %v1926_v11  ;;  %2106 = vmatpush2.msra.mxu1 %v1964_v50  ;;  %v1955_v11 = vld [vmem:[%s7334_s9 + $0x288] sm:$0xff]  ;;  %v1918_v56 = vld [vmem:[%s7334_s9 + $0x160] sm:$0xff] }
 0x2ff   :  { %3307 = vst [vmem:[#allocation4 + $0x30] sm:$0xff] %v1687_v55  ;;  %v1689_v57 = vadd.f32 %v1688_v61, %v5748_v12  ;;  %1836 = vmatmul.mubr.f32.gmra.mxu0 %v1687_v55  ;;  %2166 = vmatprep.subr.mxu0 %v1922_v0  ;;  %v1954_v0 = vld [vmem:[%s7334_s9 + $0x280] sm:$0xff]  ;;  %v1957_v55 = vld [vmem:[%s7334_s9 + $0x298] sm:$0xff]  ;;  %v2442_v61 = vld [vmem:[%s7336_s11 + $0x170] sm:$0xff] }
 0x300   :  { %v1692_v8 = vpop.f32.mrf.mxu1  ;;  %1841 = vmatprep.mubr.f32.mxu0 %v3766_v5  ;;  %2167 = vmatpush1.msra.mxu0 %v1921_v58  ;;  %v1956_v58 = vld [vmem:[%s7334_s9 + $0x290] sm:$0xff] }
 0x301   :  { %3308 = vst [vmem:[#allocation4 + $0x38] sm:$0xff] %v1689_v57  ;;  %v1693_v13 = vadd.f32 %v1692_v8, %v5745_v4  ;;  %2168 = vmatprep.subr.mxu0 %v1917_v63  ;;  %2107 = vmatprep.subr.mxu1 %v1960_v51  ;;  %v1741_v63 = vld [vmem:[%s7333_s8] sm:$0x3] }
 0x302   :  { %v1694_v21 = vpop.f32.mrf.mxu1  ;;  %2169 = vmatpush1.msra.mxu0 %v1916_v2  ;;  %2108 = vmatpush2.msra.mxu1 %v1959_v7  ;;  %v5946_v57 = vrot.slane %v1741_v63, %v5171_v16  ;;  %v5949_v2 = vrot.slane %v1741_v63, %v5179_v23 }
 0x303   :  { %3309 = vst [vmem:[#allocation4 + $0x40] sm:$0xff] %v1693_v13  ;;  %v1695_v26 = vadd.f32 %v1694_v21, %v5748_v12  ;;  %1842 = vmatmul.mubr.f32.gmra.mxu0 %v1693_v13  ;;  %2170 = vmatprep.subr.mxu0 %v1912_v59 }
 0x304   :  { %v1698_v62 = vpop.f32.mrf.mxu1  ;;  %1847 = vmatprep.mubr.f32.mxu0 %v3766_v5  ;;  %2171 = vmatpush1.msra.mxu0 %v1911_v15 }
 0x305   :  { %3310 = vst [vmem:[#allocation4 + $0x48] sm:$0xff] %v1695_v26  ;;  %v1699_v30 = vadd.f32 %v1698_v62, %v5745_v4  ;;  %2172 = vmatprep.subr.mxu0 %v1907_v24  ;;  %2109 = vmatprep.subr.mxu1 %v1955_v11  ;;  %v1953_v62 = vld [vmem:[%s7334_s9 + $0x278] sm:$0xff]  ;;  %v1908_v11 = vld [vmem:[%s7334_s9 + $0x110] sm:$0xff] }
 0x306   :  { %v1700_v17 = vpop.f32.mrf.mxu1  ;;  %2173 = vmatpush1.msra.mxu0 %v1906_v28  ;;  %2110 = vmatpush2.msra.mxu1 %v1954_v0 }
 0x307   :  { %3311 = vst [vmem:[#allocation4 + $0x50] sm:$0xff] %v1699_v30  ;;  %v1701_v35 = vadd.f32 %v1700_v17, %v5748_v12  ;;  %1848 = vmatmul.mubr.f32.gmra.mxu0 %v1699_v30  ;;  %2174 = vmatprep.subr.mxu0 %v1902_v29  ;;  %v2441_v29 = vld [vmem:[%s7336_s11 + $0x168] sm:$0xff]  ;;  %v2439_v17 = vld [vmem:[%s7336_s11 + $0x158] sm:$0xff] }
 0x308   :  { %v1704_v37 = vpop.f32.mrf.mxu1  ;;  %1853 = vmatprep.mubr.f32.mxu0 %v3766_v5  ;;  %2175 = vmatpush1.msra.mxu0 %v1901_v32 }
 0x309   :  { %3312 = vst [vmem:[#allocation4 + $0x58] sm:$0xff] %v1701_v35  ;;  %v1705_v6 = vadd.f32 %v1704_v37, %v5745_v4  ;;  %2176 = vmatprep.subr.mxu0 %v1897_v33  ;;  %v1882_v4 = vld [vmem:[%s7334_s9 + $0x40] sm:$0xff]  ;;  %2261 = vmatprep.subr.mxu1 %v3766_v5  ;;  %v1948_v35 = vld [vmem:[%s7334_s9 + $0x250] sm:$0xff] }
 0x30a   :  { %v1706_v43 = vpop.f32.mrf.mxu1  ;;  %2177 = vmatpush1.msra.mxu0 %v1896_v36 }
 0x30b   :  { %3313 = vst [vmem:[#allocation4 + $0x60] sm:$0xff] %v1705_v6  ;;  %v1707_v27 = vadd.f32 %v1706_v43, %v5748_v12  ;;  %1854 = vmatmul.mubr.f32.gmra.mxu0 %v1705_v6  ;;  %2178 = vmatprep.subr.mxu0 %v1892_v40  ;;  %v1877_v12 = vld [vmem:[%s7334_s9 + $0x18] sm:$0xff]  ;;  %v1943_v43 = vld [vmem:[%s7334_s9 + $0x228] sm:$0xff] }
 0x30c   :  { %2179 = vmatpush1.msra.mxu0 %v1891_v41 }
 0x30d   :  { %3314 = vst [vmem:[#allocation4 + $0x68] sm:$0xff] %v1707_v27  ;;  %2180 = vmatprep.subr.mxu0 %v1887_v1  ;;  %v2438_v1 = vld [vmem:[%s7336_s11 + $0x150] sm:$0xff] }
 0x30e   :  { %2181 = vmatpush1.msra.mxu0 %v1886_v10 }
 0x30f   :  { %2182 = vmatprep.subr.mxu0 %v1882_v4  ;;  %v1938_v4 = vld [vmem:[%s7334_s9 + $0x200] sm:$0xff] }
 0x310   :  { %2183 = vmatpush1.msra.mxu0 %v1881_v20 }
 0x311   :  { %2184 = vmatprep.subr.mxu0 %v1877_v12 }
 0x312   :  { %2185 = vmatpush1.msra.mxu0 %v1876_v34 }
 0x313   :  { %2200 = vmatprep.subr.mxu0 %v1997_v47 }
 0x314   :  { %2201 = vmatpush2.msra.mxu0 %v1996_v38  ;;  %v1933_v38 = vld [vmem:[%s7334_s9 + $0x1d8] sm:$0xff] }
 0x315   :  { %2202 = vmatprep.subr.mxu0 %v1992_v31 }
 0x316   :  { %2203 = vmatpush2.msra.mxu0 %v1991_v18 }
 0x317   :  { %2204 = vmatprep.subr.mxu0 %v1987_v19  ;;  %v1928_v19 = vld [vmem:[%s7334_s9 + $0x1b0] sm:$0xff] }
 0x318   :  { %2205 = vmatpush2.msra.mxu0 %v1986_v22 }
 0x319   :  { %2206 = vmatprep.subr.mxu0 %v1982_v25 }
 0x31a   :  { %2207 = vmatpush2.msra.mxu0 %v1981_v46 }
 0x31b   :  { %2208 = vmatprep.subr.mxu0 %v1977_v45 }
 0x31c   :  { %2209 = vmatpush2.msra.mxu0 %v1976_v48  ;;  %v1923_v48 = vld [vmem:[%s7334_s9 + $0x188] sm:$0xff] }
 0x31d   :  { %2210 = vmatprep.subr.mxu0 %v1972_v42 }
 0x31e   :  { %2211 = vmatpush2.msra.mxu0 %v1971_v3 }
 0x31f   :  { %2212 = vmatprep.subr.mxu0 %v1967_v60 }
 0x320   :  { %2213 = vmatpush2.msra.mxu0 %v1966_v53  ;;  %v1913_v53 = vld [vmem:[%s7334_s9 + $0x138] sm:$0xff] }
 0x321   :  { %2214 = vmatprep.subr.mxu0 %v1962_v52 }
 0x322   :  { %2215 = vmatpush2.msra.mxu0 %v1961_v54 }
 0x323   :  { %2216 = vmatprep.subr.mxu0 %v1957_v55 }
 0x324   :  { %2217 = vmatpush2.msra.mxu0 %v1956_v58 }
 0x325   :  { %2659 = vmatprep.subr.mxu0 %v2442_v61  ;;  %v1903_v61 = vld [vmem:[%s7334_s9 + $0xe8] sm:$0xff] }
 0x3b3   :  { %v1819_v8 = vpop.f32.mrf.mxu0 }
 0x3b4   :  { %v1820_v59 = vadd.f32 %v1819_v8, %v5946_v57  ;;  %v1893_v8 = vld [vmem:[%s7334_s9 + $0x98] sm:$0xff] }
 0x3b5   :  { %v1821_v13 = vpop.f32.mrf.mxu0 }
 0x3b6   :  { %v1822_v15 = vadd.f32 %v1821_v13, %v5949_v2  ;;  %v5955_v26 = vmax.f32 %v1820_v59, 0.0  ;;  %v1888_v59 = vld [vmem:[%s7334_s9 + $0x70] sm:$0xff]  ;;  %v2436_v13 = vld [vmem:[%s7336_s11 + $0x140] sm:$0xff] }
 0x3b7   :  { %v1825_v21 = vpop.f32.mrf.mxu0 }
 0x3b8   :  { %v5953_v24 = vmax.f32 %v1822_v15, 0.0  ;;  %v1826_v30 = vadd.f32 %v1825_v21, %v5946_v57  ;;  %v2435_v15 = vld [vmem:[%s7336_s11 + $0x138] sm:$0xff]  ;;  %v1883_v21 = vld [vmem:[%s7334_s9 + $0x48] sm:$0xff] }
 0x3b9   :  { %v1827_v28 = vpop.f32.mrf.mxu0 }
 0x3ba   :  { %v1828_v32 = vadd.f32 %v1827_v28, %v5949_v2  ;;  %3361 = vmatprep.mubr.msk.f32.mxu1 %vm1580_vm2, %v5953_v24  ;;  %3368 = vmatprep.mubr.msk.f32.mxu0 %vm1580_vm2, %v5953_v24  ;;  %v5980_v40 = vmax.f32 %v1826_v30, 0.0  ;;  %v2433_v28 = vld [vmem:[%s7336_s11 + $0x128] sm:$0xff] }
 0x3bb   :  { %v1831_v33 = vpop.f32.mrf.mxu0  ;;  %2112 = vmatmul.mubr.f32.vlgmr.msra.gmra.mxu1 %v5955_v26  ;;  %2219 = vmatmul.mubr.f32.vlgmr.msra.gmra.mxu0 %v5955_v26  ;;  %v2429_v30 = vld [vmem:[%s7336_s11 + $0x108] sm:$0xff] }
 0x3bc   :  { %v5977_v36 = vmax.f32 %v1828_v32, 0.0  ;;  %2262 = vmatpush1.msra.mxu1 %v1953_v62  ;;  %2660 = vmatpush1.msra.mxu0 %v2441_v29  ;;  %v1832_v6 = vadd.f32 %v1831_v33, %v5946_v57  ;;  %v2432_v62 = vld [vmem:[%s7336_s11 + $0x120] sm:$0xff]  ;;  %v2430_v29 = vld [vmem:[%s7336_s11 + $0x110] sm:$0xff] }
 0x3bd   :  { %2263 = vmatprep.subr.mxu1 %v3766_v5  ;;  %v1833_v37 = vpop.f32.mrf.mxu0  ;;  %2661 = vmatprep.subr.mxu0 %v2439_v17  ;;  %v1998_v32 = vld [vmem:[%s7334_s9 + $0x3e0] sm:$0xff]  ;;  %v2427_v17 = vld [vmem:[%s7336_s11 + $0xf8] sm:$0xff]  ;;  %v2426_v33 = vld [vmem:[%s7336_s11 + $0xf0] sm:$0xff] }
 0x3be   :  { %v1834_v41 = vadd.f32 %v1833_v37, %v5949_v2  ;;  %2264 = vmatpush1.msra.mxu1 %v1948_v35  ;;  %3362 = vmatprep.mubr.msk.f32.mxu1 %vm1580_vm2, %v5977_v36  ;;  %v6002_v12 = vmax.f32 %v1832_v6, 0.0  ;;  %v1993_v35 = vld [vmem:[%s7334_s9 + $0x3b8] sm:$0xff]  ;;  %v2424_v37 = vld [vmem:[%s7336_s11 + $0xe0] sm:$0xff] }
 0x3bf   :  { %3369 = vmatprep.mubr.msk.f32.mxu0 %vm1580_vm2, %v5977_v36  ;;  %2265 = vmatprep.subr.mxu1 %v3766_v5  ;;  %v1837_v27 = vpop.f32.mrf.mxu0  ;;  %v2423_v6 = vld [vmem:[%s7336_s11 + $0xd8] sm:$0xff] }
 0x3c0   :  { %v5995_v10 = vmax.f32 %v1834_v41, 0.0  ;;  %2118 = vmatmul.mubr.f32.gmra.mxu1 %v5980_v40  ;;  %2225 = vmatmul.mubr.f32.gmra.mxu0 %v5980_v40  ;;  %v1838_v34 = vadd.f32 %v1837_v27, %v5946_v57  ;;  %v1988_v41 = vld [vmem:[%s7334_s9 + $0x390] sm:$0xff]  ;;  %v1983_v27 = vld [vmem:[%s7334_s9 + $0x368] sm:$0xff] }
 0x3c1   :  { %2266 = vmatpush1.msra.mxu1 %v1943_v43  ;;  %v1839_v20 = vpop.f32.mrf.mxu0  ;;  %2662 = vmatpush1.msra.mxu0 %v2438_v1  ;;  %v2421_v43 = vld [vmem:[%s7336_s11 + $0xc8] sm:$0xff]  ;;  %v2420_v1 = vld [vmem:[%s7336_s11 + $0xc0] sm:$0xff] }
 0x3c2   :  { %2267 = vmatprep.subr.mxu1 %v3766_v5  ;;  %v1840_v47 = vadd.f32 %v1839_v20, %v5949_v2  ;;  %3363 = vmatprep.mubr.msk.f32.mxu1 %vm1580_vm2, %v5995_v10  ;;  %v6022_v25 = vmax.f32 %v1838_v34, 0.0  ;;  %v2417_v20 = vld [vmem:[%s7336_s11 + $0xa8] sm:$0xff]  ;;  %v1978_v34 = vld [vmem:[%s7334_s9 + $0x340] sm:$0xff] }
 0x3c3   :  { %2268 = vmatpush1.msra.mxu1 %v1938_v4  ;;  %3370 = vmatprep.mubr.msk.f32.mxu0 %vm1580_vm2, %v5995_v10  ;;  %v1843_v31 = vpop.f32.mrf.mxu0  ;;  %v2418_v4 = vld [vmem:[%s7336_s11 + $0xb0] sm:$0xff] }
 0x3c4   :  { %v6014_v18 = vmax.f32 %v1840_v47, 0.0  ;;  %2269 = vmatprep.subr.mxu1 %v3766_v5  ;;  %2124 = vmatmul.mubr.f32.gmra.mxu1 %v6002_v12  ;;  %v1844_v46 = vadd.f32 %v1843_v31, %v5946_v57  ;;  %v2415_v47 = vld [vmem:[%s7336_s11 + $0x98] sm:$0xff] }
 0x3c5   :  { %2231 = vmatmul.mubr.f32.gmra.mxu0 %v6002_v12  ;;  %2270 = vmatpush1.msra.mxu1 %v1933_v38  ;;  %v1845_v22 = vpop.f32.mrf.mxu0  ;;  %v2414_v38 = vld [vmem:[%s7336_s11 + $0x90] sm:$0xff]  ;;  %v1973_v31 = vld [vmem:[%s7334_s9 + $0x318] sm:$0xff] }
 0x3c6   :  { %2271 = vmatprep.subr.mxu1 %v3766_v5  ;;  %v1846_v45 = vadd.f32 %v1845_v22, %v5949_v2  ;;  %3364 = vmatprep.mubr.msk.f32.mxu1 %vm1580_vm2, %v6014_v18  ;;  %v6042_v50 = vmax.f32 %v1844_v46, 0.0  ;;  %v2411_v22 = vld [vmem:[%s7336_s11 + $0x78] sm:$0xff]  ;;  %v1968_v46 = vld [vmem:[%s7334_s9 + $0x2f0] sm:$0xff] }
 0x3c7   :  { %2272 = vmatpush1.msra.mxu1 %v1928_v19  ;;  %3371 = vmatprep.mubr.msk.f32.mxu0 %vm1580_vm2, %v6014_v18  ;;  %v1849_v49 = vpop.f32.mrf.mxu0  ;;  %v2412_v19 = vld [vmem:[%s7336_s11 + $0x80] sm:$0xff] }
 0x3c8   :  { %v6034_v42 = vmax.f32 %v1846_v45, 0.0  ;;  %2273 = vmatprep.subr.mxu1 %v3766_v5  ;;  %2130 = vmatmul.mubr.f32.gmra.mxu1 %v6022_v25  ;;  %v1850_v60 = vadd.f32 %v1849_v49, %v5946_v57  ;;  %v2409_v45 = vld [vmem:[%s7336_s11 + $0x68] sm:$0xff] }
 0x3c9   :  { %2237 = vmatmul.mubr.f32.gmra.mxu0 %v6022_v25  ;;  %2274 = vmatpush1.msra.mxu1 %v1923_v48  ;;  %v1851_v3 = vpop.f32.mrf.mxu0  ;;  %v2408_v48 = vld [vmem:[%s7336_s11 + $0x60] sm:$0xff]  ;;  %v1963_v49 = vld [vmem:[%s7334_s9 + $0x2c8] sm:$0xff] }
 0x3ca   :  { %2275 = vmatprep.subr.mxu1 %v3766_v5  ;;  %v1852_v51 = vadd.f32 %v1851_v3, %v5949_v2  ;;  %3365 = vmatprep.mubr.msk.f32.mxu1 %vm1580_vm2, %v6034_v42  ;;  %v6062_v0 = vmax.f32 %v1850_v60, 0.0  ;;  %v2405_v3 = vld [vmem:[%s7336_s11 + $0x48] sm:$0xff]  ;;  %v1958_v60 = vld [vmem:[%s7334_s9 + $0x2a0] sm:$0xff] }
 0x3cb   :  { %2276 = vmatpush1.msra.mxu1 %v1918_v56  ;;  %3372 = vmatprep.mubr.msk.f32.mxu0 %vm1580_vm2, %v6034_v42  ;;  %v1855_v7 = vpop.f32.mrf.mxu0  ;;  %v2406_v56 = vld [vmem:[%s7336_s11 + $0x50] sm:$0xff] }
 0x3cc   :  { %v6054_v52 = vmax.f32 %v1852_v51, 0.0  ;;  %2277 = vmatprep.subr.mxu1 %v3766_v5  ;;  %2136 = vmatmul.mubr.f32.gmra.mxu1 %v6042_v50  ;;  %v1856_v55 = vadd.f32 %v1855_v7, %v5946_v57  ;;  %v1898_v57 = vld [vmem:[%s7334_s9 + $0xc0] sm:$0xff]  ;;  %v2403_v51 = vld [vmem:[%s7336_s11 + $0x38] sm:$0xff]  ;;  %v2537_v7 = vld [vmem:[%s7336_s11 + $0x468] sm:$0xff] }
 0x3cd   :  { %2243 = vmatmul.mubr.f32.gmra.mxu0 %v6042_v50  ;;  %2278 = vmatpush1.msra.mxu1 %v1913_v53  ;;  %v1857_v54 = vpop.f32.mrf.mxu0  ;;  %v2538_v53 = vld [vmem:[%s7336_s11 + $0x470] sm:$0xff] }
 0x3ce   :  { %2279 = vmatprep.subr.mxu1 %v3766_v5  ;;  %v1858_v58 = vadd.f32 %v1857_v54, %v5949_v2  ;;  %3366 = vmatprep.mubr.msk.f32.mxu1 %vm1580_vm2, %v6054_v52  ;;  %v6082_v2 = vmax.f32 %v1856_v55, 0.0  ;;  %v2402_v54 = vld [vmem:[%s7336_s11 + $0x30] sm:$0xff] }
 0x3cf   :  { %2280 = vmatpush1.msra.mxu1 %v1908_v11  ;;  %3373 = vmatprep.mubr.msk.f32.mxu0 %vm1580_vm2, %v6054_v52  ;;  %v2535_v11 = vld [vmem:[%s7336_s11 + $0x458] sm:$0xff]  ;;  %v2534_v55 = vld [vmem:[%s7336_s11 + $0x450] sm:$0xff] }
 0x3d0   :  { %v6074_v63 = vmax.f32 %v1858_v58, 0.0  ;;  %2281 = vmatprep.subr.mxu1 %v3766_v5  ;;  %2142 = vmatmul.mubr.f32.gmra.mxu1 %v6062_v0  ;;  %v2400_v58 = vld [vmem:[%s7336_s11 + $0x20] sm:$0xff] }
 0x3d1   :  { %2249 = vmatmul.mubr.f32.gmra.mxu0 %v6062_v0  ;;  %2282 = vmatpush1.msra.mxu1 %v1903_v61  ;;  %v2532_v61 = vld [vmem:[%s7336_s11 + $0x440] sm:$0xff] }
 0x3d2   :  { %2283 = vmatprep.subr.mxu1 %v3766_v5  ;;  %3367 = vmatprep.mubr.msk.f32.mxu1 %vm1580_vm2, %v6074_v63 }
 0x3d3   :  { %2284 = vmatpush1.msra.mxu1 %v1898_v57  ;;  %3374 = vmatprep.mubr.msk.f32.mxu0 %vm1580_vm2, %v6074_v63  ;;  %v2529_v57 = vld [vmem:[%s7336_s11 + $0x428] sm:$0xff] }
 0x3d4   :  { %2285 = vmatprep.subr.mxu1 %v3766_v5  ;;  %2148 = vmatmul.mubr.f32.gmra.mxu1 %v6082_v2 }
 0x3d5   :  { %2255 = vmatmul.mubr.f32.gmra.mxu0 %v6082_v2  ;;  %2286 = vmatpush1.msra.mxu1 %v1893_v8  ;;  %v2528_v8 = vld [vmem:[%s7336_s11 + $0x420] sm:$0xff] }
 0x3d6   :  { %2287 = vmatprep.subr.mxu1 %v3766_v5  ;;  %3375 = vmatprep.mubr.msk.f32.mxu1 %vm1580_vm2, %v5953_v24  ;;  %v1878_v24 = vld [vmem:[%s7334_s9 + $0x20] sm:$0xff] }
 0x3d7   :  { %2288 = vmatpush1.msra.mxu1 %v1888_v59  ;;  %2663 = vmatprep.subr.mxu0 %v2436_v13  ;;  %v2397_v59 = vld [vmem:[%s7336_s11 + $0x8] sm:$0xff]  ;;  %v2526_v13 = vld [vmem:[%s7336_s11 + $0x410] sm:$0xff] }
 0x3d8   :  { %2289 = vmatprep.subr.mxu1 %v3766_v5  ;;  %2664 = vmatpush1.msra.mxu0 %v2435_v15  ;;  %v2523_v15 = vld [vmem:[%s7336_s11 + $0x3f8] sm:$0xff] }
 0x3d9   :  { %2290 = vmatpush1.msra.mxu1 %v1883_v21  ;;  %2665 = vmatprep.subr.mxu0 %v2433_v28  ;;  %v2522_v21 = vld [vmem:[%s7336_s11 + $0x3f0] sm:$0xff] }
 0x3da   :  { %2291 = vmatprep.subr.mxu1 %v3766_v5  ;;  %2666 = vmatpush1.msra.mxu0 %v2432_v62  ;;  %v2490_v28 = vld [vmem:[%s7336_s11 + $0x2f0] sm:$0xff]  ;;  %v2520_v62 = vld [vmem:[%s7336_s11 + $0x3e0] sm:$0xff] }
 0x3db   :  { %2292 = vmatpush1.msra.mxu1 %v1878_v24  ;;  %2667 = vmatprep.subr.mxu0 %v2430_v29  ;;  %v2517_v24 = vld [vmem:[%s7336_s11 + $0x3c8] sm:$0xff]  ;;  %v2516_v29 = vld [vmem:[%s7336_s11 + $0x3c0] sm:$0xff] }
 0x3dc   :  { %2307 = vmatprep.subr.mxu1 %v3766_v5  ;;  %2668 = vmatpush1.msra.mxu0 %v2429_v30  ;;  %v2487_v30 = vld [vmem:[%s7336_s11 + $0x2d8] sm:$0xff] }
 0x3dd   :  { %2308 = vmatpush2.msra.mxu1 %v1998_v32  ;;  %2669 = vmatprep.subr.mxu0 %v2427_v17  ;;  %v2514_v32 = vld [vmem:[%s7336_s11 + $0x3b0] sm:$0xff]  ;;  %v2511_v17 = vld [vmem:[%s7336_s11 + $0x398] sm:$0xff] }
 0x3de   :  { %2309 = vmatprep.subr.mxu1 %v3766_v5  ;;  %2670 = vmatpush1.msra.mxu0 %v2426_v33  ;;  %v2510_v33 = vld [vmem:[%s7336_s11 + $0x390] sm:$0xff] }
 0x3df   :  { %2310 = vmatpush2.msra.mxu1 %v1993_v35  ;;  %2671 = vmatprep.subr.mxu0 %v2424_v37  ;;  %v2484_v35 = vld [vmem:[%s7336_s11 + $0x2c0] sm:$0xff] }
 0x3e0   :  { %2311 = vmatprep.subr.mxu1 %v3766_v5  ;;  %2672 = vmatpush1.msra.mxu0 %v2423_v6  ;;  %v2508_v37 = vld [vmem:[%s7336_s11 + $0x380] sm:$0xff]  ;;  %v2505_v6 = vld [vmem:[%s7336_s11 + $0x368] sm:$0xff] }
 0x3e1   :  { %2312 = vmatpush2.msra.mxu1 %v1988_v41  ;;  %2673 = vmatprep.subr.mxu0 %v2421_v43  ;;  %v2504_v41 = vld [vmem:[%s7336_s11 + $0x360] sm:$0xff]  ;;  %v2481_v43 = vld [vmem:[%s7336_s11 + $0x2a8] sm:$0xff] }
 0x3e2   :  { %2313 = vmatprep.subr.mxu1 %v3766_v5  ;;  %2674 = vmatpush1.msra.mxu0 %v2420_v1  ;;  %v2502_v1 = vld [vmem:[%s7336_s11 + $0x350] sm:$0xff] }
 0x3e3   :  { %2314 = vmatpush2.msra.mxu1 %v1983_v27  ;;  %2675 = vmatprep.subr.mxu0 %v2418_v4  ;;  %v2480_v27 = vld [vmem:[%s7336_s11 + $0x2a0] sm:$0xff]  ;;  %v2478_v4 = vld [vmem:[%s7336_s11 + $0x290] sm:$0xff] }
 0x3e4   :  { %2315 = vmatprep.subr.mxu1 %v3766_v5  ;;  %2676 = vmatpush1.msra.mxu0 %v2417_v20  ;;  %v2498_v20 = vld [vmem:[%s7336_s11 + $0x330] sm:$0xff] }
 0x3e5   :  { %2316 = vmatpush2.msra.mxu1 %v1978_v34  ;;  %2677 = vmatprep.subr.mxu0 %v2415_v47  ;;  %v2477_v34 = vld [vmem:[%s7336_s11 + $0x288] sm:$0xff]  ;;  %v2496_v47 = vld [vmem:[%s7336_s11 + $0x320] sm:$0xff] }
 0x3e6   :  { %2317 = vmatprep.subr.mxu1 %v3766_v5  ;;  %2678 = vmatpush1.msra.mxu0 %v2414_v38  ;;  %v2475_v38 = vld [vmem:[%s7336_s11 + $0x278] sm:$0xff] }
 0x3e7   :  { %2318 = vmatpush2.msra.mxu1 %v1973_v31  ;;  %2679 = vmatprep.subr.mxu0 %v2412_v19  ;;  %v2474_v31 = vld [vmem:[%s7336_s11 + $0x270] sm:$0xff]  ;;  %v2493_v19 = vld [vmem:[%s7336_s11 + $0x308] sm:$0xff] }
 0x3e8   :  { %2319 = vmatprep.subr.mxu1 %v3766_v5  ;;  %2680 = vmatpush1.msra.mxu0 %v2411_v22  ;;  %v2472_v22 = vld [vmem:[%s7336_s11 + $0x260] sm:$0xff] }
 0x3e9   :  { %2320 = vmatpush2.msra.mxu1 %v1968_v46  ;;  %2681 = vmatprep.subr.mxu0 %v2409_v45  ;;  %v2492_v46 = vld [vmem:[%s7336_s11 + $0x300] sm:$0xff]  ;;  %v2471_v45 = vld [vmem:[%s7336_s11 + $0x258] sm:$0xff] }
 0x3ea   :  { %2321 = vmatprep.subr.mxu1 %v3766_v5  ;;  %2682 = vmatpush1.msra.mxu0 %v2408_v48  ;;  %v2586_v48 = vld [vmem:[%s7336_s11 + $0x5f0] sm:$0xff] }
 0x3eb   :  { %2322 = vmatpush2.msra.mxu1 %v1963_v49  ;;  %2683 = vmatprep.subr.mxu0 %v2406_v56  ;;  %v2469_v49 = vld [vmem:[%s7336_s11 + $0x248] sm:$0xff] }
 0x3ec   :  { %2323 = vmatprep.subr.mxu1 %v3766_v5  ;;  %2684 = vmatpush1.msra.mxu0 %v2405_v3  ;;  %v2585_v56 = vld [vmem:[%s7336_s11 + $0x5e8] sm:$0xff]  ;;  %v2468_v3 = vld [vmem:[%s7336_s11 + $0x240] sm:$0xff] }
 0x3ed   :  { %2324 = vmatpush2.msra.mxu1 %v1958_v60  ;;  %2685 = vmatprep.subr.mxu0 %v2403_v51  ;;  %v2583_v60 = vld [vmem:[%s7336_s11 + $0x5d8] sm:$0xff]  ;;  %v2466_v51 = vld [vmem:[%s7336_s11 + $0x230] sm:$0xff] }
 0x3ee   :  { %2326 = vmatmul.mubr.f32.vlgmr.msra.gmra.mxu1 %v5955_v26  ;;  %2766 = vmatprep.subr.mxu1 %v2538_v53  ;;  %v2531_v26 = vld [vmem:[%s7336_s11 + $0x438] sm:$0xff]  ;;  %v2582_v53 = vld [vmem:[%s7336_s11 + $0x5d0] sm:$0xff] }
 0x3ef   :  { %3376 = vmatprep.mubr.msk.f32.mxu1 %vm1580_vm2, %v5977_v36  ;;  %2767 = vmatpush1.msra.mxu1 %v2537_v7  ;;  %v2399_v36 = vld [vmem:[%s7336_s11 + $0x18] sm:$0xff]  ;;  %v2465_v7 = vld [vmem:[%s7336_s11 + $0x228] sm:$0xff] }
 0x3f0   :  { %2768 = vmatprep.subr.mxu1 %v2535_v11  ;;  %2686 = vmatpush1.msra.mxu0 %v2402_v54  ;;  %v2580_v11 = vld [vmem:[%s7336_s11 + $0x5c0] sm:$0xff]  ;;  %v2463_v54 = vld [vmem:[%s7336_s11 + $0x218] sm:$0xff] }
 0x3f1   :  { %2769 = vmatpush1.msra.mxu1 %v2534_v55  ;;  %2687 = vmatprep.subr.mxu0 %v2400_v58  ;;  %v2579_v55 = vld [vmem:[%s7336_s11 + $0x5b8] sm:$0xff]  ;;  %v2462_v58 = vld [vmem:[%s7336_s11 + $0x210] sm:$0xff] }
 0x3f2   :  { %2331 = vmatmul.mubr.f32.gmra.mxu1 %v5980_v40  ;;  %2770 = vmatprep.subr.mxu1 %v2532_v61  ;;  %v2525_v40 = vld [vmem:[%s7336_s11 + $0x408] sm:$0xff] }
 0x3f3   :  { %3377 = vmatprep.mubr.msk.f32.mxu1 %vm1580_vm2, %v5995_v10  ;;  %2771 = vmatpush1.msra.mxu1 %v2531_v26  ;;  %v2396_v10 = vld [vmem:[%s7336_s11] sm:$0xff]  ;;  %v2577_v61 = vld [vmem:[%s7336_s11 + $0x5a8] sm:$0xff] }
 0x3f4   :  { %2772 = vmatprep.subr.mxu1 %v2529_v57  ;;  %2688 = vmatpush1.msra.mxu0 %v2399_v36  ;;  %v2460_v26 = vld [vmem:[%s7336_s11 + $0x200] sm:$0xff]  ;;  %v2459_v36 = vld [vmem:[%s7336_s11 + $0x1f8] sm:$0xff] }
 0x3f5   :  { %2773 = vmatpush1.msra.mxu1 %v2528_v8  ;;  %2689 = vmatprep.subr.mxu0 %v2397_v59  ;;  %v2576_v57 = vld [vmem:[%s7336_s11 + $0x5a0] sm:$0xff]  ;;  %v2574_v8 = vld [vmem:[%s7336_s11 + $0x590] sm:$0xff]  ;;  %v2457_v59 = vld [vmem:[%s7336_s11 + $0x1e8] sm:$0xff] }
 0x3f6   :  { %2336 = vmatmul.mubr.f32.gmra.mxu1 %v6002_v12  ;;  %2774 = vmatprep.subr.mxu1 %v2526_v13  ;;  %v2519_v12 = vld [vmem:[%s7336_s11 + $0x3d8] sm:$0xff]  ;;  %v2573_v13 = vld [vmem:[%s7336_s11 + $0x588] sm:$0xff] }
 0x3f7   :  { %3378 = vmatprep.mubr.msk.f32.mxu1 %vm1580_vm2, %v6014_v18  ;;  %2775 = vmatpush1.msra.mxu1 %v2525_v40  ;;  %v2489_v18 = vld [vmem:[%s7336_s11 + $0x2e8] sm:$0xff]  ;;  %v2456_v40 = vld [vmem:[%s7336_s11 + $0x1e0] sm:$0xff] }
 0x3f8   :  { %2776 = vmatprep.subr.mxu1 %v2523_v15  ;;  %2690 = vmatpush1.msra.mxu0 %v2396_v10  ;;  %v2571_v15 = vld [vmem:[%s7336_s11 + $0x578] sm:$0xff]  ;;  %v2454_v10 = vld [vmem:[%s7336_s11 + $0x1d0] sm:$0xff] }
 0x3f9   :  { %2777 = vmatpush1.msra.mxu1 %v2522_v21  ;;  %2691 = vmatprep.subr.mxu0 %v2490_v28  ;;  %v2570_v21 = vld [vmem:[%s7336_s11 + $0x570] sm:$0xff]  ;;  %v2453_v28 = vld [vmem:[%s7336_s11 + $0x1c8] sm:$0xff] }
 0x3fa   :  { %2341 = vmatmul.mubr.f32.gmra.mxu1 %v6022_v25  ;;  %2778 = vmatprep.subr.mxu1 %v2520_v62  ;;  %v2513_v25 = vld [vmem:[%s7336_s11 + $0x3a8] sm:$0xff]  ;;  %v2568_v62 = vld [vmem:[%s7336_s11 + $0x560] sm:$0xff] }
 0x3fb   :  { %3379 = vmatprep.mubr.msk.f32.mxu1 %vm1580_vm2, %v6034_v42  ;;  %2779 = vmatpush1.msra.mxu1 %v2519_v12  ;;  %v2486_v42 = vld [vmem:[%s7336_s11 + $0x2d0] sm:$0xff]  ;;  %v2451_v12 = vld [vmem:[%s7336_s11 + $0x1b8] sm:$0xff] }
 0x3fc   :  { %2780 = vmatprep.subr.mxu1 %v2517_v24  ;;  %2692 = vmatpush2.msra.mxu0 %v2489_v18  ;;  %v2567_v24 = vld [vmem:[%s7336_s11 + $0x558] sm:$0xff]  ;;  %v2450_v18 = vld [vmem:[%s7336_s11 + $0x1b0] sm:$0xff] }
 0x3fd   :  { %2781 = vmatpush1.msra.mxu1 %v2516_v29  ;;  %2693 = vmatprep.subr.mxu0 %v2487_v30  ;;  %v2565_v29 = vld [vmem:[%s7336_s11 + $0x548] sm:$0xff]  ;;  %v2448_v30 = vld [vmem:[%s7336_s11 + $0x1a0] sm:$0xff] }
 0x3fe   :  { %2346 = vmatmul.mubr.f32.gmra.mxu1 %v6042_v50  ;;  %2782 = vmatprep.subr.mxu1 %v2514_v32  ;;  %v2507_v50 = vld [vmem:[%s7336_s11 + $0x378] sm:$0xff]  ;;  %v2564_v32 = vld [vmem:[%s7336_s11 + $0x540] sm:$0xff] }
 0x3ff   :  { %3380 = vmatprep.mubr.msk.f32.mxu1 %vm1580_vm2, %v6054_v52  ;;  %2783 = vmatpush1.msra.mxu1 %v2513_v25  ;;  %v2483_v52 = vld [vmem:[%s7336_s11 + $0x2b8] sm:$0xff] }
 0x400   :  { %2784 = vmatprep.subr.mxu1 %v2511_v17  ;;  %2694 = vmatpush2.msra.mxu0 %v2486_v42  ;;  %v2447_v25 = vld [vmem:[%s7336_s11 + $0x198] sm:$0xff]  ;;  %v2562_v17 = vld [vmem:[%s7336_s11 + $0x530] sm:$0xff]  ;;  %v2445_v42 = vld [vmem:[%s7336_s11 + $0x188] sm:$0xff] }
 0x401   :  { %2785 = vmatpush1.msra.mxu1 %v2510_v33  ;;  %2695 = vmatprep.subr.mxu0 %v2484_v35  ;;  %v2561_v33 = vld [vmem:[%s7336_s11 + $0x528] sm:$0xff]  ;;  %v2444_v35 = vld [vmem:[%s7336_s11 + $0x180] sm:$0xff] }
 0x402   :  { %2351 = vmatmul.mubr.f32.gmra.mxu1 %v6062_v0  ;;  %2786 = vmatprep.subr.mxu1 %v2508_v37  ;;  %v2501_v0 = vld [vmem:[%s7336_s11 + $0x348] sm:$0xff]  ;;  %v2559_v37 = vld [vmem:[%s7336_s11 + $0x518] sm:$0xff] }
 0x403   :  { %3381 = vmatprep.mubr.msk.f32.mxu1 %vm1580_vm2, %v6074_v63  ;;  %2787 = vmatpush1.msra.mxu1 %v2507_v50  ;;  %v2499_v63 = vld [vmem:[%s7336_s11 + $0x338] sm:$0xff] }
 0x404   :  { %2788 = vmatprep.subr.mxu1 %v2505_v6  ;;  %2696 = vmatpush2.msra.mxu0 %v2483_v52  ;;  %v2619_v50 = vld [vmem:[%s7336_s11 + $0x6f8] sm:$0xff]  ;;  %v2558_v6 = vld [vmem:[%s7336_s11 + $0x510] sm:$0xff]  ;;  %v2556_v52 = vld [vmem:[%s7336_s11 + $0x500] sm:$0xff] }
 0x405   :  { %2789 = vmatpush1.msra.mxu1 %v2504_v41  ;;  %2697 = vmatprep.subr.mxu0 %v2481_v43  ;;  %v2555_v41 = vld [vmem:[%s7336_s11 + $0x4f8] sm:$0xff]  ;;  %v2553_v43 = vld [vmem:[%s7336_s11 + $0x4e8] sm:$0xff] }
 0x406   :  { %2356 = vmatmul.mubr.f32.gmra.mxu1 %v6082_v2  ;;  %2790 = vmatprep.subr.mxu1 %v2502_v1  ;;  %v2495_v2 = vld [vmem:[%s7336_s11 + $0x318] sm:$0xff]  ;;  %v2552_v1 = vld [vmem:[%s7336_s11 + $0x4e0] sm:$0xff] }
 0x407   :  { %2791 = vmatpush1.msra.mxu1 %v2501_v0  ;;  %2698 = vmatpush2.msra.mxu0 %v2480_v27  ;;  %v2550_v0 = vld [vmem:[%s7336_s11 + $0x4d0] sm:$0xff]  ;;  %v2549_v27 = vld [vmem:[%s7336_s11 + $0x4c8] sm:$0xff] }
 0x408   :  { %2792 = vmatprep.subr.mxu1 %v2499_v63  ;;  %2699 = vmatprep.subr.mxu0 %v2478_v4  ;;  %v2547_v63 = vld [vmem:[%s7336_s11 + $0x4b8] sm:$0xff]  ;;  %v2546_v4 = vld [vmem:[%s7336_s11 + $0x4b0] sm:$0xff] }
 0x409   :  { %2793 = vmatpush1.msra.mxu1 %v2498_v20  ;;  %2700 = vmatpush2.msra.mxu0 %v2477_v34  ;;  %v2544_v20 = vld [vmem:[%s7336_s11 + $0x4a0] sm:$0xff]  ;;  %v2543_v34 = vld [vmem:[%s7336_s11 + $0x498] sm:$0xff] }
 0x40a   :  { %2794 = vmatprep.subr.mxu1 %v2496_v47  ;;  %2701 = vmatprep.subr.mxu0 %v2475_v38  ;;  %v2541_v47 = vld [vmem:[%s7336_s11 + $0x488] sm:$0xff]  ;;  %v2540_v38 = vld [vmem:[%s7336_s11 + $0x480] sm:$0xff] }
 0x40b   :  { %2795 = vmatpush1.msra.mxu1 %v2495_v2  ;;  %2702 = vmatpush2.msra.mxu0 %v2474_v31  ;;  %v2587_v2 = vld [vmem:[%s7336_s11 + $0x5f8] sm:$0xff]  ;;  %v6545_v31 = vld [vmem:[%s7335_s10] sm:$0x1f] }
 0x40c   :  { %2796 = vmatprep.subr.mxu1 %v2493_v19  ;;  %2703 = vmatprep.subr.mxu0 %v2472_v22  ;;  %v6549_v19 = vrot.slane %v6545_v31, %v5171_v16  ;;  %v6553_v22 = vrot.slane %v6545_v31, %v5267_v9 }
 0x40d   :  { %2797 = vmatpush1.msra.mxu1 %v2492_v46  ;;  %2704 = vmatpush2.msra.mxu0 %v2471_v45  ;;  %v6557_v46 = vrot.slane %v6545_v31, %v5179_v23  ;;  %v6562_v45 = vrot.slane %v6545_v31, %v325_v14 }
 0x40e   :  { %2798 = vmatprep.subr.mxu1 %v2586_v48  ;;  %2705 = vmatprep.subr.mxu0 %v2469_v49 }
 0x40f   :  { %2799 = vmatpush2.msra.mxu1 %v2585_v56  ;;  %2706 = vmatpush2.msra.mxu0 %v2468_v3 }
 0x410   :  { %2800 = vmatprep.subr.mxu1 %v2583_v60  ;;  %2707 = vmatprep.subr.mxu0 %v2466_v51 }
 0x411   :  { %2801 = vmatpush2.msra.mxu1 %v2582_v53  ;;  %2708 = vmatpush2.msra.mxu0 %v2465_v7 }
 0x412   :  { %2802 = vmatprep.subr.mxu1 %v2580_v11  ;;  %2709 = vmatprep.subr.mxu0 %v2463_v54 }
 0x413   :  { %2803 = vmatpush2.msra.mxu1 %v2579_v55  ;;  %2710 = vmatpush2.msra.mxu0 %v2462_v58 }
 0x414   :  { %2804 = vmatprep.subr.mxu1 %v2577_v61  ;;  %2711 = vmatprep.subr.mxu0 %v2460_v26  ;;  %v2539_v26 = vld [vmem:[%s7336_s11 + $0x478] sm:$0xff] }
 0x415   :  { %2805 = vmatpush2.msra.mxu1 %v2576_v57  ;;  %2712 = vmatpush2.msra.mxu0 %v2459_v36  ;;  %v2618_v57 = vld [vmem:[%s7336_s11 + $0x6f0] sm:$0xff] }
 0x416   :  { %2806 = vmatprep.subr.mxu1 %v2574_v8  ;;  %2713 = vmatprep.subr.mxu0 %v2457_v59 }
 0x417   :  { %2807 = vmatpush2.msra.mxu1 %v2573_v13  ;;  %2714 = vmatpush2.msra.mxu0 %v2456_v40  ;;  %v2584_v13 = vld [vmem:[%s7336_s11 + $0x5e0] sm:$0xff] }
 0x418   :  { %2808 = vmatprep.subr.mxu1 %v2571_v15  ;;  %2715 = vmatprep.subr.mxu0 %v2454_v10  ;;  %v2616_v40 = vld [vmem:[%s7336_s11 + $0x6e0] sm:$0xff] }
 0x419   :  { %2809 = vmatpush2.msra.mxu1 %v2570_v21  ;;  %2716 = vmatpush2.msra.mxu0 %v2453_v28  ;;  %v2536_v28 = vld [vmem:[%s7336_s11 + $0x460] sm:$0xff] }
 0x41a   :  { %2810 = vmatprep.subr.mxu1 %v2568_v62  ;;  %2717 = vmatprep.subr.mxu0 %v2451_v12  ;;  %v2615_v62 = vld [vmem:[%s7336_s11 + $0x6d8] sm:$0xff] }
 0x41b   :  { %2811 = vmatpush2.msra.mxu1 %v2567_v24  ;;  %2718 = vmatpush2.msra.mxu0 %v2450_v18 }
 0x41c   :  { %2812 = vmatprep.subr.mxu1 %v2565_v29  ;;  %2719 = vmatprep.subr.mxu0 %v2448_v30  ;;  %v2581_v30 = vld [vmem:[%s7336_s11 + $0x5c8] sm:$0xff] }
 0x41d   :  { %2813 = vmatpush2.msra.mxu1 %v2564_v32  ;;  %2720 = vmatpush2.msra.mxu0 %v2447_v25 }
 0x41e   :  { %2814 = vmatprep.subr.mxu1 %v2562_v17  ;;  %2721 = vmatprep.subr.mxu0 %v2445_v42  ;;  %v2613_v17 = vld [vmem:[%s7336_s11 + $0x6c8] sm:$0xff] }
 0x41f   :  { %2815 = vmatpush2.msra.mxu1 %v2561_v33  ;;  %2722 = vmatpush2.msra.mxu0 %v2444_v35 }
 0x420   :  { %2816 = vmatprep.subr.mxu1 %v2559_v37  ;;  %2883 = vmatprep.subr.mxu0 %v2619_v50  ;;  %v2533_v50 = vld [vmem:[%s7336_s11 + $0x448] sm:$0xff] }
 0x421   :  { %2817 = vmatpush2.msra.mxu1 %v2558_v6  ;;  %v2612_v6 = vld [vmem:[%s7336_s11 + $0x6c0] sm:$0xff] }
 0x422   :  { %2818 = vmatprep.subr.mxu1 %v2556_v52 }
 0x423   :  { %2819 = vmatpush2.msra.mxu1 %v2555_v41 }
 0x424   :  { %2820 = vmatprep.subr.mxu1 %v2553_v43 }
 0x425   :  { %2821 = vmatpush2.msra.mxu1 %v2552_v1  ;;  %v2578_v1 = vld [vmem:[%s7336_s11 + $0x5b0] sm:$0xff] }
 0x426   :  { %2822 = vmatprep.subr.mxu1 %v2550_v0 }
 0x427   :  { %2823 = vmatpush2.msra.mxu1 %v2549_v27 }
 0x428   :  { %2824 = vmatprep.subr.mxu1 %v2547_v63  ;;  %v2530_v63 = vld [vmem:[%s7336_s11 + $0x430] sm:$0xff] }
 0x429   :  { %2825 = vmatpush2.msra.mxu1 %v2546_v4 }
 0x42a   :  { %2826 = vmatprep.subr.mxu1 %v2544_v20 }
 0x42b   :  { %2827 = vmatpush2.msra.mxu1 %v2543_v34  ;;  %v2575_v34 = vld [vmem:[%s7336_s11 + $0x598] sm:$0xff] }
 0x42c   :  { %2828 = vmatprep.subr.mxu1 %v2541_v47 }
 0x42d   :  { %2829 = vmatpush2.msra.mxu1 %v2540_v38 }
 0x42e   :  { %3525 = vmatprep.subr.mxu1 %v2587_v2 }
 0x47b   :  { %v2113_v48 = vpop.f32.mrf.mxu1  ;;  %v2220_v49 = vpop.f32.mrf.mxu0 }
 0x47c   :  { %v6565_v56 = vadd.f32 %v2113_v48, %v6549_v19  ;;  %v6568_v3 = vadd.f32 %v2220_v49, %v6553_v22  ;;  %v2610_v49 = vld [vmem:[%s7336_s11 + $0x6b0] sm:$0xff] }
 0x47d   :  { %v2115_v60 = vpop.f32.mrf.mxu1  ;;  %v2222_v51 = vpop.f32.mrf.mxu0 }
 0x47e   :  { %v6571_v53 = vadd.f32 %v2115_v60, %v6557_v46  ;;  %v6574_v7 = vadd.f32 %v2222_v51, %v6562_v45  ;;  %v2361_v58 = vmax.f32 %v6565_v56, 0.0  ;;  %v2363_v61 = vmax.f32 %v6568_v3, 0.0  ;;  %v2591_v3 = vld [vmem:[%s7336_s11 + $0x618] sm:$0xff] }
 0x480   :  { %v2362_v11 = vmax.f32 %v6571_v53, 0.0  ;;  %v2364_v14 = vmax.f32 %v6574_v7, 0.0  ;;  %v2119_v54 = vpop.f32.mrf.mxu1  ;;  %v2226_v55 = vpop.f32.mrf.mxu0  ;;  %v2542_v7 = vld [vmem:[%s7336_s11 + $0x490] sm:$0xff] }
 0x481   :  { %v6587_v36 = vadd.f32 %v2119_v54, %v6549_v19  ;;  %v6600_v15 = vadd.f32 %v2226_v55, %v6553_v22 }
 0x482   :  { %v2121_v8 = vpop.f32.mrf.mxu1  ;;  %v2228_v59 = vpop.f32.mrf.mxu0  ;;  %2723 = vmatprep.mubr.f32.mxu0 %v2362_v11  ;;  %2830 = vmatprep.mubr.f32.mxu1 %v2364_v14 }
 0x483   :  { %v6603_v10 = vadd.f32 %v2121_v8, %v6557_v46  ;;  %v6606_v21 = vadd.f32 %v2228_v59, %v6562_v45  ;;  %2724 = vmatmul.mubr.f32.vlgmr.msra.gmra.mxu0 %v2361_v58  ;;  %2831 = vmatmul.mubr.f32.vlgmr.msra.gmra.mxu1 %v2363_v61  ;;  %v2366_v32 = vmax.f32 %v6587_v36, 0.0  ;;  %v2368_v42 = vmax.f32 %v6600_v15, 0.0  ;;  %v2572_v59 = vld [vmem:[%s7336_s11 + $0x580] sm:$0xff]  ;;  %v2491_v15 = vld [vmem:[%s7336_s11 + $0x2f8] sm:$0xff] }
 0x484   :  { %v2125_v12 = vpop.f32.mrf.mxu1  ;;  %3526 = vmatpush3.msra.mxu1 %v2539_v26  ;;  %2884 = vmatpush1.msra.mxu0 %v2618_v57  ;;  %v2527_v26 = vld [vmem:[%s7336_s11 + $0x418] sm:$0xff] }
 0x485   :  { %v2367_v24 = vmax.f32 %v6603_v10, 0.0  ;;  %v2369_v18 = vmax.f32 %v6606_v21, 0.0  ;;  %v2232_v29 = vpop.f32.mrf.mxu0  ;;  %3527 = vmatprep.subr.mxu1 %v2584_v13  ;;  %2885 = vmatprep.subr.mxu0 %v2616_v40  ;;  %v6629_v33 = vadd.f32 %v2125_v12, %v6549_v19  ;;  %v2589_v21 = vld [vmem:[%s7336_s11 + $0x608] sm:$0xff] }
 0x486   :  { %v2127_v25 = vpop.f32.mrf.mxu1  ;;  %3528 = vmatpush3.msra.mxu1 %v2536_v28  ;;  %2886 = vmatpush1.msra.mxu0 %v2615_v62  ;;  %v6645_v52 = vadd.f32 %v2232_v29, %v6553_v22  ;;  %v2524_v28 = vld [vmem:[%s7336_s11 + $0x400] sm:$0xff] }
 0x487   :  { %v6632_v35 = vadd.f32 %v2127_v25, %v6557_v46  ;;  %v2234_v37 = vpop.f32.mrf.mxu0  ;;  %2729 = vmatprep.mubr.f32.mxu0 %v2367_v24  ;;  %2836 = vmatprep.mubr.f32.mxu1 %v2369_v18  ;;  %v7344_v47 = vmax.f32 %v6629_v33, 0.0  ;;  %v2569_v25 = vld [vmem:[%s7336_s11 + $0x568] sm:$0xff]  ;;  %v7348_v56 = vmax.f32 %v6629_v33, 0.0 }
 0x488   :  { %v6648_v41 = vadd.f32 %v2234_v37, %v6562_v45  ;;  %3529 = vmatprep.subr.mxu1 %v2581_v30  ;;  %v2131_v43 = vpop.f32.mrf.mxu1  ;;  %2730 = vmatmul.mubr.f32.gmra.mxu0 %v2366_v32  ;;  %v2373_v60 = vmax.f32 %v6645_v52, 0.0 }
 0x489   :  { %v7345_v0 = vmax.f32 %v6632_v35, 0.0  ;;  %v2238_v27 = vpop.f32.mrf.mxu0  ;;  %2837 = vmatmul.mubr.f32.gmra.mxu1 %v2368_v42  ;;  %2887 = vmatprep.subr.mxu0 %v2613_v17  ;;  %v6667_v38 = vadd.f32 %v2131_v43, %v6549_v19  ;;  %v2521_v43 = vld [vmem:[%s7336_s11 + $0x3e8] sm:$0xff]  ;;  %v7347_v53 = vmax.f32 %v6632_v35, 0.0 }
 0x48a   :  { %v2374_v4 = vmax.f32 %v6648_v41, 0.0  ;;  %3530 = vmatpush3.msra.mxu1 %v2533_v50  ;;  %v2133_v20 = vpop.f32.mrf.mxu1  ;;  %2888 = vmatpush1.msra.mxu0 %v2612_v6  ;;  %v6679_v51 = vadd.f32 %v2238_v27, %v6553_v22 }
 0x48b   :  { %3531 = vmatprep.subr.mxu1 %v2578_v1  ;;  %v6670_v2 = vadd.f32 %v2133_v20, %v6557_v46  ;;  %v2240_v48 = vpop.f32.mrf.mxu0  ;;  %2735 = vmatprep.mubr.f32.mxu0 %v7345_v0  ;;  %v7341_v62 = vmax.f32 %v6667_v38, 0.0 }
 0x48c   :  { %v6682_v54 = vadd.f32 %v2240_v48, %v6562_v45  ;;  %3532 = vmatpush3.msra.mxu1 %v2530_v63  ;;  %2842 = vmatprep.mubr.f32.mxu1 %v2374_v4  ;;  %v2137_v55 = vpop.f32.mrf.mxu1  ;;  %v2378_v17 = vmax.f32 %v6679_v51, 0.0  ;;  %v2566_v63 = vld [vmem:[%s7336_s11 + $0x550] sm:$0xff]  ;;  %v2440_v51 = vld [vmem:[%s7336_s11 + $0x160] sm:$0xff] }
 0x48d   :  { %v7343_v57 = vmax.f32 %v6670_v2, 0.0  ;;  %3533 = vmatprep.subr.mxu1 %v2575_v34  ;;  %v2244_v8 = vpop.f32.mrf.mxu0  ;;  %2736 = vmatmul.mubr.f32.gmra.mxu0 %v7344_v47  ;;  %v6703_v12 = vadd.f32 %v2137_v55, %v6549_v19  ;;  %v2518_v48 = vld [vmem:[%s7336_s11 + $0x3d0] sm:$0xff] }
 0x48e   :  { %v2379_v13 = vmax.f32 %v6682_v54, 0.0  ;;  %2843 = vmatmul.mubr.f32.gmra.mxu1 %v2373_v60  ;;  %v2139_v40 = vpop.f32.mrf.mxu1  ;;  %2889 = vmatprep.subr.mxu0 %v2610_v49  ;;  %v6715_v37 = vadd.f32 %v2244_v8, %v6553_v22  ;;  %v6941_v54 = vld [vmem:[%s7336_s11 + $0x6d0] sm:$0xff] }
 0x48f   :  { %3534 = vmatpush3.msra.mxu1 %v2527_v26  ;;  %v6706_v29 = vadd.f32 %v2139_v40, %v6557_v46  ;;  %v2246_v30 = vpop.f32.mrf.mxu0  ;;  %2741 = vmatprep.mubr.f32.mxu0 %v7343_v57  ;;  %v7342_v49 = vmax.f32 %v6703_v12, 0.0  ;;  %v7352_v10 = vmax.f32 %v6703_v12, 0.0 }
 0x490   :  { %3535 = vmatprep.subr.mxu1 %v2572_v59  ;;  %v6718_v50 = vadd.f32 %v2246_v30, %v6562_v45  ;;  %2848 = vmatprep.mubr.f32.mxu1 %v2379_v13  ;;  %v2143_v6 = vpop.f32.mrf.mxu1  ;;  %v2563_v59 = vld [vmem:[%s7336_s11 + $0x538] sm:$0xff]  ;;  %v2383_v40 = vmax.f32 %v6715_v37, 0.0  ;;  %v2482_v37 = vld [vmem:[%s7336_s11 + $0x2b0] sm:$0xff] }
 0x491   :  { %v7340_v1 = vmax.f32 %v6706_v29, 0.0  ;;  %3536 = vmatpush3.msra.mxu1 %v2524_v28  ;;  %v2250_v27 = vpop.f32.mrf.mxu0  ;;  %2742 = vmatmul.mubr.f32.gmra.mxu0 %v7341_v62  ;;  %v6739_v55 = vadd.f32 %v2143_v6, %v6549_v19  ;;  %v2515_v6 = vld [vmem:[%s7336_s11 + $0x3b8] sm:$0xff]  ;;  %v7351_v36 = vmax.f32 %v6706_v29, 0.0 }
 0x492   :  { %v2384_v20 = vmax.f32 %v6718_v50, 0.0  ;;  %3537 = vmatprep.subr.mxu1 %v2569_v25  ;;  %2849 = vmatmul.mubr.f32.gmra.mxu1 %v2378_v17  ;;  %v2145_v34 = vpop.f32.mrf.mxu1  ;;  %v6751_v28 = vadd.f32 %v2250_v27, %v6553_v22  ;;  %v2560_v27 = vld [vmem:[%s7336_s11 + $0x520] sm:$0xff]  ;;  %v2485_v50 = vld [vmem:[%s7336_s11 + $0x2c8] sm:$0xff] }
 0x493   :  { %3538 = vmatpush3.msra.mxu1 %v2521_v43  ;;  %v6742_v26 = vadd.f32 %v2145_v34, %v6557_v46  ;;  %v2252_v8 = vpop.f32.mrf.mxu0  ;;  %2747 = vmatprep.mubr.f32.mxu0 %v7340_v1  ;;  %v2512_v1 = vld [vmem:[%s7336_s11 + $0x3a0] sm:$0xff] }
 0x494   :  { %3539 = vmatprep.subr.mxu1 %v2566_v63  ;;  %v6754_v30 = vadd.f32 %v2252_v8, %v6562_v45  ;;  %2854 = vmatprep.mubr.f32.mxu1 %v2384_v20  ;;  %v2149_v25 = vpop.f32.mrf.mxu1  ;;  %v2388_v47 = vmax.f32 %v6751_v28, 0.0 }
 0x495   :  { %v2387_v43 = vmax.f32 %v6742_v26, 0.0  ;;  %3540 = vmatpush3.msra.mxu1 %v2518_v48  ;;  %v2256_v34 = vpop.f32.mrf.mxu0  ;;  %2748 = vmatmul.mubr.f32.gmra.mxu0 %v7342_v49  ;;  %v2386_v48 = vmax.f32 %v6739_v55, 0.0  ;;  %v6775_v62 = vadd.f32 %v2149_v25, %v6549_v19 }
 0x496   :  { %v2389_v63 = vmax.f32 %v6754_v30, 0.0  ;;  %3541 = vmatprep.subr.mxu1 %v2563_v59  ;;  %2855 = vmatmul.mubr.f32.gmra.mxu1 %v2383_v40  ;;  %v2151_v8 = vpop.f32.mrf.mxu1  ;;  %v2557_v59 = vld [vmem:[%s7336_s11 + $0x508] sm:$0xff]  ;;  %v6787_v0 = vadd.f32 %v2256_v34, %v6553_v22  ;;  %v2554_v22 = vld [vmem:[%s7336_s11 + $0x4f0] sm:$0xff] }
 0x497   :  { %3542 = vmatpush3.msra.mxu1 %v2515_v6  ;;  %v6778_v49 = vadd.f32 %v2151_v8, %v6557_v46  ;;  %v2258_v57 = vpop.f32.mrf.mxu0  ;;  %2753 = vmatprep.mubr.f32.mxu0 %v2387_v43  ;;  %v2509_v46 = vld [vmem:[%s7336_s11 + $0x388] sm:$0xff]  ;;  %v7346_v6 = vmax.f32 %v6775_v62, 0.0  ;;  %v2548_v8 = vld [vmem:[%s7336_s11 + $0x4c0] sm:$0xff]  ;;  %v2434_v30 = vld [vmem:[%s7336_s11 + $0x130] sm:$0xff] }
 0x498   :  { %3543 = vmatprep.subr.mxu1 %v2560_v27  ;;  %v6790_v19 = vadd.f32 %v2258_v57, %v6562_v45  ;;  %2860 = vmatprep.mubr.f32.mxu1 %v2389_v63  ;;  %v2506_v57 = vld [vmem:[%s7336_s11 + $0x370] sm:$0xff]  ;;  %v2393_v34 = vmax.f32 %v6787_v0, 0.0  ;;  %v2503_v27 = vld [vmem:[%s7336_s11 + $0x358] sm:$0xff]  ;;  %v2425_v0 = vld [vmem:[%s7336_s11 + $0xe8] sm:$0xff] }
 0x499   :  { %v2392_v25 = vmax.f32 %v6778_v49, 0.0  ;;  %3544 = vmatpush3.msra.mxu1 %v2512_v1  ;;  %2754 = vmatmul.mubr.f32.gmra.mxu0 %v2386_v48  ;;  %v2551_v1 = vld [vmem:[%s7336_s11 + $0x4d8] sm:$0xff] }
 0x49a   :  { %v2394_v45 = vmax.f32 %v6790_v19, 0.0  ;;  %3545 = vmatprep.subr.mxu1 %v2557_v59  ;;  %2861 = vmatmul.mubr.f32.gmra.mxu1 %v2388_v47  ;;  %v2609_v59 = vld [vmem:[%s7336_s11 + $0x6a8] sm:$0xff]  ;;  %v2476_v19 = vld [vmem:[%s7336_s11 + $0x280] sm:$0xff] }
 0x49b   :  { %3546 = vmatpush3.msra.mxu1 %v2509_v46  ;;  %2759 = vmatprep.mubr.f32.mxu0 %v2392_v25  ;;  %v2500_v46 = vld [vmem:[%s7336_s11 + $0x340] sm:$0xff] }
 0x49c   :  { %3547 = vmatprep.subr.mxu1 %v2554_v22  ;;  %2866 = vmatprep.mubr.f32.mxu1 %v2394_v45  ;;  %v2607_v22 = vld [vmem:[%s7336_s11 + $0x698] sm:$0xff] }
 0x49d   :  { %3548 = vmatpush3.msra.mxu1 %v2506_v57  ;;  %2760 = vmatmul.mubr.f32.gmra.mxu0 %v7346_v6  ;;  %v2545_v57 = vld [vmem:[%s7336_s11 + $0x4a8] sm:$0xff] }
 0x49e   :  { %3549 = vmatprep.subr.mxu1 %v2551_v1  ;;  %2867 = vmatmul.mubr.f32.gmra.mxu1 %v2393_v34  ;;  %v2606_v1 = vld [vmem:[%s7336_s11 + $0x690] sm:$0xff]  ;;  %v2497_v6 = vld [vmem:[%s7336_s11 + $0x328] sm:$0xff] }
 0x49f   :  { %3550 = vmatpush3.msra.mxu1 %v2503_v27  ;;  %3144 = vmatprep.mubr.f32.mxu1 %v2364_v14  ;;  %v2604_v27 = vld [vmem:[%s7336_s11 + $0x680] sm:$0xff]  ;;  %v2603_v14 = vld [vmem:[%s7336_s11 + $0x678] sm:$0xff] }
 0x4a0   :  { %3551 = vmatprep.subr.mxu1 %v2548_v8  ;;  %2890 = vmatpush1.msra.mxu0 %v2609_v59  ;;  %v2494_v8 = vld [vmem:[%s7336_s11 + $0x310] sm:$0xff]  ;;  %v2601_v59 = vld [vmem:[%s7336_s11 + $0x668] sm:$0xff] }
 0x4a1   :  { %3552 = vmatpush3.msra.mxu1 %v2500_v46  ;;  %2891 = vmatprep.subr.mxu0 %v2607_v22  ;;  %v2600_v46 = vld [vmem:[%s7336_s11 + $0x660] sm:$0xff]  ;;  %v2598_v22 = vld [vmem:[%s7336_s11 + $0x650] sm:$0xff] }
 0x4a2   :  { %3553 = vmatprep.subr.mxu1 %v2545_v57  ;;  %2892 = vmatpush1.msra.mxu0 %v2606_v1  ;;  %v2597_v57 = vld [vmem:[%s7336_s11 + $0x648] sm:$0xff]  ;;  %v2594_v1 = vld [vmem:[%s7336_s11 + $0x630] sm:$0xff] }
 0x4a3   :  { %3554 = vmatpush3.msra.mxu1 %v2497_v6  ;;  %2893 = vmatprep.subr.mxu0 %v2604_v27  ;;  %v2595_v6 = vld [vmem:[%s7336_s11 + $0x638] sm:$0xff]  ;;  %v2592_v27 = vld [vmem:[%s7336_s11 + $0x620] sm:$0xff] }
 0x4a4   :  { %3555 = vmatprep.subr.mxu1 %v2542_v7  ;;  %2894 = vmatpush1.msra.mxu0 %v2603_v14  ;;  %v2588_v7 = vld [vmem:[%s7336_s11 + $0x600] sm:$0xff] }
 0x4a5   :  { %3556 = vmatpush3.msra.mxu1 %v2494_v8  ;;  %2895 = vmatprep.subr.mxu0 %v2601_v59  ;;  %v2437_v8 = vld [vmem:[%s7336_s11 + $0x148] sm:$0xff]  ;;  %v6968_v59 = vld [vmem:[%s7336_s11 + $0x6b8] sm:$0xff] }
 0x4a6   :  { %3145 = vmatmul.mubr.f32.vlgmr.msra.gmra.mxu1 %v2363_v61  ;;  %2896 = vmatpush1.msra.mxu0 %v2600_v46  ;;  %v6893_v61 = vld [vmem:[%s7336_s11 + $0x700] sm:$0xff] }
 0x4a7   :  { %3149 = vmatprep.mubr.f32.mxu1 %v2369_v18  ;;  %2897 = vmatprep.subr.mxu0 %v2598_v22  ;;  %v6905_v18 = vrot.slane %v6545_v31, %v329_v39 }
 0x4a8   :  { %2898 = vmatpush1.msra.mxu0 %v2597_v57  ;;  %3692 = vmatprep.subr.mxu1 %v3766_v5  ;;  %v2479_v57 = vld [vmem:[%s7336_s11 + $0x298] sm:$0xff] }
 0x4a9   :  { %2899 = vmatprep.subr.mxu0 %v2595_v6  ;;  %2937 = vmatprep.mubr.f32.mxu0 %v3766_v5  ;;  %v6995_v6 = vld [vmem:[%s7336_s11 + $0x6a0] sm:$0xff] }
 0x4aa   :  { %3150 = vmatmul.mubr.f32.gmra.mxu1 %v2368_v42  ;;  %2900 = vmatpush1.msra.mxu0 %v2594_v1 }
 0x4ab   :  { %3154 = vmatprep.mubr.f32.mxu1 %v2374_v4  ;;  %2901 = vmatprep.subr.mxu0 %v2592_v27  ;;  %v2443_v4 = vld [vmem:[%s7336_s11 + $0x178] sm:$0xff]  ;;  %v2428_v27 = vld [vmem:[%s7336_s11 + $0x100] sm:$0xff] }
 0x4ac   :  { %2902 = vmatpush1.msra.mxu0 %v2591_v3  ;;  %3703 = vmatpush3.msra.mxu1 %v6893_v61 }
 0x4ad   :  { %2903 = vmatprep.subr.mxu0 %v2589_v21  ;;  %3693 = vmatprep.subr.mxu1 %v3766_v5 }
 0x4ae   :  { %3155 = vmatmul.mubr.f32.gmra.mxu1 %v2373_v60  ;;  %v2327_v39 = vpop.f32.mrf.mxu1  ;;  %2904 = vmatpush1.msra.mxu0 %v2588_v7  ;;  %v2488_v60 = vld [vmem:[%s7336_s11 + $0x2e0] sm:$0xff]  ;;  %v2473_v7 = vld [vmem:[%s7336_s11 + $0x268] sm:$0xff] }
 0x4af   :  { %3159 = vmatprep.mubr.f32.mxu1 %v2379_v13  ;;  %v6925_v31 = vadd.f32 %v2327_v39, %v6905_v18  ;;  %3472 = vmatprep.subr.mxu0 %v2491_v15  ;;  %v7036_v39 = vld [vmem:[%s7336_s11 + $0x670] sm:$0xff] }
 0x4b0   :  { %v2329_v42 = vpop.f32.mrf.mxu1  ;;  %3704 = vmatpush3.msra.mxu1 %v6918_v44 }
 0x4b1   :  { %v2365_v41 = vmax.f32 %v6925_v31, 0.0  ;;  %3694 = vmatprep.subr.mxu1 %v3766_v5 }
 0x4b2   :  { %3160 = vmatmul.mubr.f32.gmra.mxu1 %v2378_v17  ;;  %v2332_v52 = vpop.f32.mrf.mxu1 }
 0x4b3   :  { %3164 = vmatprep.mubr.f32.mxu1 %v2384_v20  ;;  %v6946_v13 = vadd.f32 %v2332_v52, %v6905_v18  ;;  %3382 = vmatmul.mubr.msk.f32.vlgmr.msra.gmra.mxu0 %vm1161_vm1, %v2365_v41 }
 0x4b4   :  { %3473 = vmatpush3.msra.mxu0 %v2443_v4  ;;  %v2334_v17 = vpop.f32.mrf.mxu1  ;;  %2943 = vmatprep.mubr.f32.mxu0 %v3766_v5  ;;  %v7049_v4 = vld [vmem:[%s7336_s11 + $0x658] sm:$0xff] }
 0x4b5   :  { %v2370_v20 = vmax.f32 %v6946_v13, 0.0  ;;  %3474 = vmatprep.subr.mxu0 %v2488_v60  ;;  %3705 = vmatpush3.msra.mxu1 %v6941_v54  ;;  %v2422_v60 = vld [vmem:[%s7336_s11 + $0xd0] sm:$0xff]  ;;  %v2467_v17 = vld [vmem:[%s7336_s11 + $0x238] sm:$0xff] }
 0x4b6   :  { %3165 = vmatmul.mubr.f32.gmra.mxu1 %v2383_v40  ;;  %3475 = vmatpush3.msra.mxu0 %v2440_v51  ;;  %v2337_v14 = vpop.f32.mrf.mxu1 }
 0x4b7   :  { %3169 = vmatprep.mubr.f32.mxu1 %v2389_v63  ;;  %v6973_v46 = vadd.f32 %v2337_v14, %v6905_v18  ;;  %3476 = vmatprep.subr.mxu0 %v2485_v50  ;;  %v7067_v14 = vld [vmem:[%s7336_s11 + $0x640] sm:$0xff] }
 0x4b8   :  { %3383 = vmatmul.mubr.msk.f32.gmra.mxu0 %vm1161_vm1, %v2370_v20  ;;  %3695 = vmatprep.subr.mxu1 %v3766_v5  ;;  %v2339_v40 = vpop.f32.mrf.mxu1 }
 0x4b9   :  { %3477 = vmatpush3.msra.mxu0 %v2437_v8  ;;  %3706 = vmatpush3.msra.mxu1 %v6968_v59  ;;  %v2375_v63 = vmax.f32 %v6973_v46, 0.0 }
 0x4ba   :  { %3478 = vmatprep.subr.mxu0 %v2482_v37  ;;  %3170 = vmatmul.mubr.f32.gmra.mxu1 %v2388_v47  ;;  %v2342_v22 = vpop.f32.mrf.mxu1  ;;  %v2431_v47 = vld [vmem:[%s7336_s11 + $0x118] sm:$0xff] }
 0x4bb   :  { %3479 = vmatpush3.msra.mxu0 %v2434_v30  ;;  %3174 = vmatprep.mubr.f32.mxu1 %v2394_v45  ;;  %v7000_v1 = vadd.f32 %v2342_v22, %v6905_v18  ;;  %v7014_v45 = vld [vmem:[%s7336_s11 + $0x688] sm:$0xff]  ;;  %v2419_v37 = vld [vmem:[%s7336_s11 + $0xb8] sm:$0xff]  ;;  %v2464_v30 = vld [vmem:[%s7336_s11 + $0x220] sm:$0xff] }
 0x4bc   :  { %3696 = vmatprep.subr.mxu1 %v3766_v5  ;;  %2949 = vmatprep.mubr.f32.mxu0 %v3766_v5  ;;  %v2344_v28 = vpop.f32.mrf.mxu1  ;;  %v7081_v22 = vld [vmem:[%s7336_s11 + $0x628] sm:$0xff] }
 0x4bd   :  { %3480 = vmatprep.subr.mxu0 %v2479_v57  ;;  %3707 = vmatpush3.msra.mxu1 %v6995_v6  ;;  %v2380_v21 = vmax.f32 %v7000_v1, 0.0  ;;  %v2416_v57 = vld [vmem:[%s7336_s11 + $0xa0] sm:$0xff]  ;;  %v2461_v28 = vld [vmem:[%s7336_s11 + $0x208] sm:$0xff] }
 0x4be   :  { %3384 = vmatmul.mubr.msk.f32.gmra.mxu0 %vm1161_vm1, %v2375_v63  ;;  %3697 = vmatprep.subr.mxu1 %v3766_v5  ;;  %v2347_v3 = vpop.f32.mrf.mxu1 }
 0x4bf   :  { %3481 = vmatpush3.msra.mxu0 %v2431_v47  ;;  %3175 = vmatmul.mubr.f32.gmra.mxu1 %v2393_v34  ;;  %v7031_v15 = vadd.f32 %v2347_v3, %v6905_v18  ;;  %v2470_v34 = vld [vmem:[%s7336_s11 + $0x250] sm:$0xff] }
 0x4c0   :  { %3482 = vmatprep.subr.mxu0 %v2476_v19  ;;  %3708 = vmatpush3.msra.mxu1 %v7014_v45  ;;  %v2349_v42 = vpop.f32.mrf.mxu1  ;;  %v7099_v3 = vld [vmem:[%s7336_s11 + $0x610] sm:$0xff] }
 0x4c1   :  { %3483 = vmatpush3.msra.mxu0 %v2428_v27  ;;  %3698 = vmatprep.subr.mxu1 %v3766_v5  ;;  %v2385_v51 = vmax.f32 %v7031_v15, 0.0 }
 0x4c2   :  { %2955 = vmatprep.mubr.f32.mxu0 %v3766_v5  ;;  %3484 = vmatprep.subr.mxu0 %v2473_v7  ;;  %v2352_v52 = vpop.f32.mrf.mxu1  ;;  %v2413_v7 = vld [vmem:[%s7336_s11 + $0x88] sm:$0xff] }
 0x4c3   :  { %3709 = vmatpush3.msra.mxu1 %v7036_v39  ;;  %3385 = vmatmul.mubr.msk.f32.gmra.mxu0 %vm1161_vm1, %v2380_v21  ;;  %v2353_v8 = vadd.f32 %v2352_v52, %v6905_v18  ;;  %v2407_v52 = vld [vmem:[%s7336_s11 + $0x58] sm:$0xff] }
 0x4c4   :  { %3485 = vmatpush3.msra.mxu0 %v2425_v0  ;;  %3699 = vmatprep.subr.mxu1 %v3766_v5  ;;  %v2354_v50 = vpop.f32.mrf.mxu1  ;;  %v2410_v0 = vld [vmem:[%s7336_s11 + $0x70] sm:$0xff] }
 0x4c5   :  { %3486 = vmatprep.subr.mxu0 %v2470_v34  ;;  %3710 = vmatpush3.msra.mxu1 %v7049_v4  ;;  %v2390_v19 = vmax.f32 %v2353_v8, 0.0  ;;  %v2455_v34 = vld [vmem:[%s7336_s11 + $0x1d8] sm:$0xff]  ;;  %v2449_v50 = vld [vmem:[%s7336_s11 + $0x1a8] sm:$0xff] }
 0x4c6   :  { %3487 = vmatpush3.msra.mxu0 %v2422_v60  ;;  %3700 = vmatprep.subr.mxu1 %v3766_v5  ;;  %v2357_v40 = vpop.f32.mrf.mxu1  ;;  %v2452_v60 = vld [vmem:[%s7336_s11 + $0x1c0] sm:$0xff]  ;;  %v2401_v8 = vld [vmem:[%s7336_s11 + $0x28] sm:$0xff] }
 0x4c7   :  { %2961 = vmatprep.mubr.f32.mxu0 %v3766_v5  ;;  %3488 = vmatprep.subr.mxu0 %v2467_v17  ;;  %v2358_v27 = vadd.f32 %v2357_v40, %v6905_v18  ;;  %v2458_v18 = vld [vmem:[%s7336_s11 + $0x1f0] sm:$0xff]  ;;  %v2404_v17 = vld [vmem:[%s7336_s11 + $0x40] sm:$0xff] }
 0x4c8   :  { %3711 = vmatpush3.msra.mxu1 %v7067_v14  ;;  %3386 = vmatmul.mubr.msk.f32.gmra.mxu0 %vm1161_vm1, %v2385_v51  ;;  %v2359_v47 = vpop.f32.mrf.mxu1  ;;  %v2398_v40 = vld [vmem:[%s7336_s11 + $0x10] sm:$0xff] }
 0x4c9   :  { %3489 = vmatpush3.msra.mxu0 %v2419_v37  ;;  %3701 = vmatprep.subr.mxu1 %v3766_v5  ;;  %v2395_v42 = vmax.f32 %v2358_v27, 0.0  ;;  %v2446_v37 = vld [vmem:[%s7336_s11 + $0x190] sm:$0xff]  ;;  %s3768_s11 = smov [#allocation4]  }
 0x4ca   :  { %3490 = vmatprep.subr.mxu0 %v2464_v30  ;;  %3712 = vmatpush3.msra.mxu1 %v7081_v22  ;;  %s3332_s22 = sshll.u32 %s3768_s11, 4  ;;  %s3333_s22 = int_to_ptr.vmem [resolvable:$true] %s3332_s22 }
 0x4cb   :  { %3491 = vmatpush3.msra.mxu0 %v2416_v57  ;;  %3702 = vmatprep.subr.mxu1 %v3766_v5  ;;  %s3722_s23 = scalar_lea.vmem %s3333_s22, 1792  ;;  %p3727_p1 = scmp.lt.s32.totalorder %s3333_s22, %s3333_s22 }
 0x4cc   :  { %2967 = vmatprep.mubr.f32.mxu0 %v3766_v5  ;;  %3492 = vmatprep.subr.mxu0 %v2461_v28  ;;  %p3723_p0 = scmp.ne.s32.totalorder %s3333_s22, %s3722_s23  ;;  %p3728_p2 = scmp.lt.s32.totalorder %s3722_s23, %s3722_s23 }
 0x4cd   :  { %3713 = vmatpush3.msra.mxu1 %v7099_v3  ;;  %3686 = vmatprep.mubr.msk.f32.mxu1 %vm3767_vm0, %v3766_v5 }
 0x4ce   :  { %3387 = vmatmul.mubr.msk.f32.gmra.mxu0 %vm1161_vm1, %v2390_v19  ;;  %3687 = vmatmul.mubr.msk.f32.vlgmr.msra.gmra.mxu1 %vm1161_vm1, %v2390_v19  ;;  %p3729_p3 = por %p3728_p2, %p3727_p1 }
 0x4cf   :  { %3493 = vmatpush3.msra.mxu0 %v2413_v7  ;;  %2973 = vmatprep.mubr.f32.mxu0 %v3766_v5 }
 0x4d0   :  { %3494 = vmatprep.subr.mxu0 %v2458_v18  ;;  %3689 = vmatprep.mubr.msk.f32.mxu1 %vm3767_vm0, %v3766_v5  ;;  %p3730_p4 = pnand %p3729_p3, %p3723_p0 }
 0x4d1   :  { %3495 = vmatpush3.msra.mxu0 %v2410_v0 }
 0x4d2   :  { %3496 = vmatprep.subr.mxu0 %v2455_v34  ;;  %3388 = vmatmul.mubr.msk.f32.gmra.mxu0 %vm1161_vm1, %v2395_v42 }
 0x4d3   :  { %3497 = vmatpush3.msra.mxu0 %v2407_v52  ;;  %3690 = vmatmul.mubr.msk.f32.gmra.mxu1 %vm1161_vm1, %v2395_v42 }
 0x4d4   :  { %3498 = vmatprep.subr.mxu0 %v2452_v60  ;;  %3044 = vmatprep.mubr.f32.mxu0 %v2362_v11  ;;  %v7349_v11 = vmax.f32 %v6670_v2, 0.0 }
 0x4d5   :  { %3499 = vmatpush3.msra.mxu0 %v2404_v17 }
 0x4d6   :  { %3500 = vmatprep.subr.mxu0 %v2449_v50 }
 0x4d7   :  { %3501 = vmatpush3.msra.mxu0 %v2401_v8 }
 0x4d8   :  { %3502 = vmatprep.subr.mxu0 %v2446_v37 }
 0x4d9   :  { %3503 = vmatpush3.msra.mxu0 %v2398_v40 }
 0x4da   :  { %3045 = vmatmul.mubr.f32.vlgmr.msra.gmra.mxu0 %v2361_v58  ;;  %3649 = vmatprep.subr.mxu0 %v3766_v5  ;;  %v7350_v58 = vmax.f32 %v6667_v38, 0.0 }
 0x4db   :  { %3049 = vmatprep.mubr.f32.mxu0 %v2367_v24  ;;  %3650 = vmatpush3.msra.mxu0 %v6893_v61  ;;  %v7353_v24 = vmax.f32 %v6775_v62, 0.0 }
 0x4dc   :  { %3651 = vmatprep.subr.mxu0 %v3766_v5 }
 0x4dd   :  { %3652 = vmatpush3.msra.mxu0 %v6918_v44 }
 0x4de   :  { %3050 = vmatmul.mubr.f32.gmra.mxu0 %v2366_v32  ;;  %3653 = vmatprep.subr.mxu0 %v3766_v5 }
 0x4df   :  { %3054 = vmatprep.mubr.f32.mxu0 %v7347_v53  ;;  %3654 = vmatpush3.msra.mxu0 %v6941_v54 }
 0x4e0   :  { %3655 = vmatprep.subr.mxu0 %v3766_v5 }
 0x4e1   :  { %3656 = vmatpush3.msra.mxu0 %v6968_v59 }
 0x4e2   :  { %3055 = vmatmul.mubr.f32.gmra.mxu0 %v7348_v56  ;;  %3657 = vmatprep.subr.mxu0 %v3766_v5 }
 0x4e3   :  { %3059 = vmatprep.mubr.f32.mxu0 %v7349_v11  ;;  %3658 = vmatpush3.msra.mxu0 %v6995_v6 }
 0x4e4   :  { %3659 = vmatprep.subr.mxu0 %v3766_v5 }
 0x4e5   :  { %3660 = vmatpush3.msra.mxu0 %v7014_v45 }
 0x4e6   :  { %3060 = vmatmul.mubr.f32.gmra.mxu0 %v7350_v58  ;;  %3661 = vmatprep.subr.mxu0 %v3766_v5 }
 0x4e7   :  { %3064 = vmatprep.mubr.f32.mxu0 %v7351_v36  ;;  %3662 = vmatpush3.msra.mxu0 %v7036_v39 }
 0x4e8   :  { %3663 = vmatprep.subr.mxu0 %v3766_v5 }
 0x4e9   :  { %3664 = vmatpush3.msra.mxu0 %v7049_v4 }
 0x4ea   :  { %3065 = vmatmul.mubr.f32.gmra.mxu0 %v7352_v10  ;;  %3665 = vmatprep.subr.mxu0 %v3766_v5 }
 0x4eb   :  { %3069 = vmatprep.mubr.f32.mxu0 %v2387_v43  ;;  %3666 = vmatpush3.msra.mxu0 %v7067_v14 }
 0x4ec   :  { %3667 = vmatprep.subr.mxu0 %v3766_v5 }
 0x4ed   :  { %3668 = vmatpush3.msra.mxu0 %v7081_v22 }
 0x4ee   :  { %3070 = vmatmul.mubr.f32.gmra.mxu0 %v2386_v48  ;;  %3669 = vmatprep.subr.mxu0 %v3766_v5 }
 0x4ef   :  { %3074 = vmatprep.mubr.f32.mxu0 %v2392_v25  ;;  %3670 = vmatpush3.msra.mxu0 %v7099_v3 }
 0x4f2   :  { %3075 = vmatmul.mubr.f32.gmra.mxu0 %v7353_v24 }
 0x4f3   :  { %3671 = vmatprep.mubr.msk.f32.mxu0 %vm3767_vm0, %v3766_v5 }
 0x4f6   :  { %3672 = vmatmul.mubr.msk.f32.vlgmr.msra.gmra.mxu0 %vm1161_vm1, %v2365_v41 }
 0x4f7   :  { %3674 = vmatprep.mubr.msk.f32.mxu0 %vm3767_vm0, %v3766_v5 }
 0x4fa   :  { %3675 = vmatmul.mubr.msk.f32.gmra.mxu0 %vm1161_vm1, %v2370_v20 }
 0x4fb   :  { %3677 = vmatprep.mubr.msk.f32.mxu0 %vm3767_vm0, %v3766_v5 }
 0x4fe   :  { %3678 = vmatmul.mubr.msk.f32.gmra.mxu0 %vm1161_vm1, %v2375_v63 }
 0x4ff   :  { %3680 = vmatprep.mubr.msk.f32.mxu0 %vm3767_vm0, %v3766_v5 }
 0x502   :  { %3681 = vmatmul.mubr.msk.f32.gmra.mxu0 %vm1161_vm1, %v2380_v21 }
 0x503   :  { %3683 = vmatprep.mubr.msk.f32.mxu0 %vm3767_vm0, %v3766_v5 }
 0x506   :  { %3684 = vmatmul.mubr.msk.f32.gmra.mxu0 %vm1161_vm1, %v2385_v51 }
 0x543   :  { %v2725_v32 = vpop.f32.mrf.mxu0  ;;  %v2832_v33 = vpop.f32.mrf.mxu1 }
 0x545   :  { %v2727_v35 = vpop.f32.mrf.mxu0  ;;  %v2834_v38 = vpop.f32.mrf.mxu1 }
 0x548   :  { %v2731_v2 = vpop.f32.mrf.mxu0 }
 0x549   :  { %v2838_v62 = vpop.f32.mrf.mxu1 }
 0x54a   :  { %v2733_v12 = vpop.f32.mrf.mxu0 }
 0x54b   :  { %v2840_v29 = vpop.f32.mrf.mxu1 }
 0x54c   :  { %3733 = shalt.err (!%p3730_p4)
}
 0x54d   :  { %s3769_s24 = smov 256   ;;  %s3770_s3 = smov 16   ;;  %v2737_v5 = vpop.f32.mrf.mxu0  ;;  %v7245_v1 = vld [vmem:[%s7337_s12] sm:$0x7] }
 0x54e   :  { %3338 = dma.vmem_to_hbm [thread:$0]  %s3333_s22, 1792, %s7339_s14, [#allocation5], %s3769_s24, %s3769_s24, %s3770_s3   ;;  %v2844_v49 = vpop.f32.mrf.mxu1  ;;  %v7253_v15 = vrot.slane %v7245_v1, %v5171_v16  ;;  %v7259_v4 = vrot.slane %v7245_v1, %v5179_v23 }
 0x54f   :  { %v2739_v26 = vpop.f32.mrf.mxu0  ;;  %s3771_s12 = smov [#allocation2]  }
 0x550   :  { %v2846_v55 = vpop.f32.mrf.mxu1  ;;  %v2726_v30 = vadd.f32 %v2725_v32, %v7253_v15  ;;  %v2728_v57 = vadd.f32 %v2727_v35, %v7259_v4  ;;  %v2732_v23 = vadd.f32 %v2731_v2, %v7253_v15  ;;  %v2734_v42 = vadd.f32 %v2733_v12, %v7259_v4  ;;  %s3320_s27 = sshll.u32 %s3771_s12, 4  ;;  %s3321_s27 = int_to_ptr.vmem [resolvable:$true] %s3320_s27 }
 0x551   :  { %v2743_v25 = vpop.f32.mrf.mxu0  ;;  %v2738_v8 = vadd.f32 %v2737_v5, %v7253_v15  ;;  %v2740_v53 = vadd.f32 %v2739_v26, %v7259_v4  ;;  %s3742_s6 = scalar_lea.vmem %s3321_s27, 2688  ;;  %p3747_p6 = scmp.lt.s32.totalorder %s3321_s27, %s3321_s27 }
 0x552   :  { %v2850_v43 = vpop.f32.mrf.mxu1  ;;  %v2833_v28 = vadd.f32 %v2832_v33, %v2726_v30  ;;  %v2835_v3 = vadd.f32 %v2834_v38, %v2728_v57  ;;  %v2839_v52 = vadd.f32 %v2838_v62, %v2732_v23  ;;  %v2841_v50 = vadd.f32 %v2840_v29, %v2734_v42  ;;  %p3743_p5 = scmp.ne.s32.totalorder %s3321_s27, %s3742_s6  ;;  %p3748_p7 = scmp.lt.s32.totalorder %s3742_s6, %s3742_s6 }
 0x553   :  { %v2745_v31 = vpop.f32.mrf.mxu0  ;;  %v2845_v58 = vadd.f32 %v2844_v49, %v2738_v8  ;;  %v2744_v36 = vadd.f32 %v2743_v25, %v7253_v15  ;;  %v2847_v24 = vadd.f32 %v2846_v55, %v2740_v53 }
 0x554   :  { %v7224_v48 = vpop.f32.mrf.mxu1  ;;  %v2746_v33 = vadd.f32 %v2745_v31, %v7259_v4  ;;  %p3749_p8 = por %p3748_p7, %p3747_p6 }
 0x555   :  { %v2749_v13 = vpop.f32.mrf.mxu0  ;;  %v2851_v62 = vadd.f32 %v2850_v43, %v2744_v36 }
 0x556   :  { %v7226_v61 = vpop.f32.mrf.mxu1  ;;  %v2750_v12 = vadd.f32 %v2749_v13, %v7253_v15  ;;  %v2853_v5 = vadd.f32 %v7224_v48, %v2746_v33  ;;  %p3750_p9 = pnand %p3749_p8, %p3743_p5 }
 0x557   :  { %v2751_v59 = vpop.f32.mrf.mxu0 }
 0x558   :  { %v7228_v44 = vpop.f32.mrf.mxu1  ;;  %v2752_v25 = vadd.f32 %v2751_v59, %v7259_v4  ;;  %v2857_v31 = vadd.f32 %v7226_v61, %v2750_v12 }
 0x559   :  { %v7238_v63 = vpop.f32.mrf.mxu0 }
 0x55a   :  { %v7230_v41 = vpop.f32.mrf.mxu1  ;;  %v2859_v43 = vadd.f32 %v7228_v44, %v2752_v25  ;;  %v2756_v13 = vadd.f32 %v7238_v63, %v7253_v15 }
 0x55b   :  { %v7249_v21 = vpop.f32.mrf.mxu0 }
 0x55c   :  { %v7232_v54 = vpop.f32.mrf.mxu1 }
 0x55d   :  { %v7263_v14 = vpop.f32.mrf.mxu0 }
 0x55e   :  { %v7234_v20 = vpop.f32.mrf.mxu1  ;;  %v2762_v61 = vadd.f32 %v7263_v14, %v7253_v15 }
 0x55f   :  { %v7271_v16 = vpop.f32.mrf.mxu0 }
 0x560   :  { %v7236_v46 = vpop.f32.mrf.mxu1  ;;  %v2764_v63 = vadd.f32 %v7271_v16, %v7259_v4 }
 0x566   :  { %v7240_v6 = vpop.f32.mrf.mxu1 }
 0x568   :  { %v7247_v45 = vpop.f32.mrf.mxu1 }
 0x56a   :  { %v7255_v39 = vpop.f32.mrf.mxu1 }
 0x56c   :  { %v7261_v51 = vpop.f32.mrf.mxu1 }
 0x56e   :  { %v7266_v22 = vpop.f32.mrf.mxu1 }
 0x570   :  { %v7269_v47 = vpop.f32.mrf.mxu1 }
 0x572   :  { %v7273_v19 = vpop.f32.mrf.mxu1 }
 0x573   :  { %v2939_v27 = vpop.f32.mrf.mxu0 }
 0x574   :  { %v7276_v7 = vpop.f32.mrf.mxu1  ;;  %v2940_v18 = vadd.f32 %v2939_v27, %v2833_v28  ;;  %v2758_v27 = vadd.f32 %v7249_v21, %v7259_v4  ;;  %v2869_v21 = vadd.f32 %v7234_v20, %v2762_v61 }
 0x575   :  { %v2941_v0 = vpop.f32.mrf.mxu0 }
 0x576   :  { %3280 = vst [vmem:[#allocation2] sm:$0xff] %v2940_v18  ;;  %v2942_v34 = vadd.f32 %v2941_v0, %v2835_v3  ;;  %v7279_v60 = vpop.f32.mrf.mxu1  ;;  %v2863_v18 = vadd.f32 %v7230_v41, %v2756_v13  ;;  %v2865_v44 = vadd.f32 %v7232_v54, %v2758_v27  ;;  %v2871_v41 = vadd.f32 %v7236_v46, %v2764_v63 }
 0x577   :  { %v2634_v46 = vrot.slane %v7245_v1, %v5267_v9  ;;  %v3562_v1 = vadd.f32 %v7261_v51, %v7255_v39 }
 0x578   :  { %3281 = vst [vmem:[#allocation2 + $0x8] sm:$0xff] %v2942_v34  ;;  %v2945_v17 = vpop.f32.mrf.mxu0  ;;  %v7283_v11 = vpop.f32.mrf.mxu1 }
 0x579   :  { %v2946_v37 = vadd.f32 %v2945_v17, %v2839_v52 }
 0x57a   :  { %v2947_v40 = vpop.f32.mrf.mxu0  ;;  %v7287_v35 = vpop.f32.mrf.mxu1 }
 0x57b   :  { %3283 = vst [vmem:[#allocation2 + $0x18] sm:$0xff] %v2946_v37  ;;  %v2948_v56 = vadd.f32 %v2947_v40, %v2841_v50 }
 0x57c   :  { %v3573_v49 = vpop.f32.mrf.mxu1 }
 0x57d   :  { %3284 = vst [vmem:[#allocation2 + $0x20] sm:$0xff] %v2948_v56  ;;  %v3574_v25 = vadd.f32 %v3573_v49, %v7287_v35 }
 0x57e   :  { %v2951_v10 = vpop.f32.mrf.mxu0 }
 0x57f   :  { %v2952_v32 = vadd.f32 %v2951_v10, %v2845_v58  ;;  %v7293_v57 = vpop.f32.mrf.mxu1 }
 0x580   :  { %v2953_v38 = vpop.f32.mrf.mxu0 }
 0x581   :  { %3286 = vst [vmem:[#allocation2 + $0x30] sm:$0xff] %v2952_v32  ;;  %v2954_v2 = vadd.f32 %v2953_v38, %v2847_v24  ;;  %v3576_v3 = vpop.f32.mrf.mxu1 }
 0x583   :  { %3287 = vst [vmem:[#allocation2 + $0x38] sm:$0xff] %v2954_v2  ;;  %v2957_v29 = vpop.f32.mrf.mxu0 }
 0x584   :  { %v2958_v26 = vadd.f32 %v2957_v29, %v2851_v62 }
 0x585   :  { %v2959_v55 = vpop.f32.mrf.mxu0 }
 0x586   :  { %3289 = vst [vmem:[#allocation2 + $0x48] sm:$0xff] %v2958_v26  ;;  %v2960_v30 = vadd.f32 %v2959_v55, %v2853_v5  ;;  %v3559_v5 = vadd.f32 %v7247_v45, %v7240_v6 }
 0x588   :  { %3290 = vst [vmem:[#allocation2 + $0x50] sm:$0xff] %v2960_v30  ;;  %v2963_v28 = vpop.f32.mrf.mxu0 }
 0x589   :  { %v2964_v23 = vadd.f32 %v2963_v28, %v2857_v31 }
 0x58a   :  { %v2965_v48 = vpop.f32.mrf.mxu0 }
 0x58b   :  { %3292 = vst [vmem:[#allocation2 + $0x60] sm:$0xff] %v2964_v23  ;;  %v2966_v59 = vadd.f32 %v2965_v48, %v2859_v43  ;;  %v3577_v48 = vadd.f32 %v3576_v3, %v7293_v57 }
 0x58d   :  { %3293 = vst [vmem:[#allocation2 + $0x68] sm:$0xff] %v2966_v59 }
 0x58e   :  { %v2969_v42 = vpop.f32.mrf.mxu0  ;;  %v3271_v0 = vpop.f32.mrf.mxu1 }
 0x58f   :  { %v2970_v34 = vadd.f32 %v2969_v42, %v2863_v18 }
 0x590   :  { %v2971_v52 = vpop.f32.mrf.mxu0  ;;  %v3688_v17 = vpop.f32.mrf.mxu1 }
 0x591   :  { %3295 = vst [vmem:[#allocation2 + $0x78] sm:$0xff] %v2970_v34  ;;  %v2972_v50 = vadd.f32 %v2971_v52, %v2865_v44  ;;  %v3565_v44 = vadd.f32 %v7269_v47, %v7266_v22  ;;  %v3571_v22 = vadd.f32 %v7283_v11, %v7279_v60 }
 0x592   :  { %v2975_v8 = vpop.f32.mrf.mxu0 }
 0x593   :  { %3296 = vst [vmem:[#allocation2 + $0x80] sm:$0xff] %v2972_v50  ;;  %v2976_v15 = vadd.f32 %v2975_v8, %v2869_v21  ;;  %v3276_v14 = vpop.f32.mrf.mxu1 }
 0x594   :  { %v2977_v37 = vpop.f32.mrf.mxu0 }
 0x595   :  { %3298 = vst [vmem:[#allocation2 + $0x90] sm:$0xff] %v2976_v15  ;;  %v2978_v40 = vadd.f32 %v2977_v37, %v2871_v41  ;;  %v3691_v54 = vpop.f32.mrf.mxu1 }
 0x597   :  { %3299 = vst [vmem:[#allocation2 + $0x98] sm:$0xff] %v2978_v40 }
 0x59a   :  { %v3504_v53 = vpop.f32.mrf.mxu0 }
 0x59c   :  { %v3505_v4 = vpop.f32.mrf.mxu0 }
 0x59d   :  { %v3506_v32 = vadd.f32 %v3505_v4, %v3504_v53 }
 0x59e   :  { %v3507_v16 = vpop.f32.mrf.mxu0 }
 0x59f   :  { %v3047_v2 = vadd.f32 %v3506_v32, %v2634_v46 }
 0x5a0   :  { %v3508_v56 = vpop.f32.mrf.mxu0 }
 0x5a1   :  { %v3509_v12 = vadd.f32 %v3508_v56, %v3507_v16  ;;  %v3147_v31 = vadd.f32 %v3559_v5, %v3047_v2 }
 0x5a2   :  { %v3510_v58 = vpop.f32.mrf.mxu0 }
 0x5a3   :  { %v3052_v28 = vadd.f32 %v3509_v12, %v2634_v46 }
 0x5a4   :  { %v3511_v36 = vpop.f32.mrf.mxu0 }
 0x5a5   :  { %v3512_v43 = vadd.f32 %v3511_v36, %v3510_v58  ;;  %v3152_v49 = vadd.f32 %v3562_v1, %v3052_v28 }
 0x5a6   :  { %v3513_v20 = vpop.f32.mrf.mxu0 }
 0x5a7   :  { %v3057_v45 = vadd.f32 %v3512_v43, %v2634_v46 }
 0x5a8   :  { %v3514_v10 = vpop.f32.mrf.mxu0 }
 0x5a9   :  { %v3515_v61 = vadd.f32 %v3514_v10, %v3513_v20  ;;  %v3157_v57 = vadd.f32 %v3565_v44, %v3057_v45 }
 0x5aa   :  { %v3516_v24 = vpop.f32.mrf.mxu0 }
 0x5ab   :  { %v3062_v51 = vadd.f32 %v3515_v61, %v2634_v46 }
 0x5ac   :  { %v3517_v33 = vpop.f32.mrf.mxu0 }
 0x5ad   :  { %v3518_v52 = vadd.f32 %v3517_v33, %v3516_v24 }
 0x5ae   :  { %v3519_v38 = vpop.f32.mrf.mxu0 }
 0x5af   :  { %v3067_v50 = vadd.f32 %v3518_v52, %v2634_v46 }
 0x5b0   :  { %v3520_v62 = vpop.f32.mrf.mxu0 }
 0x5b1   :  { %v3521_v29 = vadd.f32 %v3520_v62, %v3519_v38 }
 0x5b2   :  { %v3522_v26 = vpop.f32.mrf.mxu0 }
 0x5b3   :  { %v3072_v55 = vadd.f32 %v3521_v29, %v2634_v46 }
 0x5b4   :  { %v3523_v30 = vpop.f32.mrf.mxu0 }
 0x5b5   :  { %v3172_v13 = vadd.f32 %v3574_v25, %v3072_v55  ;;  %v3524_v9 = vadd.f32 %v3523_v30, %v3522_v26 }
 0x5b6   :  { %v3246_v23 = vpop.f32.mrf.mxu0 }
 0x5b7   :  { %v3272_v27 = vadd.f32 %v3271_v0, %v3172_v13  ;;  %v3077_v59 = vadd.f32 %v3524_v9, %v2634_v46  ;;  %v3247_v18 = vadd.f32 %v3246_v23, %v3147_v31  ;;  %v3568_v0 = vadd.f32 %v7276_v7, %v7273_v19 }
 0x5b8   :  { %v3673_v6 = vpop.f32.mrf.mxu0 }
 0x5b9   :  { %3297 = vst [vmem:[#allocation2 + $0x88] sm:$0xff] %v3272_v27  ;;  %v3177_v35 = vadd.f32 %v3577_v48, %v3077_v59  ;;  %3282 = vst [vmem:[#allocation2 + $0x10] sm:$0xff] %v3247_v18  ;;  %v3162_v8 = vadd.f32 %v3568_v0, %v3062_v51 }
 0x5ba   :  { %v3251_v42 = vpop.f32.mrf.mxu0 }
 0x5bb   :  { %v3277_v63 = vadd.f32 %v3276_v14, %v3177_v35  ;;  %v3252_v34 = vadd.f32 %v3251_v42, %v3152_v49  ;;  %v3167_v14 = vadd.f32 %v3571_v22, %v3067_v50 }
 0x5bc   :  { %v3676_v39 = vpop.f32.mrf.mxu0 }
 0x5bd   :  { %3300 = vst [vmem:[#allocation2 + $0xa0] sm:$0xff] %v3277_v63  ;;  %3285 = vst [vmem:[#allocation2 + $0x28] sm:$0xff] %v3252_v34 }
 0x5be   :  { %v3256_v3 = vpop.f32.mrf.mxu0 }
 0x5bf   :  { %v3257_v17 = vadd.f32 %v3256_v3, %v3157_v57 }
 0x5c0   :  { %v3679_v21 = vpop.f32.mrf.mxu0 }
 0x5c1   :  { %3288 = vst [vmem:[#allocation2 + $0x40] sm:$0xff] %v3257_v17 }
 0x5c2   :  { %v3261_v41 = vpop.f32.mrf.mxu0 }
 0x5c3   :  { %v3262_v47 = vadd.f32 %v3261_v41, %v3162_v8 }
 0x5c4   :  { %v3682_v15 = vpop.f32.mrf.mxu0 }
 0x5c5   :  { %3291 = vst [vmem:[#allocation2 + $0x58] sm:$0xff] %v3262_v47 }
 0x5c6   :  { %v3266_v37 = vpop.f32.mrf.mxu0 }
 0x5c7   :  { %v3267_v40 = vadd.f32 %v3266_v37, %v3167_v14 }
 0x5c8   :  { %v3685_v54 = vpop.f32.mrf.mxu0 }
 0x5c9   :  { %3294 = vst [vmem:[#allocation2 + $0x70] sm:$0xff] %v3267_v40 }
 0x5ca   :  { %3753 = shalt.err (!%p3750_p9)
}
 0x5cb   :  { %s3772_s28 = smov 384   ;;  %s3773_s29 = smov 24  }
 0x5cc   :  { %3326 = dma.vmem_to_hbm [thread:$0]  %s3321_s27, 2688, %s7338_s13, [#allocation3], %s3772_s28, %s3772_s28, %s3773_s29  }
 0x5cd   :  { %3762 = dma.done.wait [#allocation3], 2688  }
 0x5ce   :  { %3763 = vsyncadd [#allocation3], 4294964608 }
 0x5cf   :  { %3764 = dma.done.wait [#allocation5], 1792  }
 0x5d0   :  { %3765 = vsyncadd [#allocation5], 4294965504 }
 0x5d1   :  { %3345 = vsyncpa [#allocation3], 1 }
 0x5d2   :  { %3346 = vsyncpa [#allocation5], 1 }

// kernel: tpu_custom_call.1
= control target key start
LH: loop header
LB: loop body
LE: loop exit
PB: predicated region body
PF: predicated region fallthrough
CT: control target
= control target key end

     0   :  { %20 = vsyncpa [#allocation3], 0  ;;  %s7325_s0 = inlined_call_operand.vmem [shape: f32[56,384], index: 0, kind: input, shape index: {}]   ;;  %s7326_s1 = inlined_call_operand.vmem [shape: f32[384,600], index: 1, kind: input, shape index: {}]   ;;  %s7327_s2 = inlined_call_operand.vmem [shape: f32[1,600], index: 2, kind: input, shape index: {}]   ;;  %s7328_s3 = inlined_call_operand.vmem [shape: f32[600,200], index: 3, kind: input, shape index: {}]   ;;  %s7329_s4 = inlined_call_operand.vmem [shape: f32[1,200], index: 4, kind: input, shape index: {}]   ;;  %s7330_s5 = inlined_call_operand.vmem [shape: f32[200,256], index: 5, kind: input, shape index: {}]   ;;  %s7331_s6 = inlined_call_operand.vmem [shape: f32[1,256], index: 6, kind: input, shape index: {}]   ;;  %s7332_s7 = inlined_call_operand.vmem [shape: f32[128,200], index: 7, kind: input, shape index: {}]   ;;  %s7333_s8 = inlined_call_operand.vmem [shape: f32[1,200], index: 8, kind: input, shape index: {}]   ;;  %s7334_s9 = inlined_call_operand.vmem [shape: f32[200,600], index: 9, kind: input, shape index: {}]   ;;  %s7335_s10 = inlined_call_operand.vmem [shape: f32[1,600], index: 10, kind: input, shape index: {}]   ;;  %s7336_s11 = inlined_call_operand.vmem [shape: f32[600,384], index: 11, kind: input, shape index: {}]   ;;  %s7337_s12 = inlined_call_operand.vmem [shape: f32[1,384], index: 12, kind: input, shape index: {}]   ;;  %s7338_s13 = inlined_call_operand.hbm [shape: f32[56,384], index: 13, kind: output, shape index: {0}]   ;;  %s7339_s14 = inlined_call_operand.hbm [shape: f32[56,256], index: 14, kind: output, shape index: {1}]  }
   0x1   :  { %v145_v0 = vld [vmem:[%s7326_s1 + $0x260] sm:$0xff]  ;;  %v144_v2 = vld [vmem:[%s7326_s1 + $0x258] sm:$0xff]  ;;  %v139_v6 = vld [vmem:[%s7326_s1 + $0x230] sm:$0xff] }
   0x2   :  { %v305_v1 = vld [vmem:[%s7326_s1 + $0x760] sm:$0xff]  ;;  %336 = vmatprep.subr.mxu0 %v145_v0  ;;  %v304_v3 = vld [vmem:[%s7326_s1 + $0x758] sm:$0xff]  ;;  %v299_v7 = vld [vmem:[%s7326_s1 + $0x730] sm:$0xff] }
   0x3   :  { %443 = vmatprep.subr.mxu1 %v305_v1  ;;  %v140_v4 = vld [vmem:[%s7326_s1 + $0x238] sm:$0xff]  ;;  %337 = vmatpush1.msra.mxu0 %v144_v2  ;;  %v135_v8 = vld [vmem:[%s7326_s1 + $0x210] sm:$0xff]  ;;  %v134_v10 = vld [vmem:[%s7326_s1 + $0x208] sm:$0xff] }
   0x4   :  { %v300_v5 = vld [vmem:[%s7326_s1 + $0x738] sm:$0xff]  ;;  %444 = vmatpush1.msra.mxu1 %v304_v3  ;;  %338 = vmatprep.subr.mxu0 %v140_v4  ;;  %v295_v9 = vld [vmem:[%s7326_s1 + $0x710] sm:$0xff]  ;;  %v294_v11 = vld [vmem:[%s7326_s1 + $0x708] sm:$0xff] }
   0x5   :  { %445 = vmatprep.subr.mxu1 %v300_v5  ;;  %339 = vmatpush1.msra.mxu0 %v139_v6  ;;  %v130_v12 = vld [vmem:[%s7326_s1 + $0x1e8] sm:$0xff]  ;;  %v129_v14 = vld [vmem:[%s7326_s1 + $0x1e0] sm:$0xff]  ;;  %v124_v18 = vld [vmem:[%s7326_s1 + $0x1b8] sm:$0xff]  ;;  %v3766_v5 = vmov 0.0  }
   0x6   :  { %446 = vmatpush1.msra.mxu1 %v299_v7  ;;  %v290_v13 = vld [vmem:[%s7326_s1 + $0x6e8] sm:$0xff]  ;;  %340 = vmatprep.subr.mxu0 %v135_v8  ;;  %v289_v15 = vld [vmem:[%s7326_s1 + $0x6e0] sm:$0xff]  ;;  %v284_v19 = vld [vmem:[%s7326_s1 + $0x6b8] sm:$0xff] }
   0x7   :  { %447 = vmatprep.subr.mxu1 %v295_v9  ;;  %341 = vmatpush1.msra.mxu0 %v134_v10  ;;  %v125_v16 = vld [vmem:[%s7326_s1 + $0x1c0] sm:$0xff]  ;;  %v120_v20 = vld [vmem:[%s7326_s1 + $0x198] sm:$0xff]  ;;  %v119_v22 = vld [vmem:[%s7326_s1 + $0x190] sm:$0xff] }
   0x8   :  { %448 = vmatpush1.msra.mxu1 %v294_v11  ;;  %v285_v17 = vld [vmem:[%s7326_s1 + $0x6c0] sm:$0xff]  ;;  %342 = vmatprep.subr.mxu0 %v130_v12  ;;  %v280_v21 = vld [vmem:[%s7326_s1 + $0x698] sm:$0xff]  ;;  %v279_v23 = vld [vmem:[%s7326_s1 + $0x690] sm:$0xff] }
   0x9   :  { %449 = vmatprep.subr.mxu1 %v290_v13  ;;  %343 = vmatpush1.msra.mxu0 %v129_v14  ;;  %v115_v24 = vld [vmem:[%s7326_s1 + $0x170] sm:$0xff]  ;;  %v114_v26 = vld [vmem:[%s7326_s1 + $0x168] sm:$0xff]  ;;  %v109_v30 = vld [vmem:[%s7326_s1 + $0x140] sm:$0xff] }
   0xa   :  { %450 = vmatpush1.msra.mxu1 %v289_v15  ;;  %344 = vmatprep.subr.mxu0 %v125_v16  ;;  %v275_v25 = vld [vmem:[%s7326_s1 + $0x670] sm:$0xff]  ;;  %v274_v27 = vld [vmem:[%s7326_s1 + $0x668] sm:$0xff]  ;;  %v269_v31 = vld [vmem:[%s7326_s1 + $0x640] sm:$0xff] }
   0xb   :  { %451 = vmatprep.subr.mxu1 %v285_v17  ;;  %345 = vmatpush1.msra.mxu0 %v124_v18  ;;  %v110_v28 = vld [vmem:[%s7326_s1 + $0x148] sm:$0xff]  ;;  %v105_v32 = vld [vmem:[%s7326_s1 + $0x120] sm:$0xff]  ;;  %v104_v34 = vld [vmem:[%s7326_s1 + $0x118] sm:$0xff] }
   0xc   :  { %452 = vmatpush1.msra.mxu1 %v284_v19  ;;  %346 = vmatprep.subr.mxu0 %v120_v20  ;;  %v270_v29 = vld [vmem:[%s7326_s1 + $0x648] sm:$0xff]  ;;  %v265_v33 = vld [vmem:[%s7326_s1 + $0x620] sm:$0xff]  ;;  %v264_v35 = vld [vmem:[%s7326_s1 + $0x618] sm:$0xff] }
   0xd   :  { %453 = vmatprep.subr.mxu1 %v280_v21  ;;  %347 = vmatpush1.msra.mxu0 %v119_v22  ;;  %v100_v36 = vld [vmem:[%s7326_s1 + $0xf8] sm:$0xff]  ;;  %v99_v38 = vld [vmem:[%s7326_s1 + $0xf0] sm:$0xff]  ;;  %v94_v42 = vld [vmem:[%s7326_s1 + $0xc8] sm:$0xff] }
   0xe   :  { %454 = vmatpush1.msra.mxu1 %v279_v23  ;;  %348 = vmatprep.subr.mxu0 %v115_v24  ;;  %v260_v37 = vld [vmem:[%s7326_s1 + $0x5f8] sm:$0xff]  ;;  %v259_v39 = vld [vmem:[%s7326_s1 + $0x5f0] sm:$0xff]  ;;  %v254_v43 = vld [vmem:[%s7326_s1 + $0x5c8] sm:$0xff] }
   0xf   :  { %455 = vmatprep.subr.mxu1 %v275_v25  ;;  %349 = vmatpush1.msra.mxu0 %v114_v26  ;;  %v95_v40 = vld [vmem:[%s7326_s1 + $0xd0] sm:$0xff]  ;;  %v90_v44 = vld [vmem:[%s7326_s1 + $0xa8] sm:$0xff]  ;;  %v89_v46 = vld [vmem:[%s7326_s1 + $0xa0] sm:$0xff] }
  0x10   :  { %456 = vmatpush1.msra.mxu1 %v274_v27  ;;  %350 = vmatprep.subr.mxu0 %v110_v28  ;;  %v255_v41 = vld [vmem:[%s7326_s1 + $0x5d0] sm:$0xff]  ;;  %v250_v45 = vld [vmem:[%s7326_s1 + $0x5a8] sm:$0xff]  ;;  %v249_v47 = vld [vmem:[%s7326_s1 + $0x5a0] sm:$0xff] }
  0x11   :  { %457 = vmatprep.subr.mxu1 %v270_v29  ;;  %351 = vmatpush1.msra.mxu0 %v109_v30  ;;  %v85_v48 = vld [vmem:[%s7326_s1 + $0x80] sm:$0xff]  ;;  %v84_v50 = vld [vmem:[%s7326_s1 + $0x78] sm:$0xff]  ;;  %v79_v54 = vld [vmem:[%s7326_s1 + $0x50] sm:$0xff] }
  0x12   :  { %458 = vmatpush1.msra.mxu1 %v269_v31  ;;  %352 = vmatprep.subr.mxu0 %v105_v32  ;;  %v245_v49 = vld [vmem:[%s7326_s1 + $0x580] sm:$0xff]  ;;  %v244_v51 = vld [vmem:[%s7326_s1 + $0x578] sm:$0xff]  ;;  %v239_v55 = vld [vmem:[%s7326_s1 + $0x550] sm:$0xff] }
  0x13   :  { %459 = vmatprep.subr.mxu1 %v265_v33  ;;  %353 = vmatpush1.msra.mxu0 %v104_v34  ;;  %v80_v52 = vld [vmem:[%s7326_s1 + $0x58] sm:$0xff]  ;;  %v75_v56 = vld [vmem:[%s7326_s1 + $0x30] sm:$0xff]  ;;  %v74_v58 = vld [vmem:[%s7326_s1 + $0x28] sm:$0xff] }
  0x14   :  { %460 = vmatpush1.msra.mxu1 %v264_v35  ;;  %354 = vmatprep.subr.mxu0 %v100_v36  ;;  %v240_v53 = vld [vmem:[%s7326_s1 + $0x558] sm:$0xff]  ;;  %v235_v57 = vld [vmem:[%s7326_s1 + $0x530] sm:$0xff]  ;;  %v234_v59 = vld [vmem:[%s7326_s1 + $0x528] sm:$0xff] }
  0x15   :  { %461 = vmatprep.subr.mxu1 %v260_v37  ;;  %355 = vmatpush1.msra.mxu0 %v99_v38  ;;  %v70_v60 = vld [vmem:[%s7326_s1 + $0x8] sm:$0xff]  ;;  %v69_v62 = vld [vmem:[%s7326_s1] sm:$0xff]  ;;  %v147_v1 = vld [vmem:[%s7326_s1 + $0x270] sm:$0xff] }
  0x16   :  { %462 = vmatpush1.msra.mxu1 %v259_v39  ;;  %356 = vmatprep.subr.mxu0 %v95_v40  ;;  %v230_v61 = vld [vmem:[%s7326_s1 + $0x508] sm:$0xff]  ;;  %v229_v63 = vld [vmem:[%s7326_s1 + $0x500] sm:$0xff]  ;;  %v224_v2 = vld [vmem:[%s7326_s1 + $0x4d8] sm:$0xff] }
  0x17   :  { %463 = vmatprep.subr.mxu1 %v255_v41  ;;  %357 = vmatpush1.msra.mxu0 %v94_v42  ;;  %v225_v0 = vld [vmem:[%s7326_s1 + $0x4e0] sm:$0xff]  ;;  %v4053_v3 = vld [vmem:[%s7325_s0 + $0x10] sm:$0xff]  ;;  %v220_v4 = vld [vmem:[%s7326_s1 + $0x4b8] sm:$0xff] }
  0x18   :  { %464 = vmatpush1.msra.mxu1 %v254_v43  ;;  %358 = vmatprep.subr.mxu0 %v90_v44  ;;  %v146_v6 = vld [vmem:[%s7326_s1 + $0x268] sm:$0xff]  ;;  %v219_v7 = vld [vmem:[%s7326_s1 + $0x4b0] sm:$0xff]  ;;  %v141_v10 = vld [vmem:[%s7326_s1 + $0x240] sm:$0xff] }
  0x19   :  { %465 = vmatprep.subr.mxu1 %v250_v45  ;;  %359 = vmatpush1.msra.mxu0 %v89_v46  ;;  %v142_v8 = vld [vmem:[%s7326_s1 + $0x248] sm:$0xff]  ;;  %v215_v9 = vld [vmem:[%s7326_s1 + $0x490] sm:$0xff]  ;;  %v137_v12 = vld [vmem:[%s7326_s1 + $0x220] sm:$0xff] }
  0x1a   :  { %466 = vmatpush1.msra.mxu1 %v249_v47  ;;  %360 = vmatprep.subr.mxu0 %v85_v48  ;;  %v214_v11 = vld [vmem:[%s7326_s1 + $0x488] sm:$0xff]  ;;  %v136_v14 = vld [vmem:[%s7326_s1 + $0x218] sm:$0xff]  ;;  %v209_v15 = vld [vmem:[%s7326_s1 + $0x460] sm:$0xff] }
  0x1b   :  { %467 = vmatprep.subr.mxu1 %v245_v49  ;;  %361 = vmatpush1.msra.mxu0 %v84_v50  ;;  %v210_v13 = vld [vmem:[%s7326_s1 + $0x468] sm:$0xff]  ;;  %v132_v16 = vld [vmem:[%s7326_s1 + $0x1f8] sm:$0xff]  ;;  %v205_v17 = vld [vmem:[%s7326_s1 + $0x440] sm:$0xff] }
  0x1c   :  { %468 = vmatpush1.msra.mxu1 %v244_v51  ;;  %362 = vmatprep.subr.mxu0 %v80_v52  ;;  %v131_v18 = vld [vmem:[%s7326_s1 + $0x1f0] sm:$0xff]  ;;  %v204_v19 = vld [vmem:[%s7326_s1 + $0x438] sm:$0xff]  ;;  %v126_v22 = vld [vmem:[%s7326_s1 + $0x1c8] sm:$0xff] }
  0x1d   :  { %469 = vmatprep.subr.mxu1 %v240_v53  ;;  %363 = vmatpush1.msra.mxu0 %v79_v54  ;;  %v127_v20 = vld [vmem:[%s7326_s1 + $0x1d0] sm:$0xff]  ;;  %v200_v21 = vld [vmem:[%s7326_s1 + $0x418] sm:$0xff]  ;;  %v122_v24 = vld [vmem:[%s7326_s1 + $0x1a8] sm:$0xff] }
  0x1e   :  { %470 = vmatpush1.msra.mxu1 %v239_v55  ;;  %364 = vmatprep.subr.mxu0 %v75_v56  ;;  %v199_v23 = vld [vmem:[%s7326_s1 + $0x410] sm:$0xff]  ;;  %v121_v26 = vld [vmem:[%s7326_s1 + $0x1a0] sm:$0xff]  ;;  %v194_v27 = vld [vmem:[%s7326_s1 + $0x3e8] sm:$0xff] }
  0x1f   :  { %471 = vmatprep.subr.mxu1 %v235_v57  ;;  %365 = vmatpush1.msra.mxu0 %v74_v58  ;;  %v195_v25 = vld [vmem:[%s7326_s1 + $0x3f0] sm:$0xff]  ;;  %v117_v28 = vld [vmem:[%s7326_s1 + $0x180] sm:$0xff]  ;;  %v190_v29 = vld [vmem:[%s7326_s1 + $0x3c8] sm:$0xff] }
  0x20   :  { %472 = vmatpush1.msra.mxu1 %v234_v59  ;;  %366 = vmatprep.subr.mxu0 %v70_v60  ;;  %v116_v30 = vld [vmem:[%s7326_s1 + $0x178] sm:$0xff]  ;;  %v189_v31 = vld [vmem:[%s7326_s1 + $0x3c0] sm:$0xff]  ;;  %v111_v34 = vld [vmem:[%s7326_s1 + $0x150] sm:$0xff] }
  0x21   :  { %473 = vmatprep.subr.mxu1 %v230_v61  ;;  %367 = vmatpush1.msra.mxu0 %v69_v62  ;;  %v112_v32 = vld [vmem:[%s7326_s1 + $0x158] sm:$0xff]  ;;  %v185_v33 = vld [vmem:[%s7326_s1 + $0x3a0] sm:$0xff]  ;;  %v107_v36 = vld [vmem:[%s7326_s1 + $0x130] sm:$0xff] }
  0x22   :  { %474 = vmatpush1.msra.mxu1 %v229_v63  ;;  %368 = vmatprep.subr.mxu0 %v225_v0  ;;  %v184_v35 = vld [vmem:[%s7326_s1 + $0x398] sm:$0xff]  ;;  %v106_v38 = vld [vmem:[%s7326_s1 + $0x128] sm:$0xff]  ;;  %v179_v39 = vld [vmem:[%s7326_s1 + $0x370] sm:$0xff] }
  0x23   :  { %507 = vmatprep.mubr.f32.mxu1 %v3766_v5  ;;  %550 = vmatprep.subr.mxu1 %v147_v1  ;;  %v180_v37 = vld [vmem:[%s7326_s1 + $0x378] sm:$0xff]  ;;  %v102_v40 = vld [vmem:[%s7326_s1 + $0x108] sm:$0xff]  ;;  %v175_v41 = vld [vmem:[%s7326_s1 + $0x350] sm:$0xff] }
  0x24   :  { %369 = vmatpush2.msra.mxu0 %v224_v2  ;;  %508 = vmatmul.mubr.f32.vlgmr.msra.gmra.mxu1 %v4053_v3  ;;  %v101_v42 = vld [vmem:[%s7326_s1 + $0x100] sm:$0xff]  ;;  %v174_v43 = vld [vmem:[%s7326_s1 + $0x348] sm:$0xff]  ;;  %v96_v46 = vld [vmem:[%s7326_s1 + $0xd8] sm:$0xff] }
  0x25   :  { %370 = vmatprep.subr.mxu0 %v220_v4  ;;  %551 = vmatpush1.msra.mxu1 %v146_v6  ;;  %v97_v44 = vld [vmem:[%s7326_s1 + $0xe0] sm:$0xff]  ;;  %v170_v45 = vld [vmem:[%s7326_s1 + $0x328] sm:$0xff]  ;;  %v92_v48 = vld [vmem:[%s7326_s1 + $0xb8] sm:$0xff] }
  0x26   :  { %371 = vmatpush2.msra.mxu0 %v219_v7  ;;  %552 = vmatprep.subr.mxu1 %v142_v8  ;;  %v169_v47 = vld [vmem:[%s7326_s1 + $0x320] sm:$0xff]  ;;  %v91_v50 = vld [vmem:[%s7326_s1 + $0xb0] sm:$0xff]  ;;  %v164_v51 = vld [vmem:[%s7326_s1 + $0x2f8] sm:$0xff] }
  0x27   :  { %372 = vmatprep.subr.mxu0 %v215_v9  ;;  %553 = vmatpush1.msra.mxu1 %v141_v10  ;;  %v165_v49 = vld [vmem:[%s7326_s1 + $0x300] sm:$0xff]  ;;  %v87_v52 = vld [vmem:[%s7326_s1 + $0x90] sm:$0xff]  ;;  %v160_v53 = vld [vmem:[%s7326_s1 + $0x2d8] sm:$0xff] }
  0x28   :  { %373 = vmatpush2.msra.mxu0 %v214_v11  ;;  %554 = vmatprep.subr.mxu1 %v137_v12  ;;  %v86_v54 = vld [vmem:[%s7326_s1 + $0x88] sm:$0xff]  ;;  %v159_v55 = vld [vmem:[%s7326_s1 + $0x2d0] sm:$0xff]  ;;  %v81_v58 = vld [vmem:[%s7326_s1 + $0x60] sm:$0xff] }
  0x29   :  { %374 = vmatprep.subr.mxu0 %v210_v13  ;;  %555 = vmatpush1.msra.mxu1 %v136_v14  ;;  %v82_v56 = vld [vmem:[%s7326_s1 + $0x68] sm:$0xff]  ;;  %v155_v57 = vld [vmem:[%s7326_s1 + $0x2b0] sm:$0xff]  ;;  %v77_v60 = vld [vmem:[%s7326_s1 + $0x40] sm:$0xff] }
  0x2a   :  { %375 = vmatpush2.msra.mxu0 %v209_v15  ;;  %556 = vmatprep.subr.mxu1 %v132_v16  ;;  %v154_v59 = vld [vmem:[%s7326_s1 + $0x2a8] sm:$0xff]  ;;  %v76_v62 = vld [vmem:[%s7326_s1 + $0x38] sm:$0xff]  ;;  %v149_v63 = vld [vmem:[%s7326_s1 + $0x280] sm:$0xff] }
  0x2b   :  { %376 = vmatprep.subr.mxu0 %v205_v17  ;;  %557 = vmatpush1.msra.mxu1 %v131_v18  ;;  %v150_v61 = vld [vmem:[%s7326_s1 + $0x288] sm:$0xff]  ;;  %v72_v0 = vld [vmem:[%s7326_s1 + $0x18] sm:$0xff]  ;;  %v71_v2 = vld [vmem:[%s7326_s1 + $0x10] sm:$0xff] }
  0x2c   :  { %377 = vmatpush2.msra.mxu0 %v204_v19  ;;  %558 = vmatprep.subr.mxu1 %v127_v20  ;;  %v4240_v1 = vld [vmem:[%s7325_s0 + $0x8] sm:$0xff]  ;;  %v4248_v4 = vld [vmem:[%s7325_s0] sm:$0xff]  ;;  %v227_v6 = vld [vmem:[%s7326_s1 + $0x4f0] sm:$0xff] }
  0x2d   :  { %378 = vmatprep.subr.mxu0 %v200_v21  ;;  %559 = vmatpush1.msra.mxu1 %v126_v22  ;;  %v307_v7 = vld [vmem:[%s7326_s1 + $0x770] sm:$0xff]  ;;  %v226_v8 = vld [vmem:[%s7326_s1 + $0x4e8] sm:$0xff]  ;;  %v4273_v12 = vld [vmem:[%s7325_s0 + $0x20] sm:$0xff] }
  0x2e   :  { %379 = vmatpush2.msra.mxu0 %v199_v23  ;;  %560 = vmatprep.subr.mxu1 %v122_v24  ;;  %v306_v9 = vld [vmem:[%s7326_s1 + $0x768] sm:$0xff]  ;;  %v221_v13 = vld [vmem:[%s7326_s1 + $0x4c0] sm:$0xff]  ;;  %v4287_v16 = vld [vmem:[%s7325_s0 + $0x18] sm:$0xff] }
  0x2f   :  { %380 = vmatprep.subr.mxu0 %v195_v25  ;;  %561 = vmatpush1.msra.mxu1 %v121_v26  ;;  %v222_v10 = vld [vmem:[%s7326_s1 + $0x4c8] sm:$0xff]  ;;  %v301_v14 = vld [vmem:[%s7326_s1 + $0x740] sm:$0xff]  ;;  %v216_v18 = vld [vmem:[%s7326_s1 + $0x498] sm:$0xff] }
  0x30   :  { %381 = vmatpush2.msra.mxu0 %v194_v27  ;;  %562 = vmatprep.subr.mxu1 %v117_v28  ;;  %v302_v11 = vld [vmem:[%s7326_s1 + $0x748] sm:$0xff]  ;;  %v217_v15 = vld [vmem:[%s7326_s1 + $0x4a0] sm:$0xff]  ;;  %v296_v19 = vld [vmem:[%s7326_s1 + $0x718] sm:$0xff] }
  0x31   :  { %382 = vmatprep.subr.mxu0 %v190_v29  ;;  %563 = vmatpush1.msra.mxu1 %v116_v30  ;;  %v297_v17 = vld [vmem:[%s7326_s1 + $0x720] sm:$0xff]  ;;  %v4302_v20 = vld [vmem:[%s7325_s0 + $0x28] sm:$0xff]  ;;  %v212_v21 = vld [vmem:[%s7326_s1 + $0x478] sm:$0xff] }
  0x32   :  { %383 = vmatpush2.msra.mxu0 %v189_v31  ;;  %564 = vmatprep.subr.mxu1 %v112_v32  ;;  %v292_v22 = vld [vmem:[%s7326_s1 + $0x6f8] sm:$0xff]  ;;  %v211_v24 = vld [vmem:[%s7326_s1 + $0x470] sm:$0xff]  ;;  %v206_v29 = vld [vmem:[%s7326_s1 + $0x448] sm:$0xff] }
  0x33   :  { %384 = vmatprep.subr.mxu0 %v185_v33  ;;  %565 = vmatpush1.msra.mxu1 %v111_v34  ;;  %v4315_v23 = vld [vmem:[%s7325_s0 + $0x38] sm:$0xff]  ;;  %v291_v25 = vld [vmem:[%s7326_s1 + $0x6f0] sm:$0xff]  ;;  %v286_v30 = vld [vmem:[%s7326_s1 + $0x6c8] sm:$0xff] }
  0x34   :  { %385 = vmatpush2.msra.mxu0 %v184_v35  ;;  %566 = vmatprep.subr.mxu1 %v107_v36  ;;  %v207_v26 = vld [vmem:[%s7326_s1 + $0x450] sm:$0xff]  ;;  %v4345_v31 = vld [vmem:[%s7325_s0 + $0x40] sm:$0xff]  ;;  %v202_v32 = vld [vmem:[%s7326_s1 + $0x428] sm:$0xff] }
  0x35   :  { %386 = vmatprep.subr.mxu0 %v180_v37  ;;  %567 = vmatpush1.msra.mxu1 %v106_v38  ;;  %v4330_v27 = vld [vmem:[%s7325_s0 + $0x30] sm:$0xff]  ;;  %v282_v33 = vld [vmem:[%s7326_s1 + $0x6a8] sm:$0xff]  ;;  %v201_v35 = vld [vmem:[%s7326_s1 + $0x420] sm:$0xff] }
  0x36   :  { %387 = vmatpush2.msra.mxu0 %v179_v39  ;;  %568 = vmatprep.subr.mxu1 %v102_v40  ;;  %v287_v28 = vld [vmem:[%s7326_s1 + $0x6d0] sm:$0xff]  ;;  %v281_v36 = vld [vmem:[%s7326_s1 + $0x6a0] sm:$0xff]  ;;  %v4373_v38 = vld [vmem:[%s7325_s0 + $0x48] sm:$0xff] }
  0x37   :  { %388 = vmatprep.subr.mxu0 %v175_v41  ;;  %569 = vmatpush1.msra.mxu1 %v101_v42  ;;  %v4358_v34 = vld [vmem:[%s7325_s0 + $0x50] sm:$0xff]  ;;  %v197_v37 = vld [vmem:[%s7326_s1 + $0x400] sm:$0xff]  ;;  %v196_v40 = vld [vmem:[%s7326_s1 + $0x3f8] sm:$0xff] }
  0x38   :  { %389 = vmatpush2.msra.mxu0 %v174_v43  ;;  %570 = vmatprep.subr.mxu1 %v97_v44  ;;  %v277_v39 = vld [vmem:[%s7326_s1 + $0x680] sm:$0xff]  ;;  %v276_v41 = vld [vmem:[%s7326_s1 + $0x678] sm:$0xff] }
  0x39   :  { %390 = vmatprep.subr.mxu0 %v170_v45  ;;  %571 = vmatpush1.msra.mxu1 %v96_v46  ;;  %v4388_v42 = vld [vmem:[%s7325_s0 + $0x58] sm:$0xff]  ;;  %v4401_v45 = vld [vmem:[%s7325_s0 + $0x68] sm:$0xff]  ;;  %v191_v46 = vld [vmem:[%s7326_s1 + $0x3d0] sm:$0xff] }
  0x3a   :  { %391 = vmatpush2.msra.mxu0 %v169_v47  ;;  %572 = vmatprep.subr.mxu1 %v92_v48  ;;  %v192_v43 = vld [vmem:[%s7326_s1 + $0x3d8] sm:$0xff]  ;;  %v271_v47 = vld [vmem:[%s7326_s1 + $0x650] sm:$0xff] }
  0x3b   :  { %392 = vmatprep.subr.mxu0 %v165_v49  ;;  %573 = vmatpush1.msra.mxu1 %v91_v50  ;;  %v272_v44 = vld [vmem:[%s7326_s1 + $0x658] sm:$0xff]  ;;  %v187_v48 = vld [vmem:[%s7326_s1 + $0x3b0] sm:$0xff]  ;;  %v4416_v49 = vld [vmem:[%s7325_s0 + $0x60] sm:$0xff] }
  0x3c   :  { %393 = vmatpush2.msra.mxu0 %v164_v51  ;;  %574 = vmatprep.subr.mxu1 %v87_v52  ;;  %v267_v50 = vld [vmem:[%s7326_s1 + $0x630] sm:$0xff]  ;;  %v186_v51 = vld [vmem:[%s7326_s1 + $0x3a8] sm:$0xff] }
  0x3d   :  { %394 = vmatprep.subr.mxu0 %v160_v53  ;;  %575 = vmatpush1.msra.mxu1 %v86_v54  ;;  %v266_v52 = vld [vmem:[%s7326_s1 + $0x628] sm:$0xff]  ;;  %v4431_v53 = vld [vmem:[%s7325_s0 + $0x70] sm:$0xff] }
  0x3e   :  { %395 = vmatpush2.msra.mxu0 %v159_v55  ;;  %576 = vmatprep.subr.mxu1 %v82_v56  ;;  %v182_v54 = vld [vmem:[%s7326_s1 + $0x388] sm:$0xff]  ;;  %v4444_v56 = vld [vmem:[%s7325_s0 + $0x80] sm:$0xff] }
  0x3f   :  { %396 = vmatprep.subr.mxu0 %v155_v57  ;;  %577 = vmatpush1.msra.mxu1 %v81_v58  ;;  %v262_v55 = vld [vmem:[%s7326_s1 + $0x608] sm:$0xff]  ;;  %v181_v57 = vld [vmem:[%s7326_s1 + $0x380] sm:$0xff] }
  0x40   :  { %397 = vmatpush2.msra.mxu0 %v154_v59  ;;  %578 = vmatprep.subr.mxu1 %v77_v60  ;;  %v261_v58 = vld [vmem:[%s7326_s1 + $0x600] sm:$0xff]  ;;  %v4459_v60 = vld [vmem:[%s7325_s0 + $0x78] sm:$0xff] }
  0x41   :  { %398 = vmatprep.subr.mxu0 %v150_v61  ;;  %579 = vmatpush1.msra.mxu1 %v76_v62  ;;  %v177_v59 = vld [vmem:[%s7326_s1 + $0x360] sm:$0xff]  ;;  %v176_v62 = vld [vmem:[%s7326_s1 + $0x358] sm:$0xff] }
  0x42   :  { %399 = vmatpush2.msra.mxu0 %v149_v63  ;;  %580 = vmatprep.subr.mxu1 %v72_v0  ;;  %v257_v61 = vld [vmem:[%s7326_s1 + $0x5e0] sm:$0xff]  ;;  %v256_v63 = vld [vmem:[%s7326_s1 + $0x5d8] sm:$0xff]  ;;  %v4474_v0 = vld [vmem:[%s7325_s0 + $0x88] sm:$0xff] }
  0x43   :  { %400 = vmatprep.mubr.f32.mxu0 %v4240_v1  ;;  %581 = vmatpush1.msra.mxu1 %v71_v2  ;;  %v172_v2 = vld [vmem:[%s7326_s1 + $0x338] sm:$0xff] }
  0x44   :  { %401 = vmatmul.mubr.f32.vlgmr.msra.gmra.mxu0 %v4248_v4  ;;  %582 = vmatprep.subr.mxu1 %v227_v6  ;;  %v252_v6 = vld [vmem:[%s7326_s1 + $0x5b8] sm:$0xff] }
  0x45   :  { %657 = vmatprep.subr.mxu0 %v307_v7  ;;  %583 = vmatpush2.msra.mxu1 %v226_v8 }
  0x46   :  { %658 = vmatpush1.msra.mxu0 %v306_v9  ;;  %584 = vmatprep.subr.mxu1 %v222_v10 }
  0x47   :  { %659 = vmatprep.subr.mxu0 %v302_v11  ;;  %406 = vmatprep.mubr.f32.mxu0 %v4273_v12 }
  0x48   :  { %585 = vmatpush2.msra.mxu1 %v221_v13  ;;  %660 = vmatpush1.msra.mxu0 %v301_v14 }
  0x49   :  { %586 = vmatprep.subr.mxu1 %v217_v15  ;;  %407 = vmatmul.mubr.f32.gmra.mxu0 %v4287_v16 }
  0x4a   :  { %661 = vmatprep.subr.mxu0 %v297_v17  ;;  %513 = vmatprep.mubr.f32.mxu1 %v3766_v5 }
  0x4b   :  { %587 = vmatpush2.msra.mxu1 %v216_v18  ;;  %662 = vmatpush1.msra.mxu0 %v296_v19 }
  0x4c   :  { %514 = vmatmul.mubr.f32.gmra.mxu1 %v4302_v20  ;;  %588 = vmatprep.subr.mxu1 %v212_v21 }
  0x4d   :  { %663 = vmatprep.subr.mxu0 %v292_v22  ;;  %412 = vmatprep.mubr.f32.mxu0 %v4315_v23 }
  0x4e   :  { %589 = vmatpush2.msra.mxu1 %v211_v24  ;;  %664 = vmatpush1.msra.mxu0 %v291_v25 }
  0x4f   :  { %590 = vmatprep.subr.mxu1 %v207_v26  ;;  %413 = vmatmul.mubr.f32.gmra.mxu0 %v4330_v27 }
  0x50   :  { %665 = vmatprep.subr.mxu0 %v287_v28  ;;  %519 = vmatprep.mubr.f32.mxu1 %v3766_v5 }
  0x51   :  { %591 = vmatpush2.msra.mxu1 %v206_v29  ;;  %666 = vmatpush1.msra.mxu0 %v286_v30 }
  0x52   :  { %520 = vmatmul.mubr.f32.gmra.mxu1 %v4345_v31  ;;  %592 = vmatprep.subr.mxu1 %v202_v32 }
  0x53   :  { %667 = vmatprep.subr.mxu0 %v282_v33  ;;  %418 = vmatprep.mubr.f32.mxu0 %v4358_v34 }
  0x54   :  { %593 = vmatpush2.msra.mxu1 %v201_v35  ;;  %668 = vmatpush1.msra.mxu0 %v281_v36 }
  0x55   :  { %594 = vmatprep.subr.mxu1 %v197_v37  ;;  %419 = vmatmul.mubr.f32.gmra.mxu0 %v4373_v38 }
  0x56   :  { %669 = vmatprep.subr.mxu0 %v277_v39  ;;  %525 = vmatprep.mubr.f32.mxu1 %v3766_v5 }
  0x57   :  { %595 = vmatpush2.msra.mxu1 %v196_v40  ;;  %670 = vmatpush1.msra.mxu0 %v276_v41 }
  0x58   :  { %526 = vmatmul.mubr.f32.gmra.mxu1 %v4388_v42  ;;  %596 = vmatprep.subr.mxu1 %v192_v43 }
  0x59   :  { %671 = vmatprep.subr.mxu0 %v272_v44  ;;  %424 = vmatprep.mubr.f32.mxu0 %v4401_v45 }
  0x5a   :  { %597 = vmatpush2.msra.mxu1 %v191_v46  ;;  %672 = vmatpush1.msra.mxu0 %v271_v47 }
  0x5b   :  { %598 = vmatprep.subr.mxu1 %v187_v48  ;;  %425 = vmatmul.mubr.f32.gmra.mxu0 %v4416_v49 }
  0x5c   :  { %673 = vmatprep.subr.mxu0 %v267_v50  ;;  %531 = vmatprep.mubr.f32.mxu1 %v3766_v5 }
  0x5d   :  { %599 = vmatpush2.msra.mxu1 %v186_v51  ;;  %674 = vmatpush1.msra.mxu0 %v266_v52 }
  0x5e   :  { %532 = vmatmul.mubr.f32.gmra.mxu1 %v4431_v53  ;;  %600 = vmatprep.subr.mxu1 %v182_v54 }
  0x5f   :  { %675 = vmatprep.subr.mxu0 %v262_v55  ;;  %430 = vmatprep.mubr.f32.mxu0 %v4444_v56 }
  0x60   :  { %601 = vmatpush2.msra.mxu1 %v181_v57  ;;  %676 = vmatpush1.msra.mxu0 %v261_v58 }
  0x61   :  { %602 = vmatprep.subr.mxu1 %v177_v59  ;;  %431 = vmatmul.mubr.f32.gmra.mxu0 %v4459_v60 }
  0x62   :  { %677 = vmatprep.subr.mxu0 %v257_v61 }
  0x63   :  { %21 = vsyncpa [#allocation5], 0  ;;  %537 = vmatprep.mubr.f32.mxu1 %v3766_v5  ;;  %603 = vmatpush2.msra.mxu1 %v176_v62  ;;  %v4487_v7 = vld [vmem:[%s7325_s0 + $0x98] sm:$0xff]  ;;  %v171_v8 = vld [vmem:[%s7326_s1 + $0x330] sm:$0xff]  ;;  %vm3767_vm0 = vmmov 0   ;;  %vm1161_vm1 = vcmask 719872  }
  0x64   :  { %678 = vmatpush1.msra.mxu0 %v256_v63  ;;  %538 = vmatmul.mubr.f32.gmra.mxu1 %v4474_v0  ;;  %v251_v9 = vld [vmem:[%s7326_s1 + $0x5b0] sm:$0xff]  ;;  %v166_v14 = vld [vmem:[%s7326_s1 + $0x308] sm:$0xff]  ;;  %v4517_v17 = vld [vmem:[%s7325_s0 + $0xa0] sm:$0xff]  ;;  %vm1580_vm2 = vcmask 588800  }
  0x65   :  { %v167_v10 = vld [vmem:[%s7326_s1 + $0x310] sm:$0xff]  ;;  %604 = vmatprep.subr.mxu1 %v172_v2  ;;  %679 = vmatprep.subr.mxu0 %v252_v6  ;;  %v246_v15 = vld [vmem:[%s7326_s1 + $0x588] sm:$0xff]  ;;  %v161_v21 = vld [vmem:[%s7326_s1 + $0x2e0] sm:$0xff] }
  0x66   :  { %v4502_v11 = vld [vmem:[%s7325_s0 + $0x90] sm:$0xff]  ;;  %436 = vmatprep.mubr.f32.mxu0 %v4487_v7  ;;  %605 = vmatpush2.msra.mxu1 %v171_v8  ;;  %v162_v18 = vld [vmem:[%s7326_s1 + $0x2e8] sm:$0xff]  ;;  %v241_v22 = vld [vmem:[%s7326_s1 + $0x560] sm:$0xff] }
  0x67   :  { %v247_v13 = vld [vmem:[%s7326_s1 + $0x590] sm:$0xff]  ;;  %680 = vmatpush1.msra.mxu0 %v251_v9  ;;  %606 = vmatprep.subr.mxu1 %v167_v10  ;;  %v242_v19 = vld [vmem:[%s7326_s1 + $0x568] sm:$0xff]  ;;  %v157_v24 = vld [vmem:[%s7326_s1 + $0x2c0] sm:$0xff] }
  0x68   :  { %437 = vmatmul.mubr.f32.gmra.mxu0 %v4502_v11  ;;  %681 = vmatprep.subr.mxu0 %v247_v13  ;;  %v237_v25 = vld [vmem:[%s7326_s1 + $0x540] sm:$0xff]  ;;  %v156_v26 = vld [vmem:[%s7326_s1 + $0x2b8] sm:$0xff]  ;;  %v151_v32 = vld [vmem:[%s7326_s1 + $0x290] sm:$0xff] }
  0x69   :  { %543 = vmatprep.mubr.f32.mxu1 %v3766_v5  ;;  %607 = vmatpush2.msra.mxu1 %v166_v14  ;;  %v236_v28 = vld [vmem:[%s7326_s1 + $0x538] sm:$0xff]  ;;  %v231_v33 = vld [vmem:[%s7326_s1 + $0x510] sm:$0xff]  ;;  %v218_v40 = vld [vmem:[%s7326_s1 + $0x4a8] sm:$0xff] }
  0x6a   :  { %682 = vmatpush1.msra.mxu0 %v246_v15  ;;  %544 = vmatmul.mubr.f32.gmra.mxu1 %v4517_v17  ;;  %v152_v29 = vld [vmem:[%s7326_s1 + $0x298] sm:$0xff]  ;;  %v223_v37 = vld [vmem:[%s7326_s1 + $0x4d0] sm:$0xff]  ;;  %v138_v43 = vld [vmem:[%s7326_s1 + $0x228] sm:$0xff] }
  0x6b   :  { %608 = vmatprep.subr.mxu1 %v162_v18  ;;  %683 = vmatprep.subr.mxu0 %v242_v19  ;;  %v232_v30 = vld [vmem:[%s7326_s1 + $0x518] sm:$0xff]  ;;  %v143_v39 = vld [vmem:[%s7326_s1 + $0x250] sm:$0xff]  ;;  %v213_v44 = vld [vmem:[%s7326_s1 + $0x480] sm:$0xff] }
  0x6c   :  { %609 = vmatpush2.msra.mxu1 %v161_v21  ;;  %684 = vmatpush1.msra.mxu0 %v241_v22  ;;  %v228_v35 = vld [vmem:[%s7326_s1 + $0x4f8] sm:$0xff]  ;;  %v133_v46 = vld [vmem:[%s7326_s1 + $0x200] sm:$0xff]  ;;  %v303_v47 = vld [vmem:[%s7326_s1 + $0x750] sm:$0xff] }
  0x6d   :  { %610 = vmatprep.subr.mxu1 %v157_v24  ;;  %685 = vmatprep.subr.mxu0 %v237_v25  ;;  %v148_v36 = vld [vmem:[%s7326_s1 + $0x278] sm:$0xff]  ;;  %v298_v51 = vld [vmem:[%s7326_s1 + $0x728] sm:$0xff]  ;;  %v203_v52 = vld [vmem:[%s7326_s1 + $0x430] sm:$0xff] }
  0x6e   :  { %611 = vmatpush2.msra.mxu1 %v156_v26  ;;  %686 = vmatpush1.msra.mxu0 %v236_v28  ;;  %v308_v41 = vld [vmem:[%s7326_s1 + $0x778] sm:$0xff]  ;;  %v123_v54 = vld [vmem:[%s7326_s1 + $0x1b0] sm:$0xff]  ;;  %v293_v55 = vld [vmem:[%s7326_s1 + $0x700] sm:$0xff] }
  0x6f   :  { %612 = vmatprep.subr.mxu1 %v152_v29  ;;  %687 = vmatprep.subr.mxu0 %v232_v30  ;;  %v208_v48 = vld [vmem:[%s7326_s1 + $0x458] sm:$0xff]  ;;  %v198_v57 = vld [vmem:[%s7326_s1 + $0x408] sm:$0xff]  ;;  %v193_v61 = vld [vmem:[%s7326_s1 + $0x3e0] sm:$0xff] }
  0x70   :  { %613 = vmatpush2.msra.mxu1 %v151_v32  ;;  %614 = vmatprep.mubr.f32.mxu1 %v4240_v1  ;;  %v128_v50 = vld [vmem:[%s7326_s1 + $0x1d8] sm:$0xff]  ;;  %v118_v58 = vld [vmem:[%s7326_s1 + $0x188] sm:$0xff]  ;;  %v113_v62 = vld [vmem:[%s7326_s1 + $0x160] sm:$0xff] }
  0x71   :  { %688 = vmatpush1.msra.mxu0 %v231_v33  ;;  %721 = vmatprep.mubr.f32.mxu0 %v3766_v5  ;;  %v288_v59 = vld [vmem:[%s7326_s1 + $0x6d8] sm:$0xff]  ;;  %v283_v63 = vld [vmem:[%s7326_s1 + $0x6b0] sm:$0xff]  ;;  %v278_v8 = vld [vmem:[%s7326_s1 + $0x688] sm:$0xff] }
  0x72   :  { %615 = vmatmul.mubr.f32.vlgmr.msra.gmra.mxu1 %v4248_v4  ;;  %722 = vmatmul.mubr.f32.vlgmr.msra.gmra.mxu0 %v4053_v3  ;;  %v188_v2 = vld [vmem:[%s7326_s1 + $0x3b8] sm:$0xff]  ;;  %v183_v9 = vld [vmem:[%s7326_s1 + $0x390] sm:$0xff]  ;;  %v273_v13 = vld [vmem:[%s7326_s1 + $0x660] sm:$0xff] }
  0x73   :  { %3396 = vmatprep.subr.mxu0 %v228_v35  ;;  %620 = vmatprep.mubr.f32.mxu1 %v4273_v12  ;;  %v108_v6 = vld [vmem:[%s7326_s1 + $0x138] sm:$0xff]  ;;  %v103_v10 = vld [vmem:[%s7326_s1 + $0x110] sm:$0xff]  ;;  %v178_v14 = vld [vmem:[%s7326_s1 + $0x368] sm:$0xff] }
  0x74   :  { %3397 = vmatpush3.msra.mxu0 %v148_v36  ;;  %3596 = vmatprep.subr.mxu1 %v3766_v5  ;;  %v98_v15 = vld [vmem:[%s7326_s1 + $0xe8] sm:$0xff]  ;;  %v268_v18 = vld [vmem:[%s7326_s1 + $0x638] sm:$0xff]  ;;  %v173_v19 = vld [vmem:[%s7326_s1 + $0x340] sm:$0xff] }
  0x75   :  { %3398 = vmatprep.subr.mxu0 %v223_v37  ;;  %727 = vmatprep.mubr.f32.mxu0 %v3766_v5  ;;  %v93_v21 = vld [vmem:[%s7326_s1 + $0xc0] sm:$0xff]  ;;  %v263_v22 = vld [vmem:[%s7326_s1 + $0x610] sm:$0xff]  ;;  %v168_v24 = vld [vmem:[%s7326_s1 + $0x318] sm:$0xff] }
  0x76   :  { %3399 = vmatpush3.msra.mxu0 %v143_v39  ;;  %621 = vmatmul.mubr.f32.gmra.mxu1 %v4287_v16  ;;  %v88_v25 = vld [vmem:[%s7326_s1 + $0x98] sm:$0xff]  ;;  %v258_v26 = vld [vmem:[%s7326_s1 + $0x5e8] sm:$0xff]  ;;  %v163_v28 = vld [vmem:[%s7326_s1 + $0x2f0] sm:$0xff] }
  0x77   :  { %3400 = vmatprep.subr.mxu0 %v218_v40  ;;  %3597 = vmatpush3.msra.mxu1 %v308_v41  ;;  %v83_v29 = vld [vmem:[%s7326_s1 + $0x70] sm:$0xff]  ;;  %v253_v30 = vld [vmem:[%s7326_s1 + $0x5c0] sm:$0xff]  ;;  %v158_v32 = vld [vmem:[%s7326_s1 + $0x2c8] sm:$0xff] }
  0x78   :  { %3401 = vmatpush3.msra.mxu0 %v138_v43  ;;  %3598 = vmatprep.subr.mxu1 %v3766_v5  ;;  %v78_v33 = vld [vmem:[%s7326_s1 + $0x48] sm:$0xff]  ;;  %v248_v35 = vld [vmem:[%s7326_s1 + $0x598] sm:$0xff]  ;;  %v153_v36 = vld [vmem:[%s7326_s1 + $0x2a0] sm:$0xff] }
  0x79   :  { %728 = vmatmul.mubr.f32.gmra.mxu0 %v4302_v20  ;;  %3402 = vmatprep.subr.mxu0 %v213_v44  ;;  %v73_v37 = vld [vmem:[%s7326_s1 + $0x20] sm:$0xff]  ;;  %v243_v39 = vld [vmem:[%s7326_s1 + $0x570] sm:$0xff]  ;;  %v238_v40 = vld [vmem:[%s7326_s1 + $0x548] sm:$0xff] }
  0x7a   :  { %626 = vmatprep.mubr.f32.mxu1 %v4315_v23  ;;  %3403 = vmatpush3.msra.mxu0 %v133_v46  ;;  %v1030_v41 = vld [vmem:[%s7328_s3 + $0xf8] sm:$0xff]  ;;  %v233_v43 = vld [vmem:[%s7326_s1 + $0x520] sm:$0xff]  ;;  %v1093_v44 = vld [vmem:[%s7328_s3 + $0x2f0] sm:$0xff] }
  0x7b   :  { %3599 = vmatpush3.msra.mxu1 %v303_v47  ;;  %3404 = vmatprep.subr.mxu0 %v208_v48  ;;  %v1091_v46 = vld [vmem:[%s7328_s3 + $0x2e0] sm:$0xff]  ;;  %v1089_v47 = vld [vmem:[%s7328_s3 + $0x2d0] sm:$0xff] }
  0x7c   :  { %627 = vmatmul.mubr.f32.gmra.mxu1 %v4330_v27  ;;  %3600 = vmatprep.subr.mxu1 %v3766_v5  ;;  %v1087_v48 = vld [vmem:[%s7328_s3 + $0x2c0] sm:$0xff] }
  0x7d   :  { %733 = vmatprep.mubr.f32.mxu0 %v3766_v5  ;;  %3405 = vmatpush3.msra.mxu0 %v128_v50  ;;  %v1085_v50 = vld [vmem:[%s7328_s3 + $0x2b0] sm:$0xff] }
  0x7e   :  { %3601 = vmatpush3.msra.mxu1 %v298_v51  ;;  %734 = vmatmul.mubr.f32.gmra.mxu0 %v4345_v31  ;;  %v1018_v51 = vld [vmem:[%s7328_s3 + $0x98] sm:$0xff] }
  0x7f   :  { %3406 = vmatprep.subr.mxu0 %v203_v52  ;;  %3602 = vmatprep.subr.mxu1 %v3766_v5  ;;  %v1016_v52 = vld [vmem:[%s7328_s3 + $0x88] sm:$0xff] }
  0x80   :  { %632 = vmatprep.mubr.f32.mxu1 %v4358_v34  ;;  %3407 = vmatpush3.msra.mxu0 %v123_v54  ;;  %v1015_v54 = vld [vmem:[%s7328_s3 + $0x80] sm:$0xff] }
  0x81   :  { %3603 = vmatpush3.msra.mxu1 %v293_v55  ;;  %3408 = vmatprep.subr.mxu0 %v198_v57  ;;  %v1082_v55 = vld [vmem:[%s7328_s3 + $0x298] sm:$0xff]  ;;  %v1013_v57 = vld [vmem:[%s7328_s3 + $0x70] sm:$0xff] }
  0x82   :  { %633 = vmatmul.mubr.f32.gmra.mxu1 %v4373_v38  ;;  %3604 = vmatprep.subr.mxu1 %v3766_v5 }
  0x83   :  { %739 = vmatprep.mubr.f32.mxu0 %v3766_v5  ;;  %3409 = vmatpush3.msra.mxu0 %v118_v58  ;;  %v1081_v58 = vld [vmem:[%s7328_s3 + $0x290] sm:$0xff] }
  0x84   :  { %3605 = vmatpush3.msra.mxu1 %v288_v59  ;;  %740 = vmatmul.mubr.f32.gmra.mxu0 %v4388_v42  ;;  %v1012_v59 = vld [vmem:[%s7328_s3 + $0x68] sm:$0xff] }
  0x85   :  { %3410 = vmatprep.subr.mxu0 %v193_v61  ;;  %3606 = vmatprep.subr.mxu1 %v3766_v5  ;;  %v1080_v61 = vld [vmem:[%s7328_s3 + $0x288] sm:$0xff] }
  0x86   :  { %638 = vmatprep.mubr.f32.mxu1 %v4401_v45  ;;  %3411 = vmatpush3.msra.mxu0 %v113_v62  ;;  %v1011_v62 = vld [vmem:[%s7328_s3 + $0x60] sm:$0xff] }
  0x87   :  { %3607 = vmatpush3.msra.mxu1 %v283_v63  ;;  %3412 = vmatprep.subr.mxu0 %v188_v2  ;;  %v1079_v63 = vld [vmem:[%s7328_s3 + $0x280] sm:$0xff]  ;;  %v1078_v2 = vld [vmem:[%s7328_s3 + $0x278] sm:$0xff] }
  0x88   :  { %639 = vmatmul.mubr.f32.gmra.mxu1 %v4416_v49  ;;  %3608 = vmatprep.subr.mxu1 %v3766_v5 }
  0x89   :  { %745 = vmatprep.mubr.f32.mxu0 %v3766_v5  ;;  %3413 = vmatpush3.msra.mxu0 %v108_v6  ;;  %v1009_v6 = vld [vmem:[%s7328_s3 + $0x50] sm:$0xff] }
  0x8a   :  { %3609 = vmatpush3.msra.mxu1 %v278_v8  ;;  %746 = vmatmul.mubr.f32.gmra.mxu0 %v4431_v53  ;;  %v1077_v8 = vld [vmem:[%s7328_s3 + $0x270] sm:$0xff] }
  0x8b   :  { %3414 = vmatprep.subr.mxu0 %v183_v9  ;;  %3610 = vmatprep.subr.mxu1 %v3766_v5  ;;  %v1008_v9 = vld [vmem:[%s7328_s3 + $0x48] sm:$0xff] }
  0x8c   :  { %644 = vmatprep.mubr.f32.mxu1 %v4444_v56  ;;  %3415 = vmatpush3.msra.mxu0 %v103_v10  ;;  %v1076_v10 = vld [vmem:[%s7328_s3 + $0x268] sm:$0xff] }
  0x8d   :  { %3611 = vmatpush3.msra.mxu1 %v273_v13  ;;  %3416 = vmatprep.subr.mxu0 %v178_v14  ;;  %v1007_v13 = vld [vmem:[%s7328_s3 + $0x40] sm:$0xff] }
  0x8e   :  { %645 = vmatmul.mubr.f32.gmra.mxu1 %v4459_v60  ;;  %3612 = vmatprep.subr.mxu1 %v3766_v5  ;;  %v1075_v14 = vld [vmem:[%s7328_s3 + $0x260] sm:$0xff] }
  0x8f   :  { %751 = vmatprep.mubr.f32.mxu0 %v3766_v5  ;;  %3417 = vmatpush3.msra.mxu0 %v98_v15  ;;  %v1006_v15 = vld [vmem:[%s7328_s3 + $0x38] sm:$0xff] }
  0x90   :  { %3613 = vmatpush3.msra.mxu1 %v268_v18  ;;  %752 = vmatmul.mubr.f32.gmra.mxu0 %v4474_v0  ;;  %v1074_v18 = vld [vmem:[%s7328_s3 + $0x258] sm:$0xff] }
  0x91   :  { %3418 = vmatprep.subr.mxu0 %v173_v19  ;;  %3614 = vmatprep.subr.mxu1 %v3766_v5  ;;  %v1005_v19 = vld [vmem:[%s7328_s3 + $0x30] sm:$0xff] }
  0x92   :  { %650 = vmatprep.mubr.f32.mxu1 %v4487_v7  ;;  %3419 = vmatpush3.msra.mxu0 %v93_v21  ;;  %v1073_v21 = vld [vmem:[%s7328_s3 + $0x250] sm:$0xff] }
  0x93   :  { %3615 = vmatpush3.msra.mxu1 %v263_v22  ;;  %3420 = vmatprep.subr.mxu0 %v168_v24  ;;  %v1004_v22 = vld [vmem:[%s7328_s3 + $0x28] sm:$0xff] }
  0x94   :  { %651 = vmatmul.mubr.f32.gmra.mxu1 %v4502_v11  ;;  %3616 = vmatprep.subr.mxu1 %v3766_v5  ;;  %v1072_v24 = vld [vmem:[%s7328_s3 + $0x248] sm:$0xff] }
  0x95   :  { %757 = vmatprep.mubr.f32.mxu0 %v3766_v5  ;;  %3421 = vmatpush3.msra.mxu0 %v88_v25  ;;  %v1003_v25 = vld [vmem:[%s7328_s3 + $0x20] sm:$0xff] }
  0x96   :  { %3617 = vmatpush3.msra.mxu1 %v258_v26  ;;  %758 = vmatmul.mubr.f32.gmra.mxu0 %v4517_v17  ;;  %v1071_v26 = vld [vmem:[%s7328_s3 + $0x240] sm:$0xff] }
  0x97   :  { %3422 = vmatprep.subr.mxu0 %v163_v28  ;;  %3618 = vmatprep.subr.mxu1 %v3766_v5  ;;  %v1002_v28 = vld [vmem:[%s7328_s3 + $0x18] sm:$0xff] }
  0x98   :  { %3423 = vmatpush3.msra.mxu0 %v83_v29  ;;  %3619 = vmatpush3.msra.mxu1 %v253_v30  ;;  %v1070_v29 = vld [vmem:[%s7328_s3 + $0x238] sm:$0xff]  ;;  %v1001_v30 = vld [vmem:[%s7328_s3 + $0x10] sm:$0xff] }
  0x99   :  { %3424 = vmatprep.subr.mxu0 %v158_v32  ;;  %3620 = vmatprep.subr.mxu1 %v3766_v5  ;;  %v1069_v32 = vld [vmem:[%s7328_s3 + $0x230] sm:$0xff] }
  0x9a   :  { %3425 = vmatpush3.msra.mxu0 %v78_v33  ;;  %3621 = vmatpush3.msra.mxu1 %v248_v35  ;;  %v1000_v33 = vld [vmem:[%s7328_s3 + $0x8] sm:$0xff] }
  0x9b   :  { %3426 = vmatprep.subr.mxu0 %v153_v36  ;;  %3622 = vmatprep.subr.mxu1 %v3766_v5  ;;  %v1068_v35 = vld [vmem:[%s7328_s3 + $0x228] sm:$0xff]  ;;  %v999_v36 = vld [vmem:[%s7328_s3] sm:$0xff] }
  0x9c   :  { %3427 = vmatpush3.msra.mxu0 %v73_v37  ;;  %828 = vmatprep.mubr.f32.mxu0 %v4240_v1  ;;  %v1029_v1 = vld [vmem:[%s7328_s3 + $0xf0] sm:$0xff]  ;;  %v1067_v37 = vld [vmem:[%s7328_s3 + $0x220] sm:$0xff] }
  0x9d   :  { %3623 = vmatpush3.msra.mxu1 %v243_v39  ;;  %829 = vmatmul.mubr.f32.vlgmr.msra.gmra.mxu0 %v4248_v4  ;;  %v1028_v4 = vld [vmem:[%s7328_s3 + $0xe8] sm:$0xff]  ;;  %v1062_v39 = vld [vmem:[%s7328_s3 + $0x1f8] sm:$0xff] }
  0x9e   :  { %3624 = vmatprep.subr.mxu1 %v3766_v5  ;;  %833 = vmatprep.mubr.f32.mxu0 %v4273_v12  ;;  %v1094_v12 = vld [vmem:[%s7328_s3 + $0x2f8] sm:$0xff] }
  0x9f   :  { %3625 = vmatpush3.msra.mxu1 %v238_v40  ;;  %3628 = vmatprep.mubr.msk.f32.mxu1 %vm3767_vm0, %v3766_v5  ;;  %v1066_v40 = vld [vmem:[%s7328_s3 + $0x218] sm:$0xff] }
  0xa0   :  { %3626 = vmatprep.subr.mxu1 %v3766_v5  ;;  %1183 = vmatprep.subr.mxu0 %v1030_v41  ;;  %v1061_v41 = vld [vmem:[%s7328_s3 + $0x1f0] sm:$0xff] }
  0xa1   :  { %3627 = vmatpush3.msra.mxu1 %v233_v43  ;;  %834 = vmatmul.mubr.f32.gmra.mxu0 %v4287_v16  ;;  %v1027_v16 = vld [vmem:[%s7328_s3 + $0xe0] sm:$0xff]  ;;  %v1065_v43 = vld [vmem:[%s7328_s3 + $0x210] sm:$0xff] }
  0xa2   :  { %3629 = vmatmul.mubr.f32.vlgmr.msra.gmra.mxu1 %v4053_v3  ;;  %838 = vmatprep.mubr.f32.mxu0 %v4315_v23  ;;  %v1026_v3 = vld [vmem:[%s7328_s3 + $0xd8] sm:$0xff]  ;;  %v1092_v23 = vld [vmem:[%s7328_s3 + $0x2e8] sm:$0xff] }
  0xa3   :  { %3631 = vmatprep.mubr.msk.f32.mxu1 %vm3767_vm0, %v3766_v5  ;;  %1184 = vmatpush1.msra.mxu0 %v1029_v1  ;;  %v1060_v1 = vld [vmem:[%s7328_s3 + $0x1e8] sm:$0xff] }
  0xa4   :  { %1185 = vmatprep.subr.mxu0 %v1028_v4  ;;  %1290 = vmatprep.subr.mxu1 %v1094_v12  ;;  %v1064_v4 = vld [vmem:[%s7328_s3 + $0x208] sm:$0xff]  ;;  %v1059_v12 = vld [vmem:[%s7328_s3 + $0x1e0] sm:$0xff] }
  0xa5   :  { %839 = vmatmul.mubr.f32.gmra.mxu0 %v4330_v27  ;;  %1291 = vmatpush1.msra.mxu1 %v1093_v44  ;;  %v1025_v27 = vld [vmem:[%s7328_s3 + $0xd0] sm:$0xff]  ;;  %v1063_v44 = vld [vmem:[%s7328_s3 + $0x200] sm:$0xff] }
  0xa6   :  { %3632 = vmatmul.mubr.f32.gmra.mxu1 %v4302_v20  ;;  %843 = vmatprep.mubr.f32.mxu0 %v4358_v34  ;;  %v1024_v20 = vld [vmem:[%s7328_s3 + $0xc8] sm:$0xff]  ;;  %v1090_v34 = vld [vmem:[%s7328_s3 + $0x2d8] sm:$0xff] }
  0xa7   :  { %3634 = vmatprep.mubr.msk.f32.mxu1 %vm3767_vm0, %v3766_v5  ;;  %1186 = vmatpush1.msra.mxu0 %v1027_v16  ;;  %v1058_v16 = vld [vmem:[%s7328_s3 + $0x1d8] sm:$0xff] }
  0xa8   :  { %1187 = vmatprep.subr.mxu0 %v1026_v3  ;;  %1292 = vmatprep.subr.mxu1 %v1092_v23  ;;  %v1126_v3 = vld [vmem:[%s7328_s3 + $0x3f8] sm:$0xff]  ;;  %v1057_v23 = vld [vmem:[%s7328_s3 + $0x1d0] sm:$0xff] }
  0xa9   :  { %844 = vmatmul.mubr.f32.gmra.mxu0 %v4373_v38  ;;  %1293 = vmatpush1.msra.mxu1 %v1091_v46  ;;  %v1023_v38 = vld [vmem:[%s7328_s3 + $0xc0] sm:$0xff]  ;;  %v1125_v46 = vld [vmem:[%s7328_s3 + $0x3f0] sm:$0xff] }
  0xaa   :  { %3635 = vmatmul.mubr.f32.gmra.mxu1 %v4345_v31  ;;  %848 = vmatprep.mubr.f32.mxu0 %v4401_v45  ;;  %v1022_v31 = vld [vmem:[%s7328_s3 + $0xb8] sm:$0xff]  ;;  %v1088_v45 = vld [vmem:[%s7328_s3 + $0x2c8] sm:$0xff] }
  0xab   :  { %3637 = vmatprep.mubr.msk.f32.mxu1 %vm3767_vm0, %v3766_v5  ;;  %1188 = vmatpush1.msra.mxu0 %v1025_v27  ;;  %v1056_v27 = vld [vmem:[%s7328_s3 + $0x1c8] sm:$0xff] }
  0xac   :  { %1189 = vmatprep.subr.mxu0 %v1024_v20  ;;  %1294 = vmatprep.subr.mxu1 %v1090_v34  ;;  %v1124_v20 = vld [vmem:[%s7328_s3 + $0x3e8] sm:$0xff]  ;;  %v1055_v34 = vld [vmem:[%s7328_s3 + $0x1c0] sm:$0xff] }
  0xad   :  { %849 = vmatmul.mubr.f32.gmra.mxu0 %v4416_v49  ;;  %1295 = vmatpush1.msra.mxu1 %v1089_v47  ;;  %v1021_v49 = vld [vmem:[%s7328_s3 + $0xb0] sm:$0xff]  ;;  %v1123_v47 = vld [vmem:[%s7328_s3 + $0x3e0] sm:$0xff] }
  0xae   :  { %3638 = vmatmul.mubr.f32.gmra.mxu1 %v4388_v42  ;;  %853 = vmatprep.mubr.f32.mxu0 %v4444_v56  ;;  %v1020_v42 = vld [vmem:[%s7328_s3 + $0xa8] sm:$0xff]  ;;  %v1086_v56 = vld [vmem:[%s7328_s3 + $0x2b8] sm:$0xff] }
  0xaf   :  { %3640 = vmatprep.mubr.msk.f32.mxu1 %vm3767_vm0, %v3766_v5  ;;  %1190 = vmatpush1.msra.mxu0 %v1023_v38  ;;  %v1054_v38 = vld [vmem:[%s7328_s3 + $0x1b8] sm:$0xff] }
  0xb0   :  { %1191 = vmatprep.subr.mxu0 %v1022_v31  ;;  %1296 = vmatprep.subr.mxu1 %v1088_v45  ;;  %v1122_v31 = vld [vmem:[%s7328_s3 + $0x3d8] sm:$0xff]  ;;  %v1053_v45 = vld [vmem:[%s7328_s3 + $0x1b0] sm:$0xff] }
  0xb1   :  { %854 = vmatmul.mubr.f32.gmra.mxu0 %v4459_v60  ;;  %1297 = vmatpush1.msra.mxu1 %v1087_v48  ;;  %v1019_v60 = vld [vmem:[%s7328_s3 + $0xa0] sm:$0xff]  ;;  %v1121_v48 = vld [vmem:[%s7328_s3 + $0x3d0] sm:$0xff] }
  0xb2   :  { %3641 = vmatmul.mubr.f32.gmra.mxu1 %v4431_v53  ;;  %858 = vmatprep.mubr.f32.mxu0 %v4487_v7  ;;  %v1017_v53 = vld [vmem:[%s7328_s3 + $0x90] sm:$0xff]  ;;  %v1084_v7 = vld [vmem:[%s7328_s3 + $0x2a8] sm:$0xff] }
  0xb3   :  { %3643 = vmatprep.mubr.msk.f32.mxu1 %vm3767_vm0, %v3766_v5  ;;  %1192 = vmatpush1.msra.mxu0 %v1021_v49  ;;  %v1052_v49 = vld [vmem:[%s7328_s3 + $0x1a8] sm:$0xff] }
  0xb4   :  { %1193 = vmatprep.subr.mxu0 %v1020_v42  ;;  %1298 = vmatprep.subr.mxu1 %v1086_v56  ;;  %v1120_v42 = vld [vmem:[%s7328_s3 + $0x3c8] sm:$0xff]  ;;  %v1051_v56 = vld [vmem:[%s7328_s3 + $0x1a0] sm:$0xff] }
  0xb5   :  { %859 = vmatmul.mubr.f32.gmra.mxu0 %v4502_v11  ;;  %1299 = vmatpush1.msra.mxu1 %v1085_v50  ;;  %v1083_v11 = vld [vmem:[%s7328_s3 + $0x2a0] sm:$0xff] }
  0xb6   :  { %3644 = vmatmul.mubr.f32.gmra.mxu1 %v4474_v0  ;;  %1194 = vmatpush1.msra.mxu0 %v1019_v60  ;;  %v1014_v0 = vld [vmem:[%s7328_s3 + $0x78] sm:$0xff]  ;;  %v1119_v50 = vld [vmem:[%s7328_s3 + $0x3c0] sm:$0xff] }
  0xb7   :  { %3646 = vmatprep.mubr.msk.f32.mxu1 %vm3767_vm0, %v3766_v5  ;;  %1195 = vmatprep.subr.mxu0 %v1018_v51  ;;  %v1050_v60 = vld [vmem:[%s7328_s3 + $0x198] sm:$0xff] }
  0xb8   :  { %1196 = vmatpush1.msra.mxu0 %v1017_v53  ;;  %1300 = vmatprep.subr.mxu1 %v1084_v7  ;;  %v1118_v51 = vld [vmem:[%s7328_s3 + $0x3b8] sm:$0xff]  ;;  %v1049_v53 = vld [vmem:[%s7328_s3 + $0x190] sm:$0xff] }
  0xb9   :  { %1197 = vmatprep.subr.mxu0 %v1016_v52  ;;  %1301 = vmatpush1.msra.mxu1 %v1083_v11  ;;  %v1117_v7 = vld [vmem:[%s7328_s3 + $0x3b0] sm:$0xff]  ;;  %v1048_v52 = vld [vmem:[%s7328_s3 + $0x188] sm:$0xff] }
  0xba   :  { %3647 = vmatmul.mubr.f32.gmra.mxu1 %v4517_v17  ;;  %1198 = vmatpush1.msra.mxu0 %v1015_v54  ;;  %v1010_v17 = vld [vmem:[%s7328_s3 + $0x58] sm:$0xff]  ;;  %v1116_v11 = vld [vmem:[%s7328_s3 + $0x3a8] sm:$0xff]  ;;  %v1047_v54 = vld [vmem:[%s7328_s3 + $0x180] sm:$0xff] }
  0xbb   :  { %1199 = vmatprep.subr.mxu0 %v1014_v0  ;;  %1302 = vmatprep.subr.mxu1 %v1082_v55  ;;  %v1115_v0 = vld [vmem:[%s7328_s3 + $0x3a0] sm:$0xff]  ;;  %v1046_v55 = vld [vmem:[%s7328_s3 + $0x178] sm:$0xff] }
  0xbc   :  { %1200 = vmatpush1.msra.mxu0 %v1013_v57  ;;  %1303 = vmatpush1.msra.mxu1 %v1081_v58  ;;  %v1114_v57 = vld [vmem:[%s7328_s3 + $0x398] sm:$0xff]  ;;  %v1045_v58 = vld [vmem:[%s7328_s3 + $0x170] sm:$0xff] }
  0xbd   :  { %1201 = vmatprep.subr.mxu0 %v1012_v59  ;;  %1304 = vmatprep.subr.mxu1 %v1080_v61  ;;  %v1113_v59 = vld [vmem:[%s7328_s3 + $0x390] sm:$0xff]  ;;  %v1044_v61 = vld [vmem:[%s7328_s3 + $0x168] sm:$0xff] }
  0xbe   :  { %1202 = vmatpush1.msra.mxu0 %v1011_v62  ;;  %1305 = vmatpush1.msra.mxu1 %v1079_v63  ;;  %v1112_v62 = vld [vmem:[%s7328_s3 + $0x388] sm:$0xff]  ;;  %v1043_v63 = vld [vmem:[%s7328_s3 + $0x160] sm:$0xff] }
  0xbf   :  { %1203 = vmatprep.subr.mxu0 %v1010_v17  ;;  %1306 = vmatprep.subr.mxu1 %v1078_v2  ;;  %v1111_v17 = vld [vmem:[%s7328_s3 + $0x380] sm:$0xff]  ;;  %v1042_v2 = vld [vmem:[%s7328_s3 + $0x158] sm:$0xff] }
  0xc0   :  { %1204 = vmatpush1.msra.mxu0 %v1009_v6  ;;  %1307 = vmatpush1.msra.mxu1 %v1077_v8  ;;  %v1110_v6 = vld [vmem:[%s7328_s3 + $0x378] sm:$0xff]  ;;  %v1041_v8 = vld [vmem:[%s7328_s3 + $0x150] sm:$0xff] }
  0xc1   :  { %1205 = vmatprep.subr.mxu0 %v1008_v9  ;;  %1308 = vmatprep.subr.mxu1 %v1076_v10  ;;  %v1109_v9 = vld [vmem:[%s7328_s3 + $0x370] sm:$0xff]  ;;  %v1040_v10 = vld [vmem:[%s7328_s3 + $0x148] sm:$0xff] }
  0xc2   :  { %1206 = vmatpush1.msra.mxu0 %v1007_v13  ;;  %1309 = vmatpush1.msra.mxu1 %v1075_v14  ;;  %v1108_v13 = vld [vmem:[%s7328_s3 + $0x368] sm:$0xff]  ;;  %v1039_v14 = vld [vmem:[%s7328_s3 + $0x140] sm:$0xff] }
  0xc3   :  { %1207 = vmatprep.subr.mxu0 %v1006_v15  ;;  %1310 = vmatprep.subr.mxu1 %v1074_v18  ;;  %v1107_v15 = vld [vmem:[%s7328_s3 + $0x360] sm:$0xff]  ;;  %v1038_v18 = vld [vmem:[%s7328_s3 + $0x138] sm:$0xff] }
  0xc4   :  { %1208 = vmatpush1.msra.mxu0 %v1005_v19  ;;  %1311 = vmatpush1.msra.mxu1 %v1073_v21  ;;  %v1106_v19 = vld [vmem:[%s7328_s3 + $0x358] sm:$0xff]  ;;  %v1037_v21 = vld [vmem:[%s7328_s3 + $0x130] sm:$0xff] }
  0xc5   :  { %1209 = vmatprep.subr.mxu0 %v1004_v22  ;;  %1312 = vmatprep.subr.mxu1 %v1072_v24  ;;  %v1105_v22 = vld [vmem:[%s7328_s3 + $0x350] sm:$0xff]  ;;  %v1036_v24 = vld [vmem:[%s7328_s3 + $0x128] sm:$0xff] }
  0xc6   :  { %1210 = vmatpush1.msra.mxu0 %v1003_v25  ;;  %1313 = vmatpush1.msra.mxu1 %v1071_v26  ;;  %v1104_v25 = vld [vmem:[%s7328_s3 + $0x348] sm:$0xff]  ;;  %v1035_v26 = vld [vmem:[%s7328_s3 + $0x120] sm:$0xff] }
  0xc7   :  { %1211 = vmatprep.subr.mxu0 %v1002_v28  ;;  %1314 = vmatprep.subr.mxu1 %v1070_v29  ;;  %v1103_v28 = vld [vmem:[%s7328_s3 + $0x340] sm:$0xff]  ;;  %v1034_v29 = vld [vmem:[%s7328_s3 + $0x118] sm:$0xff] }
  0xc8   :  { %1212 = vmatpush1.msra.mxu0 %v1001_v30  ;;  %1315 = vmatpush1.msra.mxu1 %v1069_v32  ;;  %v1102_v30 = vld [vmem:[%s7328_s3 + $0x338] sm:$0xff]  ;;  %v1033_v32 = vld [vmem:[%s7328_s3 + $0x110] sm:$0xff] }
  0xc9   :  { %1213 = vmatprep.subr.mxu0 %v1000_v33  ;;  %1316 = vmatprep.subr.mxu1 %v1068_v35  ;;  %v1101_v33 = vld [vmem:[%s7328_s3 + $0x330] sm:$0xff]  ;;  %v1032_v35 = vld [vmem:[%s7328_s3 + $0x108] sm:$0xff] }
  0xca   :  { %1214 = vmatpush1.msra.mxu0 %v999_v36  ;;  %1317 = vmatpush1.msra.mxu1 %v1067_v37  ;;  %v1100_v36 = vld [vmem:[%s7328_s3 + $0x328] sm:$0xff]  ;;  %v1031_v37 = vld [vmem:[%s7328_s3 + $0x100] sm:$0xff] }
  0xcb   :  { %1215 = vmatprep.subr.mxu0 %v1062_v39  ;;  %1318 = vmatprep.subr.mxu1 %v1066_v40  ;;  %v1099_v39 = vld [vmem:[%s7328_s3 + $0x320] sm:$0xff]  ;;  %v1098_v40 = vld [vmem:[%s7328_s3 + $0x318] sm:$0xff] }
  0xcc   :  { %1216 = vmatpush2.msra.mxu0 %v1061_v41  ;;  %1319 = vmatpush1.msra.mxu1 %v1065_v43  ;;  %v1148_v41 = vld [vmem:[%s7328_s3 + $0x4a8] sm:$0xff]  ;;  %v1097_v43 = vld [vmem:[%s7328_s3 + $0x310] sm:$0xff] }
  0xcd   :  { %1217 = vmatprep.subr.mxu0 %v1060_v1  ;;  %1320 = vmatprep.subr.mxu1 %v1064_v4  ;;  %v1096_v1 = vld [vmem:[%s7328_s3 + $0x308] sm:$0xff]  ;;  %v1095_v4 = vld [vmem:[%s7328_s3 + $0x300] sm:$0xff] }
  0xce   :  { %1218 = vmatpush2.msra.mxu0 %v1059_v12  ;;  %1321 = vmatpush1.msra.mxu1 %v1063_v44  ;;  %v311_v12 = vlaneseq }
  0xcf   :  { %1219 = vmatprep.subr.mxu0 %v1058_v16  ;;  %1322 = vmatprep.subr.mxu1 %v1126_v3  ;;  %v5176_v3 = vld [vmem:[%s7327_s2] sm:$0x1f] }
  0xd0   :  { %1220 = vmatpush2.msra.mxu0 %v1057_v23  ;;  %1323 = vmatpush2.msra.mxu1 %v1125_v46  ;;  %v5168_v44 = vshrl.u32 %v311_v12, 7  ;;  %v1131_v12 = vld [vmem:[%s7328_s3 + $0x420] sm:$0xff] }
  0xd1   :  { %1221 = vmatprep.subr.mxu0 %v1056_v27  ;;  %1324 = vmatprep.subr.mxu1 %v1124_v20 }
  0xd2   :  { %1222 = vmatpush2.msra.mxu0 %v1055_v34  ;;  %1325 = vmatpush2.msra.mxu1 %v1123_v47  ;;  %v5171_v16 = vsub.s32 0, %v5168_v44  ;;  %v5179_v23 = vsub.s32 1, %v5168_v44 }
  0xd3   :  { %1223 = vmatprep.subr.mxu0 %v1054_v38  ;;  %1326 = vmatprep.subr.mxu1 %v1122_v31 }
  0xd4   :  { %1224 = vmatpush2.msra.mxu0 %v1053_v45  ;;  %1327 = vmatpush2.msra.mxu1 %v1121_v48  ;;  %v5183_v46 = vrot.slane %v5176_v3, %v5171_v16  ;;  %v5187_v27 = vrot.slane %v5176_v3, %v5179_v23 }
  0xd5   :  { %1225 = vmatprep.subr.mxu0 %v1052_v49  ;;  %1328 = vmatprep.subr.mxu1 %v1120_v42 }
  0xd6   :  { %1226 = vmatpush2.msra.mxu0 %v1051_v56  ;;  %1329 = vmatpush2.msra.mxu1 %v1119_v50 }
  0xd7   :  { %1227 = vmatprep.subr.mxu0 %v1050_v60  ;;  %1330 = vmatprep.subr.mxu1 %v1118_v51 }
  0xd8   :  { %1228 = vmatpush2.msra.mxu0 %v1049_v53  ;;  %1331 = vmatpush2.msra.mxu1 %v1117_v7  ;;  %v1147_v7 = vld [vmem:[%s7328_s3 + $0x4a0] sm:$0xff] }
  0xd9   :  { %1229 = vmatprep.subr.mxu0 %v1048_v52  ;;  %1332 = vmatprep.subr.mxu1 %v1116_v11 }
  0xda   :  { %1230 = vmatpush2.msra.mxu0 %v1047_v54  ;;  %1333 = vmatpush2.msra.mxu1 %v1115_v0  ;;  %v1146_v54 = vld [vmem:[%s7328_s3 + $0x498] sm:$0xff] }
  0xdb   :  { %1231 = vmatprep.subr.mxu0 %v1046_v55  ;;  %1334 = vmatprep.subr.mxu1 %v1114_v57  ;;  %v1145_v55 = vld [vmem:[%s7328_s3 + $0x490] sm:$0xff] }
  0xdc   :  { %1232 = vmatpush2.msra.mxu0 %v1045_v58  ;;  %1335 = vmatpush2.msra.mxu1 %v1113_v59  ;;  %v1144_v58 = vld [vmem:[%s7328_s3 + $0x488] sm:$0xff] }
  0xdd   :  { %1233 = vmatprep.subr.mxu0 %v1044_v61  ;;  %1336 = vmatprep.subr.mxu1 %v1112_v62  ;;  %v1143_v62 = vld [vmem:[%s7328_s3 + $0x480] sm:$0xff] }
  0xde   :  { %1234 = vmatpush2.msra.mxu0 %v1043_v63  ;;  %1337 = vmatpush2.msra.mxu1 %v1111_v17 }
  0xdf   :  { %1235 = vmatprep.subr.mxu0 %v1042_v2  ;;  %1338 = vmatprep.subr.mxu1 %v1110_v6  ;;  %v1142_v2 = vld [vmem:[%s7328_s3 + $0x478] sm:$0xff] }
  0xe0   :  { %1236 = vmatpush2.msra.mxu0 %v1041_v8  ;;  %1339 = vmatpush2.msra.mxu1 %v1109_v9  ;;  %v1141_v9 = vld [vmem:[%s7328_s3 + $0x470] sm:$0xff] }
  0xe1   :  { %1237 = vmatprep.subr.mxu0 %v1040_v10  ;;  %1340 = vmatprep.subr.mxu1 %v1108_v13 }
  0xe2   :  { %1238 = vmatpush2.msra.mxu0 %v1039_v14  ;;  %1341 = vmatpush2.msra.mxu1 %v1107_v15  ;;  %v1140_v14 = vld [vmem:[%s7328_s3 + $0x468] sm:$0xff] }
  0xe3   :  { %1239 = vmatprep.subr.mxu0 %v1038_v18  ;;  %1342 = vmatprep.subr.mxu1 %v1106_v19  ;;  %v1139_v18 = vld [vmem:[%s7328_s3 + $0x460] sm:$0xff] }
  0xe4   :  { %1240 = vmatpush2.msra.mxu0 %v1037_v21  ;;  %1343 = vmatpush2.msra.mxu1 %v1105_v22  ;;  %v509_v20 = vpop.f32.mrf.mxu1  ;;  %v1138_v21 = vld [vmem:[%s7328_s3 + $0x458] sm:$0xff] }
  0xe5   :  { %1241 = vmatprep.subr.mxu0 %v1036_v24  ;;  %1344 = vmatprep.subr.mxu1 %v1104_v25  ;;  %v1137_v25 = vld [vmem:[%s7328_s3 + $0x450] sm:$0xff] }
  0xe6   :  { %1242 = vmatpush2.msra.mxu0 %v1035_v26  ;;  %1345 = vmatpush2.msra.mxu1 %v1103_v28  ;;  %v511_v45 = vpop.f32.mrf.mxu1 }
  0xe7   :  { %1243 = vmatprep.subr.mxu0 %v1034_v29  ;;  %1346 = vmatprep.subr.mxu1 %v1102_v30  ;;  %v1136_v29 = vld [vmem:[%s7328_s3 + $0x448] sm:$0xff] }
  0xe8   :  { %1244 = vmatpush2.msra.mxu0 %v1033_v32  ;;  %1347 = vmatpush2.msra.mxu1 %v1101_v33  ;;  %v1135_v33 = vld [vmem:[%s7328_s3 + $0x440] sm:$0xff] }
  0xe9   :  { %1245 = vmatprep.subr.mxu0 %v1032_v35  ;;  %1348 = vmatprep.subr.mxu1 %v1100_v36 }
  0xea   :  { %1246 = vmatpush2.msra.mxu0 %v1031_v37  ;;  %1349 = vmatpush2.msra.mxu1 %v1099_v39  ;;  %v1134_v37 = vld [vmem:[%s7328_s3 + $0x438] sm:$0xff] }
  0xeb   :  { %1350 = vmatprep.subr.mxu1 %v1098_v40  ;;  %1407 = vmatprep.subr.mxu0 %v1148_v41  ;;  %v1133_v40 = vld [vmem:[%s7328_s3 + $0x430] sm:$0xff] }
  0xec   :  { %1351 = vmatpush2.msra.mxu1 %v1097_v43  ;;  %v1132_v43 = vld [vmem:[%s7328_s3 + $0x428] sm:$0xff] }
  0xed   :  { %1352 = vmatprep.subr.mxu1 %v1096_v1 }
  0xee   :  { %1353 = vmatpush2.msra.mxu1 %v1095_v4 }
 0x104   :  { %v402_v34 = vpop.f32.mrf.mxu0 }
 0x105   :  { %v403_v47 = vadd.f32 %v402_v34, %v5183_v46 }
 0x106   :  { %v404_v38 = vpop.f32.mrf.mxu0 }
 0x107   :  { %v405_v31 = vadd.f32 %v404_v38, %v5187_v27  ;;  %v510_v48 = vadd.f32 %v509_v20, %v403_v47  ;;  %v1130_v47 = vld [vmem:[%s7328_s3 + $0x418] sm:$0xff] }
 0x109   :  { %v512_v49 = vadd.f32 %v511_v45, %v405_v31  ;;  %v408_v42 = vpop.f32.mrf.mxu0  ;;  %v964_v60 = vmax.f32 %v510_v48, 0.0  ;;  %v1129_v45 = vld [vmem:[%s7328_s3 + $0x410] sm:$0xff] }
 0x10a   :  { %v409_v56 = vadd.f32 %v408_v42, %v5183_v46  ;;  %v1128_v42 = vld [vmem:[%s7328_s3 + $0x408] sm:$0xff] }
 0x10b   :  { %v965_v50 = vmax.f32 %v512_v49, 0.0  ;;  %v410_v51 = vpop.f32.mrf.mxu0 }
 0x10c   :  { %v515_v53 = vpop.f32.mrf.mxu1  ;;  %v411_v52 = vadd.f32 %v410_v51, %v5187_v27 }
 0x10d   :  { %v516_v11 = vadd.f32 %v515_v53, %v409_v56  ;;  %1247 = vmatprep.mubr.f32.mxu0 %v965_v50  ;;  %v1127_v50 = vld [vmem:[%s7328_s3 + $0x400] sm:$0xff] }
 0x10e   :  { %v517_v0 = vpop.f32.mrf.mxu1  ;;  %1248 = vmatmul.mubr.f32.vlgmr.msra.gmra.mxu0 %v964_v60 }
 0x10f   :  { %v518_v57 = vadd.f32 %v517_v0, %v411_v52  ;;  %1408 = vmatpush1.msra.mxu0 %v1147_v7  ;;  %v969_v59 = vmax.f32 %v516_v11, 0.0  ;;  %v414_v61 = vpop.f32.mrf.mxu0 }
 0x110   :  { %1409 = vmatprep.subr.mxu0 %v1146_v54  ;;  %v415_v63 = vadd.f32 %v414_v61, %v5183_v46 }
 0x111   :  { %v970_v17 = vmax.f32 %v518_v57, 0.0  ;;  %1410 = vmatpush1.msra.mxu0 %v1145_v55  ;;  %v416_v6 = vpop.f32.mrf.mxu0 }
 0x112   :  { %v521_v8 = vpop.f32.mrf.mxu1  ;;  %1411 = vmatprep.subr.mxu0 %v1144_v58  ;;  %v417_v10 = vadd.f32 %v416_v6, %v5187_v27 }
 0x113   :  { %v522_v13 = vadd.f32 %v521_v8, %v415_v63  ;;  %1253 = vmatprep.mubr.f32.mxu0 %v970_v17  ;;  %1412 = vmatpush1.msra.mxu0 %v1143_v62 }
 0x114   :  { %v523_v15 = vpop.f32.mrf.mxu1  ;;  %1254 = vmatmul.mubr.f32.gmra.mxu0 %v969_v59  ;;  %1413 = vmatprep.subr.mxu0 %v1142_v2 }
 0x115   :  { %v524_v19 = vadd.f32 %v523_v15, %v417_v10  ;;  %1414 = vmatpush1.msra.mxu0 %v1141_v9  ;;  %v974_v22 = vmax.f32 %v522_v13, 0.0  ;;  %v420_v24 = vpop.f32.mrf.mxu0  ;;  %v5267_v9 = vsub.s32 2, %v5168_v44 }
 0x116   :  { %1415 = vmatprep.subr.mxu0 %v1140_v14  ;;  %v421_v26 = vadd.f32 %v420_v24, %v5183_v46  ;;  %v325_v14 = vsub.s32 3, %v5168_v44 }
 0x117   :  { %v975_v28 = vmax.f32 %v524_v19, 0.0  ;;  %1416 = vmatpush1.msra.mxu0 %v1139_v18  ;;  %v422_v30 = vpop.f32.mrf.mxu0 }
 0x118   :  { %v527_v32 = vpop.f32.mrf.mxu1  ;;  %1417 = vmatprep.subr.mxu0 %v1138_v21  ;;  %v423_v35 = vadd.f32 %v422_v30, %v5187_v27 }
 0x119   :  { %v528_v36 = vadd.f32 %v527_v32, %v421_v26  ;;  %1259 = vmatprep.mubr.f32.mxu0 %v975_v28  ;;  %1418 = vmatpush1.msra.mxu0 %v1137_v25 }
 0x11a   :  { %v529_v39 = vpop.f32.mrf.mxu1  ;;  %1260 = vmatmul.mubr.f32.gmra.mxu0 %v974_v22  ;;  %1419 = vmatprep.subr.mxu0 %v1136_v29 }
 0x11b   :  { %v530_v41 = vadd.f32 %v529_v39, %v423_v35  ;;  %1420 = vmatpush1.msra.mxu0 %v1135_v33  ;;  %v979_v1 = vmax.f32 %v528_v36, 0.0  ;;  %v426_v4 = vpop.f32.mrf.mxu0 }
 0x11c   :  { %1421 = vmatprep.subr.mxu0 %v1134_v37  ;;  %v427_v20 = vadd.f32 %v426_v4, %v5183_v46 }
 0x11d   :  { %v980_v34 = vmax.f32 %v530_v41, 0.0  ;;  %1422 = vmatpush1.msra.mxu0 %v1133_v40  ;;  %v428_v38 = vpop.f32.mrf.mxu0 }
 0x11e   :  { %v533_v31 = vpop.f32.mrf.mxu1  ;;  %1423 = vmatprep.subr.mxu0 %v1132_v43  ;;  %v429_v48 = vadd.f32 %v428_v38, %v5187_v27 }
 0x11f   :  { %v534_v49 = vadd.f32 %v533_v31, %v427_v20  ;;  %1265 = vmatprep.mubr.f32.mxu0 %v980_v34  ;;  %1424 = vmatpush1.msra.mxu0 %v1131_v12 }
 0x120   :  { %v535_v56 = vpop.f32.mrf.mxu1  ;;  %1266 = vmatmul.mubr.f32.gmra.mxu0 %v979_v1  ;;  %1425 = vmatprep.subr.mxu0 %v1130_v47 }
 0x121   :  { %v536_v60 = vadd.f32 %v535_v56, %v429_v48  ;;  %1426 = vmatpush1.msra.mxu0 %v1129_v45  ;;  %v984_v51 = vmax.f32 %v534_v49, 0.0  ;;  %v432_v53 = vpop.f32.mrf.mxu0 }
 0x122   :  { %1427 = vmatprep.subr.mxu0 %v1128_v42  ;;  %v433_v7 = vadd.f32 %v432_v53, %v5183_v46 }
 0x123   :  { %v985_v52 = vmax.f32 %v536_v60, 0.0  ;;  %1428 = vmatpush1.msra.mxu0 %v1127_v50  ;;  %v434_v11 = vpop.f32.mrf.mxu0 }
 0x124   :  { %v539_v54 = vpop.f32.mrf.mxu1  ;;  %v435_v0 = vadd.f32 %v434_v11, %v5187_v27 }
 0x125   :  { %v540_v55 = vadd.f32 %v539_v54, %v433_v7  ;;  %1271 = vmatprep.mubr.f32.mxu0 %v985_v52 }
 0x126   :  { %v541_v57 = vpop.f32.mrf.mxu1  ;;  %1272 = vmatmul.mubr.f32.gmra.mxu0 %v984_v51 }
 0x127   :  { %v542_v58 = vadd.f32 %v541_v57, %v435_v0  ;;  %v989_v59 = vmax.f32 %v540_v55, 0.0 }
 0x128   :  { %v438_v61 = vpop.f32.mrf.mxu0 }
 0x129   :  { %v439_v62 = vadd.f32 %v438_v61, %v5183_v46  ;;  %v990_v63 = vmax.f32 %v542_v58, 0.0  ;;  %v5272_v46 = vrot.slane %v5176_v3, %v5267_v9 }
 0x12a   :  { %v440_v17 = vpop.f32.mrf.mxu0  ;;  %v545_v2 = vpop.f32.mrf.mxu1 }
 0x12b   :  { %v441_v6 = vadd.f32 %v440_v17, %v5187_v27  ;;  %v546_v8 = vadd.f32 %v545_v2, %v439_v62  ;;  %1277 = vmatprep.mubr.f32.mxu0 %v990_v63  ;;  %v5277_v27 = vrot.slane %v5176_v3, %v325_v14 }
 0x12c   :  { %v547_v10 = vpop.f32.mrf.mxu1  ;;  %1278 = vmatmul.mubr.f32.gmra.mxu0 %v989_v59 }
 0x12d   :  { %v548_v13 = vadd.f32 %v547_v10, %v441_v6  ;;  %v994_v15 = vmax.f32 %v546_v8, 0.0 }
 0x12f   :  { %v995_v18 = vmax.f32 %v548_v13, 0.0 }
 0x131   :  { %1283 = vmatprep.mubr.f32.mxu0 %v995_v18 }
 0x132   :  { %v616_v19 = vpop.f32.mrf.mxu1  ;;  %v723_v21 = vpop.f32.mrf.mxu0  ;;  %1284 = vmatmul.mubr.f32.gmra.mxu0 %v994_v15 }
 0x133   :  { %v617_v22 = vadd.f32 %v616_v19, %v5272_v46  ;;  %1461 = vmatprep.mubr.f32.mxu0 %v3766_v5 }
 0x134   :  { %v618_v24 = vpop.f32.mrf.mxu1  ;;  %v725_v28 = vpop.f32.mrf.mxu0 }
 0x135   :  { %v619_v25 = vadd.f32 %v618_v24, %v5277_v27  ;;  %v724_v26 = vadd.f32 %v723_v21, %v617_v22 }
 0x136   :  { %v622_v29 = vpop.f32.mrf.mxu1 }
 0x137   :  { %v726_v30 = vadd.f32 %v725_v28, %v619_v25  ;;  %v623_v32 = vadd.f32 %v622_v29, %v5272_v46  ;;  %v966_v39 = vmax.f32 %v724_v26, 0.0 }
 0x138   :  { %v624_v33 = vpop.f32.mrf.mxu1 }
 0x139   :  { %v967_v35 = vmax.f32 %v726_v30, 0.0  ;;  %v625_v36 = vadd.f32 %v624_v33, %v5277_v27  ;;  %v729_v37 = vpop.f32.mrf.mxu0 }
 0x13a   :  { %v730_v40 = vadd.f32 %v729_v37, %v623_v32 }
 0x13b   :  { %v731_v41 = vpop.f32.mrf.mxu0  ;;  %1354 = vmatprep.mubr.f32.mxu1 %v967_v35 }
 0x13c   :  { %v628_v43 = vpop.f32.mrf.mxu1  ;;  %v732_v1 = vadd.f32 %v731_v41, %v625_v36  ;;  %1355 = vmatmul.mubr.f32.vlgmr.msra.gmra.mxu1 %v966_v39  ;;  %v971_v4 = vmax.f32 %v730_v40, 0.0  ;;  %v329_v39 = vsub.s32 4, %v5168_v44  ;;  %v6918_v44 = vld [vmem:[%s7336_s11 + $0x6e8] sm:$0xff] }
 0x13d   :  { %v629_v12 = vadd.f32 %v628_v43, %v5272_v46 }
 0x13e   :  { %v972_v20 = vmax.f32 %v732_v1, 0.0  ;;  %v630_v34 = vpop.f32.mrf.mxu1  ;;  %v735_v47 = vpop.f32.mrf.mxu0 }
 0x13f   :  { %v631_v38 = vadd.f32 %v630_v34, %v5277_v27  ;;  %v736_v31 = vadd.f32 %v735_v47, %v629_v12 }
 0x140   :  { %v737_v45 = vpop.f32.mrf.mxu0  ;;  %1360 = vmatprep.mubr.f32.mxu1 %v972_v20 }
 0x141   :  { %v738_v48 = vadd.f32 %v737_v45, %v631_v38  ;;  %1361 = vmatmul.mubr.f32.gmra.mxu1 %v971_v4  ;;  %v976_v49 = vmax.f32 %v736_v31, 0.0 }
 0x142   :  { %v634_v42 = vpop.f32.mrf.mxu1 }
 0x143   :  { %v635_v56 = vadd.f32 %v634_v42, %v5272_v46  ;;  %v977_v50 = vmax.f32 %v738_v48, 0.0 }
 0x144   :  { %v636_v60 = vpop.f32.mrf.mxu1  ;;  %v741_v51 = vpop.f32.mrf.mxu0 }
 0x145   :  { %v637_v53 = vadd.f32 %v636_v60, %v5277_v27  ;;  %v742_v7 = vadd.f32 %v741_v51, %v635_v56  ;;  %1366 = vmatprep.mubr.f32.mxu1 %v977_v50 }
 0x146   :  { %v743_v52 = vpop.f32.mrf.mxu0  ;;  %1367 = vmatmul.mubr.f32.gmra.mxu1 %v976_v49 }
 0x147   :  { %v744_v11 = vadd.f32 %v743_v52, %v637_v53  ;;  %v981_v54 = vmax.f32 %v742_v7, 0.0 }
 0x148   :  { %v640_v0 = vpop.f32.mrf.mxu1 }
 0x149   :  { %v641_v55 = vadd.f32 %v640_v0, %v5272_v46  ;;  %v982_v57 = vmax.f32 %v744_v11, 0.0 }
 0x14a   :  { %v642_v58 = vpop.f32.mrf.mxu1  ;;  %v747_v59 = vpop.f32.mrf.mxu0 }
 0x14b   :  { %v643_v61 = vadd.f32 %v642_v58, %v5277_v27  ;;  %v748_v62 = vadd.f32 %v747_v59, %v641_v55  ;;  %1372 = vmatprep.mubr.f32.mxu1 %v982_v57 }
 0x14c   :  { %v749_v63 = vpop.f32.mrf.mxu0  ;;  %1373 = vmatmul.mubr.f32.gmra.mxu1 %v981_v54 }
 0x14d   :  { %v750_v17 = vadd.f32 %v749_v63, %v643_v61  ;;  %v986_v2 = vmax.f32 %v748_v62, 0.0  ;;  %v1549_v62 = vld [vmem:[%s7330_s5 + $0xf8] sm:$0xff] }
 0x14e   :  { %v646_v6 = vpop.f32.mrf.mxu1  ;;  %1602 = vmatprep.subr.mxu1 %v1549_v62  ;;  %v1567_v62 = vld [vmem:[%s7330_s5 + $0x188] sm:$0xff] }
 0x14f   :  { %v647_v8 = vadd.f32 %v646_v6, %v5272_v46  ;;  %v987_v10 = vmax.f32 %v750_v17, 0.0 }
 0x150   :  { %v648_v13 = vpop.f32.mrf.mxu1  ;;  %v753_v15 = vpop.f32.mrf.mxu0 }
 0x151   :  { %v649_v18 = vadd.f32 %v648_v13, %v5277_v27  ;;  %v754_v19 = vadd.f32 %v753_v15, %v647_v8  ;;  %1378 = vmatprep.mubr.f32.mxu1 %v987_v10 }
 0x152   :  { %v755_v21 = vpop.f32.mrf.mxu0  ;;  %1379 = vmatmul.mubr.f32.gmra.mxu1 %v986_v2 }
 0x153   :  { %v756_v22 = vadd.f32 %v755_v21, %v649_v18  ;;  %v991_v24 = vmax.f32 %v754_v19, 0.0  ;;  %v1548_v18 = vld [vmem:[%s7330_s5 + $0xf0] sm:$0xff]  ;;  %v1547_v19 = vld [vmem:[%s7330_s5 + $0xe8] sm:$0xff] }
 0x154   :  { %v652_v25 = vpop.f32.mrf.mxu1  ;;  %1603 = vmatpush1.msra.mxu1 %v1548_v18  ;;  %v1558_v18 = vld [vmem:[%s7330_s5 + $0x140] sm:$0xff] }
 0x155   :  { %v653_v26 = vadd.f32 %v652_v25, %v5272_v46  ;;  %v992_v28 = vmax.f32 %v756_v22, 0.0  ;;  %v5298_v46 = vrot.slane %v5176_v3, %v329_v39  ;;  %1604 = vmatprep.subr.mxu1 %v1547_v19  ;;  %v1557_v19 = vld [vmem:[%s7330_s5 + $0x138] sm:$0xff] }
 0x156   :  { %v654_v29 = vpop.f32.mrf.mxu1  ;;  %v759_v30 = vpop.f32.mrf.mxu0 }
 0x157   :  { %v655_v32 = vadd.f32 %v654_v29, %v5277_v27  ;;  %v760_v33 = vadd.f32 %v759_v30, %v653_v26  ;;  %1384 = vmatprep.mubr.f32.mxu1 %v992_v28  ;;  %v1546_v26 = vld [vmem:[%s7330_s5 + $0xe0] sm:$0xff]  ;;  %v1545_v28 = vld [vmem:[%s7330_s5 + $0xd8] sm:$0xff]  ;;  %v1544_v29 = vld [vmem:[%s7330_s5 + $0xd0] sm:$0xff] }
 0x158   :  { %v761_v35 = vpop.f32.mrf.mxu0  ;;  %1385 = vmatmul.mubr.f32.gmra.mxu1 %v991_v24 }
 0x159   :  { %v762_v36 = vadd.f32 %v761_v35, %v655_v32  ;;  %v996_v37 = vmax.f32 %v760_v33, 0.0  ;;  %1605 = vmatpush1.msra.mxu1 %v1546_v26  ;;  %v1543_v35 = vld [vmem:[%s7330_s5 + $0xc8] sm:$0xff]  ;;  %v1552_v26 = vld [vmem:[%s7330_s5 + $0x110] sm:$0xff] }
 0x15a   :  { %1606 = vmatprep.subr.mxu1 %v1545_v28  ;;  %v1551_v28 = vld [vmem:[%s7330_s5 + $0x108] sm:$0xff] }
 0x15b   :  { %v997_v40 = vmax.f32 %v762_v36, 0.0  ;;  %1607 = vmatpush1.msra.mxu1 %v1544_v29  ;;  %v1550_v29 = vld [vmem:[%s7330_s5 + $0x100] sm:$0xff] }
 0x15c   :  { %1608 = vmatprep.subr.mxu1 %v1543_v35  ;;  %v1737_v35 = vld [vmem:[%s7332_s7 + $0xe0] sm:$0xff] }
 0x15d   :  { %v3428_v41 = vpop.f32.mrf.mxu0  ;;  %1390 = vmatprep.mubr.f32.mxu1 %v997_v40 }
 0x15e   :  { %1391 = vmatmul.mubr.f32.gmra.mxu1 %v996_v37  ;;  %v1542_v37 = vld [vmem:[%s7330_s5 + $0xc0] sm:$0xff] }
 0x15f   :  { %v3429_v43 = vpop.f32.mrf.mxu0  ;;  %1609 = vmatpush1.msra.mxu1 %v1542_v37  ;;  %v1735_v37 = vld [vmem:[%s7332_s7 + $0xd0] sm:$0xff] }
 0x160   :  { %v3430_v1 = vadd.f32 %v3429_v43, %v3428_v41 }
 0x161   :  { %v3431_v27 = vpop.f32.mrf.mxu0 }
 0x162   :  { %v831_v4 = vadd.f32 %v3430_v1, %v5298_v46  ;;  %v930_v12 = vpop.f32.mrf.mxu1  ;;  %v1541_v1 = vld [vmem:[%s7330_s5 + $0xb8] sm:$0xff] }
 0x163   :  { %v3432_v20 = vpop.f32.mrf.mxu0  ;;  %1610 = vmatprep.subr.mxu1 %v1541_v1  ;;  %v1731_v1 = vld [vmem:[%s7332_s7 + $0xb0] sm:$0xff] }
 0x164   :  { %v931_v34 = vadd.f32 %v930_v12, %v831_v4  ;;  %v3433_v47 = vadd.f32 %v3432_v20, %v3431_v27  ;;  %v3630_v38 = vpop.f32.mrf.mxu1 }
 0x165   :  { %v3434_v31 = vpop.f32.mrf.mxu0  ;;  %v1539_v38 = vld [vmem:[%s7330_s5 + $0xa8] sm:$0xff] }
 0x166   :  { %v968_v45 = vmax.f32 %v931_v34, 0.0  ;;  %v836_v48 = vadd.f32 %v3433_v47, %v5298_v46  ;;  %v935_v49 = vpop.f32.mrf.mxu1  ;;  %v1540_v47 = vld [vmem:[%s7330_s5 + $0xb0] sm:$0xff] }
 0x167   :  { %v3435_v42 = vpop.f32.mrf.mxu0  ;;  %1611 = vmatpush1.msra.mxu1 %v1540_v47  ;;  %v1725_v47 = vld [vmem:[%s7332_s7 + $0x80] sm:$0xff] }
 0x168   :  { %v3436_v56 = vadd.f32 %v3435_v42, %v3434_v31  ;;  %v936_v3 = vadd.f32 %v935_v49, %v836_v48  ;;  %3347 = vmatmul.mubr.msk.f32.vlgmr.msra.gmra.mxu0 %vm1161_vm1, %v968_v45  ;;  %v3633_v50 = vpop.f32.mrf.mxu1  ;;  %1612 = vmatprep.subr.mxu1 %v1539_v38  ;;  %v1537_v45 = vld [vmem:[%s7330_s5 + $0x98] sm:$0xff]  ;;  %v1536_v48 = vld [vmem:[%s7330_s5 + $0x90] sm:$0xff]  ;;  %v1535_v49 = vld [vmem:[%s7330_s5 + $0x88] sm:$0xff] }
 0x169   :  { %v3437_v60 = vpop.f32.mrf.mxu0  ;;  %1467 = vmatprep.mubr.f32.mxu0 %v3766_v5  ;;  %v1534_v42 = vld [vmem:[%s7330_s5 + $0x80] sm:$0xff]  ;;  %v1531_v50 = vld [vmem:[%s7330_s5 + $0x68] sm:$0xff]  ;;  %v1724_v38 = vld [vmem:[%s7332_s7 + $0x78] sm:$0xff] }
 0x16a   :  { %v973_v51 = vmax.f32 %v936_v3, 0.0  ;;  %v841_v53 = vadd.f32 %v3436_v56, %v5298_v46  ;;  %v940_v7 = vpop.f32.mrf.mxu1  ;;  %v1533_v56 = vld [vmem:[%s7330_s5 + $0x78] sm:$0xff]  ;;  %v1532_v3 = vld [vmem:[%s7330_s5 + $0x70] sm:$0xff] }
 0x16b   :  { %v3438_v52 = vpop.f32.mrf.mxu0 }
 0x16c   :  { %v3439_v11 = vadd.f32 %v3438_v52, %v3437_v60  ;;  %v941_v54 = vadd.f32 %v940_v7, %v841_v53  ;;  %3348 = vmatmul.mubr.msk.f32.gmra.mxu0 %vm1161_vm1, %v973_v51  ;;  %v3636_v0 = vpop.f32.mrf.mxu1  ;;  %v1530_v60 = vld [vmem:[%s7330_s5 + $0x60] sm:$0xff]  ;;  %v1529_v51 = vld [vmem:[%s7330_s5 + $0x58] sm:$0xff]  ;;  %v1528_v53 = vld [vmem:[%s7330_s5 + $0x50] sm:$0xff] }
 0x16d   :  { %v3440_v55 = vpop.f32.mrf.mxu0  ;;  %1473 = vmatprep.mubr.f32.mxu0 %v3766_v5  ;;  %v1527_v7 = vld [vmem:[%s7330_s5 + $0x48] sm:$0xff]  ;;  %v1526_v52 = vld [vmem:[%s7330_s5 + $0x40] sm:$0xff] }
 0x16e   :  { %v978_v57 = vmax.f32 %v941_v54, 0.0  ;;  %v846_v58 = vadd.f32 %v3439_v11, %v5298_v46  ;;  %v945_v59 = vpop.f32.mrf.mxu1  ;;  %v1525_v11 = vld [vmem:[%s7330_s5 + $0x38] sm:$0xff]  ;;  %v1524_v54 = vld [vmem:[%s7330_s5 + $0x30] sm:$0xff]  ;;  %v1523_v0 = vld [vmem:[%s7330_s5 + $0x28] sm:$0xff] }
 0x16f   :  { %v3441_v61 = vpop.f32.mrf.mxu0 }
 0x170   :  { %v3442_v63 = vadd.f32 %v3441_v61, %v3440_v55  ;;  %v946_v17 = vadd.f32 %v945_v59, %v846_v58  ;;  %3349 = vmatmul.mubr.msk.f32.gmra.mxu0 %vm1161_vm1, %v978_v57  ;;  %v3639_v2 = vpop.f32.mrf.mxu1  ;;  %v1522_v55 = vld [vmem:[%s7330_s5 + $0x20] sm:$0xff]  ;;  %v1521_v57 = vld [vmem:[%s7330_s5 + $0x18] sm:$0xff]  ;;  %v1520_v58 = vld [vmem:[%s7330_s5 + $0x10] sm:$0xff] }
 0x171   :  { %v3443_v6 = vpop.f32.mrf.mxu0  ;;  %1479 = vmatprep.mubr.f32.mxu0 %v3766_v5  ;;  %v1519_v59 = vld [vmem:[%s7330_s5 + $0x8] sm:$0xff]  ;;  %v1518_v61 = vld [vmem:[%s7330_s5] sm:$0xff]  ;;  %v1564_v2 = vld [vmem:[%s7330_s5 + $0x170] sm:$0xff] }
 0x172   :  { %v983_v8 = vmax.f32 %v946_v17, 0.0  ;;  %v851_v10 = vadd.f32 %v3442_v63, %v5298_v46  ;;  %v950_v13 = vpop.f32.mrf.mxu1  ;;  %v1566_v63 = vld [vmem:[%s7330_s5 + $0x180] sm:$0xff]  ;;  %v1565_v17 = vld [vmem:[%s7330_s5 + $0x178] sm:$0xff] }
 0x173   :  { %v3444_v15 = vpop.f32.mrf.mxu0 }
 0x174   :  { %v3445_v21 = vadd.f32 %v3444_v15, %v3443_v6  ;;  %v951_v22 = vadd.f32 %v950_v13, %v851_v10  ;;  %3350 = vmatmul.mubr.msk.f32.gmra.mxu0 %vm1161_vm1, %v983_v8  ;;  %v3642_v24 = vpop.f32.mrf.mxu1  ;;  %v1563_v6 = vld [vmem:[%s7330_s5 + $0x168] sm:$0xff]  ;;  %v1562_v8 = vld [vmem:[%s7330_s5 + $0x160] sm:$0xff]  ;;  %v1561_v10 = vld [vmem:[%s7330_s5 + $0x158] sm:$0xff] }
 0x175   :  { %v3446_v25 = vpop.f32.mrf.mxu0  ;;  %1485 = vmatprep.mubr.f32.mxu0 %v3766_v5  ;;  %v1560_v13 = vld [vmem:[%s7330_s5 + $0x150] sm:$0xff]  ;;  %v1559_v15 = vld [vmem:[%s7330_s5 + $0x148] sm:$0xff]  ;;  %v1554_v24 = vld [vmem:[%s7330_s5 + $0x120] sm:$0xff] }
 0x176   :  { %v988_v30 = vmax.f32 %v951_v22, 0.0  ;;  %v856_v32 = vadd.f32 %v3445_v21, %v5298_v46  ;;  %v955_v33 = vpop.f32.mrf.mxu1  ;;  %v1556_v21 = vld [vmem:[%s7330_s5 + $0x130] sm:$0xff]  ;;  %v1555_v22 = vld [vmem:[%s7330_s5 + $0x128] sm:$0xff] }
 0x177   :  { %v3447_v36 = vpop.f32.mrf.mxu0 }
 0x178   :  { %v3448_v40 = vadd.f32 %v3447_v36, %v3446_v25  ;;  %v956_v41 = vadd.f32 %v955_v33, %v856_v32  ;;  %3351 = vmatmul.mubr.msk.f32.gmra.mxu0 %vm1161_vm1, %v988_v30  ;;  %v3645_v43 = vpop.f32.mrf.mxu1  ;;  %v1553_v25 = vld [vmem:[%s7330_s5 + $0x118] sm:$0xff]  ;;  %v1739_v32 = vld [vmem:[%s7332_s7 + $0xf0] sm:$0xff]  ;;  %v1738_v33 = vld [vmem:[%s7332_s7 + $0xe8] sm:$0xff] }
 0x179   :  { %1491 = vmatprep.mubr.f32.mxu0 %v3766_v5  ;;  %v1740_v30 = vld [vmem:[%s7332_s7 + $0xf8] sm:$0xff] }
 0x17a   :  { %v993_v27 = vmax.f32 %v956_v41, 0.0  ;;  %v861_v4 = vadd.f32 %v3448_v40, %v5298_v46  ;;  %v960_v12 = vpop.f32.mrf.mxu1  ;;  %v1538_v46 = vld [vmem:[%s7330_s5 + $0xa0] sm:$0xff]  ;;  %1753 = vmatprep.subr.mxu0 %v1740_v30  ;;  %v1736_v36 = vld [vmem:[%s7332_s7 + $0xd8] sm:$0xff]  ;;  %v1734_v40 = vld [vmem:[%s7332_s7 + $0xc8] sm:$0xff] }
 0x17b   :  { %1613 = vmatpush1.msra.mxu1 %v1538_v46  ;;  %1754 = vmatpush1.msra.mxu0 %v1739_v32  ;;  %v1733_v41 = vld [vmem:[%s7332_s7 + $0xc0] sm:$0xff]  ;;  %v1732_v43 = vld [vmem:[%s7332_s7 + $0xb8] sm:$0xff]  ;;  %v1722_v46 = vld [vmem:[%s7332_s7 + $0x68] sm:$0xff] }
 0x17c   :  { %v961_v20 = vadd.f32 %v960_v12, %v861_v4  ;;  %3352 = vmatmul.mubr.msk.f32.gmra.mxu0 %vm1161_vm1, %v993_v27  ;;  %v3648_v34 = vpop.f32.mrf.mxu1  ;;  %1614 = vmatprep.subr.mxu1 %v1537_v45  ;;  %v1730_v27 = vld [vmem:[%s7332_s7 + $0xa8] sm:$0xff]  ;;  %v1729_v4 = vld [vmem:[%s7332_s7 + $0xa0] sm:$0xff]  ;;  %v1728_v12 = vld [vmem:[%s7332_s7 + $0x98] sm:$0xff] }
 0x17d   :  { %1497 = vmatprep.mubr.f32.mxu0 %v3766_v5  ;;  %1615 = vmatpush1.msra.mxu1 %v1536_v48  ;;  %v1726_v34 = vld [vmem:[%s7332_s7 + $0x88] sm:$0xff]  ;;  %v1721_v45 = vld [vmem:[%s7332_s7 + $0x60] sm:$0xff]  ;;  %v1720_v48 = vld [vmem:[%s7332_s7 + $0x58] sm:$0xff] }
 0x17e   :  { %v998_v31 = vmax.f32 %v961_v20, 0.0  ;;  %1616 = vmatprep.subr.mxu1 %v1535_v49  ;;  %1755 = vmatprep.subr.mxu0 %v1738_v33  ;;  %v1727_v20 = vld [vmem:[%s7332_s7 + $0x90] sm:$0xff] }
 0x17f   :  { %1617 = vmatpush1.msra.mxu1 %v1534_v42  ;;  %1756 = vmatpush1.msra.mxu0 %v1737_v35  ;;  %v1719_v49 = vld [vmem:[%s7332_s7 + $0x50] sm:$0xff]  ;;  %v1718_v42 = vld [vmem:[%s7332_s7 + $0x48] sm:$0xff] }
 0x180   :  { %3353 = vmatmul.mubr.msk.f32.gmra.mxu0 %vm1161_vm1, %v998_v31  ;;  %1618 = vmatprep.subr.mxu1 %v1533_v56  ;;  %v1723_v31 = vld [vmem:[%s7332_s7 + $0x70] sm:$0xff]  ;;  %v1717_v56 = vld [vmem:[%s7332_s7 + $0x40] sm:$0xff] }
 0x181   :  { %1817 = vmatprep.mubr.f32.mxu0 %v3766_v5  ;;  %1619 = vmatpush1.msra.mxu1 %v1532_v3  ;;  %v1716_v3 = vld [vmem:[%s7332_s7 + $0x38] sm:$0xff] }
 0x182   :  { %1620 = vmatprep.subr.mxu1 %v1531_v50  ;;  %1757 = vmatprep.subr.mxu0 %v1736_v36  ;;  %v1715_v50 = vld [vmem:[%s7332_s7 + $0x30] sm:$0xff] }
 0x183   :  { %1621 = vmatpush1.msra.mxu1 %v1530_v60  ;;  %1758 = vmatpush1.msra.mxu0 %v1735_v37  ;;  %v1714_v60 = vld [vmem:[%s7332_s7 + $0x28] sm:$0xff] }
 0x184   :  { %1622 = vmatprep.subr.mxu1 %v1529_v51  ;;  %1759 = vmatprep.subr.mxu0 %v1734_v40  ;;  %v1713_v51 = vld [vmem:[%s7332_s7 + $0x20] sm:$0xff] }
 0x185   :  { %1623 = vmatpush1.msra.mxu1 %v1528_v53  ;;  %1760 = vmatpush1.msra.mxu0 %v1733_v41  ;;  %v1712_v53 = vld [vmem:[%s7332_s7 + $0x18] sm:$0xff] }
 0x186   :  { %1624 = vmatprep.subr.mxu1 %v1527_v7  ;;  %1761 = vmatprep.subr.mxu0 %v1732_v43 }
 0x187   :  { %1625 = vmatpush1.msra.mxu1 %v1526_v52  ;;  %1762 = vmatpush1.msra.mxu0 %v1731_v1 }
 0x188   :  { %1626 = vmatprep.subr.mxu1 %v1525_v11  ;;  %1763 = vmatprep.subr.mxu0 %v1730_v27 }
 0x189   :  { %1627 = vmatpush1.msra.mxu1 %v1524_v54  ;;  %1764 = vmatpush1.msra.mxu0 %v1729_v4 }
 0x18a   :  { %1628 = vmatprep.subr.mxu1 %v1523_v0  ;;  %1765 = vmatprep.subr.mxu0 %v1728_v12 }
 0x18b   :  { %1629 = vmatpush1.msra.mxu1 %v1522_v55  ;;  %1766 = vmatpush1.msra.mxu0 %v1727_v20 }
 0x18c   :  { %1630 = vmatprep.subr.mxu1 %v1521_v57  ;;  %1767 = vmatprep.subr.mxu0 %v1726_v34 }
 0x18d   :  { %1631 = vmatpush1.msra.mxu1 %v1520_v58  ;;  %1768 = vmatpush1.msra.mxu0 %v1725_v47 }
 0x18e   :  { %1632 = vmatprep.subr.mxu1 %v1519_v59  ;;  %1769 = vmatprep.subr.mxu0 %v1724_v38 }
 0x18f   :  { %1633 = vmatpush1.msra.mxu1 %v1518_v61  ;;  %1770 = vmatpush1.msra.mxu0 %v1723_v31 }
 0x190   :  { %1648 = vmatprep.subr.mxu1 %v1567_v62  ;;  %1771 = vmatprep.subr.mxu0 %v1722_v46 }
 0x191   :  { %1649 = vmatpush2.msra.mxu1 %v1566_v63  ;;  %1772 = vmatpush1.msra.mxu0 %v1721_v45 }
 0x192   :  { %1650 = vmatprep.subr.mxu1 %v1565_v17  ;;  %1773 = vmatprep.subr.mxu0 %v1720_v48 }
 0x193   :  { %1651 = vmatpush2.msra.mxu1 %v1564_v2  ;;  %1774 = vmatpush1.msra.mxu0 %v1719_v49 }
 0x194   :  { %1652 = vmatprep.subr.mxu1 %v1563_v6  ;;  %1775 = vmatprep.subr.mxu0 %v1718_v42 }
 0x195   :  { %1653 = vmatpush2.msra.mxu1 %v1562_v8  ;;  %1776 = vmatpush1.msra.mxu0 %v1717_v56 }
 0x196   :  { %1654 = vmatprep.subr.mxu1 %v1561_v10  ;;  %1777 = vmatprep.subr.mxu0 %v1716_v3 }
 0x197   :  { %1655 = vmatpush2.msra.mxu1 %v1560_v13  ;;  %1778 = vmatpush1.msra.mxu0 %v1715_v50 }
 0x198   :  { %1656 = vmatprep.subr.mxu1 %v1559_v15  ;;  %1779 = vmatprep.subr.mxu0 %v1714_v60  ;;  %v1149_v15 = vld [vmem:[%s7329_s4] sm:$0x3] }
 0x199   :  { %1657 = vmatpush2.msra.mxu1 %v1558_v18  ;;  %1780 = vmatpush1.msra.mxu0 %v1713_v51  ;;  %v5566_v18 = vrot.slane %v1149_v15, %v5171_v16 }
 0x19a   :  { %1658 = vmatprep.subr.mxu1 %v1557_v19  ;;  %1781 = vmatprep.subr.mxu0 %v1712_v53 }
 0x19b   :  { %1659 = vmatpush2.msra.mxu1 %v1556_v21 }
 0x19c   :  { %1660 = vmatprep.subr.mxu1 %v1555_v22  ;;  %v5571_v22 = vrot.slane %v1149_v15, %v5179_v23 }
 0x19d   :  { %1661 = vmatpush2.msra.mxu1 %v1554_v24 }
 0x19e   :  { %1662 = vmatprep.subr.mxu1 %v1553_v25 }
 0x19f   :  { %1663 = vmatpush2.msra.mxu1 %v1552_v26 }
 0x1a0   :  { %1664 = vmatprep.subr.mxu1 %v1551_v28 }
 0x1a1   :  { %1665 = vmatpush2.msra.mxu1 %v1550_v29 }
 0x1ce   :  { %v1249_v7 = vpop.f32.mrf.mxu0 }
 0x1cf   :  { %v1250_v24 = vadd.f32 %v1249_v7, %v5566_v18 }
 0x1d0   :  { %v1251_v52 = vpop.f32.mrf.mxu0 }
 0x1d1   :  { %v1252_v28 = vadd.f32 %v1251_v52, %v5571_v22 }
 0x1d4   :  { %v1255_v11 = vpop.f32.mrf.mxu0 }
 0x1d5   :  { %v1256_v33 = vadd.f32 %v1255_v11, %v5566_v18 }
 0x1d6   :  { %v1257_v54 = vpop.f32.mrf.mxu0 }
 0x1d7   :  { %v1258_v40 = vadd.f32 %v1257_v54, %v5571_v22 }
 0x1da   :  { %v1261_v0 = vpop.f32.mrf.mxu0 }
 0x1db   :  { %v1262_v12 = vadd.f32 %v1261_v0, %v5566_v18 }
 0x1dc   :  { %v1263_v55 = vpop.f32.mrf.mxu0 }
 0x1dd   :  { %v1264_v31 = vadd.f32 %v1263_v55, %v5571_v22 }
 0x1e0   :  { %v1267_v57 = vpop.f32.mrf.mxu0 }
 0x1e1   :  { %v1268_v56 = vadd.f32 %v1267_v57, %v5566_v18 }
 0x1e2   :  { %v1269_v59 = vpop.f32.mrf.mxu0 }
 0x1e3   :  { %v1270_v53 = vadd.f32 %v1269_v59, %v5571_v22 }
 0x1e6   :  { %v1273_v62 = vpop.f32.mrf.mxu0 }
 0x1e7   :  { %v1274_v55 = vadd.f32 %v1273_v62, %v5566_v18 }
 0x1e8   :  { %v1275_v17 = vpop.f32.mrf.mxu0 }
 0x1ec   :  { %v5558_v6 = vpop.f32.mrf.mxu0 }
 0x1ee   :  { %v5560_v10 = vpop.f32.mrf.mxu0 }
 0x1f2   :  { %v5568_v19 = vpop.f32.mrf.mxu0 }
 0x1f4   :  { %v5574_v25 = vpop.f32.mrf.mxu0 }
 0x1fc   :  { %v1356_v58 = vpop.f32.mrf.mxu1 }
 0x1fd   :  { %v1357_v29 = vadd.f32 %v1356_v58, %v1250_v24  ;;  %v1280_v24 = vadd.f32 %v5558_v6, %v5566_v18 }
 0x1fe   :  { %v1358_v61 = vpop.f32.mrf.mxu1 }
 0x1ff   :  { %v1359_v32 = vadd.f32 %v1358_v61, %v1252_v28 }
 0x201   :  { %v1362_v63 = vpop.f32.mrf.mxu1 }
 0x202   :  { %v1363_v43 = vadd.f32 %v1362_v63, %v1256_v33 }
 0x203   :  { %v1364_v2 = vpop.f32.mrf.mxu1 }
 0x204   :  { %v1365_v27 = vadd.f32 %v1364_v2, %v1258_v40  ;;  %v1276_v2 = vadd.f32 %v1275_v17, %v5571_v22 }
 0x206   :  { %v1368_v8 = vpop.f32.mrf.mxu1 }
 0x207   :  { %v1369_v45 = vadd.f32 %v1368_v8, %v1262_v12 }
 0x208   :  { %v1370_v13 = vpop.f32.mrf.mxu1 }
 0x209   :  { %v1371_v49 = vadd.f32 %v1370_v13, %v1264_v31 }
 0x20c   :  { %v1374_v21 = vpop.f32.mrf.mxu1 }
 0x20d   :  { %v1375_v52 = vadd.f32 %v1374_v21, %v1268_v56  ;;  %v1944_v56 = vld [vmem:[%s7334_s9 + $0x230] sm:$0xff] }
 0x20e   :  { %v1376_v26 = vpop.f32.mrf.mxu1 }
 0x20f   :  { %v1377_v54 = vadd.f32 %v1376_v26, %v1270_v53  ;;  %v1930_v53 = vld [vmem:[%s7334_s9 + $0x1c0] sm:$0xff] }
 0x212   :  { %v1380_v35 = vpop.f32.mrf.mxu1 }
 0x213   :  { %v1381_v59 = vadd.f32 %v1380_v35, %v1274_v55  ;;  %v1915_v55 = vld [vmem:[%s7334_s9 + $0x148] sm:$0xff] }
 0x214   :  { %v1382_v20 = vpop.f32.mrf.mxu1 }
 0x215   :  { %v1383_v15 = vadd.f32 %v1382_v20, %v1276_v2  ;;  %v1904_v2 = vld [vmem:[%s7334_s9 + $0xf0] sm:$0xff] }
 0x218   :  { %v1386_v3 = vpop.f32.mrf.mxu1 }
 0x219   :  { %v1387_v17 = vadd.f32 %v1386_v3, %v1280_v24  ;;  %v1940_v3 = vld [vmem:[%s7334_s9 + $0x210] sm:$0xff]  ;;  %v1889_v24 = vld [vmem:[%s7334_s9 + $0x78] sm:$0xff] }
 0x21a   :  { %v1388_v58 = vpop.f32.mrf.mxu1 }
 0x21e   :  { %v1392_v26 = vpop.f32.mrf.mxu1 }
 0x220   :  { %v1394_v40 = vpop.f32.mrf.mxu1 }
 0x228   :  { %v1463_v30 = vpop.f32.mrf.mxu0 }
 0x229   :  { %v1464_v36 = vadd.f32 %v1463_v30, %v1357_v29  ;;  %v1282_v30 = vadd.f32 %v5560_v10, %v5571_v22 }
 0x22a   :  { %v1465_v37 = vpop.f32.mrf.mxu0 }
 0x22b   :  { %v1466_v41 = vadd.f32 %v1465_v37, %v1359_v32  ;;  %v1504_v34 = vmax.f32 %v1464_v36, 0.0  ;;  %v1389_v35 = vadd.f32 %v1388_v58, %v1282_v30  ;;  %v1286_v37 = vadd.f32 %v5568_v19, %v5566_v18  ;;  %v1914_v58 = vld [vmem:[%s7334_s9 + $0x140] sm:$0xff]  ;;  %v1875_v30 = vld [vmem:[%s7334_s9 + $0x8] sm:$0xff] }
 0x22c   :  { %v1469_v1 = vpop.f32.mrf.mxu0 }
 0x22d   :  { %v1505_v4 = vmax.f32 %v1466_v41, 0.0  ;;  %v1470_v47 = vadd.f32 %v1469_v1, %v1363_v43  ;;  %v1288_v1 = vadd.f32 %v5574_v25, %v5571_v22  ;;  %v1393_v10 = vadd.f32 %v1392_v26, %v1286_v37  ;;  %v1711_v22 = vld [vmem:[%s7332_s7 + $0x10] sm:$0xff]  ;;  %v1710_v25 = vld [vmem:[%s7332_s7 + $0x8] sm:$0xff]  ;;  %v1885_v26 = vld [vmem:[%s7334_s9 + $0x58] sm:$0xff] }
 0x22e   :  { %v1471_v38 = vpop.f32.mrf.mxu0  ;;  %1782 = vmatpush1.msra.mxu0 %v1711_v22  ;;  %v1985_v37 = vld [vmem:[%s7334_s9 + $0x378] sm:$0xff] }
 0x22f   :  { %v1472_v46 = vadd.f32 %v1471_v38, %v1365_v27  ;;  %3354 = vmatprep.mubr.msk.f32.mxu1 %vm1580_vm2, %v1505_v4  ;;  %v1506_v50 = vmax.f32 %v1470_v47, 0.0  ;;  %v1395_v12 = vadd.f32 %v1394_v40, %v1288_v1  ;;  %1783 = vmatprep.subr.mxu0 %v1710_v25  ;;  %v1984_v40 = vld [vmem:[%s7334_s9 + $0x370] sm:$0xff]  ;;  %v1974_v1 = vld [vmem:[%s7334_s9 + $0x320] sm:$0xff] }
 0x230   :  { %v1475_v48 = vpop.f32.mrf.mxu0  ;;  %1667 = vmatmul.mubr.f32.vlgmr.msra.gmra.mxu1 %v1504_v34  ;;  %v1942_v25 = vld [vmem:[%s7334_s9 + $0x220] sm:$0xff] }
 0x231   :  { %v1507_v42 = vmax.f32 %v1472_v46, 0.0  ;;  %v1476_v60 = vadd.f32 %v1475_v48, %v1369_v45  ;;  %v1709_v46 = vld [vmem:[%s7332_s7] sm:$0xff]  ;;  %v1949_v48 = vld [vmem:[%s7334_s9 + $0x258] sm:$0xff] }
 0x232   :  { %v1477_v51 = vpop.f32.mrf.mxu0  ;;  %1784 = vmatpush1.msra.mxu0 %v1709_v46  ;;  %v1950_v45 = vld [vmem:[%s7334_s9 + $0x260] sm:$0xff] }
 0x233   :  { %v1478_v7 = vadd.f32 %v1477_v51, %v1371_v49  ;;  %3355 = vmatprep.mubr.msk.f32.mxu1 %vm1580_vm2, %v1507_v42  ;;  %v1508_v61 = vmax.f32 %v1476_v60, 0.0  ;;  %v1952_v49 = vld [vmem:[%s7334_s9 + $0x270] sm:$0xff]  ;;  %2047 = vmatprep.subr.mxu1 %v1950_v45  ;;  %v1945_v42 = vld [vmem:[%s7334_s9 + $0x238] sm:$0xff]  ;;  %v1935_v60 = vld [vmem:[%s7334_s9 + $0x1e8] sm:$0xff] }
 0x234   :  { %v1481_v11 = vpop.f32.mrf.mxu0  ;;  %1673 = vmatmul.mubr.f32.gmra.mxu1 %v1506_v50  ;;  %2154 = vmatprep.subr.mxu0 %v1952_v49  ;;  %v1939_v50 = vld [vmem:[%s7334_s9 + $0x208] sm:$0xff]  ;;  %v1934_v51 = vld [vmem:[%s7334_s9 + $0x1e0] sm:$0xff]  ;;  %v1941_v45 = vld [vmem:[%s7334_s9 + $0x218] sm:$0xff] }
 0x235   :  { %v1509_v0 = vmax.f32 %v1478_v7, 0.0  ;;  %v1482_v63 = vadd.f32 %v1481_v11, %v1375_v52  ;;  %2048 = vmatpush1.msra.mxu1 %v1949_v48  ;;  %v1929_v7 = vld [vmem:[%s7334_s9 + $0x1b8] sm:$0xff]  ;;  %v1924_v11 = vld [vmem:[%s7334_s9 + $0x190] sm:$0xff] }
 0x236   :  { %v1483_v57 = vpop.f32.mrf.mxu0  ;;  %2049 = vmatprep.subr.mxu1 %v1945_v42  ;;  %v1925_v52 = vld [vmem:[%s7334_s9 + $0x198] sm:$0xff] }
 0x237   :  { %v1484_v8 = vadd.f32 %v1483_v57, %v1377_v54  ;;  %3356 = vmatprep.mubr.msk.f32.mxu1 %vm1580_vm2, %v1509_v0  ;;  %v1510_v28 = vmax.f32 %v1482_v63, 0.0  ;;  %2050 = vmatpush1.msra.mxu1 %v1944_v56  ;;  %v1920_v54 = vld [vmem:[%s7334_s9 + $0x170] sm:$0xff]  ;;  %v1919_v0 = vld [vmem:[%s7334_s9 + $0x168] sm:$0xff]  ;;  %v1909_v63 = vld [vmem:[%s7334_s9 + $0x118] sm:$0xff] }
 0x238   :  { %v1487_v13 = vpop.f32.mrf.mxu0  ;;  %1679 = vmatmul.mubr.f32.gmra.mxu1 %v1508_v61  ;;  %2051 = vmatprep.subr.mxu1 %v1940_v3  ;;  %v1910_v61 = vld [vmem:[%s7334_s9 + $0x120] sm:$0xff]  ;;  %v1905_v57 = vld [vmem:[%s7334_s9 + $0xf8] sm:$0xff]  ;;  %v1936_v56 = vld [vmem:[%s7334_s9 + $0x1f0] sm:$0xff] }
 0x239   :  { %v1511_v21 = vmax.f32 %v1484_v8, 0.0  ;;  %v1488_v62 = vadd.f32 %v1487_v13, %v1381_v59  ;;  %2052 = vmatpush1.msra.mxu1 %v1939_v50  ;;  %v1900_v8 = vld [vmem:[%s7334_s9 + $0xd0] sm:$0xff]  ;;  %v1899_v59 = vld [vmem:[%s7334_s9 + $0xc8] sm:$0xff]  ;;  %v1937_v49 = vld [vmem:[%s7334_s9 + $0x1f8] sm:$0xff] }
 0x23a   :  { %v1489_v29 = vpop.f32.mrf.mxu0  ;;  %2053 = vmatprep.subr.mxu1 %v1935_v60  ;;  %v1895_v13 = vld [vmem:[%s7334_s9 + $0xa8] sm:$0xff]  ;;  %v1932_v50 = vld [vmem:[%s7334_s9 + $0x1d0] sm:$0xff] }
 0x23b   :  { %v1490_v32 = vadd.f32 %v1489_v29, %v1383_v15  ;;  %3357 = vmatprep.mubr.msk.f32.mxu1 %vm1580_vm2, %v1511_v21  ;;  %v1512_v6 = vmax.f32 %v1488_v62, 0.0  ;;  %2054 = vmatpush1.msra.mxu1 %v1934_v51  ;;  %v1894_v15 = vld [vmem:[%s7334_s9 + $0xa0] sm:$0xff]  ;;  %v1880_v62 = vld [vmem:[%s7334_s9 + $0x30] sm:$0xff]  ;;  %v1879_v29 = vld [vmem:[%s7334_s9 + $0x28] sm:$0xff] }
 0x23c   :  { %v1493_v33 = vpop.f32.mrf.mxu0  ;;  %1685 = vmatmul.mubr.f32.gmra.mxu1 %v1510_v28  ;;  %2055 = vmatprep.subr.mxu1 %v1930_v53  ;;  %v1890_v21 = vld [vmem:[%s7334_s9 + $0x80] sm:$0xff]  ;;  %v1884_v28 = vld [vmem:[%s7334_s9 + $0x50] sm:$0xff]  ;;  %v1931_v51 = vld [vmem:[%s7334_s9 + $0x1c8] sm:$0xff] }
 0x23d   :  { %v1513_v36 = vmax.f32 %v1490_v32, 0.0  ;;  %v1494_v41 = vadd.f32 %v1493_v33, %v1387_v17  ;;  %2056 = vmatpush1.msra.mxu1 %v1929_v7  ;;  %v1874_v32 = vld [vmem:[%s7334_s9] sm:$0xff]  ;;  %v1995_v17 = vld [vmem:[%s7334_s9 + $0x3c8] sm:$0xff] }
 0x23e   :  { %v1495_v43 = vpop.f32.mrf.mxu0  ;;  %2057 = vmatprep.subr.mxu1 %v1925_v52  ;;  %v1994_v33 = vld [vmem:[%s7334_s9 + $0x3c0] sm:$0xff]  ;;  %v1927_v7 = vld [vmem:[%s7334_s9 + $0x1a8] sm:$0xff] }
 0x23f   :  { %v1496_v27 = vadd.f32 %v1495_v43, %v1389_v35  ;;  %3358 = vmatprep.mubr.msk.f32.mxu1 %vm1580_vm2, %v1513_v36  ;;  %v1514_v34 = vmax.f32 %v1494_v41, 0.0  ;;  %2058 = vmatpush1.msra.mxu1 %v1924_v11  ;;  %v1990_v35 = vld [vmem:[%s7334_s9 + $0x3a0] sm:$0xff]  ;;  %v1989_v36 = vld [vmem:[%s7334_s9 + $0x398] sm:$0xff]  ;;  %v1979_v41 = vld [vmem:[%s7334_s9 + $0x348] sm:$0xff] }
 0x240   :  { %v1499_v4 = vpop.f32.mrf.mxu0  ;;  %1691 = vmatmul.mubr.f32.gmra.mxu1 %v1512_v6  ;;  %2059 = vmatprep.subr.mxu1 %v1920_v54  ;;  %v1980_v6 = vld [vmem:[%s7334_s9 + $0x350] sm:$0xff]  ;;  %v1975_v43 = vld [vmem:[%s7334_s9 + $0x328] sm:$0xff]  ;;  %v1926_v11 = vld [vmem:[%s7334_s9 + $0x1a0] sm:$0xff] }
 0x241   :  { %v1515_v20 = vmax.f32 %v1496_v27, 0.0  ;;  %v1500_v47 = vadd.f32 %v1499_v4, %v1393_v10  ;;  %2060 = vmatpush1.msra.mxu1 %v1919_v0  ;;  %v1970_v27 = vld [vmem:[%s7334_s9 + $0x300] sm:$0xff] }
 0x242   :  { %v1501_v38 = vpop.f32.mrf.mxu0  ;;  %2061 = vmatprep.subr.mxu1 %v1915_v55  ;;  %v1568_v10 = vld [vmem:[%s7331_s6] sm:$0x3] }
 0x243   :  { %v1502_v31 = vadd.f32 %v1501_v38, %v1395_v12  ;;  %3359 = vmatprep.mubr.msk.f32.mxu1 %vm1580_vm2, %v1515_v20  ;;  %v1516_v19 = vmax.f32 %v1500_v47, 0.0  ;;  %2062 = vmatpush1.msra.mxu1 %v1914_v58  ;;  %v5745_v4 = vrot.slane %v1568_v10, %v5171_v16  ;;  %v5748_v12 = vrot.slane %v1568_v10, %v5179_v23  ;;  %v1951_v47 = vld [vmem:[%s7334_s9 + $0x268] sm:$0xff]  ;;  %v1922_v0 = vld [vmem:[%s7334_s9 + $0x180] sm:$0xff]  ;;  %v1921_v58 = vld [vmem:[%s7334_s9 + $0x178] sm:$0xff] }
 0x244   :  { %1697 = vmatmul.mubr.f32.gmra.mxu1 %v1514_v34  ;;  %2063 = vmatprep.subr.mxu1 %v1910_v61  ;;  %v1886_v10 = vld [vmem:[%s7334_s9 + $0x60] sm:$0xff] }
 0x245   :  { %v1517_v18 = vmax.f32 %v1502_v31, 0.0  ;;  %2064 = vmatpush1.msra.mxu1 %v1909_v63  ;;  %v1947_v31 = vld [vmem:[%s7334_s9 + $0x248] sm:$0xff]  ;;  %v1917_v63 = vld [vmem:[%s7334_s9 + $0x158] sm:$0xff] }
 0x246   :  { %2065 = vmatprep.subr.mxu1 %v1905_v57 }
 0x247   :  { %3360 = vmatprep.mubr.msk.f32.mxu1 %vm1580_vm2, %v1517_v18  ;;  %2066 = vmatpush1.msra.mxu1 %v1904_v2  ;;  %v1916_v2 = vld [vmem:[%s7334_s9 + $0x150] sm:$0xff] }
 0x248   :  { %1703 = vmatmul.mubr.f32.gmra.mxu1 %v1516_v19  ;;  %2067 = vmatprep.subr.mxu1 %v1900_v8  ;;  %v1946_v19 = vld [vmem:[%s7334_s9 + $0x240] sm:$0xff] }
 0x249   :  { %2068 = vmatpush1.msra.mxu1 %v1899_v59  ;;  %v1912_v59 = vld [vmem:[%s7334_s9 + $0x130] sm:$0xff] }
 0x24a   :  { %2069 = vmatprep.subr.mxu1 %v1895_v13 }
 0x24b   :  { %2070 = vmatpush1.msra.mxu1 %v1894_v15  ;;  %v1911_v15 = vld [vmem:[%s7334_s9 + $0x128] sm:$0xff] }
 0x24c   :  { %2071 = vmatprep.subr.mxu1 %v1890_v21 }
 0x24d   :  { %2072 = vmatpush1.msra.mxu1 %v1889_v24  ;;  %v1907_v24 = vld [vmem:[%s7334_s9 + $0x108] sm:$0xff] }
 0x24e   :  { %2073 = vmatprep.subr.mxu1 %v1885_v26 }
 0x24f   :  { %2074 = vmatpush1.msra.mxu1 %v1884_v28  ;;  %v1906_v28 = vld [vmem:[%s7334_s9 + $0x100] sm:$0xff] }
 0x250   :  { %2075 = vmatprep.subr.mxu1 %v1880_v62 }
 0x251   :  { %2076 = vmatpush1.msra.mxu1 %v1879_v29  ;;  %v1902_v29 = vld [vmem:[%s7334_s9 + $0xe0] sm:$0xff] }
 0x252   :  { %2077 = vmatprep.subr.mxu1 %v1875_v30 }
 0x253   :  { %2078 = vmatpush1.msra.mxu1 %v1874_v32  ;;  %v1901_v32 = vld [vmem:[%s7334_s9 + $0xd8] sm:$0xff] }
 0x254   :  { %2093 = vmatprep.subr.mxu1 %v1995_v17 }
 0x255   :  { %2094 = vmatpush2.msra.mxu1 %v1994_v33  ;;  %v1897_v33 = vld [vmem:[%s7334_s9 + $0xb8] sm:$0xff] }
 0x256   :  { %2095 = vmatprep.subr.mxu1 %v1990_v35 }
 0x257   :  { %2096 = vmatpush2.msra.mxu1 %v1989_v36  ;;  %v1896_v36 = vld [vmem:[%s7334_s9 + $0xb0] sm:$0xff] }
 0x258   :  { %2097 = vmatprep.subr.mxu1 %v1985_v37 }
 0x259   :  { %2098 = vmatpush2.msra.mxu1 %v1984_v40  ;;  %v1892_v40 = vld [vmem:[%s7334_s9 + $0x90] sm:$0xff] }
 0x25a   :  { %2099 = vmatprep.subr.mxu1 %v1980_v6 }
 0x25b   :  { %2100 = vmatpush2.msra.mxu1 %v1979_v41  ;;  %v1891_v41 = vld [vmem:[%s7334_s9 + $0x88] sm:$0xff] }
 0x25c   :  { %2101 = vmatprep.subr.mxu1 %v1975_v43 }
 0x25d   :  { %2102 = vmatpush2.msra.mxu1 %v1974_v1  ;;  %v1887_v1 = vld [vmem:[%s7334_s9 + $0x68] sm:$0xff] }
 0x25e   :  { %2103 = vmatprep.subr.mxu1 %v1970_v27 }
 0x2f0   :  { %v1668_v20 = vpop.f32.mrf.mxu1 }
 0x2f1   :  { %v1669_v34 = vadd.f32 %v1668_v20, %v5745_v4  ;;  %v1881_v20 = vld [vmem:[%s7334_s9 + $0x38] sm:$0xff] }
 0x2f2   :  { %v1670_v38 = vpop.f32.mrf.mxu1 }
 0x2f3   :  { %3301 = vst [vmem:[#allocation4] sm:$0xff] %v1669_v34  ;;  %v1671_v18 = vadd.f32 %v1670_v38, %v5748_v12  ;;  %1818 = vmatmul.mubr.f32.vlgmr.msra.gmra.mxu0 %v1669_v34  ;;  %v1876_v34 = vld [vmem:[%s7334_s9 + $0x10] sm:$0xff] }
 0x2f4   :  { %v1674_v22 = vpop.f32.mrf.mxu1  ;;  %1823 = vmatprep.mubr.f32.mxu0 %v3766_v5  ;;  %2155 = vmatpush1.msra.mxu0 %v1951_v47  ;;  %v1997_v47 = vld [vmem:[%s7334_s9 + $0x3d8] sm:$0xff]  ;;  %v1996_v38 = vld [vmem:[%s7334_s9 + $0x3d0] sm:$0xff] }
 0x2f5   :  { %3302 = vst [vmem:[#allocation4 + $0x8] sm:$0xff] %v1671_v18  ;;  %v1675_v46 = vadd.f32 %v1674_v22, %v5745_v4  ;;  %2156 = vmatprep.subr.mxu0 %v1947_v31  ;;  %v1992_v31 = vld [vmem:[%s7334_s9 + $0x3b0] sm:$0xff]  ;;  %v1991_v18 = vld [vmem:[%s7334_s9 + $0x3a8] sm:$0xff]  ;;  %v1986_v22 = vld [vmem:[%s7334_s9 + $0x380] sm:$0xff] }
 0x2f6   :  { %v1676_v48 = vpop.f32.mrf.mxu1  ;;  %2157 = vmatpush1.msra.mxu0 %v1946_v19  ;;  %v1987_v19 = vld [vmem:[%s7334_s9 + $0x388] sm:$0xff] }
 0x2f7   :  { %3303 = vst [vmem:[#allocation4 + $0x10] sm:$0xff] %v1675_v46  ;;  %v1677_v42 = vadd.f32 %v1676_v48, %v5748_v12  ;;  %1824 = vmatmul.mubr.f32.gmra.mxu0 %v1675_v46  ;;  %2158 = vmatprep.subr.mxu0 %v1942_v25  ;;  %v1982_v25 = vld [vmem:[%s7334_s9 + $0x360] sm:$0xff]  ;;  %v1981_v46 = vld [vmem:[%s7334_s9 + $0x358] sm:$0xff]  ;;  %v1976_v48 = vld [vmem:[%s7334_s9 + $0x330] sm:$0xff] }
 0x2f8   :  { %v1680_v3 = vpop.f32.mrf.mxu1  ;;  %1829 = vmatprep.mubr.f32.mxu0 %v3766_v5  ;;  %2159 = vmatpush1.msra.mxu0 %v1941_v45  ;;  %v1977_v45 = vld [vmem:[%s7334_s9 + $0x338] sm:$0xff] }
 0x2f9   :  { %3304 = vst [vmem:[#allocation4 + $0x18] sm:$0xff] %v1677_v42  ;;  %v1681_v60 = vadd.f32 %v1680_v3, %v5745_v4  ;;  %2160 = vmatprep.subr.mxu0 %v1937_v49  ;;  %v1969_v49 = vld [vmem:[%s7334_s9 + $0x2f8] sm:$0xff]  ;;  %v1972_v42 = vld [vmem:[%s7334_s9 + $0x310] sm:$0xff]  ;;  %v1971_v3 = vld [vmem:[%s7334_s9 + $0x308] sm:$0xff] }
 0x2fa   :  { %v1682_v53 = vpop.f32.mrf.mxu1  ;;  %2161 = vmatpush1.msra.mxu0 %v1936_v56  ;;  %2104 = vmatpush2.msra.mxu1 %v1969_v49  ;;  %v1965_v56 = vld [vmem:[%s7334_s9 + $0x2d8] sm:$0xff] }
 0x2fb   :  { %3305 = vst [vmem:[#allocation4 + $0x20] sm:$0xff] %v1681_v60  ;;  %v1683_v52 = vadd.f32 %v1682_v53, %v5748_v12  ;;  %1830 = vmatmul.mubr.f32.gmra.mxu0 %v1681_v60  ;;  %2162 = vmatprep.subr.mxu0 %v1932_v50  ;;  %v1964_v50 = vld [vmem:[%s7334_s9 + $0x2d0] sm:$0xff]  ;;  %v1967_v60 = vld [vmem:[%s7334_s9 + $0x2e8] sm:$0xff]  ;;  %v1966_v53 = vld [vmem:[%s7334_s9 + $0x2e0] sm:$0xff] }
 0x2fc   :  { %v1686_v54 = vpop.f32.mrf.mxu1  ;;  %1835 = vmatprep.mubr.f32.mxu0 %v3766_v5  ;;  %2163 = vmatpush1.msra.mxu0 %v1931_v51  ;;  %v1960_v51 = vld [vmem:[%s7334_s9 + $0x2b0] sm:$0xff] }
 0x2fd   :  { %3306 = vst [vmem:[#allocation4 + $0x28] sm:$0xff] %v1683_v52  ;;  %v1687_v55 = vadd.f32 %v1686_v54, %v5745_v4  ;;  %2164 = vmatprep.subr.mxu0 %v1927_v7  ;;  %2105 = vmatprep.subr.mxu1 %v1965_v56  ;;  %v1959_v7 = vld [vmem:[%s7334_s9 + $0x2a8] sm:$0xff]  ;;  %v1962_v52 = vld [vmem:[%s7334_s9 + $0x2c0] sm:$0xff]  ;;  %v1961_v54 = vld [vmem:[%s7334_s9 + $0x2b8] sm:$0xff] }
 0x2fe   :  { %v1688_v61 = vpop.f32.mrf.mxu1  ;;  %2165 = vmatpush1.msra.mxu0 %v1926_v11  ;;  %2106 = vmatpush2.msra.mxu1 %v1964_v50  ;;  %v1955_v11 = vld [vmem:[%s7334_s9 + $0x288] sm:$0xff]  ;;  %v1918_v56 = vld [vmem:[%s7334_s9 + $0x160] sm:$0xff] }
 0x2ff   :  { %3307 = vst [vmem:[#allocation4 + $0x30] sm:$0xff] %v1687_v55  ;;  %v1689_v57 = vadd.f32 %v1688_v61, %v5748_v12  ;;  %1836 = vmatmul.mubr.f32.gmra.mxu0 %v1687_v55  ;;  %2166 = vmatprep.subr.mxu0 %v1922_v0  ;;  %v1954_v0 = vld [vmem:[%s7334_s9 + $0x280] sm:$0xff]  ;;  %v1957_v55 = vld [vmem:[%s7334_s9 + $0x298] sm:$0xff]  ;;  %v2442_v61 = vld [vmem:[%s7336_s11 + $0x170] sm:$0xff] }
 0x300   :  { %v1692_v8 = vpop.f32.mrf.mxu1  ;;  %1841 = vmatprep.mubr.f32.mxu0 %v3766_v5  ;;  %2167 = vmatpush1.msra.mxu0 %v1921_v58  ;;  %v1956_v58 = vld [vmem:[%s7334_s9 + $0x290] sm:$0xff] }
 0x301   :  { %3308 = vst [vmem:[#allocation4 + $0x38] sm:$0xff] %v1689_v57  ;;  %v1693_v13 = vadd.f32 %v1692_v8, %v5745_v4  ;;  %2168 = vmatprep.subr.mxu0 %v1917_v63  ;;  %2107 = vmatprep.subr.mxu1 %v1960_v51  ;;  %v1741_v63 = vld [vmem:[%s7333_s8] sm:$0x3] }
 0x302   :  { %v1694_v21 = vpop.f32.mrf.mxu1  ;;  %2169 = vmatpush1.msra.mxu0 %v1916_v2  ;;  %2108 = vmatpush2.msra.mxu1 %v1959_v7  ;;  %v5946_v57 = vrot.slane %v1741_v63, %v5171_v16  ;;  %v5949_v2 = vrot.slane %v1741_v63, %v5179_v23 }
 0x303   :  { %3309 = vst [vmem:[#allocation4 + $0x40] sm:$0xff] %v1693_v13  ;;  %v1695_v26 = vadd.f32 %v1694_v21, %v5748_v12  ;;  %1842 = vmatmul.mubr.f32.gmra.mxu0 %v1693_v13  ;;  %2170 = vmatprep.subr.mxu0 %v1912_v59 }
 0x304   :  { %v1698_v62 = vpop.f32.mrf.mxu1  ;;  %1847 = vmatprep.mubr.f32.mxu0 %v3766_v5  ;;  %2171 = vmatpush1.msra.mxu0 %v1911_v15 }
 0x305   :  { %3310 = vst [vmem:[#allocation4 + $0x48] sm:$0xff] %v1695_v26  ;;  %v1699_v30 = vadd.f32 %v1698_v62, %v5745_v4  ;;  %2172 = vmatprep.subr.mxu0 %v1907_v24  ;;  %2109 = vmatprep.subr.mxu1 %v1955_v11  ;;  %v1953_v62 = vld [vmem:[%s7334_s9 + $0x278] sm:$0xff]  ;;  %v1908_v11 = vld [vmem:[%s7334_s9 + $0x110] sm:$0xff] }
 0x306   :  { %v1700_v17 = vpop.f32.mrf.mxu1  ;;  %2173 = vmatpush1.msra.mxu0 %v1906_v28  ;;  %2110 = vmatpush2.msra.mxu1 %v1954_v0 }
 0x307   :  { %3311 = vst [vmem:[#allocation4 + $0x50] sm:$0xff] %v1699_v30  ;;  %v1701_v35 = vadd.f32 %v1700_v17, %v5748_v12  ;;  %1848 = vmatmul.mubr.f32.gmra.mxu0 %v1699_v30  ;;  %2174 = vmatprep.subr.mxu0 %v1902_v29  ;;  %v2441_v29 = vld [vmem:[%s7336_s11 + $0x168] sm:$0xff]  ;;  %v2439_v17 = vld [vmem:[%s7336_s11 + $0x158] sm:$0xff] }
 0x308   :  { %v1704_v37 = vpop.f32.mrf.mxu1  ;;  %1853 = vmatprep.mubr.f32.mxu0 %v3766_v5  ;;  %2175 = vmatpush1.msra.mxu0 %v1901_v32 }
 0x309   :  { %3312 = vst [vmem:[#allocation4 + $0x58] sm:$0xff] %v1701_v35  ;;  %v1705_v6 = vadd.f32 %v1704_v37, %v5745_v4  ;;  %2176 = vmatprep.subr.mxu0 %v1897_v33  ;;  %v1882_v4 = vld [vmem:[%s7334_s9 + $0x40] sm:$0xff]  ;;  %2261 = vmatprep.subr.mxu1 %v3766_v5  ;;  %v1948_v35 = vld [vmem:[%s7334_s9 + $0x250] sm:$0xff] }
 0x30a   :  { %v1706_v43 = vpop.f32.mrf.mxu1  ;;  %2177 = vmatpush1.msra.mxu0 %v1896_v36 }
 0x30b   :  { %3313 = vst [vmem:[#allocation4 + $0x60] sm:$0xff] %v1705_v6  ;;  %v1707_v27 = vadd.f32 %v1706_v43, %v5748_v12  ;;  %1854 = vmatmul.mubr.f32.gmra.mxu0 %v1705_v6  ;;  %2178 = vmatprep.subr.mxu0 %v1892_v40  ;;  %v1877_v12 = vld [vmem:[%s7334_s9 + $0x18] sm:$0xff]  ;;  %v1943_v43 = vld [vmem:[%s7334_s9 + $0x228] sm:$0xff] }
 0x30c   :  { %2179 = vmatpush1.msra.mxu0 %v1891_v41 }
 0x30d   :  { %3314 = vst [vmem:[#allocation4 + $0x68] sm:$0xff] %v1707_v27  ;;  %2180 = vmatprep.subr.mxu0 %v1887_v1  ;;  %v2438_v1 = vld [vmem:[%s7336_s11 + $0x150] sm:$0xff] }
 0x30e   :  { %2181 = vmatpush1.msra.mxu0 %v1886_v10 }
 0x30f   :  { %2182 = vmatprep.subr.mxu0 %v1882_v4  ;;  %v1938_v4 = vld [vmem:[%s7334_s9 + $0x200] sm:$0xff] }
 0x310   :  { %2183 = vmatpush1.msra.mxu0 %v1881_v20 }
 0x311   :  { %2184 = vmatprep.subr.mxu0 %v1877_v12 }
 0x312   :  { %2185 = vmatpush1.msra.mxu0 %v1876_v34 }
 0x313   :  { %2200 = vmatprep.subr.mxu0 %v1997_v47 }
 0x314   :  { %2201 = vmatpush2.msra.mxu0 %v1996_v38  ;;  %v1933_v38 = vld [vmem:[%s7334_s9 + $0x1d8] sm:$0xff] }
 0x315   :  { %2202 = vmatprep.subr.mxu0 %v1992_v31 }
 0x316   :  { %2203 = vmatpush2.msra.mxu0 %v1991_v18 }
 0x317   :  { %2204 = vmatprep.subr.mxu0 %v1987_v19  ;;  %v1928_v19 = vld [vmem:[%s7334_s9 + $0x1b0] sm:$0xff] }
 0x318   :  { %2205 = vmatpush2.msra.mxu0 %v1986_v22 }
 0x319   :  { %2206 = vmatprep.subr.mxu0 %v1982_v25 }
 0x31a   :  { %2207 = vmatpush2.msra.mxu0 %v1981_v46 }
 0x31b   :  { %2208 = vmatprep.subr.mxu0 %v1977_v45 }
 0x31c   :  { %2209 = vmatpush2.msra.mxu0 %v1976_v48  ;;  %v1923_v48 = vld [vmem:[%s7334_s9 + $0x188] sm:$0xff] }
 0x31d   :  { %2210 = vmatprep.subr.mxu0 %v1972_v42 }
 0x31e   :  { %2211 = vmatpush2.msra.mxu0 %v1971_v3 }
 0x31f   :  { %2212 = vmatprep.subr.mxu0 %v1967_v60 }
 0x320   :  { %2213 = vmatpush2.msra.mxu0 %v1966_v53  ;;  %v1913_v53 = vld [vmem:[%s7334_s9 + $0x138] sm:$0xff] }
 0x321   :  { %2214 = vmatprep.subr.mxu0 %v1962_v52 }
 0x322   :  { %2215 = vmatpush2.msra.mxu0 %v1961_v54 }
 0x323   :  { %2216 = vmatprep.subr.mxu0 %v1957_v55 }
 0x324   :  { %2217 = vmatpush2.msra.mxu0 %v1956_v58 }
 0x325   :  { %2659 = vmatprep.subr.mxu0 %v2442_v61  ;;  %v1903_v61 = vld [vmem:[%s7334_s9 + $0xe8] sm:$0xff] }
 0x3b3   :  { %v1819_v8 = vpop.f32.mrf.mxu0 }
 0x3b4   :  { %v1820_v59 = vadd.f32 %v1819_v8, %v5946_v57  ;;  %v1893_v8 = vld [vmem:[%s7334_s9 + $0x98] sm:$0xff] }
 0x3b5   :  { %v1821_v13 = vpop.f32.mrf.mxu0 }
 0x3b6   :  { %v1822_v15 = vadd.f32 %v1821_v13, %v5949_v2  ;;  %v5955_v26 = vmax.f32 %v1820_v59, 0.0  ;;  %v1888_v59 = vld [vmem:[%s7334_s9 + $0x70] sm:$0xff]  ;;  %v2436_v13 = vld [vmem:[%s7336_s11 + $0x140] sm:$0xff] }
 0x3b7   :  { %v1825_v21 = vpop.f32.mrf.mxu0 }
 0x3b8   :  { %v5953_v24 = vmax.f32 %v1822_v15, 0.0  ;;  %v1826_v30 = vadd.f32 %v1825_v21, %v5946_v57  ;;  %v2435_v15 = vld [vmem:[%s7336_s11 + $0x138] sm:$0xff]  ;;  %v1883_v21 = vld [vmem:[%s7334_s9 + $0x48] sm:$0xff] }
 0x3b9   :  { %v1827_v28 = vpop.f32.mrf.mxu0 }
 0x3ba   :  { %v1828_v32 = vadd.f32 %v1827_v28, %v5949_v2  ;;  %3361 = vmatprep.mubr.msk.f32.mxu1 %vm1580_vm2, %v5953_v24  ;;  %3368 = vmatprep.mubr.msk.f32.mxu0 %vm1580_vm2, %v5953_v24  ;;  %v5980_v40 = vmax.f32 %v1826_v30, 0.0  ;;  %v2433_v28 = vld [vmem:[%s7336_s11 + $0x128] sm:$0xff] }
 0x3bb   :  { %v1831_v33 = vpop.f32.mrf.mxu0  ;;  %2112 = vmatmul.mubr.f32.vlgmr.msra.gmra.mxu1 %v5955_v26  ;;  %2219 = vmatmul.mubr.f32.vlgmr.msra.gmra.mxu0 %v5955_v26  ;;  %v2429_v30 = vld [vmem:[%s7336_s11 + $0x108] sm:$0xff] }
 0x3bc   :  { %v5977_v36 = vmax.f32 %v1828_v32, 0.0  ;;  %2262 = vmatpush1.msra.mxu1 %v1953_v62  ;;  %2660 = vmatpush1.msra.mxu0 %v2441_v29  ;;  %v1832_v6 = vadd.f32 %v1831_v33, %v5946_v57  ;;  %v2432_v62 = vld [vmem:[%s7336_s11 + $0x120] sm:$0xff]  ;;  %v2430_v29 = vld [vmem:[%s7336_s11 + $0x110] sm:$0xff] }
 0x3bd   :  { %2263 = vmatprep.subr.mxu1 %v3766_v5  ;;  %v1833_v37 = vpop.f32.mrf.mxu0  ;;  %2661 = vmatprep.subr.mxu0 %v2439_v17  ;;  %v1998_v32 = vld [vmem:[%s7334_s9 + $0x3e0] sm:$0xff]  ;;  %v2427_v17 = vld [vmem:[%s7336_s11 + $0xf8] sm:$0xff]  ;;  %v2426_v33 = vld [vmem:[%s7336_s11 + $0xf0] sm:$0xff] }
 0x3be   :  { %v1834_v41 = vadd.f32 %v1833_v37, %v5949_v2  ;;  %2264 = vmatpush1.msra.mxu1 %v1948_v35  ;;  %3362 = vmatprep.mubr.msk.f32.mxu1 %vm1580_vm2, %v5977_v36  ;;  %v6002_v12 = vmax.f32 %v1832_v6, 0.0  ;;  %v1993_v35 = vld [vmem:[%s7334_s9 + $0x3b8] sm:$0xff]  ;;  %v2424_v37 = vld [vmem:[%s7336_s11 + $0xe0] sm:$0xff] }
 0x3bf   :  { %3369 = vmatprep.mubr.msk.f32.mxu0 %vm1580_vm2, %v5977_v36  ;;  %2265 = vmatprep.subr.mxu1 %v3766_v5  ;;  %v1837_v27 = vpop.f32.mrf.mxu0  ;;  %v2423_v6 = vld [vmem:[%s7336_s11 + $0xd8] sm:$0xff] }
 0x3c0   :  { %v5995_v10 = vmax.f32 %v1834_v41, 0.0  ;;  %2118 = vmatmul.mubr.f32.gmra.mxu1 %v5980_v40  ;;  %2225 = vmatmul.mubr.f32.gmra.mxu0 %v5980_v40  ;;  %v1838_v34 = vadd.f32 %v1837_v27, %v5946_v57  ;;  %v1988_v41 = vld [vmem:[%s7334_s9 + $0x390] sm:$0xff]  ;;  %v1983_v27 = vld [vmem:[%s7334_s9 + $0x368] sm:$0xff] }
 0x3c1   :  { %2266 = vmatpush1.msra.mxu1 %v1943_v43  ;;  %v1839_v20 = vpop.f32.mrf.mxu0  ;;  %2662 = vmatpush1.msra.mxu0 %v2438_v1  ;;  %v2421_v43 = vld [vmem:[%s7336_s11 + $0xc8] sm:$0xff]  ;;  %v2420_v1 = vld [vmem:[%s7336_s11 + $0xc0] sm:$0xff] }
 0x3c2   :  { %2267 = vmatprep.subr.mxu1 %v3766_v5  ;;  %v1840_v47 = vadd.f32 %v1839_v20, %v5949_v2  ;;  %3363 = vmatprep.mubr.msk.f32.mxu1 %vm1580_vm2, %v5995_v10  ;;  %v6022_v25 = vmax.f32 %v1838_v34, 0.0  ;;  %v2417_v20 = vld [vmem:[%s7336_s11 + $0xa8] sm:$0xff]  ;;  %v1978_v34 = vld [vmem:[%s7334_s9 + $0x340] sm:$0xff] }
 0x3c3   :  { %2268 = vmatpush1.msra.mxu1 %v1938_v4  ;;  %3370 = vmatprep.mubr.msk.f32.mxu0 %vm1580_vm2, %v5995_v10  ;;  %v1843_v31 = vpop.f32.mrf.mxu0  ;;  %v2418_v4 = vld [vmem:[%s7336_s11 + $0xb0] sm:$0xff] }
 0x3c4   :  { %v6014_v18 = vmax.f32 %v1840_v47, 0.0  ;;  %2269 = vmatprep.subr.mxu1 %v3766_v5  ;;  %2124 = vmatmul.mubr.f32.gmra.mxu1 %v6002_v12  ;;  %v1844_v46 = vadd.f32 %v1843_v31, %v5946_v57  ;;  %v2415_v47 = vld [vmem:[%s7336_s11 + $0x98] sm:$0xff] }
 0x3c5   :  { %2231 = vmatmul.mubr.f32.gmra.mxu0 %v6002_v12  ;;  %2270 = vmatpush1.msra.mxu1 %v1933_v38  ;;  %v1845_v22 = vpop.f32.mrf.mxu0  ;;  %v2414_v38 = vld [vmem:[%s7336_s11 + $0x90] sm:$0xff]  ;;  %v1973_v31 = vld [vmem:[%s7334_s9 + $0x318] sm:$0xff] }
 0x3c6   :  { %2271 = vmatprep.subr.mxu1 %v3766_v5  ;;  %v1846_v45 = vadd.f32 %v1845_v22, %v5949_v2  ;;  %3364 = vmatprep.mubr.msk.f32.mxu1 %vm1580_vm2, %v6014_v18  ;;  %v6042_v50 = vmax.f32 %v1844_v46, 0.0  ;;  %v2411_v22 = vld [vmem:[%s7336_s11 + $0x78] sm:$0xff]  ;;  %v1968_v46 = vld [vmem:[%s7334_s9 + $0x2f0] sm:$0xff] }
 0x3c7   :  { %2272 = vmatpush1.msra.mxu1 %v1928_v19  ;;  %3371 = vmatprep.mubr.msk.f32.mxu0 %vm1580_vm2, %v6014_v18  ;;  %v1849_v49 = vpop.f32.mrf.mxu0  ;;  %v2412_v19 = vld [vmem:[%s7336_s11 + $0x80] sm:$0xff] }
 0x3c8   :  { %v6034_v42 = vmax.f32 %v1846_v45, 0.0  ;;  %2273 = vmatprep.subr.mxu1 %v3766_v5  ;;  %2130 = vmatmul.mubr.f32.gmra.mxu1 %v6022_v25  ;;  %v1850_v60 = vadd.f32 %v1849_v49, %v5946_v57  ;;  %v2409_v45 = vld [vmem:[%s7336_s11 + $0x68] sm:$0xff] }
 0x3c9   :  { %2237 = vmatmul.mubr.f32.gmra.mxu0 %v6022_v25  ;;  %2274 = vmatpush1.msra.mxu1 %v1923_v48  ;;  %v1851_v3 = vpop.f32.mrf.mxu0  ;;  %v2408_v48 = vld [vmem:[%s7336_s11 + $0x60] sm:$0xff]  ;;  %v1963_v49 = vld [vmem:[%s7334_s9 + $0x2c8] sm:$0xff] }
 0x3ca   :  { %2275 = vmatprep.subr.mxu1 %v3766_v5  ;;  %v1852_v51 = vadd.f32 %v1851_v3, %v5949_v2  ;;  %3365 = vmatprep.mubr.msk.f32.mxu1 %vm1580_vm2, %v6034_v42  ;;  %v6062_v0 = vmax.f32 %v1850_v60, 0.0  ;;  %v2405_v3 = vld [vmem:[%s7336_s11 + $0x48] sm:$0xff]  ;;  %v1958_v60 = vld [vmem:[%s7334_s9 + $0x2a0] sm:$0xff] }
 0x3cb   :  { %2276 = vmatpush1.msra.mxu1 %v1918_v56  ;;  %3372 = vmatprep.mubr.msk.f32.mxu0 %vm1580_vm2, %v6034_v42  ;;  %v1855_v7 = vpop.f32.mrf.mxu0  ;;  %v2406_v56 = vld [vmem:[%s7336_s11 + $0x50] sm:$0xff] }
 0x3cc   :  { %v6054_v52 = vmax.f32 %v1852_v51, 0.0  ;;  %2277 = vmatprep.subr.mxu1 %v3766_v5  ;;  %2136 = vmatmul.mubr.f32.gmra.mxu1 %v6042_v50  ;;  %v1856_v55 = vadd.f32 %v1855_v7, %v5946_v57  ;;  %v1898_v57 = vld [vmem:[%s7334_s9 + $0xc0] sm:$0xff]  ;;  %v2403_v51 = vld [vmem:[%s7336_s11 + $0x38] sm:$0xff]  ;;  %v2537_v7 = vld [vmem:[%s7336_s11 + $0x468] sm:$0xff] }
 0x3cd   :  { %2243 = vmatmul.mubr.f32.gmra.mxu0 %v6042_v50  ;;  %2278 = vmatpush1.msra.mxu1 %v1913_v53  ;;  %v1857_v54 = vpop.f32.mrf.mxu0  ;;  %v2538_v53 = vld [vmem:[%s7336_s11 + $0x470] sm:$0xff] }
 0x3ce   :  { %2279 = vmatprep.subr.mxu1 %v3766_v5  ;;  %v1858_v58 = vadd.f32 %v1857_v54, %v5949_v2  ;;  %3366 = vmatprep.mubr.msk.f32.mxu1 %vm1580_vm2, %v6054_v52  ;;  %v6082_v2 = vmax.f32 %v1856_v55, 0.0  ;;  %v2402_v54 = vld [vmem:[%s7336_s11 + $0x30] sm:$0xff] }
 0x3cf   :  { %2280 = vmatpush1.msra.mxu1 %v1908_v11  ;;  %3373 = vmatprep.mubr.msk.f32.mxu0 %vm1580_vm2, %v6054_v52  ;;  %v2535_v11 = vld [vmem:[%s7336_s11 + $0x458] sm:$0xff]  ;;  %v2534_v55 = vld [vmem:[%s7336_s11 + $0x450] sm:$0xff] }
 0x3d0   :  { %v6074_v63 = vmax.f32 %v1858_v58, 0.0  ;;  %2281 = vmatprep.subr.mxu1 %v3766_v5  ;;  %2142 = vmatmul.mubr.f32.gmra.mxu1 %v6062_v0  ;;  %v2400_v58 = vld [vmem:[%s7336_s11 + $0x20] sm:$0xff] }
 0x3d1   :  { %2249 = vmatmul.mubr.f32.gmra.mxu0 %v6062_v0  ;;  %2282 = vmatpush1.msra.mxu1 %v1903_v61  ;;  %v2532_v61 = vld [vmem:[%s7336_s11 + $0x440] sm:$0xff] }
 0x3d2   :  { %2283 = vmatprep.subr.mxu1 %v3766_v5  ;;  %3367 = vmatprep.mubr.msk.f32.mxu1 %vm1580_vm2, %v6074_v63 }
 0x3d3   :  { %2284 = vmatpush1.msra.mxu1 %v1898_v57  ;;  %3374 = vmatprep.mubr.msk.f32.mxu0 %vm1580_vm2, %v6074_v63  ;;  %v2529_v57 = vld [vmem:[%s7336_s11 + $0x428] sm:$0xff] }
 0x3d4   :  { %2285 = vmatprep.subr.mxu1 %v3766_v5  ;;  %2148 = vmatmul.mubr.f32.gmra.mxu1 %v6082_v2 }
 0x3d5   :  { %2255 = vmatmul.mubr.f32.gmra.mxu0 %v6082_v2  ;;  %2286 = vmatpush1.msra.mxu1 %v1893_v8  ;;  %v2528_v8 = vld [vmem:[%s7336_s11 + $0x420] sm:$0xff] }
 0x3d6   :  { %2287 = vmatprep.subr.mxu1 %v3766_v5  ;;  %3375 = vmatprep.mubr.msk.f32.mxu1 %vm1580_vm2, %v5953_v24  ;;  %v1878_v24 = vld [vmem:[%s7334_s9 + $0x20] sm:$0xff] }
 0x3d7   :  { %2288 = vmatpush1.msra.mxu1 %v1888_v59  ;;  %2663 = vmatprep.subr.mxu0 %v2436_v13  ;;  %v2397_v59 = vld [vmem:[%s7336_s11 + $0x8] sm:$0xff]  ;;  %v2526_v13 = vld [vmem:[%s7336_s11 + $0x410] sm:$0xff] }
 0x3d8   :  { %2289 = vmatprep.subr.mxu1 %v3766_v5  ;;  %2664 = vmatpush1.msra.mxu0 %v2435_v15  ;;  %v2523_v15 = vld [vmem:[%s7336_s11 + $0x3f8] sm:$0xff] }
 0x3d9   :  { %2290 = vmatpush1.msra.mxu1 %v1883_v21  ;;  %2665 = vmatprep.subr.mxu0 %v2433_v28  ;;  %v2522_v21 = vld [vmem:[%s7336_s11 + $0x3f0] sm:$0xff] }
 0x3da   :  { %2291 = vmatprep.subr.mxu1 %v3766_v5  ;;  %2666 = vmatpush1.msra.mxu0 %v2432_v62  ;;  %v2490_v28 = vld [vmem:[%s7336_s11 + $0x2f0] sm:$0xff]  ;;  %v2520_v62 = vld [vmem:[%s7336_s11 + $0x3e0] sm:$0xff] }
 0x3db   :  { %2292 = vmatpush1.msra.mxu1 %v1878_v24  ;;  %2667 = vmatprep.subr.mxu0 %v2430_v29  ;;  %v2517_v24 = vld [vmem:[%s7336_s11 + $0x3c8] sm:$0xff]  ;;  %v2516_v29 = vld [vmem:[%s7336_s11 + $0x3c0] sm:$0xff] }
 0x3dc   :  { %2307 = vmatprep.subr.mxu1 %v3766_v5  ;;  %2668 = vmatpush1.msra.mxu0 %v2429_v30  ;;  %v2487_v30 = vld [vmem:[%s7336_s11 + $0x2d8] sm:$0xff] }
 0x3dd   :  { %2308 = vmatpush2.msra.mxu1 %v1998_v32  ;;  %2669 = vmatprep.subr.mxu0 %v2427_v17  ;;  %v2514_v32 = vld [vmem:[%s7336_s11 + $0x3b0] sm:$0xff]  ;;  %v2511_v17 = vld [vmem:[%s7336_s11 + $0x398] sm:$0xff] }
 0x3de   :  { %2309 = vmatprep.subr.mxu1 %v3766_v5  ;;  %2670 = vmatpush1.msra.mxu0 %v2426_v33  ;;  %v2510_v33 = vld [vmem:[%s7336_s11 + $0x390] sm:$0xff] }
 0x3df   :  { %2310 = vmatpush2.msra.mxu1 %v1993_v35  ;;  %2671 = vmatprep.subr.mxu0 %v2424_v37  ;;  %v2484_v35 = vld [vmem:[%s7336_s11 + $0x2c0] sm:$0xff] }
 0x3e0   :  { %2311 = vmatprep.subr.mxu1 %v3766_v5  ;;  %2672 = vmatpush1.msra.mxu0 %v2423_v6  ;;  %v2508_v37 = vld [vmem:[%s7336_s11 + $0x380] sm:$0xff]  ;;  %v2505_v6 = vld [vmem:[%s7336_s11 + $0x368] sm:$0xff] }
 0x3e1   :  { %2312 = vmatpush2.msra.mxu1 %v1988_v41  ;;  %2673 = vmatprep.subr.mxu0 %v2421_v43  ;;  %v2504_v41 = vld [vmem:[%s7336_s11 + $0x360] sm:$0xff]  ;;  %v2481_v43 = vld [vmem:[%s7336_s11 + $0x2a8] sm:$0xff] }
 0x3e2   :  { %2313 = vmatprep.subr.mxu1 %v3766_v5  ;;  %2674 = vmatpush1.msra.mxu0 %v2420_v1  ;;  %v2502_v1 = vld [vmem:[%s7336_s11 + $0x350] sm:$0xff] }
 0x3e3   :  { %2314 = vmatpush2.msra.mxu1 %v1983_v27  ;;  %2675 = vmatprep.subr.mxu0 %v2418_v4  ;;  %v2480_v27 = vld [vmem:[%s7336_s11 + $0x2a0] sm:$0xff]  ;;  %v2478_v4 = vld [vmem:[%s7336_s11 + $0x290] sm:$0xff] }
 0x3e4   :  { %2315 = vmatprep.subr.mxu1 %v3766_v5  ;;  %2676 = vmatpush1.msra.mxu0 %v2417_v20  ;;  %v2498_v20 = vld [vmem:[%s7336_s11 + $0x330] sm:$0xff] }
 0x3e5   :  { %2316 = vmatpush2.msra.mxu1 %v1978_v34  ;;  %2677 = vmatprep.subr.mxu0 %v2415_v47  ;;  %v2477_v34 = vld [vmem:[%s7336_s11 + $0x288] sm:$0xff]  ;;  %v2496_v47 = vld [vmem:[%s7336_s11 + $0x320] sm:$0xff] }
 0x3e6   :  { %2317 = vmatprep.subr.mxu1 %v3766_v5  ;;  %2678 = vmatpush1.msra.mxu0 %v2414_v38  ;;  %v2475_v38 = vld [vmem:[%s7336_s11 + $0x278] sm:$0xff] }
 0x3e7   :  { %2318 = vmatpush2.msra.mxu1 %v1973_v31  ;;  %2679 = vmatprep.subr.mxu0 %v2412_v19  ;;  %v2474_v31 = vld [vmem:[%s7336_s11 + $0x270] sm:$0xff]  ;;  %v2493_v19 = vld [vmem:[%s7336_s11 + $0x308] sm:$0xff] }
 0x3e8   :  { %2319 = vmatprep.subr.mxu1 %v3766_v5  ;;  %2680 = vmatpush1.msra.mxu0 %v2411_v22  ;;  %v2472_v22 = vld [vmem:[%s7336_s11 + $0x260] sm:$0xff] }
 0x3e9   :  { %2320 = vmatpush2.msra.mxu1 %v1968_v46  ;;  %2681 = vmatprep.subr.mxu0 %v2409_v45  ;;  %v2492_v46 = vld [vmem:[%s7336_s11 + $0x300] sm:$0xff]  ;;  %v2471_v45 = vld [vmem:[%s7336_s11 + $0x258] sm:$0xff] }
 0x3ea   :  { %2321 = vmatprep.subr.mxu1 %v3766_v5  ;;  %2682 = vmatpush1.msra.mxu0 %v2408_v48  ;;  %v2586_v48 = vld [vmem:[%s7336_s11 + $0x5f0] sm:$0xff] }
 0x3eb   :  { %2322 = vmatpush2.msra.mxu1 %v1963_v49  ;;  %2683 = vmatprep.subr.mxu0 %v2406_v56  ;;  %v2469_v49 = vld [vmem:[%s7336_s11 + $0x248] sm:$0xff] }
 0x3ec   :  { %2323 = vmatprep.subr.mxu1 %v3766_v5  ;;  %2684 = vmatpush1.msra.mxu0 %v2405_v3  ;;  %v2585_v56 = vld [vmem:[%s7336_s11 + $0x5e8] sm:$0xff]  ;;  %v2468_v3 = vld [vmem:[%s7336_s11 + $0x240] sm:$0xff] }
 0x3ed   :  { %2324 = vmatpush2.msra.mxu1 %v1958_v60  ;;  %2685 = vmatprep.subr.mxu0 %v2403_v51  ;;  %v2583_v60 = vld [vmem:[%s7336_s11 + $0x5d8] sm:$0xff]  ;;  %v2466_v51 = vld [vmem:[%s7336_s11 + $0x230] sm:$0xff] }
 0x3ee   :  { %2326 = vmatmul.mubr.f32.vlgmr.msra.gmra.mxu1 %v5955_v26  ;;  %2766 = vmatprep.subr.mxu1 %v2538_v53  ;;  %v2531_v26 = vld [vmem:[%s7336_s11 + $0x438] sm:$0xff]  ;;  %v2582_v53 = vld [vmem:[%s7336_s11 + $0x5d0] sm:$0xff] }
 0x3ef   :  { %3376 = vmatprep.mubr.msk.f32.mxu1 %vm1580_vm2, %v5977_v36  ;;  %2767 = vmatpush1.msra.mxu1 %v2537_v7  ;;  %v2399_v36 = vld [vmem:[%s7336_s11 + $0x18] sm:$0xff]  ;;  %v2465_v7 = vld [vmem:[%s7336_s11 + $0x228] sm:$0xff] }
 0x3f0   :  { %2768 = vmatprep.subr.mxu1 %v2535_v11  ;;  %2686 = vmatpush1.msra.mxu0 %v2402_v54  ;;  %v2580_v11 = vld [vmem:[%s7336_s11 + $0x5c0] sm:$0xff]  ;;  %v2463_v54 = vld [vmem:[%s7336_s11 + $0x218] sm:$0xff] }
 0x3f1   :  { %2769 = vmatpush1.msra.mxu1 %v2534_v55  ;;  %2687 = vmatprep.subr.mxu0 %v2400_v58  ;;  %v2579_v55 = vld [vmem:[%s7336_s11 + $0x5b8] sm:$0xff]  ;;  %v2462_v58 = vld [vmem:[%s7336_s11 + $0x210] sm:$0xff] }
 0x3f2   :  { %2331 = vmatmul.mubr.f32.gmra.mxu1 %v5980_v40  ;;  %2770 = vmatprep.subr.mxu1 %v2532_v61  ;;  %v2525_v40 = vld [vmem:[%s7336_s11 + $0x408] sm:$0xff] }
 0x3f3   :  { %3377 = vmatprep.mubr.msk.f32.mxu1 %vm1580_vm2, %v5995_v10  ;;  %2771 = vmatpush1.msra.mxu1 %v2531_v26  ;;  %v2396_v10 = vld [vmem:[%s7336_s11] sm:$0xff]  ;;  %v2577_v61 = vld [vmem:[%s7336_s11 + $0x5a8] sm:$0xff] }
 0x3f4   :  { %2772 = vmatprep.subr.mxu1 %v2529_v57  ;;  %2688 = vmatpush1.msra.mxu0 %v2399_v36  ;;  %v2460_v26 = vld [vmem:[%s7336_s11 + $0x200] sm:$0xff]  ;;  %v2459_v36 = vld [vmem:[%s7336_s11 + $0x1f8] sm:$0xff] }
 0x3f5   :  { %2773 = vmatpush1.msra.mxu1 %v2528_v8  ;;  %2689 = vmatprep.subr.mxu0 %v2397_v59  ;;  %v2576_v57 = vld [vmem:[%s7336_s11 + $0x5a0] sm:$0xff]  ;;  %v2574_v8 = vld [vmem:[%s7336_s11 + $0x590] sm:$0xff]  ;;  %v2457_v59 = vld [vmem:[%s7336_s11 + $0x1e8] sm:$0xff] }
 0x3f6   :  { %2336 = vmatmul.mubr.f32.gmra.mxu1 %v6002_v12  ;;  %2774 = vmatprep.subr.mxu1 %v2526_v13  ;;  %v2519_v12 = vld [vmem:[%s7336_s11 + $0x3d8] sm:$0xff]  ;;  %v2573_v13 = vld [vmem:[%s7336_s11 + $0x588] sm:$0xff] }
 0x3f7   :  { %3378 = vmatprep.mubr.msk.f32.mxu1 %vm1580_vm2, %v6014_v18  ;;  %2775 = vmatpush1.msra.mxu1 %v2525_v40  ;;  %v2489_v18 = vld [vmem:[%s7336_s11 + $0x2e8] sm:$0xff]  ;;  %v2456_v40 = vld [vmem:[%s7336_s11 + $0x1e0] sm:$0xff] }
 0x3f8   :  { %2776 = vmatprep.subr.mxu1 %v2523_v15  ;;  %2690 = vmatpush1.msra.mxu0 %v2396_v10  ;;  %v2571_v15 = vld [vmem:[%s7336_s11 + $0x578] sm:$0xff]  ;;  %v2454_v10 = vld [vmem:[%s7336_s11 + $0x1d0] sm:$0xff] }
 0x3f9   :  { %2777 = vmatpush1.msra.mxu1 %v2522_v21  ;;  %2691 = vmatprep.subr.mxu0 %v2490_v28  ;;  %v2570_v21 = vld [vmem:[%s7336_s11 + $0x570] sm:$0xff]  ;;  %v2453_v28 = vld [vmem:[%s7336_s11 + $0x1c8] sm:$0xff] }
 0x3fa   :  { %2341 = vmatmul.mubr.f32.gmra.mxu1 %v6022_v25  ;;  %2778 = vmatprep.subr.mxu1 %v2520_v62  ;;  %v2513_v25 = vld [vmem:[%s7336_s11 + $0x3a8] sm:$0xff]  ;;  %v2568_v62 = vld [vmem:[%s7336_s11 + $0x560] sm:$0xff] }
 0x3fb   :  { %3379 = vmatprep.mubr.msk.f32.mxu1 %vm1580_vm2, %v6034_v42  ;;  %2779 = vmatpush1.msra.mxu1 %v2519_v12  ;;  %v2486_v42 = vld [vmem:[%s7336_s11 + $0x2d0] sm:$0xff]  ;;  %v2451_v12 = vld [vmem:[%s7336_s11 + $0x1b8] sm:$0xff] }
 0x3fc   :  { %2780 = vmatprep.subr.mxu1 %v2517_v24  ;;  %2692 = vmatpush2.msra.mxu0 %v2489_v18  ;;  %v2567_v24 = vld [vmem:[%s7336_s11 + $0x558] sm:$0xff]  ;;  %v2450_v18 = vld [vmem:[%s7336_s11 + $0x1b0] sm:$0xff] }
 0x3fd   :  { %2781 = vmatpush1.msra.mxu1 %v2516_v29  ;;  %2693 = vmatprep.subr.mxu0 %v2487_v30  ;;  %v2565_v29 = vld [vmem:[%s7336_s11 + $0x548] sm:$0xff]  ;;  %v2448_v30 = vld [vmem:[%s7336_s11 + $0x1a0] sm:$0xff] }
 0x3fe   :  { %2346 = vmatmul.mubr.f32.gmra.mxu1 %v6042_v50  ;;  %2782 = vmatprep.subr.mxu1 %v2514_v32  ;;  %v2507_v50 = vld [vmem:[%s7336_s11 + $0x378] sm:$0xff]  ;;  %v2564_v32 = vld [vmem:[%s7336_s11 + $0x540] sm:$0xff] }
 0x3ff   :  { %3380 = vmatprep.mubr.msk.f32.mxu1 %vm1580_vm2, %v6054_v52  ;;  %2783 = vmatpush1.msra.mxu1 %v2513_v25  ;;  %v2483_v52 = vld [vmem:[%s7336_s11 + $0x2b8] sm:$0xff] }
 0x400   :  { %2784 = vmatprep.subr.mxu1 %v2511_v17  ;;  %2694 = vmatpush2.msra.mxu0 %v2486_v42  ;;  %v2447_v25 = vld [vmem:[%s7336_s11 + $0x198] sm:$0xff]  ;;  %v2562_v17 = vld [vmem:[%s7336_s11 + $0x530] sm:$0xff]  ;;  %v2445_v42 = vld [vmem:[%s7336_s11 + $0x188] sm:$0xff] }
 0x401   :  { %2785 = vmatpush1.msra.mxu1 %v2510_v33  ;;  %2695 = vmatprep.subr.mxu0 %v2484_v35  ;;  %v2561_v33 = vld [vmem:[%s7336_s11 + $0x528] sm:$0xff]  ;;  %v2444_v35 = vld [vmem:[%s7336_s11 + $0x180] sm:$0xff] }
 0x402   :  { %2351 = vmatmul.mubr.f32.gmra.mxu1 %v6062_v0  ;;  %2786 = vmatprep.subr.mxu1 %v2508_v37  ;;  %v2501_v0 = vld [vmem:[%s7336_s11 + $0x348] sm:$0xff]  ;;  %v2559_v37 = vld [vmem:[%s7336_s11 + $0x518] sm:$0xff] }
 0x403   :  { %3381 = vmatprep.mubr.msk.f32.mxu1 %vm1580_vm2, %v6074_v63  ;;  %2787 = vmatpush1.msra.mxu1 %v2507_v50  ;;  %v2499_v63 = vld [vmem:[%s7336_s11 + $0x338] sm:$0xff] }
 0x404   :  { %2788 = vmatprep.subr.mxu1 %v2505_v6  ;;  %2696 = vmatpush2.msra.mxu0 %v2483_v52  ;;  %v2619_v50 = vld [vmem:[%s7336_s11 + $0x6f8] sm:$0xff]  ;;  %v2558_v6 = vld [vmem:[%s7336_s11 + $0x510] sm:$0xff]  ;;  %v2556_v52 = vld [vmem:[%s7336_s11 + $0x500] sm:$0xff] }
 0x405   :  { %2789 = vmatpush1.msra.mxu1 %v2504_v41  ;;  %2697 = vmatprep.subr.mxu0 %v2481_v43  ;;  %v2555_v41 = vld [vmem:[%s7336_s11 + $0x4f8] sm:$0xff]  ;;  %v2553_v43 = vld [vmem:[%s7336_s11 + $0x4e8] sm:$0xff] }
 0x406   :  { %2356 = vmatmul.mubr.f32.gmra.mxu1 %v6082_v2  ;;  %2790 = vmatprep.subr.mxu1 %v2502_v1  ;;  %v2495_v2 = vld [vmem:[%s7336_s11 + $0x318] sm:$0xff]  ;;  %v2552_v1 = vld [vmem:[%s7336_s11 + $0x4e0] sm:$0xff] }
 0x407   :  { %2791 = vmatpush1.msra.mxu1 %v2501_v0  ;;  %2698 = vmatpush2.msra.mxu0 %v2480_v27  ;;  %v2550_v0 = vld [vmem:[%s7336_s11 + $0x4d0] sm:$0xff]  ;;  %v2549_v27 = vld [vmem:[%s7336_s11 + $0x4c8] sm:$0xff] }
 0x408   :  { %2792 = vmatprep.subr.mxu1 %v2499_v63  ;;  %2699 = vmatprep.subr.mxu0 %v2478_v4  ;;  %v2547_v63 = vld [vmem:[%s7336_s11 + $0x4b8] sm:$0xff]  ;;  %v2546_v4 = vld [vmem:[%s7336_s11 + $0x4b0] sm:$0xff] }
 0x409   :  { %2793 = vmatpush1.msra.mxu1 %v2498_v20  ;;  %2700 = vmatpush2.msra.mxu0 %v2477_v34  ;;  %v2544_v20 = vld [vmem:[%s7336_s11 + $0x4a0] sm:$0xff]  ;;  %v2543_v34 = vld [vmem:[%s7336_s11 + $0x498] sm:$0xff] }
 0x40a   :  { %2794 = vmatprep.subr.mxu1 %v2496_v47  ;;  %2701 = vmatprep.subr.mxu0 %v2475_v38  ;;  %v2541_v47 = vld [vmem:[%s7336_s11 + $0x488] sm:$0xff]  ;;  %v2540_v38 = vld [vmem:[%s7336_s11 + $0x480] sm:$0xff] }
 0x40b   :  { %2795 = vmatpush1.msra.mxu1 %v2495_v2  ;;  %2702 = vmatpush2.msra.mxu0 %v2474_v31  ;;  %v2587_v2 = vld [vmem:[%s7336_s11 + $0x5f8] sm:$0xff]  ;;  %v6545_v31 = vld [vmem:[%s7335_s10] sm:$0x1f] }
 0x40c   :  { %2796 = vmatprep.subr.mxu1 %v2493_v19  ;;  %2703 = vmatprep.subr.mxu0 %v2472_v22  ;;  %v6549_v19 = vrot.slane %v6545_v31, %v5171_v16  ;;  %v6553_v22 = vrot.slane %v6545_v31, %v5267_v9 }
 0x40d   :  { %2797 = vmatpush1.msra.mxu1 %v2492_v46  ;;  %2704 = vmatpush2.msra.mxu0 %v2471_v45  ;;  %v6557_v46 = vrot.slane %v6545_v31, %v5179_v23  ;;  %v6562_v45 = vrot.slane %v6545_v31, %v325_v14 }
 0x40e   :  { %2798 = vmatprep.subr.mxu1 %v2586_v48  ;;  %2705 = vmatprep.subr.mxu0 %v2469_v49 }
 0x40f   :  { %2799 = vmatpush2.msra.mxu1 %v2585_v56  ;;  %2706 = vmatpush2.msra.mxu0 %v2468_v3 }
 0x410   :  { %2800 = vmatprep.subr.mxu1 %v2583_v60  ;;  %2707 = vmatprep.subr.mxu0 %v2466_v51 }
 0x411   :  { %2801 = vmatpush2.msra.mxu1 %v2582_v53  ;;  %2708 = vmatpush2.msra.mxu0 %v2465_v7 }
 0x412   :  { %2802 = vmatprep.subr.mxu1 %v2580_v11  ;;  %2709 = vmatprep.subr.mxu0 %v2463_v54 }
 0x413   :  { %2803 = vmatpush2.msra.mxu1 %v2579_v55  ;;  %2710 = vmatpush2.msra.mxu0 %v2462_v58 }
 0x414   :  { %2804 = vmatprep.subr.mxu1 %v2577_v61  ;;  %2711 = vmatprep.subr.mxu0 %v2460_v26  ;;  %v2539_v26 = vld [vmem:[%s7336_s11 + $0x478] sm:$0xff] }
 0x415   :  { %2805 = vmatpush2.msra.mxu1 %v2576_v57  ;;  %2712 = vmatpush2.msra.mxu0 %v2459_v36  ;;  %v2618_v57 = vld [vmem:[%s7336_s11 + $0x6f0] sm:$0xff] }
 0x416   :  { %2806 = vmatprep.subr.mxu1 %v2574_v8  ;;  %2713 = vmatprep.subr.mxu0 %v2457_v59 }
 0x417   :  { %2807 = vmatpush2.msra.mxu1 %v2573_v13  ;;  %2714 = vmatpush2.msra.mxu0 %v2456_v40  ;;  %v2584_v13 = vld [vmem:[%s7336_s11 + $0x5e0] sm:$0xff] }
 0x418   :  { %2808 = vmatprep.subr.mxu1 %v2571_v15  ;;  %2715 = vmatprep.subr.mxu0 %v2454_v10  ;;  %v2616_v40 = vld [vmem:[%s7336_s11 + $0x6e0] sm:$0xff] }
 0x419   :  { %2809 = vmatpush2.msra.mxu1 %v2570_v21  ;;  %2716 = vmatpush2.msra.mxu0 %v2453_v28  ;;  %v2536_v28 = vld [vmem:[%s7336_s11 + $0x460] sm:$0xff] }
 0x41a   :  { %2810 = vmatprep.subr.mxu1 %v2568_v62  ;;  %2717 = vmatprep.subr.mxu0 %v2451_v12  ;;  %v2615_v62 = vld [vmem:[%s7336_s11 + $0x6d8] sm:$0xff] }
 0x41b   :  { %2811 = vmatpush2.msra.mxu1 %v2567_v24  ;;  %2718 = vmatpush2.msra.mxu0 %v2450_v18 }
 0x41c   :  { %2812 = vmatprep.subr.mxu1 %v2565_v29  ;;  %2719 = vmatprep.subr.mxu0 %v2448_v30  ;;  %v2581_v30 = vld [vmem:[%s7336_s11 + $0x5c8] sm:$0xff] }
 0x41d   :  { %2813 = vmatpush2.msra.mxu1 %v2564_v32  ;;  %2720 = vmatpush2.msra.mxu0 %v2447_v25 }
 0x41e   :  { %2814 = vmatprep.subr.mxu1 %v2562_v17  ;;  %2721 = vmatprep.subr.mxu0 %v2445_v42  ;;  %v2613_v17 = vld [vmem:[%s7336_s11 + $0x6c8] sm:$0xff] }
 0x41f   :  { %2815 = vmatpush2.msra.mxu1 %v2561_v33  ;;  %2722 = vmatpush2.msra.mxu0 %v2444_v35 }
 0x420   :  { %2816 = vmatprep.subr.mxu1 %v2559_v37  ;;  %2883 = vmatprep.subr.mxu0 %v2619_v50  ;;  %v2533_v50 = vld [vmem:[%s7336_s11 + $0x448] sm:$0xff] }
 0x421   :  { %2817 = vmatpush2.msra.mxu1 %v2558_v6  ;;  %v2612_v6 = vld [vmem:[%s7336_s11 + $0x6c0] sm:$0xff] }
 0x422   :  { %2818 = vmatprep.subr.mxu1 %v2556_v52 }
 0x423   :  { %2819 = vmatpush2.msra.mxu1 %v2555_v41 }
 0x424   :  { %2820 = vmatprep.subr.mxu1 %v2553_v43 }
 0x425   :  { %2821 = vmatpush2.msra.mxu1 %v2552_v1  ;;  %v2578_v1 = vld [vmem:[%s7336_s11 + $0x5b0] sm:$0xff] }
 0x426   :  { %2822 = vmatprep.subr.mxu1 %v2550_v0 }
 0x427   :  { %2823 = vmatpush2.msra.mxu1 %v2549_v27 }
 0x428   :  { %2824 = vmatprep.subr.mxu1 %v2547_v63  ;;  %v2530_v63 = vld [vmem:[%s7336_s11 + $0x430] sm:$0xff] }
 0x429   :  { %2825 = vmatpush2.msra.mxu1 %v2546_v4 }
 0x42a   :  { %2826 = vmatprep.subr.mxu1 %v2544_v20 }
 0x42b   :  { %2827 = vmatpush2.msra.mxu1 %v2543_v34  ;;  %v2575_v34 = vld [vmem:[%s7336_s11 + $0x598] sm:$0xff] }
 0x42c   :  { %2828 = vmatprep.subr.mxu1 %v2541_v47 }
 0x42d   :  { %2829 = vmatpush2.msra.mxu1 %v2540_v38 }
 0x42e   :  { %3525 = vmatprep.subr.mxu1 %v2587_v2 }
 0x47b   :  { %v2113_v48 = vpop.f32.mrf.mxu1  ;;  %v2220_v49 = vpop.f32.mrf.mxu0 }
 0x47c   :  { %v6565_v56 = vadd.f32 %v2113_v48, %v6549_v19  ;;  %v6568_v3 = vadd.f32 %v2220_v49, %v6553_v22  ;;  %v2610_v49 = vld [vmem:[%s7336_s11 + $0x6b0] sm:$0xff] }
 0x47d   :  { %v2115_v60 = vpop.f32.mrf.mxu1  ;;  %v2222_v51 = vpop.f32.mrf.mxu0 }
 0x47e   :  { %v6571_v53 = vadd.f32 %v2115_v60, %v6557_v46  ;;  %v6574_v7 = vadd.f32 %v2222_v51, %v6562_v45  ;;  %v2361_v58 = vmax.f32 %v6565_v56, 0.0  ;;  %v2363_v61 = vmax.f32 %v6568_v3, 0.0  ;;  %v2591_v3 = vld [vmem:[%s7336_s11 + $0x618] sm:$0xff] }
 0x480   :  { %v2362_v11 = vmax.f32 %v6571_v53, 0.0  ;;  %v2364_v14 = vmax.f32 %v6574_v7, 0.0  ;;  %v2119_v54 = vpop.f32.mrf.mxu1  ;;  %v2226_v55 = vpop.f32.mrf.mxu0  ;;  %v2542_v7 = vld [vmem:[%s7336_s11 + $0x490] sm:$0xff] }
 0x481   :  { %v6587_v36 = vadd.f32 %v2119_v54, %v6549_v19  ;;  %v6600_v15 = vadd.f32 %v2226_v55, %v6553_v22 }
 0x482   :  { %v2121_v8 = vpop.f32.mrf.mxu1  ;;  %v2228_v59 = vpop.f32.mrf.mxu0  ;;  %2723 = vmatprep.mubr.f32.mxu0 %v2362_v11  ;;  %2830 = vmatprep.mubr.f32.mxu1 %v2364_v14 }
 0x483   :  { %v6603_v10 = vadd.f32 %v2121_v8, %v6557_v46  ;;  %v6606_v21 = vadd.f32 %v2228_v59, %v6562_v45  ;;  %2724 = vmatmul.mubr.f32.vlgmr.msra.gmra.mxu0 %v2361_v58  ;;  %2831 = vmatmul.mubr.f32.vlgmr.msra.gmra.mxu1 %v2363_v61  ;;  %v2366_v32 = vmax.f32 %v6587_v36, 0.0  ;;  %v2368_v42 = vmax.f32 %v6600_v15, 0.0  ;;  %v2572_v59 = vld [vmem:[%s7336_s11 + $0x580] sm:$0xff]  ;;  %v2491_v15 = vld [vmem:[%s7336_s11 + $0x2f8] sm:$0xff] }
 0x484   :  { %v2125_v12 = vpop.f32.mrf.mxu1  ;;  %3526 = vmatpush3.msra.mxu1 %v2539_v26  ;;  %2884 = vmatpush1.msra.mxu0 %v2618_v57  ;;  %v2527_v26 = vld [vmem:[%s7336_s11 + $0x418] sm:$0xff] }
 0x485   :  { %v2367_v24 = vmax.f32 %v6603_v10, 0.0  ;;  %v2369_v18 = vmax.f32 %v6606_v21, 0.0  ;;  %v2232_v29 = vpop.f32.mrf.mxu0  ;;  %3527 = vmatprep.subr.mxu1 %v2584_v13  ;;  %2885 = vmatprep.subr.mxu0 %v2616_v40  ;;  %v6629_v33 = vadd.f32 %v2125_v12, %v6549_v19  ;;  %v2589_v21 = vld [vmem:[%s7336_s11 + $0x608] sm:$0xff] }
 0x486   :  { %v2127_v25 = vpop.f32.mrf.mxu1  ;;  %3528 = vmatpush3.msra.mxu1 %v2536_v28  ;;  %2886 = vmatpush1.msra.mxu0 %v2615_v62  ;;  %v6645_v52 = vadd.f32 %v2232_v29, %v6553_v22  ;;  %v2524_v28 = vld [vmem:[%s7336_s11 + $0x400] sm:$0xff] }
 0x487   :  { %v6632_v35 = vadd.f32 %v2127_v25, %v6557_v46  ;;  %v2234_v37 = vpop.f32.mrf.mxu0  ;;  %2729 = vmatprep.mubr.f32.mxu0 %v2367_v24  ;;  %2836 = vmatprep.mubr.f32.mxu1 %v2369_v18  ;;  %v7344_v47 = vmax.f32 %v6629_v33, 0.0  ;;  %v2569_v25 = vld [vmem:[%s7336_s11 + $0x568] sm:$0xff]  ;;  %v7348_v56 = vmax.f32 %v6629_v33, 0.0 }
 0x488   :  { %v6648_v41 = vadd.f32 %v2234_v37, %v6562_v45  ;;  %3529 = vmatprep.subr.mxu1 %v2581_v30  ;;  %v2131_v43 = vpop.f32.mrf.mxu1  ;;  %2730 = vmatmul.mubr.f32.gmra.mxu0 %v2366_v32  ;;  %v2373_v60 = vmax.f32 %v6645_v52, 0.0 }
 0x489   :  { %v7345_v0 = vmax.f32 %v6632_v35, 0.0  ;;  %v2238_v27 = vpop.f32.mrf.mxu0  ;;  %2837 = vmatmul.mubr.f32.gmra.mxu1 %v2368_v42  ;;  %2887 = vmatprep.subr.mxu0 %v2613_v17  ;;  %v6667_v38 = vadd.f32 %v2131_v43, %v6549_v19  ;;  %v2521_v43 = vld [vmem:[%s7336_s11 + $0x3e8] sm:$0xff]  ;;  %v7347_v53 = vmax.f32 %v6632_v35, 0.0 }
 0x48a   :  { %v2374_v4 = vmax.f32 %v6648_v41, 0.0  ;;  %3530 = vmatpush3.msra.mxu1 %v2533_v50  ;;  %v2133_v20 = vpop.f32.mrf.mxu1  ;;  %2888 = vmatpush1.msra.mxu0 %v2612_v6  ;;  %v6679_v51 = vadd.f32 %v2238_v27, %v6553_v22 }
 0x48b   :  { %3531 = vmatprep.subr.mxu1 %v2578_v1  ;;  %v6670_v2 = vadd.f32 %v2133_v20, %v6557_v46  ;;  %v2240_v48 = vpop.f32.mrf.mxu0  ;;  %2735 = vmatprep.mubr.f32.mxu0 %v7345_v0  ;;  %v7341_v62 = vmax.f32 %v6667_v38, 0.0 }
 0x48c   :  { %v6682_v54 = vadd.f32 %v2240_v48, %v6562_v45  ;;  %3532 = vmatpush3.msra.mxu1 %v2530_v63  ;;  %2842 = vmatprep.mubr.f32.mxu1 %v2374_v4  ;;  %v2137_v55 = vpop.f32.mrf.mxu1  ;;  %v2378_v17 = vmax.f32 %v6679_v51, 0.0  ;;  %v2566_v63 = vld [vmem:[%s7336_s11 + $0x550] sm:$0xff]  ;;  %v2440_v51 = vld [vmem:[%s7336_s11 + $0x160] sm:$0xff] }
 0x48d   :  { %v7343_v57 = vmax.f32 %v6670_v2, 0.0  ;;  %3533 = vmatprep.subr.mxu1 %v2575_v34  ;;  %v2244_v8 = vpop.f32.mrf.mxu0  ;;  %2736 = vmatmul.mubr.f32.gmra.mxu0 %v7344_v47  ;;  %v6703_v12 = vadd.f32 %v2137_v55, %v6549_v19  ;;  %v2518_v48 = vld [vmem:[%s7336_s11 + $0x3d0] sm:$0xff] }
 0x48e   :  { %v2379_v13 = vmax.f32 %v6682_v54, 0.0  ;;  %2843 = vmatmul.mubr.f32.gmra.mxu1 %v2373_v60  ;;  %v2139_v40 = vpop.f32.mrf.mxu1  ;;  %2889 = vmatprep.subr.mxu0 %v2610_v49  ;;  %v6715_v37 = vadd.f32 %v2244_v8, %v6553_v22  ;;  %v6941_v54 = vld [vmem:[%s7336_s11 + $0x6d0] sm:$0xff] }
 0x48f   :  { %3534 = vmatpush3.msra.mxu1 %v2527_v26  ;;  %v6706_v29 = vadd.f32 %v2139_v40, %v6557_v46  ;;  %v2246_v30 = vpop.f32.mrf.mxu0  ;;  %2741 = vmatprep.mubr.f32.mxu0 %v7343_v57  ;;  %v7342_v49 = vmax.f32 %v6703_v12, 0.0  ;;  %v7352_v10 = vmax.f32 %v6703_v12, 0.0 }
 0x490   :  { %3535 = vmatprep.subr.mxu1 %v2572_v59  ;;  %v6718_v50 = vadd.f32 %v2246_v30, %v6562_v45  ;;  %2848 = vmatprep.mubr.f32.mxu1 %v2379_v13  ;;  %v2143_v6 = vpop.f32.mrf.mxu1  ;;  %v2563_v59 = vld [vmem:[%s7336_s11 + $0x538] sm:$0xff]  ;;  %v2383_v40 = vmax.f32 %v6715_v37, 0.0  ;;  %v2482_v37 = vld [vmem:[%s7336_s11 + $0x2b0] sm:$0xff] }
 0x491   :  { %v7340_v1 = vmax.f32 %v6706_v29, 0.0  ;;  %3536 = vmatpush3.msra.mxu1 %v2524_v28  ;;  %v2250_v27 = vpop.f32.mrf.mxu0  ;;  %2742 = vmatmul.mubr.f32.gmra.mxu0 %v7341_v62  ;;  %v6739_v55 = vadd.f32 %v2143_v6, %v6549_v19  ;;  %v2515_v6 = vld [vmem:[%s7336_s11 + $0x3b8] sm:$0xff]  ;;  %v7351_v36 = vmax.f32 %v6706_v29, 0.0 }
 0x492   :  { %v2384_v20 = vmax.f32 %v6718_v50, 0.0  ;;  %3537 = vmatprep.subr.mxu1 %v2569_v25  ;;  %2849 = vmatmul.mubr.f32.gmra.mxu1 %v2378_v17  ;;  %v2145_v34 = vpop.f32.mrf.mxu1  ;;  %v6751_v28 = vadd.f32 %v2250_v27, %v6553_v22  ;;  %v2560_v27 = vld [vmem:[%s7336_s11 + $0x520] sm:$0xff]  ;;  %v2485_v50 = vld [vmem:[%s7336_s11 + $0x2c8] sm:$0xff] }
 0x493   :  { %3538 = vmatpush3.msra.mxu1 %v2521_v43  ;;  %v6742_v26 = vadd.f32 %v2145_v34, %v6557_v46  ;;  %v2252_v8 = vpop.f32.mrf.mxu0  ;;  %2747 = vmatprep.mubr.f32.mxu0 %v7340_v1  ;;  %v2512_v1 = vld [vmem:[%s7336_s11 + $0x3a0] sm:$0xff] }
 0x494   :  { %3539 = vmatprep.subr.mxu1 %v2566_v63  ;;  %v6754_v30 = vadd.f32 %v2252_v8, %v6562_v45  ;;  %2854 = vmatprep.mubr.f32.mxu1 %v2384_v20  ;;  %v2149_v25 = vpop.f32.mrf.mxu1  ;;  %v2388_v47 = vmax.f32 %v6751_v28, 0.0 }
 0x495   :  { %v2387_v43 = vmax.f32 %v6742_v26, 0.0  ;;  %3540 = vmatpush3.msra.mxu1 %v2518_v48  ;;  %v2256_v34 = vpop.f32.mrf.mxu0  ;;  %2748 = vmatmul.mubr.f32.gmra.mxu0 %v7342_v49  ;;  %v2386_v48 = vmax.f32 %v6739_v55, 0.0  ;;  %v6775_v62 = vadd.f32 %v2149_v25, %v6549_v19 }
 0x496   :  { %v2389_v63 = vmax.f32 %v6754_v30, 0.0  ;;  %3541 = vmatprep.subr.mxu1 %v2563_v59  ;;  %2855 = vmatmul.mubr.f32.gmra.mxu1 %v2383_v40  ;;  %v2151_v8 = vpop.f32.mrf.mxu1  ;;  %v2557_v59 = vld [vmem:[%s7336_s11 + $0x508] sm:$0xff]  ;;  %v6787_v0 = vadd.f32 %v2256_v34, %v6553_v22  ;;  %v2554_v22 = vld [vmem:[%s7336_s11 + $0x4f0] sm:$0xff] }
 0x497   :  { %3542 = vmatpush3.msra.mxu1 %v2515_v6  ;;  %v6778_v49 = vadd.f32 %v2151_v8, %v6557_v46  ;;  %v2258_v57 = vpop.f32.mrf.mxu0  ;;  %2753 = vmatprep.mubr.f32.mxu0 %v2387_v43  ;;  %v2509_v46 = vld [vmem:[%s7336_s11 + $0x388] sm:$0xff]  ;;  %v7346_v6 = vmax.f32 %v6775_v62, 0.0  ;;  %v2548_v8 = vld [vmem:[%s7336_s11 + $0x4c0] sm:$0xff]  ;;  %v2434_v30 = vld [vmem:[%s7336_s11 + $0x130] sm:$0xff] }
 0x498   :  { %3543 = vmatprep.subr.mxu1 %v2560_v27  ;;  %v6790_v19 = vadd.f32 %v2258_v57, %v6562_v45  ;;  %2860 = vmatprep.mubr.f32.mxu1 %v2389_v63  ;;  %v2506_v57 = vld [vmem:[%s7336_s11 + $0x370] sm:$0xff]  ;;  %v2393_v34 = vmax.f32 %v6787_v0, 0.0  ;;  %v2503_v27 = vld [vmem:[%s7336_s11 + $0x358] sm:$0xff]  ;;  %v2425_v0 = vld [vmem:[%s7336_s11 + $0xe8] sm:$0xff] }
 0x499   :  { %v2392_v25 = vmax.f32 %v6778_v49, 0.0  ;;  %3544 = vmatpush3.msra.mxu1 %v2512_v1  ;;  %2754 = vmatmul.mubr.f32.gmra.mxu0 %v2386_v48  ;;  %v2551_v1 = vld [vmem:[%s7336_s11 + $0x4d8] sm:$0xff] }
 0x49a   :  { %v2394_v45 = vmax.f32 %v6790_v19, 0.0  ;;  %3545 = vmatprep.subr.mxu1 %v2557_v59  ;;  %2861 = vmatmul.mubr.f32.gmra.mxu1 %v2388_v47  ;;  %v2609_v59 = vld [vmem:[%s7336_s11 + $0x6a8] sm:$0xff]  ;;  %v2476_v19 = vld [vmem:[%s7336_s11 + $0x280] sm:$0xff] }
 0x49b   :  { %3546 = vmatpush3.msra.mxu1 %v2509_v46  ;;  %2759 = vmatprep.mubr.f32.mxu0 %v2392_v25  ;;  %v2500_v46 = vld [vmem:[%s7336_s11 + $0x340] sm:$0xff] }
 0x49c   :  { %3547 = vmatprep.subr.mxu1 %v2554_v22  ;;  %2866 = vmatprep.mubr.f32.mxu1 %v2394_v45  ;;  %v2607_v22 = vld [vmem:[%s7336_s11 + $0x698] sm:$0xff] }
 0x49d   :  { %3548 = vmatpush3.msra.mxu1 %v2506_v57  ;;  %2760 = vmatmul.mubr.f32.gmra.mxu0 %v7346_v6  ;;  %v2545_v57 = vld [vmem:[%s7336_s11 + $0x4a8] sm:$0xff] }
 0x49e   :  { %3549 = vmatprep.subr.mxu1 %v2551_v1  ;;  %2867 = vmatmul.mubr.f32.gmra.mxu1 %v2393_v34  ;;  %v2606_v1 = vld [vmem:[%s7336_s11 + $0x690] sm:$0xff]  ;;  %v2497_v6 = vld [vmem:[%s7336_s11 + $0x328] sm:$0xff] }
 0x49f   :  { %3550 = vmatpush3.msra.mxu1 %v2503_v27  ;;  %3144 = vmatprep.mubr.f32.mxu1 %v2364_v14  ;;  %v2604_v27 = vld [vmem:[%s7336_s11 + $0x680] sm:$0xff]  ;;  %v2603_v14 = vld [vmem:[%s7336_s11 + $0x678] sm:$0xff] }
 0x4a0   :  { %3551 = vmatprep.subr.mxu1 %v2548_v8  ;;  %2890 = vmatpush1.msra.mxu0 %v2609_v59  ;;  %v2494_v8 = vld [vmem:[%s7336_s11 + $0x310] sm:$0xff]  ;;  %v2601_v59 = vld [vmem:[%s7336_s11 + $0x668] sm:$0xff] }
 0x4a1   :  { %3552 = vmatpush3.msra.mxu1 %v2500_v46  ;;  %2891 = vmatprep.subr.mxu0 %v2607_v22  ;;  %v2600_v46 = vld [vmem:[%s7336_s11 + $0x660] sm:$0xff]  ;;  %v2598_v22 = vld [vmem:[%s7336_s11 + $0x650] sm:$0xff] }
 0x4a2   :  { %3553 = vmatprep.subr.mxu1 %v2545_v57  ;;  %2892 = vmatpush1.msra.mxu0 %v2606_v1  ;;  %v2597_v57 = vld [vmem:[%s7336_s11 + $0x648] sm:$0xff]  ;;  %v2594_v1 = vld [vmem:[%s7336_s11 + $0x630] sm:$0xff] }
 0x4a3   :  { %3554 = vmatpush3.msra.mxu1 %v2497_v6  ;;  %2893 = vmatprep.subr.mxu0 %v2604_v27  ;;  %v2595_v6 = vld [vmem:[%s7336_s11 + $0x638] sm:$0xff]  ;;  %v2592_v27 = vld [vmem:[%s7336_s11 + $0x620] sm:$0xff] }
 0x4a4   :  { %3555 = vmatprep.subr.mxu1 %v2542_v7  ;;  %2894 = vmatpush1.msra.mxu0 %v2603_v14  ;;  %v2588_v7 = vld [vmem:[%s7336_s11 + $0x600] sm:$0xff] }
 0x4a5   :  { %3556 = vmatpush3.msra.mxu1 %v2494_v8  ;;  %2895 = vmatprep.subr.mxu0 %v2601_v59  ;;  %v2437_v8 = vld [vmem:[%s7336_s11 + $0x148] sm:$0xff]  ;;  %v6968_v59 = vld [vmem:[%s7336_s11 + $0x6b8] sm:$0xff] }
 0x4a6   :  { %3145 = vmatmul.mubr.f32.vlgmr.msra.gmra.mxu1 %v2363_v61  ;;  %2896 = vmatpush1.msra.mxu0 %v2600_v46  ;;  %v6893_v61 = vld [vmem:[%s7336_s11 + $0x700] sm:$0xff] }
 0x4a7   :  { %3149 = vmatprep.mubr.f32.mxu1 %v2369_v18  ;;  %2897 = vmatprep.subr.mxu0 %v2598_v22  ;;  %v6905_v18 = vrot.slane %v6545_v31, %v329_v39 }
 0x4a8   :  { %2898 = vmatpush1.msra.mxu0 %v2597_v57  ;;  %3692 = vmatprep.subr.mxu1 %v3766_v5  ;;  %v2479_v57 = vld [vmem:[%s7336_s11 + $0x298] sm:$0xff] }
 0x4a9   :  { %2899 = vmatprep.subr.mxu0 %v2595_v6  ;;  %2937 = vmatprep.mubr.f32.mxu0 %v3766_v5  ;;  %v6995_v6 = vld [vmem:[%s7336_s11 + $0x6a0] sm:$0xff] }
 0x4aa   :  { %3150 = vmatmul.mubr.f32.gmra.mxu1 %v2368_v42  ;;  %2900 = vmatpush1.msra.mxu0 %v2594_v1 }
 0x4ab   :  { %3154 = vmatprep.mubr.f32.mxu1 %v2374_v4  ;;  %2901 = vmatprep.subr.mxu0 %v2592_v27  ;;  %v2443_v4 = vld [vmem:[%s7336_s11 + $0x178] sm:$0xff]  ;;  %v2428_v27 = vld [vmem:[%s7336_s11 + $0x100] sm:$0xff] }
 0x4ac   :  { %2902 = vmatpush1.msra.mxu0 %v2591_v3  ;;  %3703 = vmatpush3.msra.mxu1 %v6893_v61 }
 0x4ad   :  { %2903 = vmatprep.subr.mxu0 %v2589_v21  ;;  %3693 = vmatprep.subr.mxu1 %v3766_v5 }
 0x4ae   :  { %3155 = vmatmul.mubr.f32.gmra.mxu1 %v2373_v60  ;;  %v2327_v39 = vpop.f32.mrf.mxu1  ;;  %2904 = vmatpush1.msra.mxu0 %v2588_v7  ;;  %v2488_v60 = vld [vmem:[%s7336_s11 + $0x2e0] sm:$0xff]  ;;  %v2473_v7 = vld [vmem:[%s7336_s11 + $0x268] sm:$0xff] }
 0x4af   :  { %3159 = vmatprep.mubr.f32.mxu1 %v2379_v13  ;;  %v6925_v31 = vadd.f32 %v2327_v39, %v6905_v18  ;;  %3472 = vmatprep.subr.mxu0 %v2491_v15  ;;  %v7036_v39 = vld [vmem:[%s7336_s11 + $0x670] sm:$0xff] }
 0x4b0   :  { %v2329_v42 = vpop.f32.mrf.mxu1  ;;  %3704 = vmatpush3.msra.mxu1 %v6918_v44 }
 0x4b1   :  { %v2365_v41 = vmax.f32 %v6925_v31, 0.0  ;;  %3694 = vmatprep.subr.mxu1 %v3766_v5 }
 0x4b2   :  { %3160 = vmatmul.mubr.f32.gmra.mxu1 %v2378_v17  ;;  %v2332_v52 = vpop.f32.mrf.mxu1 }
 0x4b3   :  { %3164 = vmatprep.mubr.f32.mxu1 %v2384_v20  ;;  %v6946_v13 = vadd.f32 %v2332_v52, %v6905_v18  ;;  %3382 = vmatmul.mubr.msk.f32.vlgmr.msra.gmra.mxu0 %vm1161_vm1, %v2365_v41 }
 0x4b4   :  { %3473 = vmatpush3.msra.mxu0 %v2443_v4  ;;  %v2334_v17 = vpop.f32.mrf.mxu1  ;;  %2943 = vmatprep.mubr.f32.mxu0 %v3766_v5  ;;  %v7049_v4 = vld [vmem:[%s7336_s11 + $0x658] sm:$0xff] }
 0x4b5   :  { %v2370_v20 = vmax.f32 %v6946_v13, 0.0  ;;  %3474 = vmatprep.subr.mxu0 %v2488_v60  ;;  %3705 = vmatpush3.msra.mxu1 %v6941_v54  ;;  %v2422_v60 = vld [vmem:[%s7336_s11 + $0xd0] sm:$0xff]  ;;  %v2467_v17 = vld [vmem:[%s7336_s11 + $0x238] sm:$0xff] }
 0x4b6   :  { %3165 = vmatmul.mubr.f32.gmra.mxu1 %v2383_v40  ;;  %3475 = vmatpush3.msra.mxu0 %v2440_v51  ;;  %v2337_v14 = vpop.f32.mrf.mxu1 }
 0x4b7   :  { %3169 = vmatprep.mubr.f32.mxu1 %v2389_v63  ;;  %v6973_v46 = vadd.f32 %v2337_v14, %v6905_v18  ;;  %3476 = vmatprep.subr.mxu0 %v2485_v50  ;;  %v7067_v14 = vld [vmem:[%s7336_s11 + $0x640] sm:$0xff] }
 0x4b8   :  { %3383 = vmatmul.mubr.msk.f32.gmra.mxu0 %vm1161_vm1, %v2370_v20  ;;  %3695 = vmatprep.subr.mxu1 %v3766_v5  ;;  %v2339_v40 = vpop.f32.mrf.mxu1 }
 0x4b9   :  { %3477 = vmatpush3.msra.mxu0 %v2437_v8  ;;  %3706 = vmatpush3.msra.mxu1 %v6968_v59  ;;  %v2375_v63 = vmax.f32 %v6973_v46, 0.0 }
 0x4ba   :  { %3478 = vmatprep.subr.mxu0 %v2482_v37  ;;  %3170 = vmatmul.mubr.f32.gmra.mxu1 %v2388_v47  ;;  %v2342_v22 = vpop.f32.mrf.mxu1  ;;  %v2431_v47 = vld [vmem:[%s7336_s11 + $0x118] sm:$0xff] }
 0x4bb   :  { %3479 = vmatpush3.msra.mxu0 %v2434_v30  ;;  %3174 = vmatprep.mubr.f32.mxu1 %v2394_v45  ;;  %v7000_v1 = vadd.f32 %v2342_v22, %v6905_v18  ;;  %v7014_v45 = vld [vmem:[%s7336_s11 + $0x688] sm:$0xff]  ;;  %v2419_v37 = vld [vmem:[%s7336_s11 + $0xb8] sm:$0xff]  ;;  %v2464_v30 = vld [vmem:[%s7336_s11 + $0x220] sm:$0xff] }
 0x4bc   :  { %3696 = vmatprep.subr.mxu1 %v3766_v5  ;;  %2949 = vmatprep.mubr.f32.mxu0 %v3766_v5  ;;  %v2344_v28 = vpop.f32.mrf.mxu1  ;;  %v7081_v22 = vld [vmem:[%s7336_s11 + $0x628] sm:$0xff] }
 0x4bd   :  { %3480 = vmatprep.subr.mxu0 %v2479_v57  ;;  %3707 = vmatpush3.msra.mxu1 %v6995_v6  ;;  %v2380_v21 = vmax.f32 %v7000_v1, 0.0  ;;  %v2416_v57 = vld [vmem:[%s7336_s11 + $0xa0] sm:$0xff]  ;;  %v2461_v28 = vld [vmem:[%s7336_s11 + $0x208] sm:$0xff] }
 0x4be   :  { %3384 = vmatmul.mubr.msk.f32.gmra.mxu0 %vm1161_vm1, %v2375_v63  ;;  %3697 = vmatprep.subr.mxu1 %v3766_v5  ;;  %v2347_v3 = vpop.f32.mrf.mxu1 }
 0x4bf   :  { %3481 = vmatpush3.msra.mxu0 %v2431_v47  ;;  %3175 = vmatmul.mubr.f32.gmra.mxu1 %v2393_v34  ;;  %v7031_v15 = vadd.f32 %v2347_v3, %v6905_v18  ;;  %v2470_v34 = vld [vmem:[%s7336_s11 + $0x250] sm:$0xff] }
 0x4c0   :  { %3482 = vmatprep.subr.mxu0 %v2476_v19  ;;  %3708 = vmatpush3.msra.mxu1 %v7014_v45  ;;  %v2349_v42 = vpop.f32.mrf.mxu1  ;;  %v7099_v3 = vld [vmem:[%s7336_s11 + $0x610] sm:$0xff] }
 0x4c1   :  { %3483 = vmatpush3.msra.mxu0 %v2428_v27  ;;  %3698 = vmatprep.subr.mxu1 %v3766_v5  ;;  %v2385_v51 = vmax.f32 %v7031_v15, 0.0 }
 0x4c2   :  { %2955 = vmatprep.mubr.f32.mxu0 %v3766_v5  ;;  %3484 = vmatprep.subr.mxu0 %v2473_v7  ;;  %v2352_v52 = vpop.f32.mrf.mxu1  ;;  %v2413_v7 = vld [vmem:[%s7336_s11 + $0x88] sm:$0xff] }
 0x4c3   :  { %3709 = vmatpush3.msra.mxu1 %v7036_v39  ;;  %3385 = vmatmul.mubr.msk.f32.gmra.mxu0 %vm1161_vm1, %v2380_v21  ;;  %v2353_v8 = vadd.f32 %v2352_v52, %v6905_v18  ;;  %v2407_v52 = vld [vmem:[%s7336_s11 + $0x58] sm:$0xff] }
 0x4c4   :  { %3485 = vmatpush3.msra.mxu0 %v2425_v0  ;;  %3699 = vmatprep.subr.mxu1 %v3766_v5  ;;  %v2354_v50 = vpop.f32.mrf.mxu1  ;;  %v2410_v0 = vld [vmem:[%s7336_s11 + $0x70] sm:$0xff] }
 0x4c5   :  { %3486 = vmatprep.subr.mxu0 %v2470_v34  ;;  %3710 = vmatpush3.msra.mxu1 %v7049_v4  ;;  %v2390_v19 = vmax.f32 %v2353_v8, 0.0  ;;  %v2455_v34 = vld [vmem:[%s7336_s11 + $0x1d8] sm:$0xff]  ;;  %v2449_v50 = vld [vmem:[%s7336_s11 + $0x1a8] sm:$0xff] }
 0x4c6   :  { %3487 = vmatpush3.msra.mxu0 %v2422_v60  ;;  %3700 = vmatprep.subr.mxu1 %v3766_v5  ;;  %v2357_v40 = vpop.f32.mrf.mxu1  ;;  %v2452_v60 = vld [vmem:[%s7336_s11 + $0x1c0] sm:$0xff]  ;;  %v2401_v8 = vld [vmem:[%s7336_s11 + $0x28] sm:$0xff] }
 0x4c7   :  { %2961 = vmatprep.mubr.f32.mxu0 %v3766_v5  ;;  %3488 = vmatprep.subr.mxu0 %v2467_v17  ;;  %v2358_v27 = vadd.f32 %v2357_v40, %v6905_v18  ;;  %v2458_v18 = vld [vmem:[%s7336_s11 + $0x1f0] sm:$0xff]  ;;  %v2404_v17 = vld [vmem:[%s7336_s11 + $0x40] sm:$0xff] }
 0x4c8   :  { %3711 = vmatpush3.msra.mxu1 %v7067_v14  ;;  %3386 = vmatmul.mubr.msk.f32.gmra.mxu0 %vm1161_vm1, %v2385_v51  ;;  %v2359_v47 = vpop.f32.mrf.mxu1  ;;  %v2398_v40 = vld [vmem:[%s7336_s11 + $0x10] sm:$0xff] }
 0x4c9   :  { %3489 = vmatpush3.msra.mxu0 %v2419_v37  ;;  %3701 = vmatprep.subr.mxu1 %v3766_v5  ;;  %v2395_v42 = vmax.f32 %v2358_v27, 0.0  ;;  %v2446_v37 = vld [vmem:[%s7336_s11 + $0x190] sm:$0xff]  ;;  %s3768_s11 = smov [#allocation4]  }
 0x4ca   :  { %3490 = vmatprep.subr.mxu0 %v2464_v30  ;;  %3712 = vmatpush3.msra.mxu1 %v7081_v22  ;;  %s3332_s22 = sshll.u32 %s3768_s11, 4  ;;  %s3333_s22 = int_to_ptr.vmem [resolvable:$true] %s3332_s22 }
 0x4cb   :  { %3491 = vmatpush3.msra.mxu0 %v2416_v57  ;;  %3702 = vmatprep.subr.mxu1 %v3766_v5  ;;  %s3722_s23 = scalar_lea.vmem %s3333_s22, 1792  ;;  %p3727_p1 = scmp.lt.s32.totalorder %s3333_s22, %s3333_s22 }
 0x4cc   :  { %2967 = vmatprep.mubr.f32.mxu0 %v3766_v5  ;;  %3492 = vmatprep.subr.mxu0 %v2461_v28  ;;  %p3723_p0 = scmp.ne.s32.totalorder %s3333_s22, %s3722_s23  ;;  %p3728_p2 = scmp.lt.s32.totalorder %s3722_s23, %s3722_s23 }
 0x4cd   :  { %3713 = vmatpush3.msra.mxu1 %v7099_v3  ;;  %3686 = vmatprep.mubr.msk.f32.mxu1 %vm3767_vm0, %v3766_v5 }
 0x4ce   :  { %3387 = vmatmul.mubr.msk.f32.gmra.mxu0 %vm1161_vm1, %v2390_v19  ;;  %3687 = vmatmul.mubr.msk.f32.vlgmr.msra.gmra.mxu1 %vm1161_vm1, %v2390_v19  ;;  %p3729_p3 = por %p3728_p2, %p3727_p1 }
 0x4cf   :  { %3493 = vmatpush3.msra.mxu0 %v2413_v7  ;;  %2973 = vmatprep.mubr.f32.mxu0 %v3766_v5 }
 0x4d0   :  { %3494 = vmatprep.subr.mxu0 %v2458_v18  ;;  %3689 = vmatprep.mubr.msk.f32.mxu1 %vm3767_vm0, %v3766_v5  ;;  %p3730_p4 = pnand %p3729_p3, %p3723_p0 }
 0x4d1   :  { %3495 = vmatpush3.msra.mxu0 %v2410_v0 }
 0x4d2   :  { %3496 = vmatprep.subr.mxu0 %v2455_v34  ;;  %3388 = vmatmul.mubr.msk.f32.gmra.mxu0 %vm1161_vm1, %v2395_v42 }
 0x4d3   :  { %3497 = vmatpush3.msra.mxu0 %v2407_v52  ;;  %3690 = vmatmul.mubr.msk.f32.gmra.mxu1 %vm1161_vm1, %v2395_v42 }
 0x4d4   :  { %3498 = vmatprep.subr.mxu0 %v2452_v60  ;;  %3044 = vmatprep.mubr.f32.mxu0 %v2362_v11  ;;  %v7349_v11 = vmax.f32 %v6670_v2, 0.0 }
 0x4d5   :  { %3499 = vmatpush3.msra.mxu0 %v2404_v17 }
 0x4d6   :  { %3500 = vmatprep.subr.mxu0 %v2449_v50 }
 0x4d7   :  { %3501 = vmatpush3.msra.mxu0 %v2401_v8 }
 0x4d8   :  { %3502 = vmatprep.subr.mxu0 %v2446_v37 }
 0x4d9   :  { %3503 = vmatpush3.msra.mxu0 %v2398_v40 }
 0x4da   :  { %3045 = vmatmul.mubr.f32.vlgmr.msra.gmra.mxu0 %v2361_v58  ;;  %3649 = vmatprep.subr.mxu0 %v3766_v5  ;;  %v7350_v58 = vmax.f32 %v6667_v38, 0.0 }
 0x4db   :  { %3049 = vmatprep.mubr.f32.mxu0 %v2367_v24  ;;  %3650 = vmatpush3.msra.mxu0 %v6893_v61  ;;  %v7353_v24 = vmax.f32 %v6775_v62, 0.0 }
 0x4dc   :  { %3651 = vmatprep.subr.mxu0 %v3766_v5 }
 0x4dd   :  { %3652 = vmatpush3.msra.mxu0 %v6918_v44 }
 0x4de   :  { %3050 = vmatmul.mubr.f32.gmra.mxu0 %v2366_v32  ;;  %3653 = vmatprep.subr.mxu0 %v3766_v5 }
 0x4df   :  { %3054 = vmatprep.mubr.f32.mxu0 %v7347_v53  ;;  %3654 = vmatpush3.msra.mxu0 %v6941_v54 }
 0x4e0   :  { %3655 = vmatprep.subr.mxu0 %v3766_v5 }
 0x4e1   :  { %3656 = vmatpush3.msra.mxu0 %v6968_v59 }
 0x4e2   :  { %3055 = vmatmul.mubr.f32.gmra.mxu0 %v7348_v56  ;;  %3657 = vmatprep.subr.mxu0 %v3766_v5 }
 0x4e3   :  { %3059 = vmatprep.mubr.f32.mxu0 %v7349_v11  ;;  %3658 = vmatpush3.msra.mxu0 %v6995_v6 }
 0x4e4   :  { %3659 = vmatprep.subr.mxu0 %v3766_v5 }
 0x4e5   :  { %3660 = vmatpush3.msra.mxu0 %v7014_v45 }
 0x4e6   :  { %3060 = vmatmul.mubr.f32.gmra.mxu0 %v7350_v58  ;;  %3661 = vmatprep.subr.mxu0 %v3766_v5 }
 0x4e7   :  { %3064 = vmatprep.mubr.f32.mxu0 %v7351_v36  ;;  %3662 = vmatpush3.msra.mxu0 %v7036_v39 }
 0x4e8   :  { %3663 = vmatprep.subr.mxu0 %v3766_v5 }
 0x4e9   :  { %3664 = vmatpush3.msra.mxu0 %v7049_v4 }
 0x4ea   :  { %3065 = vmatmul.mubr.f32.gmra.mxu0 %v7352_v10  ;;  %3665 = vmatprep.subr.mxu0 %v3766_v5 }
 0x4eb   :  { %3069 = vmatprep.mubr.f32.mxu0 %v2387_v43  ;;  %3666 = vmatpush3.msra.mxu0 %v7067_v14 }
 0x4ec   :  { %3667 = vmatprep.subr.mxu0 %v3766_v5 }
 0x4ed   :  { %3668 = vmatpush3.msra.mxu0 %v7081_v22 }
 0x4ee   :  { %3070 = vmatmul.mubr.f32.gmra.mxu0 %v2386_v48  ;;  %3669 = vmatprep.subr.mxu0 %v3766_v5 }
 0x4ef   :  { %3074 = vmatprep.mubr.f32.mxu0 %v2392_v25  ;;  %3670 = vmatpush3.msra.mxu0 %v7099_v3 }
 0x4f2   :  { %3075 = vmatmul.mubr.f32.gmra.mxu0 %v7353_v24 }
 0x4f3   :  { %3671 = vmatprep.mubr.msk.f32.mxu0 %vm3767_vm0, %v3766_v5 }
 0x4f6   :  { %3672 = vmatmul.mubr.msk.f32.vlgmr.msra.gmra.mxu0 %vm1161_vm1, %v2365_v41 }
 0x4f7   :  { %3674 = vmatprep.mubr.msk.f32.mxu0 %vm3767_vm0, %v3766_v5 }
 0x4fa   :  { %3675 = vmatmul.mubr.msk.f32.gmra.mxu0 %vm1161_vm1, %v2370_v20 }
 0x4fb   :  { %3677 = vmatprep.mubr.msk.f32.mxu0 %vm3767_vm0, %v3766_v5 }
 0x4fe   :  { %3678 = vmatmul.mubr.msk.f32.gmra.mxu0 %vm1161_vm1, %v2375_v63 }
 0x4ff   :  { %3680 = vmatprep.mubr.msk.f32.mxu0 %vm3767_vm0, %v3766_v5 }
 0x502   :  { %3681 = vmatmul.mubr.msk.f32.gmra.mxu0 %vm1161_vm1, %v2380_v21 }
 0x503   :  { %3683 = vmatprep.mubr.msk.f32.mxu0 %vm3767_vm0, %v3766_v5 }
 0x506   :  { %3684 = vmatmul.mubr.msk.f32.gmra.mxu0 %vm1161_vm1, %v2385_v51 }
 0x543   :  { %v2725_v32 = vpop.f32.mrf.mxu0  ;;  %v2832_v33 = vpop.f32.mrf.mxu1 }
 0x545   :  { %v2727_v35 = vpop.f32.mrf.mxu0  ;;  %v2834_v38 = vpop.f32.mrf.mxu1 }
 0x548   :  { %v2731_v2 = vpop.f32.mrf.mxu0 }
 0x549   :  { %v2838_v62 = vpop.f32.mrf.mxu1 }
 0x54a   :  { %v2733_v12 = vpop.f32.mrf.mxu0 }
 0x54b   :  { %v2840_v29 = vpop.f32.mrf.mxu1 }
 0x54c   :  { %3733 = shalt.err (!%p3730_p4)
}
 0x54d   :  { %s3769_s24 = smov 256   ;;  %s3770_s3 = smov 16   ;;  %v2737_v5 = vpop.f32.mrf.mxu0  ;;  %v7245_v1 = vld [vmem:[%s7337_s12] sm:$0x7] }
 0x54e   :  { %3338 = dma.vmem_to_hbm [thread:$0]  %s3333_s22, 1792, %s7339_s14, [#allocation5], %s3769_s24, %s3769_s24, %s3770_s3   ;;  %v2844_v49 = vpop.f32.mrf.mxu1  ;;  %v7253_v15 = vrot.slane %v7245_v1, %v5171_v16  ;;  %v7259_v4 = vrot.slane %v7245_v1, %v5179_v23 }
 0x54f   :  { %v2739_v26 = vpop.f32.mrf.mxu0  ;;  %s3771_s12 = smov [#allocation2]  }
 0x550   :  { %v2846_v55 = vpop.f32.mrf.mxu1  ;;  %v2726_v30 = vadd.f32 %v2725_v32, %v7253_v15  ;;  %v2728_v57 = vadd.f32 %v2727_v35, %v7259_v4  ;;  %v2732_v23 = vadd.f32 %v2731_v2, %v7253_v15  ;;  %v2734_v42 = vadd.f32 %v2733_v12, %v7259_v4  ;;  %s3320_s27 = sshll.u32 %s3771_s12, 4  ;;  %s3321_s27 = int_to_ptr.vmem [resolvable:$true] %s3320_s27 }
 0x551   :  { %v2743_v25 = vpop.f32.mrf.mxu0  ;;  %v2738_v8 = vadd.f32 %v2737_v5, %v7253_v15  ;;  %v2740_v53 = vadd.f32 %v2739_v26, %v7259_v4  ;;  %s3742_s6 = scalar_lea.vmem %s3321_s27, 2688  ;;  %p3747_p6 = scmp.lt.s32.totalorder %s3321_s27, %s3321_s27 }
 0x552   :  { %v2850_v43 = vpop.f32.mrf.mxu1  ;;  %v2833_v28 = vadd.f32 %v2832_v33, %v2726_v30  ;;  %v2835_v3 = vadd.f32 %v2834_v38, %v2728_v57  ;;  %v2839_v52 = vadd.f32 %v2838_v62, %v2732_v23  ;;  %v2841_v50 = vadd.f32 %v2840_v29, %v2734_v42  ;;  %p3743_p5 = scmp.ne.s32.totalorder %s3321_s27, %s3742_s6  ;;  %p3748_p7 = scmp.lt.s32.totalorder %s3742_s6, %s3742_s6 }
 0x553   :  { %v2745_v31 = vpop.f32.mrf.mxu0  ;;  %v2845_v58 = vadd.f32 %v2844_v49, %v2738_v8  ;;  %v2744_v36 = vadd.f32 %v2743_v25, %v7253_v15  ;;  %v2847_v24 = vadd.f32 %v2846_v55, %v2740_v53 }
 0x554   :  { %v7224_v48 = vpop.f32.mrf.mxu1  ;;  %v2746_v33 = vadd.f32 %v2745_v31, %v7259_v4  ;;  %p3749_p8 = por %p3748_p7, %p3747_p6 }
 0x555   :  { %v2749_v13 = vpop.f32.mrf.mxu0  ;;  %v2851_v62 = vadd.f32 %v2850_v43, %v2744_v36 }
 0x556   :  { %v7226_v61 = vpop.f32.mrf.mxu1  ;;  %v2750_v12 = vadd.f32 %v2749_v13, %v7253_v15  ;;  %v2853_v5 = vadd.f32 %v7224_v48, %v2746_v33  ;;  %p3750_p9 = pnand %p3749_p8, %p3743_p5 }
 0x557   :  { %v2751_v59 = vpop.f32.mrf.mxu0 }
 0x558   :  { %v7228_v44 = vpop.f32.mrf.mxu1  ;;  %v2752_v25 = vadd.f32 %v2751_v59, %v7259_v4  ;;  %v2857_v31 = vadd.f32 %v7226_v61, %v2750_v12 }
 0x559   :  { %v7238_v63 = vpop.f32.mrf.mxu0 }
 0x55a   :  { %v7230_v41 = vpop.f32.mrf.mxu1  ;;  %v2859_v43 = vadd.f32 %v7228_v44, %v2752_v25  ;;  %v2756_v13 = vadd.f32 %v7238_v63, %v7253_v15 }
 0x55b   :  { %v7249_v21 = vpop.f32.mrf.mxu0 }
 0x55c   :  { %v7232_v54 = vpop.f32.mrf.mxu1 }
 0x55d   :  { %v7263_v14 = vpop.f32.mrf.mxu0 }
 0x55e   :  { %v7234_v20 = vpop.f32.mrf.mxu1  ;;  %v2762_v61 = vadd.f32 %v7263_v14, %v7253_v15 }
 0x55f   :  { %v7271_v16 = vpop.f32.mrf.mxu0 }
 0x560   :  { %v7236_v46 = vpop.f32.mrf.mxu1  ;;  %v2764_v63 = vadd.f32 %v7271_v16, %v7259_v4 }
 0x566   :  { %v7240_v6 = vpop.f32.mrf.mxu1 }
 0x568   :  { %v7247_v45 = vpop.f32.mrf.mxu1 }
 0x56a   :  { %v7255_v39 = vpop.f32.mrf.mxu1 }
 0x56c   :  { %v7261_v51 = vpop.f32.mrf.mxu1 }
 0x56e   :  { %v7266_v22 = vpop.f32.mrf.mxu1 }
 0x570   :  { %v7269_v47 = vpop.f32.mrf.mxu1 }
 0x572   :  { %v7273_v19 = vpop.f32.mrf.mxu1 }
 0x573   :  { %v2939_v27 = vpop.f32.mrf.mxu0 }
 0x574   :  { %v7276_v7 = vpop.f32.mrf.mxu1  ;;  %v2940_v18 = vadd.f32 %v2939_v27, %v2833_v28  ;;  %v2758_v27 = vadd.f32 %v7249_v21, %v7259_v4  ;;  %v2869_v21 = vadd.f32 %v7234_v20, %v2762_v61 }
 0x575   :  { %v2941_v0 = vpop.f32.mrf.mxu0 }
 0x576   :  { %3280 = vst [vmem:[#allocation2] sm:$0xff] %v2940_v18  ;;  %v2942_v34 = vadd.f32 %v2941_v0, %v2835_v3  ;;  %v7279_v60 = vpop.f32.mrf.mxu1  ;;  %v2863_v18 = vadd.f32 %v7230_v41, %v2756_v13  ;;  %v2865_v44 = vadd.f32 %v7232_v54, %v2758_v27  ;;  %v2871_v41 = vadd.f32 %v7236_v46, %v2764_v63 }
 0x577   :  { %v2634_v46 = vrot.slane %v7245_v1, %v5267_v9  ;;  %v3562_v1 = vadd.f32 %v7261_v51, %v7255_v39 }
 0x578   :  { %3281 = vst [vmem:[#allocation2 + $0x8] sm:$0xff] %v2942_v34  ;;  %v2945_v17 = vpop.f32.mrf.mxu0  ;;  %v7283_v11 = vpop.f32.mrf.mxu1 }
 0x579   :  { %v2946_v37 = vadd.f32 %v2945_v17, %v2839_v52 }
 0x57a   :  { %v2947_v40 = vpop.f32.mrf.mxu0  ;;  %v7287_v35 = vpop.f32.mrf.mxu1 }
 0x57b   :  { %3283 = vst [vmem:[#allocation2 + $0x18] sm:$0xff] %v2946_v37  ;;  %v2948_v56 = vadd.f32 %v2947_v40, %v2841_v50 }
 0x57c   :  { %v3573_v49 = vpop.f32.mrf.mxu1 }
 0x57d   :  { %3284 = vst [vmem:[#allocation2 + $0x20] sm:$0xff] %v2948_v56  ;;  %v3574_v25 = vadd.f32 %v3573_v49, %v7287_v35 }
 0x57e   :  { %v2951_v10 = vpop.f32.mrf.mxu0 }
 0x57f   :  { %v2952_v32 = vadd.f32 %v2951_v10, %v2845_v58  ;;  %v7293_v57 = vpop.f32.mrf.mxu1 }
 0x580   :  { %v2953_v38 = vpop.f32.mrf.mxu0 }
 0x581   :  { %3286 = vst [vmem:[#allocation2 + $0x30] sm:$0xff] %v2952_v32  ;;  %v2954_v2 = vadd.f32 %v2953_v38, %v2847_v24  ;;  %v3576_v3 = vpop.f32.mrf.mxu1 }
 0x583   :  { %3287 = vst [vmem:[#allocation2 + $0x38] sm:$0xff] %v2954_v2  ;;  %v2957_v29 = vpop.f32.mrf.mxu0 }
 0x584   :  { %v2958_v26 = vadd.f32 %v2957_v29, %v2851_v62 }
 0x585   :  { %v2959_v55 = vpop.f32.mrf.mxu0 }
 0x586   :  { %3289 = vst [vmem:[#allocation2 + $0x48] sm:$0xff] %v2958_v26  ;;  %v2960_v30 = vadd.f32 %v2959_v55, %v2853_v5  ;;  %v3559_v5 = vadd.f32 %v7247_v45, %v7240_v6 }
 0x588   :  { %3290 = vst [vmem:[#allocation2 + $0x50] sm:$0xff] %v2960_v30  ;;  %v2963_v28 = vpop.f32.mrf.mxu0 }
 0x589   :  { %v2964_v23 = vadd.f32 %v2963_v28, %v2857_v31 }
 0x58a   :  { %v2965_v48 = vpop.f32.mrf.mxu0 }
 0x58b   :  { %3292 = vst [vmem:[#allocation2 + $0x60] sm:$0xff] %v2964_v23  ;;  %v2966_v59 = vadd.f32 %v2965_v48, %v2859_v43  ;;  %v3577_v48 = vadd.f32 %v3576_v3, %v7293_v57 }
 0x58d   :  { %3293 = vst [vmem:[#allocation2 + $0x68] sm:$0xff] %v2966_v59 }
 0x58e   :  { %v2969_v42 = vpop.f32.mrf.mxu0  ;;  %v3271_v0 = vpop.f32.mrf.mxu1 }
 0x58f   :  { %v2970_v34 = vadd.f32 %v2969_v42, %v2863_v18 }
 0x590   :  { %v2971_v52 = vpop.f32.mrf.mxu0  ;;  %v3688_v17 = vpop.f32.mrf.mxu1 }
 0x591   :  { %3295 = vst [vmem:[#allocation2 + $0x78] sm:$0xff] %v2970_v34  ;;  %v2972_v50 = vadd.f32 %v2971_v52, %v2865_v44  ;;  %v3565_v44 = vadd.f32 %v7269_v47, %v7266_v22  ;;  %v3571_v22 = vadd.f32 %v7283_v11, %v7279_v60 }
 0x592   :  { %v2975_v8 = vpop.f32.mrf.mxu0 }
 0x593   :  { %3296 = vst [vmem:[#allocation2 + $0x80] sm:$0xff] %v2972_v50  ;;  %v2976_v15 = vadd.f32 %v2975_v8, %v2869_v21  ;;  %v3276_v14 = vpop.f32.mrf.mxu1 }
 0x594   :  { %v2977_v37 = vpop.f32.mrf.mxu0 }
 0x595   :  { %3298 = vst [vmem:[#allocation2 + $0x90] sm:$0xff] %v2976_v15  ;;  %v2978_v40 = vadd.f32 %v2977_v37, %v2871_v41  ;;  %v3691_v54 = vpop.f32.mrf.mxu1 }
 0x597   :  { %3299 = vst [vmem:[#allocation2 + $0x98] sm:$0xff] %v2978_v40 }
 0x59a   :  { %v3504_v53 = vpop.f32.mrf.mxu0 }
 0x59c   :  { %v3505_v4 = vpop.f32.mrf.mxu0 }
 0x59d   :  { %v3506_v32 = vadd.f32 %v3505_v4, %v3504_v53 }
 0x59e   :  { %v3507_v16 = vpop.f32.mrf.mxu0 }
 0x59f   :  { %v3047_v2 = vadd.f32 %v3506_v32, %v2634_v46 }
 0x5a0   :  { %v3508_v56 = vpop.f32.mrf.mxu0 }
 0x5a1   :  { %v3509_v12 = vadd.f32 %v3508_v56, %v3507_v16  ;;  %v3147_v31 = vadd.f32 %v3559_v5, %v3047_v2 }
 0x5a2   :  { %v3510_v58 = vpop.f32.mrf.mxu0 }
 0x5a3   :  { %v3052_v28 = vadd.f32 %v3509_v12, %v2634_v46 }
 0x5a4   :  { %v3511_v36 = vpop.f32.mrf.mxu0 }
 0x5a5   :  { %v3512_v43 = vadd.f32 %v3511_v36, %v3510_v58  ;;  %v3152_v49 = vadd.f32 %v3562_v1, %v3052_v28 }
 0x5a6   :  { %v3513_v20 = vpop.f32.mrf.mxu0 }
 0x5a7   :  { %v3057_v45 = vadd.f32 %v3512_v43, %v2634_v46 }
 0x5a8   :  { %v3514_v10 = vpop.f32.mrf.mxu0 }
 0x5a9   :  { %v3515_v61 = vadd.f32 %v3514_v10, %v3513_v20  ;;  %v3157_v57 = vadd.f32 %v3565_v44, %v3057_v45 }
 0x5aa   :  { %v3516_v24 = vpop.f32.mrf.mxu0 }
 0x5ab   :  { %v3062_v51 = vadd.f32 %v3515_v61, %v2634_v46 }
 0x5ac   :  { %v3517_v33 = vpop.f32.mrf.mxu0 }
 0x5ad   :  { %v3518_v52 = vadd.f32 %v3517_v33, %v3516_v24 }
 0x5ae   :  { %v3519_v38 = vpop.f32.mrf.mxu0 }
 0x5af   :  { %v3067_v50 = vadd.f32 %v3518_v52, %v2634_v46 }
 0x5b0   :  { %v3520_v62 = vpop.f32.mrf.mxu0 }
 0x5b1   :  { %v3521_v29 = vadd.f32 %v3520_v62, %v3519_v38 }
 0x5b2   :  { %v3522_v26 = vpop.f32.mrf.mxu0 }
 0x5b3   :  { %v3072_v55 = vadd.f32 %v3521_v29, %v2634_v46 }
 0x5b4   :  { %v3523_v30 = vpop.f32.mrf.mxu0 }
 0x5b5   :  { %v3172_v13 = vadd.f32 %v3574_v25, %v3072_v55  ;;  %v3524_v9 = vadd.f32 %v3523_v30, %v3522_v26 }
 0x5b6   :  { %v3246_v23 = vpop.f32.mrf.mxu0 }
 0x5b7   :  { %v3272_v27 = vadd.f32 %v3271_v0, %v3172_v13  ;;  %v3077_v59 = vadd.f32 %v3524_v9, %v2634_v46  ;;  %v3247_v18 = vadd.f32 %v3246_v23, %v3147_v31  ;;  %v3568_v0 = vadd.f32 %v7276_v7, %v7273_v19 }
 0x5b8   :  { %v3673_v6 = vpop.f32.mrf.mxu0 }
 0x5b9   :  { %3297 = vst [vmem:[#allocation2 + $0x88] sm:$0xff] %v3272_v27  ;;  %v3177_v35 = vadd.f32 %v3577_v48, %v3077_v59  ;;  %3282 = vst [vmem:[#allocation2 + $0x10] sm:$0xff] %v3247_v18  ;;  %v3162_v8 = vadd.f32 %v3568_v0, %v3062_v51 }
 0x5ba   :  { %v3251_v42 = vpop.f32.mrf.mxu0 }
 0x5bb   :  { %v3277_v63 = vadd.f32 %v3276_v14, %v3177_v35  ;;  %v3252_v34 = vadd.f32 %v3251_v42, %v3152_v49  ;;  %v3167_v14 = vadd.f32 %v3571_v22, %v3067_v50 }
 0x5bc   :  { %v3676_v39 = vpop.f32.mrf.mxu0 }
 0x5bd   :  { %3300 = vst [vmem:[#allocation2 + $0xa0] sm:$0xff] %v3277_v63  ;;  %3285 = vst [vmem:[#allocation2 + $0x28] sm:$0xff] %v3252_v34 }
 0x5be   :  { %v3256_v3 = vpop.f32.mrf.mxu0 }
 0x5bf   :  { %v3257_v17 = vadd.f32 %v3256_v3, %v3157_v57 }
 0x5c0   :  { %v3679_v21 = vpop.f32.mrf.mxu0 }
 0x5c1   :  { %3288 = vst [vmem:[#allocation2 + $0x40] sm:$0xff] %v3257_v17 }
 0x5c2   :  { %v3261_v41 = vpop.f32.mrf.mxu0 }
 0x5c3   :  { %v3262_v47 = vadd.f32 %v3261_v41, %v3162_v8 }
 0x5c4   :  { %v3682_v15 = vpop.f32.mrf.mxu0 }
 0x5c5   :  { %3291 = vst [vmem:[#allocation2 + $0x58] sm:$0xff] %v3262_v47 }
 0x5c6   :  { %v3266_v37 = vpop.f32.mrf.mxu0 }
 0x5c7   :  { %v3267_v40 = vadd.f32 %v3266_v37, %v3167_v14 }
 0x5c8   :  { %v3685_v54 = vpop.f32.mrf.mxu0 }
 0x5c9   :  { %3294 = vst [vmem:[#allocation2 + $0x70] sm:$0xff] %v3267_v40 }
 0x5ca   :  { %3753 = shalt.err (!%p3750_p9)
}
 0x5cb   :  { %s3772_s28 = smov 384   ;;  %s3773_s29 = smov 24  }
 0x5cc   :  { %3326 = dma.vmem_to_hbm [thread:$0]  %s3321_s27, 2688, %s7338_s13, [#allocation3], %s3772_s28, %s3772_s28, %s3773_s29  }
 0x5cd   :  { %3762 = dma.done.wait [#allocation3], 2688  }
 0x5ce   :  { %3763 = vsyncadd [#allocation3], 4294964608 }
 0x5cf   :  { %3764 = dma.done.wait [#allocation5], 1792  }
 0x5d0   :  { %3765 = vsyncadd [#allocation5], 4294965504 }
 0x5d1   :  { %3345 = vsyncpa [#allocation3], 1 }
 0x5d2   :  { %3346 = vsyncpa [#allocation5], 1 }

</bundles_post_ra>
